<compile_context>
chip_gen: v6e
topology: v6e:2x2x1
jax: 0.10.0
libtpu: 0.0.40
codegen_flags: <defaults>
</compile_context>

<pallas_src>
import functools

import jax
import jax.numpy as jnp
from jax.experimental import pallas as pl
from jax.experimental.pallas import tpu as pltpu


# ----------------------------------------------------------------------------
# Matmul helpers: bf16 operands on the MXU, f32 accumulation.
# ----------------------------------------------------------------------------
def _mm(a, b):
    return jnp.dot(a.astype(jnp.bfloat16), b.astype(jnp.bfloat16),
                   preferred_element_type=jnp.float32)


def _mm_nt(a, b):
    # a @ b.T without materializing the transpose (MXU dimension numbers).
    return jax.lax.dot_general(
        a.astype(jnp.bfloat16), b.astype(jnp.bfloat16),
        dimension_numbers=(((1,), (1,)), ((), ())),
        preferred_element_type=jnp.float32)


def _layer_norm(x, g, b):
    m = jnp.mean(x, axis=-1, keepdims=True)
    v = jnp.mean((x - m) ** 2, axis=-1, keepdims=True)
    return (x - m) * jax.lax.rsqrt(v + 1e-5) * g + b


# ----------------------------------------------------------------------------
# Single fused kernel: the whole VAE-Transformer forward
# ----------------------------------------------------------------------------
def _vae_fused_kernel(*refs, L, Nb, H, nhead, num_layers):
    M = Nb * L
    hd = H // nhead
    scale = 1.0 / float(hd) ** 0.5

    it = iter(refs)
    x_ref, eps_ref, emb_w, emb_b = (next(it) for _ in range(4))
    enc = tuple(next(it) for _ in range(12))
    dec = tuple(next(it) for _ in range(12))
    (mu_w, mu_b, var_w, var_b, l2h_w, l2h_b, outp_w, outp_b) = (
        next(it) for _ in range(8))
    recon_ref, mu_ref, lv_ref = (next(it) for _ in range(3))

    # Additive block-diagonal mask, generated in-kernel with iota + compare
    # (a few VPU ops) instead of an O(M^2) f32 HBM input.  Rows are
    # batch-major (row = b*L + pos); a row attends only within its batch.
    col = jax.lax.broadcasted_iota(jnp.int32, (L, M), 1)
    mask = jnp.concatenate(
        [jnp.where((col >= b * L) & (col < (b + 1) * L), 0.0, -1e30)
         for b in range(Nb)], axis=0).astype(jnp.float32)          # (M, M)

    def encoder_layer(h2, p, l):
        (in_w, in_b, out_w, out_b, g1, b1,
         f1w, f1b, f2w, f2b, g2, b2) = p
        # Fused QKV projection: one full-width (M,H)x(H,3H) MXU pass.
        qkv = _mm(h2, in_w[l]) + in_b[l]                           # (M, 3H) f32
        heads = []
        for hh in range(nhead):
            q = qkv[:, hh * hd:(hh + 1) * hd]                      # (M, hd)
            k = qkv[:, H + hh * hd:H + (hh + 1) * hd]
            v = qkv[:, 2 * H + hh * hd:2 * H + (hh + 1) * hd]
            s = _mm_nt(q, k) * scale + mask                        # (M, M) f32
            m_row = jnp.max(s, axis=-1, keepdims=True)             # f32 softmax
            e = jnp.exp(s - m_row)
            den = jnp.sum(e, axis=-1, keepdims=True)
            prob = e * pl.reciprocal(den, approx=True)             # EUP slot
            heads.append(_mm(prob, v))                             # (M, hd)
        # Head merge + out-proj fused: one (M,H)x(H,H) matmul on the MXU.
        attn = _mm(jnp.concatenate(heads, axis=-1), out_w[l]) + out_b[l]
        h2 = _layer_norm(h2 + attn, g1[l], b1[l])                  # post-norm
        ff = jnp.maximum(_mm(h2, f1w[l]) + f1b[l], 0.0)            # ReLU FFN
        ff = _mm(ff, f2w[l]) + f2b[l]
        return _layer_norm(h2 + ff, g2[l], b2[l])

    # ---------------- encode ----------------
    h = _mm(x_ref[...], emb_w[...]) + emb_b[...]                   # (M, H)
    for l in range(num_layers):
        h = encoder_layer(h, enc, l)

    # torch.mean(x, dim=1): average over the batch axis of batch-major rows.
    acc = h[0:L, :]
    for b in range(1, Nb):
        acc = acc + h[b * L:(b + 1) * L, :]
    pooled = acc * (1.0 / Nb)                                      # (L, H)

    mu = _mm(pooled, mu_w[...]) + mu_b[...]                        # (L, latent)
    lv = _mm(pooled, var_w[...]) + var_b[...]
    z = mu + eps_ref[...] * jnp.exp(0.5 * lv)                      # reparameterize

    # ---------------- decode ----------------
    zh = _mm(z, l2h_w[...]) + l2h_b[...]                           # (L, H)
    hdec = jnp.concatenate([zh] * Nb, axis=0)                      # repeat -> (M, H)
    for l in range(num_layers):
        hdec = encoder_layer(hdec, dec, l)

    recon_ref[...] = _mm(hdec, outp_w[...]) + outp_b[...]          # (M, Din)
    mu_ref[...] = mu
    lv_ref[...] = lv


# ----------------------------------------------------------------------------
# One-time parameter packing: stack per-layer slabs, cast matmul weights to
# bf16, reshape biases.  Hoisted out of the per-forward path.
# ----------------------------------------------------------------------------
def _pack_stack(layers):
    w16 = lambda n: jnp.stack([p[n] for p in layers]).astype(jnp.bfloat16)
    b32 = lambda n: jnp.stack([p[n][None, :] for p in layers]).astype(jnp.float32)
    return [w16("in_w"), b32("in_b"), w16("out_w"), b32("out_b"),
            b32("ln1_g"), b32("ln1_b"),
            w16("ff1_w"), b32("ff1_b"), w16("ff2_w"), b32("ff2_b"),
            b32("ln2_g"), b32("ln2_b")]


def pack_params(params):
    H = params["emb_w"].shape[1]
    latent = params["mu_w"].shape[1]
    Din = params["out_w"].shape[1]
    return dict(
        emb_w=params["emb_w"].astype(jnp.bfloat16),
        emb_b=params["emb_b"].reshape(1, H).astype(jnp.float32),
        enc=_pack_stack(params["enc_layers"]),
        dec=_pack_stack(params["dec_layers"]),
        mu_w=params["mu_w"].astype(jnp.bfloat16),
        mu_b=params["mu_b"].reshape(1, latent).astype(jnp.float32),
        var_w=params["var_w"].astype(jnp.bfloat16),
        var_b=params["var_b"].reshape(1, latent).astype(jnp.float32),
        l2h_w=params["l2h_w"].astype(jnp.bfloat16),
        l2h_b=params["l2h_b"].reshape(1, H).astype(jnp.float32),
        out_w=params["out_w"].astype(jnp.bfloat16),
        out_b=params["out_b"].reshape(1, Din).astype(jnp.float32),
    )


# ----------------------------------------------------------------------------
# Forward wrapper (one pallas_call; only cheap layout plumbing outside)
# ----------------------------------------------------------------------------
def vae_transformer_forward(packed, x, eps, nhead):
    L, Nb, Din = x.shape                       # (d0, d1, input_dim)
    H = packed["emb_w"].shape[1]
    latent = packed["mu_w"].shape[1]
    num_layers = packed["enc"][0].shape[0]
    M = Nb * L

    # Batch-major flattening: row = b * L + position (one tiny XLA transpose).
    x2d = jnp.transpose(x, (1, 0, 2)).reshape(M, Din).astype(jnp.float32)

    inputs = [
        x2d, eps.astype(jnp.float32),
        packed["emb_w"], packed["emb_b"],
        *packed["enc"], *packed["dec"],
        packed["mu_w"], packed["mu_b"], packed["var_w"], packed["var_b"],
        packed["l2h_w"], packed["l2h_b"], packed["out_w"], packed["out_b"],
    ]

    kern = functools.partial(
        _vae_fused_kernel, L=L, Nb=Nb, H=H, nhead=nhead, num_layers=num_layers)

    out_shape = (
        jax.ShapeDtypeStruct((M, Din), jnp.float32),     # recon (batch-major rows)
        jax.ShapeDtypeStruct((L, latent), jnp.float32),  # mu
        jax.ShapeDtypeStruct((L, latent), jnp.float32),  # log_var
    )

    # No grid: every operand is whole-array resident in VMEM, single-buffered
    # (nothing to pipeline).  For larger models, add a grid axis over layers
    # (streaming the stacked weight slabs) and over batch blocks for v7x's
    # second TensorCore.
    vmem = pltpu.MemorySpace.VMEM
    recon2d, mu, log_var = pl.pallas_call(
        kern,
        out_shape=out_shape,
        in_specs=[pl.BlockSpec(memory_space=vmem) for _ in inputs],
        out_specs=tuple(pl.BlockSpec(memory_space=vmem) for _ in out_shape),
        compiler_params=pltpu.CompilerParams(
            vmem_limit_bytes=32 * 1024 * 1024),
    )(*inputs)

    recon = jnp.transpose(recon2d.reshape(Nb, L, Din), (1, 0, 2))  # (d0, d1, Din)
    return recon, mu, log_var


# ----------------------------------------------------------------------------
# Deterministic parameter initialization (shapes as in VAETransformer.__init__)
# ----------------------------------------------------------------------------
def init_params(key, input_dim, hidden_dim, latent_dim, num_layers, nhead):
    ffn = hidden_dim * 4
    n_keys = 6 + 8 * num_layers
    keys = iter(jax.random.split(key, n_keys))

    def dense(shape):
        return 0.02 * jax.random.normal(next(keys), shape, jnp.float32)

    def layer_params():
        return dict(
            in_w=dense((hidden_dim, 3 * hidden_dim)),
            in_b=jnp.zeros((3 * hidden_dim,), jnp.float32),
            out_w=dense((hidden_dim, hidden_dim)),
            out_b=jnp.zeros((hidden_dim,), jnp.float32),
            ln1_g=jnp.ones((hidden_dim,), jnp.float32),
            ln1_b=jnp.zeros((hidden_dim,), jnp.float32),
            ff1_w=dense((hidden_dim, ffn)),
            ff1_b=jnp.zeros((ffn,), jnp.float32),
            ff2_w=dense((ffn, hidden_dim)),
            ff2_b=jnp.zeros((hidden_dim,), jnp.float32),
            ln2_g=jnp.ones((hidden_dim,), jnp.float32),
            ln2_b=jnp.zeros((hidden_dim,), jnp.float32),
        )

    return dict(
        emb_w=dense((input_dim, hidden_dim)),
        emb_b=jnp.zeros((hidden_dim,), jnp.float32),
        enc_layers=[layer_params() for _ in range(num_layers)],
        mu_w=dense((hidden_dim, latent_dim)),
        mu_b=jnp.zeros((latent_dim,), jnp.float32),
        var_w=dense((hidden_dim, latent_dim)),
        var_b=jnp.zeros((latent_dim,), jnp.float32),
        l2h_w=dense((latent_dim, hidden_dim)),
        l2h_b=jnp.zeros((hidden_dim,), jnp.float32),
        dec_layers=[layer_params() for _ in range(num_layers)],
        out_w=dense((hidden_dim, input_dim)),
        out_b=jnp.zeros((input_dim,), jnp.float32),
    )


if __name__ == "__main__":
    # small, forward-consistent shapes
    INPUT_DIM = 32
    HIDDEN_DIM = 64
    LATENT_DIM = 32
    NUM_LAYERS = 2
    NHEAD = 4
    D0, D1 = 4, 8  # x: (d0, d1, input_dim); decode seq_length = d1

    key = jax.random.PRNGKey(0)
    kx, keps, kp = jax.random.split(key, 3)

    x = jax.random.normal(kx, (D0, D1, INPUT_DIM), jnp.float32)
    eps = jax.random.normal(keps, (D0, LATENT_DIM), jnp.float32)  # randn_like(std)
    params = init_params(kp, INPUT_DIM, HIDDEN_DIM, LATENT_DIM, NUM_LAYERS, NHEAD)

    # One-time weight packing (stack layers, bf16 matmul weights) — hoisted
    # out of the per-forward path.
    packed = jax.tree_util.tree_map(lambda a: a, pack_params(params))

    fwd = jax.jit(functools.partial(vae_transformer_forward, nhead=NHEAD))
    recon, mu, log_var = fwd(packed, x, eps)
    jax.block_until_ready((recon, mu, log_var))

    assert recon.shape == (D0, D1, INPUT_DIM)
    assert mu.shape == (D0, LATENT_DIM) and log_var.shape == (D0, LATENT_DIM)
    assert bool(jnp.all(jnp.isfinite(recon)))
    assert bool(jnp.all(jnp.isfinite(mu))) and bool(jnp.all(jnp.isfinite(log_var)))
    print("KERNEL_OK")
</pallas_src>

<mosaic_0001>
module attributes {stable_mosaic.version = 11 : i64} {
  func.func @_vae_fused_kernel(%arg0: memref<32x32xf32, #tpu.memory_space<vmem>>, %arg1: memref<4x32xf32, #tpu.memory_space<vmem>>, %arg2: memref<32x64xbf16, #tpu.memory_space<vmem>>, %arg3: memref<1x64xf32, #tpu.memory_space<vmem>>, %arg4: memref<2x64x192xbf16, #tpu.memory_space<vmem>>, %arg5: memref<2x1x192xf32, #tpu.memory_space<vmem>>, %arg6: memref<2x64x64xbf16, #tpu.memory_space<vmem>>, %arg7: memref<2x1x64xf32, #tpu.memory_space<vmem>>, %arg8: memref<2x1x64xf32, #tpu.memory_space<vmem>>, %arg9: memref<2x1x64xf32, #tpu.memory_space<vmem>>, %arg10: memref<2x64x256xbf16, #tpu.memory_space<vmem>>, %arg11: memref<2x1x256xf32, #tpu.memory_space<vmem>>, %arg12: memref<2x256x64xbf16, #tpu.memory_space<vmem>>, %arg13: memref<2x1x64xf32, #tpu.memory_space<vmem>>, %arg14: memref<2x1x64xf32, #tpu.memory_space<vmem>>, %arg15: memref<2x1x64xf32, #tpu.memory_space<vmem>>, %arg16: memref<2x64x192xbf16, #tpu.memory_space<vmem>>, %arg17: memref<2x1x192xf32, #tpu.memory_space<vmem>>, %arg18: memref<2x64x64xbf16, #tpu.memory_space<vmem>>, %arg19: memref<2x1x64xf32, #tpu.memory_space<vmem>>, %arg20: memref<2x1x64xf32, #tpu.memory_space<vmem>>, %arg21: memref<2x1x64xf32, #tpu.memory_space<vmem>>, %arg22: memref<2x64x256xbf16, #tpu.memory_space<vmem>>, %arg23: memref<2x1x256xf32, #tpu.memory_space<vmem>>, %arg24: memref<2x256x64xbf16, #tpu.memory_space<vmem>>, %arg25: memref<2x1x64xf32, #tpu.memory_space<vmem>>, %arg26: memref<2x1x64xf32, #tpu.memory_space<vmem>>, %arg27: memref<2x1x64xf32, #tpu.memory_space<vmem>>, %arg28: memref<64x32xbf16, #tpu.memory_space<vmem>>, %arg29: memref<1x32xf32, #tpu.memory_space<vmem>>, %arg30: memref<64x32xbf16, #tpu.memory_space<vmem>>, %arg31: memref<1x32xf32, #tpu.memory_space<vmem>>, %arg32: memref<32x64xbf16, #tpu.memory_space<vmem>>, %arg33: memref<1x64xf32, #tpu.memory_space<vmem>>, %arg34: memref<64x32xbf16, #tpu.memory_space<vmem>>, %arg35: memref<1x32xf32, #tpu.memory_space<vmem>>, %arg36: memref<32x32xf32, #tpu.memory_space<vmem>>, %arg37: memref<4x32xf32, #tpu.memory_space<vmem>>, %arg38: memref<4x32xf32, #tpu.memory_space<vmem>>) attributes {dimension_semantics = [], scalar_prefetch = 0 : i64, scratch_operands = 0 : i64, tpu.core_type = #tpu.core_type<tc>} {
    %0 = tpu.iota {dimensions = array<i32: 1>} : vector<4x32xi32>
    %c0_i32 = arith.constant 0 : i32
    %1 = vector.broadcast %c0_i32 : i32 to vector<4x32xi32>
    %2 = arith.cmpi sge, %0, %1 : vector<4x32xi32>
    %c4_i32 = arith.constant 4 : i32
    %3 = vector.broadcast %c4_i32 : i32 to vector<4x32xi32>
    %4 = arith.cmpi slt, %0, %3 : vector<4x32xi32>
    %5 = arith.andi %2, %4 : vector<4x32xi1>
    %cst = arith.constant 0.000000e+00 : f32
    %cst_0 = arith.constant -1.000000e+30 : f32
    %6 = vector.broadcast %cst : f32 to vector<4x32xf32>
    %7 = vector.broadcast %cst_0 : f32 to vector<4x32xf32>
    %8 = arith.select %5, %6, %7 : vector<4x32xi1>, vector<4x32xf32>
    %c4_i32_1 = arith.constant 4 : i32
    %9 = vector.broadcast %c4_i32_1 : i32 to vector<4x32xi32>
    %10 = arith.cmpi sge, %0, %9 : vector<4x32xi32>
    %c8_i32 = arith.constant 8 : i32
    %11 = vector.broadcast %c8_i32 : i32 to vector<4x32xi32>
    %12 = arith.cmpi slt, %0, %11 : vector<4x32xi32>
    %13 = arith.andi %10, %12 : vector<4x32xi1>
    %cst_2 = arith.constant 0.000000e+00 : f32
    %cst_3 = arith.constant -1.000000e+30 : f32
    %14 = vector.broadcast %cst_2 : f32 to vector<4x32xf32>
    %15 = vector.broadcast %cst_3 : f32 to vector<4x32xf32>
    %16 = arith.select %13, %14, %15 : vector<4x32xi1>, vector<4x32xf32>
    %c8_i32_4 = arith.constant 8 : i32
    %17 = vector.broadcast %c8_i32_4 : i32 to vector<4x32xi32>
    %18 = arith.cmpi sge, %0, %17 : vector<4x32xi32>
    %c12_i32 = arith.constant 12 : i32
    %19 = vector.broadcast %c12_i32 : i32 to vector<4x32xi32>
    %20 = arith.cmpi slt, %0, %19 : vector<4x32xi32>
    %21 = arith.andi %18, %20 : vector<4x32xi1>
    %cst_5 = arith.constant 0.000000e+00 : f32
    %cst_6 = arith.constant -1.000000e+30 : f32
    %22 = vector.broadcast %cst_5 : f32 to vector<4x32xf32>
    %23 = vector.broadcast %cst_6 : f32 to vector<4x32xf32>
    %24 = arith.select %21, %22, %23 : vector<4x32xi1>, vector<4x32xf32>
    %c12_i32_7 = arith.constant 12 : i32
    %25 = vector.broadcast %c12_i32_7 : i32 to vector<4x32xi32>
    %26 = arith.cmpi sge, %0, %25 : vector<4x32xi32>
    %c16_i32 = arith.constant 16 : i32
    %27 = vector.broadcast %c16_i32 : i32 to vector<4x32xi32>
    %28 = arith.cmpi slt, %0, %27 : vector<4x32xi32>
    %29 = arith.andi %26, %28 : vector<4x32xi1>
    %cst_8 = arith.constant 0.000000e+00 : f32
    %cst_9 = arith.constant -1.000000e+30 : f32
    %30 = vector.broadcast %cst_8 : f32 to vector<4x32xf32>
    %31 = vector.broadcast %cst_9 : f32 to vector<4x32xf32>
    %32 = arith.select %29, %30, %31 : vector<4x32xi1>, vector<4x32xf32>
    %c16_i32_10 = arith.constant 16 : i32
    %33 = vector.broadcast %c16_i32_10 : i32 to vector<4x32xi32>
    %34 = arith.cmpi sge, %0, %33 : vector<4x32xi32>
    %c20_i32 = arith.constant 20 : i32
    %35 = vector.broadcast %c20_i32 : i32 to vector<4x32xi32>
    %36 = arith.cmpi slt, %0, %35 : vector<4x32xi32>
    %37 = arith.andi %34, %36 : vector<4x32xi1>
    %cst_11 = arith.constant 0.000000e+00 : f32
    %cst_12 = arith.constant -1.000000e+30 : f32
    %38 = vector.broadcast %cst_11 : f32 to vector<4x32xf32>
    %39 = vector.broadcast %cst_12 : f32 to vector<4x32xf32>
    %40 = arith.select %37, %38, %39 : vector<4x32xi1>, vector<4x32xf32>
    %c20_i32_13 = arith.constant 20 : i32
    %41 = vector.broadcast %c20_i32_13 : i32 to vector<4x32xi32>
    %42 = arith.cmpi sge, %0, %41 : vector<4x32xi32>
    %c24_i32 = arith.constant 24 : i32
    %43 = vector.broadcast %c24_i32 : i32 to vector<4x32xi32>
    %44 = arith.cmpi slt, %0, %43 : vector<4x32xi32>
    %45 = arith.andi %42, %44 : vector<4x32xi1>
    %cst_14 = arith.constant 0.000000e+00 : f32
    %cst_15 = arith.constant -1.000000e+30 : f32
    %46 = vector.broadcast %cst_14 : f32 to vector<4x32xf32>
    %47 = vector.broadcast %cst_15 : f32 to vector<4x32xf32>
    %48 = arith.select %45, %46, %47 : vector<4x32xi1>, vector<4x32xf32>
    %c24_i32_16 = arith.constant 24 : i32
    %49 = vector.broadcast %c24_i32_16 : i32 to vector<4x32xi32>
    %50 = arith.cmpi sge, %0, %49 : vector<4x32xi32>
    %c28_i32 = arith.constant 28 : i32
    %51 = vector.broadcast %c28_i32 : i32 to vector<4x32xi32>
    %52 = arith.cmpi slt, %0, %51 : vector<4x32xi32>
    %53 = arith.andi %50, %52 : vector<4x32xi1>
    %cst_17 = arith.constant 0.000000e+00 : f32
    %cst_18 = arith.constant -1.000000e+30 : f32
    %54 = vector.broadcast %cst_17 : f32 to vector<4x32xf32>
    %55 = vector.broadcast %cst_18 : f32 to vector<4x32xf32>
    %56 = arith.select %53, %54, %55 : vector<4x32xi1>, vector<4x32xf32>
    %c28_i32_19 = arith.constant 28 : i32
    %57 = vector.broadcast %c28_i32_19 : i32 to vector<4x32xi32>
    %58 = arith.cmpi sge, %0, %57 : vector<4x32xi32>
    %c32_i32 = arith.constant 32 : i32
    %59 = vector.broadcast %c32_i32 : i32 to vector<4x32xi32>
    %60 = arith.cmpi slt, %0, %59 : vector<4x32xi32>
    %61 = arith.andi %58, %60 : vector<4x32xi1>
    %cst_20 = arith.constant 0.000000e+00 : f32
    %cst_21 = arith.constant -1.000000e+30 : f32
    %62 = vector.broadcast %cst_20 : f32 to vector<4x32xf32>
    %63 = vector.broadcast %cst_21 : f32 to vector<4x32xf32>
    %64 = arith.select %61, %62, %63 : vector<4x32xi1>, vector<4x32xf32>
    %65 = tpu.concatenate %8, %16, %24, %32, %40, %48, %56, %64 in 0 : vector<4x32xf32>, vector<4x32xf32>, vector<4x32xf32>, vector<4x32xf32>, vector<4x32xf32>, vector<4x32xf32>, vector<4x32xf32>, vector<4x32xf32> -> vector<32x32xf32>
    %c0 = arith.constant 0 : index
    %c0_22 = arith.constant 0 : index
    %66 = vector.load %arg0[%c0, %c0_22] : memref<32x32xf32, #tpu.memory_space<vmem>>, vector<32x32xf32>
    %c0_23 = arith.constant 0 : index
    %c0_24 = arith.constant 0 : index
    %67 = vector.load %arg2[%c0_23, %c0_24] : memref<32x64xbf16, #tpu.memory_space<vmem>>, vector<32x64xbf16>
    %68 = arith.truncf %66 : vector<32x32xf32> to vector<32x32xbf16>
    %cst_25 = arith.constant dense<0.000000e+00> : vector<32x64xf32>
    %69 = tpu.matmul %68, %67, %cst_25 {dimension_numbers = #tpu.dot_dimension_numbers<[1], [0], [0], [1], [0, 0, 1, 1], [], []>} : vector<32x32xbf16>, vector<32x64xbf16>, vector<32x64xf32> -> vector<32x64xf32>
    %c0_26 = arith.constant 0 : index
    %c0_27 = arith.constant 0 : index
    %70 = vector.load %arg3[%c0_26, %c0_27] : memref<1x64xf32, #tpu.memory_space<vmem>>, vector<1x64xf32>
    %71 = vector.broadcast %70 : vector<1x64xf32> to vector<32x64xf32>
    %72 = arith.addf %69, %71 : vector<32x64xf32>
    %c0_28 = arith.constant 0 : index
    %c0_29 = arith.constant 0 : index
    %c0_30 = arith.constant 0 : index
    %73 = vector.load %arg4[%c0_28, %c0_29, %c0_30] : memref<2x64x192xbf16, #tpu.memory_space<vmem>>, vector<1x64x192xbf16>
    %74 = vector.shape_cast %73 : vector<1x64x192xbf16> to vector<64x192xbf16>
    %75 = arith.truncf %72 : vector<32x64xf32> to vector<32x64xbf16>
    %cst_31 = arith.constant dense<0.000000e+00> : vector<32x192xf32>
    %76 = tpu.matmul %75, %74, %cst_31 {dimension_numbers = #tpu.dot_dimension_numbers<[1], [0], [0], [1], [0, 0, 1, 1], [], []>} : vector<32x64xbf16>, vector<64x192xbf16>, vector<32x192xf32> -> vector<32x192xf32>
    %c0_32 = arith.constant 0 : index
    %c0_33 = arith.constant 0 : index
    %c0_34 = arith.constant 0 : index
    %77 = vector.load %arg5[%c0_32, %c0_33, %c0_34] : memref<2x1x192xf32, #tpu.memory_space<vmem>>, vector<1x1x192xf32>
    %78 = vector.shape_cast %77 : vector<1x1x192xf32> to vector<1x192xf32>
    %79 = vector.broadcast %78 : vector<1x192xf32> to vector<32x192xf32>
    %80 = arith.addf %76, %79 : vector<32x192xf32>
    %81 = vector.extract_strided_slice %80 {offsets = [0, 0], sizes = [32, 16], strides = [1, 1]} : vector<32x192xf32> to vector<32x16xf32>
    %82 = vector.extract_strided_slice %80 {offsets = [0, 64], sizes = [32, 16], strides = [1, 1]} : vector<32x192xf32> to vector<32x16xf32>
    %83 = vector.extract_strided_slice %80 {offsets = [0, 128], sizes = [32, 16], strides = [1, 1]} : vector<32x192xf32> to vector<32x16xf32>
    %84 = arith.truncf %81 : vector<32x16xf32> to vector<32x16xbf16>
    %85 = arith.truncf %82 : vector<32x16xf32> to vector<32x16xbf16>
    %cst_35 = arith.constant dense<0.000000e+00> : vector<32x32xf32>
    %86 = tpu.matmul %84, %85, %cst_35 {dimension_numbers = #tpu.dot_dimension_numbers<[1], [1], [0], [0], [0, 0, 1, 0], [], []>} : vector<32x16xbf16>, vector<32x16xbf16>, vector<32x32xf32> -> vector<32x32xf32>
    %cst_36 = arith.constant 2.500000e-01 : f32
    %87 = vector.broadcast %cst_36 : f32 to vector<32x32xf32>
    %88 = arith.mulf %86, %87 : vector<32x32xf32>
    %89 = arith.addf %88, %65 : vector<32x32xf32>
    %cst_37 = arith.constant dense<0xFF800000> : vector<32xf32>
    %90 = vector.multi_reduction <maximumf>, %89, %cst_37 [1] : vector<32x32xf32> to vector<32xf32>
    %91 = vector.shape_cast %90 : vector<32xf32> to vector<32x1xf32>
    %92 = vector.broadcast %91 : vector<32x1xf32> to vector<32x32xf32>
    %93 = arith.subf %89, %92 : vector<32x32xf32>
    %94 = math.exp %93 : vector<32x32xf32>
    %cst_38 = arith.constant dense<0.000000e+00> : vector<32xf32>
    %95 = vector.multi_reduction <add>, %94, %cst_38 [1] : vector<32x32xf32> to vector<32xf32>
    %96 = vector.shape_cast %95 : vector<32xf32> to vector<32x1xf32>
    %97 = tpu.reciprocal %96 {approx = true} : vector<32x1xf32> -> vector<32x1xf32>
    %98 = vector.broadcast %97 : vector<32x1xf32> to vector<32x32xf32>
    %99 = arith.mulf %94, %98 : vector<32x32xf32>
    %100 = arith.truncf %99 : vector<32x32xf32> to vector<32x32xbf16>
    %101 = arith.truncf %83 : vector<32x16xf32> to vector<32x16xbf16>
    %cst_39 = arith.constant dense<0.000000e+00> : vector<32x16xf32>
    %102 = tpu.matmul %100, %101, %cst_39 {dimension_numbers = #tpu.dot_dimension_numbers<[1], [0], [0], [1], [0, 0, 1, 1], [], []>} : vector<32x32xbf16>, vector<32x16xbf16>, vector<32x16xf32> -> vector<32x16xf32>
    %103 = vector.extract_strided_slice %80 {offsets = [0, 16], sizes = [32, 16], strides = [1, 1]} : vector<32x192xf32> to vector<32x16xf32>
    %104 = vector.extract_strided_slice %80 {offsets = [0, 80], sizes = [32, 16], strides = [1, 1]} : vector<32x192xf32> to vector<32x16xf32>
    %105 = vector.extract_strided_slice %80 {offsets = [0, 144], sizes = [32, 16], strides = [1, 1]} : vector<32x192xf32> to vector<32x16xf32>
    %106 = arith.truncf %103 : vector<32x16xf32> to vector<32x16xbf16>
    %107 = arith.truncf %104 : vector<32x16xf32> to vector<32x16xbf16>
    %cst_40 = arith.constant dense<0.000000e+00> : vector<32x32xf32>
    %108 = tpu.matmul %106, %107, %cst_40 {dimension_numbers = #tpu.dot_dimension_numbers<[1], [1], [0], [0], [0, 0, 1, 0], [], []>} : vector<32x16xbf16>, vector<32x16xbf16>, vector<32x32xf32> -> vector<32x32xf32>
    %cst_41 = arith.constant 2.500000e-01 : f32
    %109 = vector.broadcast %cst_41 : f32 to vector<32x32xf32>
    %110 = arith.mulf %108, %109 : vector<32x32xf32>
    %111 = arith.addf %110, %65 : vector<32x32xf32>
    %cst_42 = arith.constant dense<0xFF800000> : vector<32xf32>
    %112 = vector.multi_reduction <maximumf>, %111, %cst_42 [1] : vector<32x32xf32> to vector<32xf32>
    %113 = vector.shape_cast %112 : vector<32xf32> to vector<32x1xf32>
    %114 = vector.broadcast %113 : vector<32x1xf32> to vector<32x32xf32>
    %115 = arith.subf %111, %114 : vector<32x32xf32>
    %116 = math.exp %115 : vector<32x32xf32>
    %cst_43 = arith.constant dense<0.000000e+00> : vector<32xf32>
    %117 = vector.multi_reduction <add>, %116, %cst_43 [1] : vector<32x32xf32> to vector<32xf32>
    %118 = vector.shape_cast %117 : vector<32xf32> to vector<32x1xf32>
    %119 = tpu.reciprocal %118 {approx = true} : vector<32x1xf32> -> vector<32x1xf32>
    %120 = vector.broadcast %119 : vector<32x1xf32> to vector<32x32xf32>
    %121 = arith.mulf %116, %120 : vector<32x32xf32>
    %122 = arith.truncf %121 : vector<32x32xf32> to vector<32x32xbf16>
    %123 = arith.truncf %105 : vector<32x16xf32> to vector<32x16xbf16>
    %cst_44 = arith.constant dense<0.000000e+00> : vector<32x16xf32>
    %124 = tpu.matmul %122, %123, %cst_44 {dimension_numbers = #tpu.dot_dimension_numbers<[1], [0], [0], [1], [0, 0, 1, 1], [], []>} : vector<32x32xbf16>, vector<32x16xbf16>, vector<32x16xf32> -> vector<32x16xf32>
    %125 = vector.extract_strided_slice %80 {offsets = [0, 32], sizes = [32, 16], strides = [1, 1]} : vector<32x192xf32> to vector<32x16xf32>
    %126 = vector.extract_strided_slice %80 {offsets = [0, 96], sizes = [32, 16], strides = [1, 1]} : vector<32x192xf32> to vector<32x16xf32>
    %127 = vector.extract_strided_slice %80 {offsets = [0, 160], sizes = [32, 16], strides = [1, 1]} : vector<32x192xf32> to vector<32x16xf32>
    %128 = arith.truncf %125 : vector<32x16xf32> to vector<32x16xbf16>
    %129 = arith.truncf %126 : vector<32x16xf32> to vector<32x16xbf16>
    %cst_45 = arith.constant dense<0.000000e+00> : vector<32x32xf32>
    %130 = tpu.matmul %128, %129, %cst_45 {dimension_numbers = #tpu.dot_dimension_numbers<[1], [1], [0], [0], [0, 0, 1, 0], [], []>} : vector<32x16xbf16>, vector<32x16xbf16>, vector<32x32xf32> -> vector<32x32xf32>
    %cst_46 = arith.constant 2.500000e-01 : f32
    %131 = vector.broadcast %cst_46 : f32 to vector<32x32xf32>
    %132 = arith.mulf %130, %131 : vector<32x32xf32>
    %133 = arith.addf %132, %65 : vector<32x32xf32>
    %cst_47 = arith.constant dense<0xFF800000> : vector<32xf32>
    %134 = vector.multi_reduction <maximumf>, %133, %cst_47 [1] : vector<32x32xf32> to vector<32xf32>
    %135 = vector.shape_cast %134 : vector<32xf32> to vector<32x1xf32>
    %136 = vector.broadcast %135 : vector<32x1xf32> to vector<32x32xf32>
    %137 = arith.subf %133, %136 : vector<32x32xf32>
    %138 = math.exp %137 : vector<32x32xf32>
    %cst_48 = arith.constant dense<0.000000e+00> : vector<32xf32>
    %139 = vector.multi_reduction <add>, %138, %cst_48 [1] : vector<32x32xf32> to vector<32xf32>
    %140 = vector.shape_cast %139 : vector<32xf32> to vector<32x1xf32>
    %141 = tpu.reciprocal %140 {approx = true} : vector<32x1xf32> -> vector<32x1xf32>
    %142 = vector.broadcast %141 : vector<32x1xf32> to vector<32x32xf32>
    %143 = arith.mulf %138, %142 : vector<32x32xf32>
    %144 = arith.truncf %143 : vector<32x32xf32> to vector<32x32xbf16>
    %145 = arith.truncf %127 : vector<32x16xf32> to vector<32x16xbf16>
    %cst_49 = arith.constant dense<0.000000e+00> : vector<32x16xf32>
    %146 = tpu.matmul %144, %145, %cst_49 {dimension_numbers = #tpu.dot_dimension_numbers<[1], [0], [0], [1], [0, 0, 1, 1], [], []>} : vector<32x32xbf16>, vector<32x16xbf16>, vector<32x16xf32> -> vector<32x16xf32>
    %147 = vector.extract_strided_slice %80 {offsets = [0, 48], sizes = [32, 16], strides = [1, 1]} : vector<32x192xf32> to vector<32x16xf32>
    %148 = vector.extract_strided_slice %80 {offsets = [0, 112], sizes = [32, 16], strides = [1, 1]} : vector<32x192xf32> to vector<32x16xf32>
    %149 = vector.extract_strided_slice %80 {offsets = [0, 176], sizes = [32, 16], strides = [1, 1]} : vector<32x192xf32> to vector<32x16xf32>
    %150 = arith.truncf %147 : vector<32x16xf32> to vector<32x16xbf16>
    %151 = arith.truncf %148 : vector<32x16xf32> to vector<32x16xbf16>
    %cst_50 = arith.constant dense<0.000000e+00> : vector<32x32xf32>
    %152 = tpu.matmul %150, %151, %cst_50 {dimension_numbers = #tpu.dot_dimension_numbers<[1], [1], [0], [0], [0, 0, 1, 0], [], []>} : vector<32x16xbf16>, vector<32x16xbf16>, vector<32x32xf32> -> vector<32x32xf32>
    %cst_51 = arith.constant 2.500000e-01 : f32
    %153 = vector.broadcast %cst_51 : f32 to vector<32x32xf32>
    %154 = arith.mulf %152, %153 : vector<32x32xf32>
    %155 = arith.addf %154, %65 : vector<32x32xf32>
    %cst_52 = arith.constant dense<0xFF800000> : vector<32xf32>
    %156 = vector.multi_reduction <maximumf>, %155, %cst_52 [1] : vector<32x32xf32> to vector<32xf32>
    %157 = vector.shape_cast %156 : vector<32xf32> to vector<32x1xf32>
    %158 = vector.broadcast %157 : vector<32x1xf32> to vector<32x32xf32>
    %159 = arith.subf %155, %158 : vector<32x32xf32>
    %160 = math.exp %159 : vector<32x32xf32>
    %cst_53 = arith.constant dense<0.000000e+00> : vector<32xf32>
    %161 = vector.multi_reduction <add>, %160, %cst_53 [1] : vector<32x32xf32> to vector<32xf32>
    %162 = vector.shape_cast %161 : vector<32xf32> to vector<32x1xf32>
    %163 = tpu.reciprocal %162 {approx = true} : vector<32x1xf32> -> vector<32x1xf32>
    %164 = vector.broadcast %163 : vector<32x1xf32> to vector<32x32xf32>
    %165 = arith.mulf %160, %164 : vector<32x32xf32>
    %166 = arith.truncf %165 : vector<32x32xf32> to vector<32x32xbf16>
    %167 = arith.truncf %149 : vector<32x16xf32> to vector<32x16xbf16>
    %cst_54 = arith.constant dense<0.000000e+00> : vector<32x16xf32>
    %168 = tpu.matmul %166, %167, %cst_54 {dimension_numbers = #tpu.dot_dimension_numbers<[1], [0], [0], [1], [0, 0, 1, 1], [], []>} : vector<32x32xbf16>, vector<32x16xbf16>, vector<32x16xf32> -> vector<32x16xf32>
    %169 = tpu.concatenate %102, %124, %146, %168 in 1 : vector<32x16xf32>, vector<32x16xf32>, vector<32x16xf32>, vector<32x16xf32> -> vector<32x64xf32>
    %c0_55 = arith.constant 0 : index
    %c0_56 = arith.constant 0 : index
    %c0_57 = arith.constant 0 : index
    %170 = vector.load %arg6[%c0_55, %c0_56, %c0_57] : memref<2x64x64xbf16, #tpu.memory_space<vmem>>, vector<1x64x64xbf16>
    %171 = vector.shape_cast %170 : vector<1x64x64xbf16> to vector<64x64xbf16>
    %172 = arith.truncf %169 : vector<32x64xf32> to vector<32x64xbf16>
    %cst_58 = arith.constant dense<0.000000e+00> : vector<32x64xf32>
    %173 = tpu.matmul %172, %171, %cst_58 {dimension_numbers = #tpu.dot_dimension_numbers<[1], [0], [0], [1], [0, 0, 1, 1], [], []>} : vector<32x64xbf16>, vector<64x64xbf16>, vector<32x64xf32> -> vector<32x64xf32>
    %c0_59 = arith.constant 0 : index
    %c0_60 = arith.constant 0 : index
    %c0_61 = arith.constant 0 : index
    %174 = vector.load %arg7[%c0_59, %c0_60, %c0_61] : memref<2x1x64xf32, #tpu.memory_space<vmem>>, vector<1x1x64xf32>
    %175 = vector.shape_cast %174 : vector<1x1x64xf32> to vector<1x64xf32>
    %176 = vector.broadcast %175 : vector<1x64xf32> to vector<32x64xf32>
    %177 = arith.addf %173, %176 : vector<32x64xf32>
    %178 = arith.addf %72, %177 : vector<32x64xf32>
    %c0_62 = arith.constant 0 : index
    %c0_63 = arith.constant 0 : index
    %c0_64 = arith.constant 0 : index
    %179 = vector.load %arg8[%c0_62, %c0_63, %c0_64] : memref<2x1x64xf32, #tpu.memory_space<vmem>>, vector<1x1x64xf32>
    %180 = vector.shape_cast %179 : vector<1x1x64xf32> to vector<1x64xf32>
    %c0_65 = arith.constant 0 : index
    %c0_66 = arith.constant 0 : index
    %c0_67 = arith.constant 0 : index
    %181 = vector.load %arg9[%c0_65, %c0_66, %c0_67] : memref<2x1x64xf32, #tpu.memory_space<vmem>>, vector<1x1x64xf32>
    %182 = vector.shape_cast %181 : vector<1x1x64xf32> to vector<1x64xf32>
    %cst_68 = arith.constant dense<0.000000e+00> : vector<32xf32>
    %183 = vector.multi_reduction <add>, %178, %cst_68 [1] : vector<32x64xf32> to vector<32xf32>
    %184 = vector.shape_cast %183 : vector<32xf32> to vector<32x1xf32>
    %cst_69 = arith.constant 6.400000e+01 : f32
    %185 = vector.broadcast %cst_69 : f32 to vector<32x1xf32>
    %186 = arith.divf %184, %185 : vector<32x1xf32>
    %187 = vector.broadcast %186 : vector<32x1xf32> to vector<32x64xf32>
    %188 = arith.subf %178, %187 : vector<32x64xf32>
    %189 = arith.mulf %188, %188 : vector<32x64xf32>
    %cst_70 = arith.constant dense<0.000000e+00> : vector<32xf32>
    %190 = vector.multi_reduction <add>, %189, %cst_70 [1] : vector<32x64xf32> to vector<32xf32>
    %191 = vector.shape_cast %190 : vector<32xf32> to vector<32x1xf32>
    %cst_71 = arith.constant 6.400000e+01 : f32
    %192 = vector.broadcast %cst_71 : f32 to vector<32x1xf32>
    %193 = arith.divf %191, %192 : vector<32x1xf32>
    %194 = vector.broadcast %186 : vector<32x1xf32> to vector<32x64xf32>
    %195 = arith.subf %178, %194 : vector<32x64xf32>
    %cst_72 = arith.constant 9.99999974E-6 : f32
    %196 = vector.broadcast %cst_72 : f32 to vector<32x1xf32>
    %197 = arith.addf %193, %196 : vector<32x1xf32>
    %198 = math.rsqrt %197 : vector<32x1xf32>
    %199 = vector.broadcast %198 : vector<32x1xf32> to vector<32x64xf32>
    %200 = arith.mulf %195, %199 : vector<32x64xf32>
    %201 = vector.broadcast %180 : vector<1x64xf32> to vector<32x64xf32>
    %202 = arith.mulf %200, %201 : vector<32x64xf32>
    %203 = vector.broadcast %182 : vector<1x64xf32> to vector<32x64xf32>
    %204 = arith.addf %202, %203 : vector<32x64xf32>
    %c0_73 = arith.constant 0 : index
    %c0_74 = arith.constant 0 : index
    %c0_75 = arith.constant 0 : index
    %205 = vector.load %arg10[%c0_73, %c0_74, %c0_75] : memref<2x64x256xbf16, #tpu.memory_space<vmem>>, vector<1x64x256xbf16>
    %206 = vector.shape_cast %205 : vector<1x64x256xbf16> to vector<64x256xbf16>
    %207 = arith.truncf %204 : vector<32x64xf32> to vector<32x64xbf16>
    %cst_76 = arith.constant dense<0.000000e+00> : vector<32x256xf32>
    %208 = tpu.matmul %207, %206, %cst_76 {dimension_numbers = #tpu.dot_dimension_numbers<[1], [0], [0], [1], [0, 0, 1, 1], [], []>} : vector<32x64xbf16>, vector<64x256xbf16>, vector<32x256xf32> -> vector<32x256xf32>
    %c0_77 = arith.constant 0 : index
    %c0_78 = arith.constant 0 : index
    %c0_79 = arith.constant 0 : index
    %209 = vector.load %arg11[%c0_77, %c0_78, %c0_79] : memref<2x1x256xf32, #tpu.memory_space<vmem>>, vector<1x1x256xf32>
    %210 = vector.shape_cast %209 : vector<1x1x256xf32> to vector<1x256xf32>
    %211 = vector.broadcast %210 : vector<1x256xf32> to vector<32x256xf32>
    %212 = arith.addf %208, %211 : vector<32x256xf32>
    %cst_80 = arith.constant 0.000000e+00 : f32
    %213 = vector.broadcast %cst_80 : f32 to vector<32x256xf32>
    %214 = arith.maximumf %212, %213 : vector<32x256xf32>
    %c0_81 = arith.constant 0 : index
    %c0_82 = arith.constant 0 : index
    %c0_83 = arith.constant 0 : index
    %215 = vector.load %arg12[%c0_81, %c0_82, %c0_83] : memref<2x256x64xbf16, #tpu.memory_space<vmem>>, vector<1x256x64xbf16>
    %216 = vector.shape_cast %215 : vector<1x256x64xbf16> to vector<256x64xbf16>
    %217 = arith.truncf %214 : vector<32x256xf32> to vector<32x256xbf16>
    %cst_84 = arith.constant dense<0.000000e+00> : vector<32x64xf32>
    %218 = tpu.matmul %217, %216, %cst_84 {dimension_numbers = #tpu.dot_dimension_numbers<[1], [0], [0], [1], [0, 0, 1, 1], [], []>} : vector<32x256xbf16>, vector<256x64xbf16>, vector<32x64xf32> -> vector<32x64xf32>
    %c0_85 = arith.constant 0 : index
    %c0_86 = arith.constant 0 : index
    %c0_87 = arith.constant 0 : index
    %219 = vector.load %arg13[%c0_85, %c0_86, %c0_87] : memref<2x1x64xf32, #tpu.memory_space<vmem>>, vector<1x1x64xf32>
    %220 = vector.shape_cast %219 : vector<1x1x64xf32> to vector<1x64xf32>
    %221 = vector.broadcast %220 : vector<1x64xf32> to vector<32x64xf32>
    %222 = arith.addf %218, %221 : vector<32x64xf32>
    %223 = arith.addf %204, %222 : vector<32x64xf32>
    %c0_88 = arith.constant 0 : index
    %c0_89 = arith.constant 0 : index
    %c0_90 = arith.constant 0 : index
    %224 = vector.load %arg14[%c0_88, %c0_89, %c0_90] : memref<2x1x64xf32, #tpu.memory_space<vmem>>, vector<1x1x64xf32>
    %225 = vector.shape_cast %224 : vector<1x1x64xf32> to vector<1x64xf32>
    %c0_91 = arith.constant 0 : index
    %c0_92 = arith.constant 0 : index
    %c0_93 = arith.constant 0 : index
    %226 = vector.load %arg15[%c0_91, %c0_92, %c0_93] : memref<2x1x64xf32, #tpu.memory_space<vmem>>, vector<1x1x64xf32>
    %227 = vector.shape_cast %226 : vector<1x1x64xf32> to vector<1x64xf32>
    %cst_94 = arith.constant dense<0.000000e+00> : vector<32xf32>
    %228 = vector.multi_reduction <add>, %223, %cst_94 [1] : vector<32x64xf32> to vector<32xf32>
    %229 = vector.shape_cast %228 : vector<32xf32> to vector<32x1xf32>
    %cst_95 = arith.constant 6.400000e+01 : f32
    %230 = vector.broadcast %cst_95 : f32 to vector<32x1xf32>
    %231 = arith.divf %229, %230 : vector<32x1xf32>
    %232 = vector.broadcast %231 : vector<32x1xf32> to vector<32x64xf32>
    %233 = arith.subf %223, %232 : vector<32x64xf32>
    %234 = arith.mulf %233, %233 : vector<32x64xf32>
    %cst_96 = arith.constant dense<0.000000e+00> : vector<32xf32>
    %235 = vector.multi_reduction <add>, %234, %cst_96 [1] : vector<32x64xf32> to vector<32xf32>
    %236 = vector.shape_cast %235 : vector<32xf32> to vector<32x1xf32>
    %cst_97 = arith.constant 6.400000e+01 : f32
    %237 = vector.broadcast %cst_97 : f32 to vector<32x1xf32>
    %238 = arith.divf %236, %237 : vector<32x1xf32>
    %239 = vector.broadcast %231 : vector<32x1xf32> to vector<32x64xf32>
    %240 = arith.subf %223, %239 : vector<32x64xf32>
    %cst_98 = arith.constant 9.99999974E-6 : f32
    %241 = vector.broadcast %cst_98 : f32 to vector<32x1xf32>
    %242 = arith.addf %238, %241 : vector<32x1xf32>
    %243 = math.rsqrt %242 : vector<32x1xf32>
    %244 = vector.broadcast %243 : vector<32x1xf32> to vector<32x64xf32>
    %245 = arith.mulf %240, %244 : vector<32x64xf32>
    %246 = vector.broadcast %225 : vector<1x64xf32> to vector<32x64xf32>
    %247 = arith.mulf %245, %246 : vector<32x64xf32>
    %248 = vector.broadcast %227 : vector<1x64xf32> to vector<32x64xf32>
    %249 = arith.addf %247, %248 : vector<32x64xf32>
    %c1 = arith.constant 1 : index
    %c0_99 = arith.constant 0 : index
    %c0_100 = arith.constant 0 : index
    %250 = vector.load %arg4[%c1, %c0_99, %c0_100] : memref<2x64x192xbf16, #tpu.memory_space<vmem>>, vector<1x64x192xbf16>
    %251 = vector.shape_cast %250 : vector<1x64x192xbf16> to vector<64x192xbf16>
    %252 = arith.truncf %249 : vector<32x64xf32> to vector<32x64xbf16>
    %cst_101 = arith.constant dense<0.000000e+00> : vector<32x192xf32>
    %253 = tpu.matmul %252, %251, %cst_101 {dimension_numbers = #tpu.dot_dimension_numbers<[1], [0], [0], [1], [0, 0, 1, 1], [], []>} : vector<32x64xbf16>, vector<64x192xbf16>, vector<32x192xf32> -> vector<32x192xf32>
    %c1_102 = arith.constant 1 : index
    %c0_103 = arith.constant 0 : index
    %c0_104 = arith.constant 0 : index
    %254 = vector.load %arg5[%c1_102, %c0_103, %c0_104] : memref<2x1x192xf32, #tpu.memory_space<vmem>>, vector<1x1x192xf32>
    %255 = vector.shape_cast %254 : vector<1x1x192xf32> to vector<1x192xf32>
    %256 = vector.broadcast %255 : vector<1x192xf32> to vector<32x192xf32>
    %257 = arith.addf %253, %256 : vector<32x192xf32>
    %258 = vector.extract_strided_slice %257 {offsets = [0, 0], sizes = [32, 16], strides = [1, 1]} : vector<32x192xf32> to vector<32x16xf32>
    %259 = vector.extract_strided_slice %257 {offsets = [0, 64], sizes = [32, 16], strides = [1, 1]} : vector<32x192xf32> to vector<32x16xf32>
    %260 = vector.extract_strided_slice %257 {offsets = [0, 128], sizes = [32, 16], strides = [1, 1]} : vector<32x192xf32> to vector<32x16xf32>
    %261 = arith.truncf %258 : vector<32x16xf32> to vector<32x16xbf16>
    %262 = arith.truncf %259 : vector<32x16xf32> to vector<32x16xbf16>
    %cst_105 = arith.constant dense<0.000000e+00> : vector<32x32xf32>
    %263 = tpu.matmul %261, %262, %cst_105 {dimension_numbers = #tpu.dot_dimension_numbers<[1], [1], [0], [0], [0, 0, 1, 0], [], []>} : vector<32x16xbf16>, vector<32x16xbf16>, vector<32x32xf32> -> vector<32x32xf32>
    %cst_106 = arith.constant 2.500000e-01 : f32
    %264 = vector.broadcast %cst_106 : f32 to vector<32x32xf32>
    %265 = arith.mulf %263, %264 : vector<32x32xf32>
    %266 = arith.addf %265, %65 : vector<32x32xf32>
    %cst_107 = arith.constant dense<0xFF800000> : vector<32xf32>
    %267 = vector.multi_reduction <maximumf>, %266, %cst_107 [1] : vector<32x32xf32> to vector<32xf32>
    %268 = vector.shape_cast %267 : vector<32xf32> to vector<32x1xf32>
    %269 = vector.broadcast %268 : vector<32x1xf32> to vector<32x32xf32>
    %270 = arith.subf %266, %269 : vector<32x32xf32>
    %271 = math.exp %270 : vector<32x32xf32>
    %cst_108 = arith.constant dense<0.000000e+00> : vector<32xf32>
    %272 = vector.multi_reduction <add>, %271, %cst_108 [1] : vector<32x32xf32> to vector<32xf32>
    %273 = vector.shape_cast %272 : vector<32xf32> to vector<32x1xf32>
    %274 = tpu.reciprocal %273 {approx = true} : vector<32x1xf32> -> vector<32x1xf32>
    %275 = vector.broadcast %274 : vector<32x1xf32> to vector<32x32xf32>
    %276 = arith.mulf %271, %275 : vector<32x32xf32>
    %277 = arith.truncf %276 : vector<32x32xf32> to vector<32x32xbf16>
    %278 = arith.truncf %260 : vector<32x16xf32> to vector<32x16xbf16>
    %cst_109 = arith.constant dense<0.000000e+00> : vector<32x16xf32>
    %279 = tpu.matmul %277, %278, %cst_109 {dimension_numbers = #tpu.dot_dimension_numbers<[1], [0], [0], [1], [0, 0, 1, 1], [], []>} : vector<32x32xbf16>, vector<32x16xbf16>, vector<32x16xf32> -> vector<32x16xf32>
    %280 = vector.extract_strided_slice %257 {offsets = [0, 16], sizes = [32, 16], strides = [1, 1]} : vector<32x192xf32> to vector<32x16xf32>
    %281 = vector.extract_strided_slice %257 {offsets = [0, 80], sizes = [32, 16], strides = [1, 1]} : vector<32x192xf32> to vector<32x16xf32>
    %282 = vector.extract_strided_slice %257 {offsets = [0, 144], sizes = [32, 16], strides = [1, 1]} : vector<32x192xf32> to vector<32x16xf32>
    %283 = arith.truncf %280 : vector<32x16xf32> to vector<32x16xbf16>
    %284 = arith.truncf %281 : vector<32x16xf32> to vector<32x16xbf16>
    %cst_110 = arith.constant dense<0.000000e+00> : vector<32x32xf32>
    %285 = tpu.matmul %283, %284, %cst_110 {dimension_numbers = #tpu.dot_dimension_numbers<[1], [1], [0], [0], [0, 0, 1, 0], [], []>} : vector<32x16xbf16>, vector<32x16xbf16>, vector<32x32xf32> -> vector<32x32xf32>
    %cst_111 = arith.constant 2.500000e-01 : f32
    %286 = vector.broadcast %cst_111 : f32 to vector<32x32xf32>
    %287 = arith.mulf %285, %286 : vector<32x32xf32>
    %288 = arith.addf %287, %65 : vector<32x32xf32>
    %cst_112 = arith.constant dense<0xFF800000> : vector<32xf32>
    %289 = vector.multi_reduction <maximumf>, %288, %cst_112 [1] : vector<32x32xf32> to vector<32xf32>
    %290 = vector.shape_cast %289 : vector<32xf32> to vector<32x1xf32>
    %291 = vector.broadcast %290 : vector<32x1xf32> to vector<32x32xf32>
    %292 = arith.subf %288, %291 : vector<32x32xf32>
    %293 = math.exp %292 : vector<32x32xf32>
    %cst_113 = arith.constant dense<0.000000e+00> : vector<32xf32>
    %294 = vector.multi_reduction <add>, %293, %cst_113 [1] : vector<32x32xf32> to vector<32xf32>
    %295 = vector.shape_cast %294 : vector<32xf32> to vector<32x1xf32>
    %296 = tpu.reciprocal %295 {approx = true} : vector<32x1xf32> -> vector<32x1xf32>
    %297 = vector.broadcast %296 : vector<32x1xf32> to vector<32x32xf32>
    %298 = arith.mulf %293, %297 : vector<32x32xf32>
    %299 = arith.truncf %298 : vector<32x32xf32> to vector<32x32xbf16>
    %300 = arith.truncf %282 : vector<32x16xf32> to vector<32x16xbf16>
    %cst_114 = arith.constant dense<0.000000e+00> : vector<32x16xf32>
    %301 = tpu.matmul %299, %300, %cst_114 {dimension_numbers = #tpu.dot_dimension_numbers<[1], [0], [0], [1], [0, 0, 1, 1], [], []>} : vector<32x32xbf16>, vector<32x16xbf16>, vector<32x16xf32> -> vector<32x16xf32>
    %302 = vector.extract_strided_slice %257 {offsets = [0, 32], sizes = [32, 16], strides = [1, 1]} : vector<32x192xf32> to vector<32x16xf32>
    %303 = vector.extract_strided_slice %257 {offsets = [0, 96], sizes = [32, 16], strides = [1, 1]} : vector<32x192xf32> to vector<32x16xf32>
    %304 = vector.extract_strided_slice %257 {offsets = [0, 160], sizes = [32, 16], strides = [1, 1]} : vector<32x192xf32> to vector<32x16xf32>
    %305 = arith.truncf %302 : vector<32x16xf32> to vector<32x16xbf16>
    %306 = arith.truncf %303 : vector<32x16xf32> to vector<32x16xbf16>
    %cst_115 = arith.constant dense<0.000000e+00> : vector<32x32xf32>
    %307 = tpu.matmul %305, %306, %cst_115 {dimension_numbers = #tpu.dot_dimension_numbers<[1], [1], [0], [0], [0, 0, 1, 0], [], []>} : vector<32x16xbf16>, vector<32x16xbf16>, vector<32x32xf32> -> vector<32x32xf32>
    %cst_116 = arith.constant 2.500000e-01 : f32
    %308 = vector.broadcast %cst_116 : f32 to vector<32x32xf32>
    %309 = arith.mulf %307, %308 : vector<32x32xf32>
    %310 = arith.addf %309, %65 : vector<32x32xf32>
    %cst_117 = arith.constant dense<0xFF800000> : vector<32xf32>
    %311 = vector.multi_reduction <maximumf>, %310, %cst_117 [1] : vector<32x32xf32> to vector<32xf32>
    %312 = vector.shape_cast %311 : vector<32xf32> to vector<32x1xf32>
    %313 = vector.broadcast %312 : vector<32x1xf32> to vector<32x32xf32>
    %314 = arith.subf %310, %313 : vector<32x32xf32>
    %315 = math.exp %314 : vector<32x32xf32>
    %cst_118 = arith.constant dense<0.000000e+00> : vector<32xf32>
    %316 = vector.multi_reduction <add>, %315, %cst_118 [1] : vector<32x32xf32> to vector<32xf32>
    %317 = vector.shape_cast %316 : vector<32xf32> to vector<32x1xf32>
    %318 = tpu.reciprocal %317 {approx = true} : vector<32x1xf32> -> vector<32x1xf32>
    %319 = vector.broadcast %318 : vector<32x1xf32> to vector<32x32xf32>
    %320 = arith.mulf %315, %319 : vector<32x32xf32>
    %321 = arith.truncf %320 : vector<32x32xf32> to vector<32x32xbf16>
    %322 = arith.truncf %304 : vector<32x16xf32> to vector<32x16xbf16>
    %cst_119 = arith.constant dense<0.000000e+00> : vector<32x16xf32>
    %323 = tpu.matmul %321, %322, %cst_119 {dimension_numbers = #tpu.dot_dimension_numbers<[1], [0], [0], [1], [0, 0, 1, 1], [], []>} : vector<32x32xbf16>, vector<32x16xbf16>, vector<32x16xf32> -> vector<32x16xf32>
    %324 = vector.extract_strided_slice %257 {offsets = [0, 48], sizes = [32, 16], strides = [1, 1]} : vector<32x192xf32> to vector<32x16xf32>
    %325 = vector.extract_strided_slice %257 {offsets = [0, 112], sizes = [32, 16], strides = [1, 1]} : vector<32x192xf32> to vector<32x16xf32>
    %326 = vector.extract_strided_slice %257 {offsets = [0, 176], sizes = [32, 16], strides = [1, 1]} : vector<32x192xf32> to vector<32x16xf32>
    %327 = arith.truncf %324 : vector<32x16xf32> to vector<32x16xbf16>
    %328 = arith.truncf %325 : vector<32x16xf32> to vector<32x16xbf16>
    %cst_120 = arith.constant dense<0.000000e+00> : vector<32x32xf32>
    %329 = tpu.matmul %327, %328, %cst_120 {dimension_numbers = #tpu.dot_dimension_numbers<[1], [1], [0], [0], [0, 0, 1, 0], [], []>} : vector<32x16xbf16>, vector<32x16xbf16>, vector<32x32xf32> -> vector<32x32xf32>
    %cst_121 = arith.constant 2.500000e-01 : f32
    %330 = vector.broadcast %cst_121 : f32 to vector<32x32xf32>
    %331 = arith.mulf %329, %330 : vector<32x32xf32>
    %332 = arith.addf %331, %65 : vector<32x32xf32>
    %cst_122 = arith.constant dense<0xFF800000> : vector<32xf32>
    %333 = vector.multi_reduction <maximumf>, %332, %cst_122 [1] : vector<32x32xf32> to vector<32xf32>
    %334 = vector.shape_cast %333 : vector<32xf32> to vector<32x1xf32>
    %335 = vector.broadcast %334 : vector<32x1xf32> to vector<32x32xf32>
    %336 = arith.subf %332, %335 : vector<32x32xf32>
    %337 = math.exp %336 : vector<32x32xf32>
    %cst_123 = arith.constant dense<0.000000e+00> : vector<32xf32>
    %338 = vector.multi_reduction <add>, %337, %cst_123 [1] : vector<32x32xf32> to vector<32xf32>
    %339 = vector.shape_cast %338 : vector<32xf32> to vector<32x1xf32>
    %340 = tpu.reciprocal %339 {approx = true} : vector<32x1xf32> -> vector<32x1xf32>
    %341 = vector.broadcast %340 : vector<32x1xf32> to vector<32x32xf32>
    %342 = arith.mulf %337, %341 : vector<32x32xf32>
    %343 = arith.truncf %342 : vector<32x32xf32> to vector<32x32xbf16>
    %344 = arith.truncf %326 : vector<32x16xf32> to vector<32x16xbf16>
    %cst_124 = arith.constant dense<0.000000e+00> : vector<32x16xf32>
    %345 = tpu.matmul %343, %344, %cst_124 {dimension_numbers = #tpu.dot_dimension_numbers<[1], [0], [0], [1], [0, 0, 1, 1], [], []>} : vector<32x32xbf16>, vector<32x16xbf16>, vector<32x16xf32> -> vector<32x16xf32>
    %346 = tpu.concatenate %279, %301, %323, %345 in 1 : vector<32x16xf32>, vector<32x16xf32>, vector<32x16xf32>, vector<32x16xf32> -> vector<32x64xf32>
    %c1_125 = arith.constant 1 : index
    %c0_126 = arith.constant 0 : index
    %c0_127 = arith.constant 0 : index
    %347 = vector.load %arg6[%c1_125, %c0_126, %c0_127] : memref<2x64x64xbf16, #tpu.memory_space<vmem>>, vector<1x64x64xbf16>
    %348 = vector.shape_cast %347 : vector<1x64x64xbf16> to vector<64x64xbf16>
    %349 = arith.truncf %346 : vector<32x64xf32> to vector<32x64xbf16>
    %cst_128 = arith.constant dense<0.000000e+00> : vector<32x64xf32>
    %350 = tpu.matmul %349, %348, %cst_128 {dimension_numbers = #tpu.dot_dimension_numbers<[1], [0], [0], [1], [0, 0, 1, 1], [], []>} : vector<32x64xbf16>, vector<64x64xbf16>, vector<32x64xf32> -> vector<32x64xf32>
    %c1_129 = arith.constant 1 : index
    %c0_130 = arith.constant 0 : index
    %c0_131 = arith.constant 0 : index
    %351 = vector.load %arg7[%c1_129, %c0_130, %c0_131] : memref<2x1x64xf32, #tpu.memory_space<vmem>>, vector<1x1x64xf32>
    %352 = vector.shape_cast %351 : vector<1x1x64xf32> to vector<1x64xf32>
    %353 = vector.broadcast %352 : vector<1x64xf32> to vector<32x64xf32>
    %354 = arith.addf %350, %353 : vector<32x64xf32>
    %355 = arith.addf %249, %354 : vector<32x64xf32>
    %c1_132 = arith.constant 1 : index
    %c0_133 = arith.constant 0 : index
    %c0_134 = arith.constant 0 : index
    %356 = vector.load %arg8[%c1_132, %c0_133, %c0_134] : memref<2x1x64xf32, #tpu.memory_space<vmem>>, vector<1x1x64xf32>
    %357 = vector.shape_cast %356 : vector<1x1x64xf32> to vector<1x64xf32>
    %c1_135 = arith.constant 1 : index
    %c0_136 = arith.constant 0 : index
    %c0_137 = arith.constant 0 : index
    %358 = vector.load %arg9[%c1_135, %c0_136, %c0_137] : memref<2x1x64xf32, #tpu.memory_space<vmem>>, vector<1x1x64xf32>
    %359 = vector.shape_cast %358 : vector<1x1x64xf32> to vector<1x64xf32>
    %cst_138 = arith.constant dense<0.000000e+00> : vector<32xf32>
    %360 = vector.multi_reduction <add>, %355, %cst_138 [1] : vector<32x64xf32> to vector<32xf32>
    %361 = vector.shape_cast %360 : vector<32xf32> to vector<32x1xf32>
    %cst_139 = arith.constant 6.400000e+01 : f32
    %362 = vector.broadcast %cst_139 : f32 to vector<32x1xf32>
    %363 = arith.divf %361, %362 : vector<32x1xf32>
    %364 = vector.broadcast %363 : vector<32x1xf32> to vector<32x64xf32>
    %365 = arith.subf %355, %364 : vector<32x64xf32>
    %366 = arith.mulf %365, %365 : vector<32x64xf32>
    %cst_140 = arith.constant dense<0.000000e+00> : vector<32xf32>
    %367 = vector.multi_reduction <add>, %366, %cst_140 [1] : vector<32x64xf32> to vector<32xf32>
    %368 = vector.shape_cast %367 : vector<32xf32> to vector<32x1xf32>
    %cst_141 = arith.constant 6.400000e+01 : f32
    %369 = vector.broadcast %cst_141 : f32 to vector<32x1xf32>
    %370 = arith.divf %368, %369 : vector<32x1xf32>
    %371 = vector.broadcast %363 : vector<32x1xf32> to vector<32x64xf32>
    %372 = arith.subf %355, %371 : vector<32x64xf32>
    %cst_142 = arith.constant 9.99999974E-6 : f32
    %373 = vector.broadcast %cst_142 : f32 to vector<32x1xf32>
    %374 = arith.addf %370, %373 : vector<32x1xf32>
    %375 = math.rsqrt %374 : vector<32x1xf32>
    %376 = vector.broadcast %375 : vector<32x1xf32> to vector<32x64xf32>
    %377 = arith.mulf %372, %376 : vector<32x64xf32>
    %378 = vector.broadcast %357 : vector<1x64xf32> to vector<32x64xf32>
    %379 = arith.mulf %377, %378 : vector<32x64xf32>
    %380 = vector.broadcast %359 : vector<1x64xf32> to vector<32x64xf32>
    %381 = arith.addf %379, %380 : vector<32x64xf32>
    %c1_143 = arith.constant 1 : index
    %c0_144 = arith.constant 0 : index
    %c0_145 = arith.constant 0 : index
    %382 = vector.load %arg10[%c1_143, %c0_144, %c0_145] : memref<2x64x256xbf16, #tpu.memory_space<vmem>>, vector<1x64x256xbf16>
    %383 = vector.shape_cast %382 : vector<1x64x256xbf16> to vector<64x256xbf16>
    %384 = arith.truncf %381 : vector<32x64xf32> to vector<32x64xbf16>
    %cst_146 = arith.constant dense<0.000000e+00> : vector<32x256xf32>
    %385 = tpu.matmul %384, %383, %cst_146 {dimension_numbers = #tpu.dot_dimension_numbers<[1], [0], [0], [1], [0, 0, 1, 1], [], []>} : vector<32x64xbf16>, vector<64x256xbf16>, vector<32x256xf32> -> vector<32x256xf32>
    %c1_147 = arith.constant 1 : index
    %c0_148 = arith.constant 0 : index
    %c0_149 = arith.constant 0 : index
    %386 = vector.load %arg11[%c1_147, %c0_148, %c0_149] : memref<2x1x256xf32, #tpu.memory_space<vmem>>, vector<1x1x256xf32>
    %387 = vector.shape_cast %386 : vector<1x1x256xf32> to vector<1x256xf32>
    %388 = vector.broadcast %387 : vector<1x256xf32> to vector<32x256xf32>
    %389 = arith.addf %385, %388 : vector<32x256xf32>
    %cst_150 = arith.constant 0.000000e+00 : f32
    %390 = vector.broadcast %cst_150 : f32 to vector<32x256xf32>
    %391 = arith.maximumf %389, %390 : vector<32x256xf32>
    %c1_151 = arith.constant 1 : index
    %c0_152 = arith.constant 0 : index
    %c0_153 = arith.constant 0 : index
    %392 = vector.load %arg12[%c1_151, %c0_152, %c0_153] : memref<2x256x64xbf16, #tpu.memory_space<vmem>>, vector<1x256x64xbf16>
    %393 = vector.shape_cast %392 : vector<1x256x64xbf16> to vector<256x64xbf16>
    %394 = arith.truncf %391 : vector<32x256xf32> to vector<32x256xbf16>
    %cst_154 = arith.constant dense<0.000000e+00> : vector<32x64xf32>
    %395 = tpu.matmul %394, %393, %cst_154 {dimension_numbers = #tpu.dot_dimension_numbers<[1], [0], [0], [1], [0, 0, 1, 1], [], []>} : vector<32x256xbf16>, vector<256x64xbf16>, vector<32x64xf32> -> vector<32x64xf32>
    %c1_155 = arith.constant 1 : index
    %c0_156 = arith.constant 0 : index
    %c0_157 = arith.constant 0 : index
    %396 = vector.load %arg13[%c1_155, %c0_156, %c0_157] : memref<2x1x64xf32, #tpu.memory_space<vmem>>, vector<1x1x64xf32>
    %397 = vector.shape_cast %396 : vector<1x1x64xf32> to vector<1x64xf32>
    %398 = vector.broadcast %397 : vector<1x64xf32> to vector<32x64xf32>
    %399 = arith.addf %395, %398 : vector<32x64xf32>
    %400 = arith.addf %381, %399 : vector<32x64xf32>
    %c1_158 = arith.constant 1 : index
    %c0_159 = arith.constant 0 : index
    %c0_160 = arith.constant 0 : index
    %401 = vector.load %arg14[%c1_158, %c0_159, %c0_160] : memref<2x1x64xf32, #tpu.memory_space<vmem>>, vector<1x1x64xf32>
    %402 = vector.shape_cast %401 : vector<1x1x64xf32> to vector<1x64xf32>
    %c1_161 = arith.constant 1 : index
    %c0_162 = arith.constant 0 : index
    %c0_163 = arith.constant 0 : index
    %403 = vector.load %arg15[%c1_161, %c0_162, %c0_163] : memref<2x1x64xf32, #tpu.memory_space<vmem>>, vector<1x1x64xf32>
    %404 = vector.shape_cast %403 : vector<1x1x64xf32> to vector<1x64xf32>
    %cst_164 = arith.constant dense<0.000000e+00> : vector<32xf32>
    %405 = vector.multi_reduction <add>, %400, %cst_164 [1] : vector<32x64xf32> to vector<32xf32>
    %406 = vector.shape_cast %405 : vector<32xf32> to vector<32x1xf32>
    %cst_165 = arith.constant 6.400000e+01 : f32
    %407 = vector.broadcast %cst_165 : f32 to vector<32x1xf32>
    %408 = arith.divf %406, %407 : vector<32x1xf32>
    %409 = vector.broadcast %408 : vector<32x1xf32> to vector<32x64xf32>
    %410 = arith.subf %400, %409 : vector<32x64xf32>
    %411 = arith.mulf %410, %410 : vector<32x64xf32>
    %cst_166 = arith.constant dense<0.000000e+00> : vector<32xf32>
    %412 = vector.multi_reduction <add>, %411, %cst_166 [1] : vector<32x64xf32> to vector<32xf32>
    %413 = vector.shape_cast %412 : vector<32xf32> to vector<32x1xf32>
    %cst_167 = arith.constant 6.400000e+01 : f32
    %414 = vector.broadcast %cst_167 : f32 to vector<32x1xf32>
    %415 = arith.divf %413, %414 : vector<32x1xf32>
    %416 = vector.broadcast %408 : vector<32x1xf32> to vector<32x64xf32>
    %417 = arith.subf %400, %416 : vector<32x64xf32>
    %cst_168 = arith.constant 9.99999974E-6 : f32
    %418 = vector.broadcast %cst_168 : f32 to vector<32x1xf32>
    %419 = arith.addf %415, %418 : vector<32x1xf32>
    %420 = math.rsqrt %419 : vector<32x1xf32>
    %421 = vector.broadcast %420 : vector<32x1xf32> to vector<32x64xf32>
    %422 = arith.mulf %417, %421 : vector<32x64xf32>
    %423 = vector.broadcast %402 : vector<1x64xf32> to vector<32x64xf32>
    %424 = arith.mulf %422, %423 : vector<32x64xf32>
    %425 = vector.broadcast %404 : vector<1x64xf32> to vector<32x64xf32>
    %426 = arith.addf %424, %425 : vector<32x64xf32>
    %427 = vector.extract_strided_slice %426 {offsets = [0, 0], sizes = [4, 64], strides = [1, 1]} : vector<32x64xf32> to vector<4x64xf32>
    %428 = vector.extract_strided_slice %426 {offsets = [4, 0], sizes = [4, 64], strides = [1, 1]} : vector<32x64xf32> to vector<4x64xf32>
    %429 = arith.addf %427, %428 : vector<4x64xf32>
    %430 = vector.extract_strided_slice %426 {offsets = [8, 0], sizes = [4, 64], strides = [1, 1]} : vector<32x64xf32> to vector<4x64xf32>
    %431 = arith.addf %429, %430 : vector<4x64xf32>
    %432 = vector.extract_strided_slice %426 {offsets = [12, 0], sizes = [4, 64], strides = [1, 1]} : vector<32x64xf32> to vector<4x64xf32>
    %433 = arith.addf %431, %432 : vector<4x64xf32>
    %434 = vector.extract_strided_slice %426 {offsets = [16, 0], sizes = [4, 64], strides = [1, 1]} : vector<32x64xf32> to vector<4x64xf32>
    %435 = arith.addf %433, %434 : vector<4x64xf32>
    %436 = vector.extract_strided_slice %426 {offsets = [20, 0], sizes = [4, 64], strides = [1, 1]} : vector<32x64xf32> to vector<4x64xf32>
    %437 = arith.addf %435, %436 : vector<4x64xf32>
    %438 = vector.extract_strided_slice %426 {offsets = [24, 0], sizes = [4, 64], strides = [1, 1]} : vector<32x64xf32> to vector<4x64xf32>
    %439 = arith.addf %437, %438 : vector<4x64xf32>
    %440 = vector.extract_strided_slice %426 {offsets = [28, 0], sizes = [4, 64], strides = [1, 1]} : vector<32x64xf32> to vector<4x64xf32>
    %441 = arith.addf %439, %440 : vector<4x64xf32>
    %cst_169 = arith.constant 1.250000e-01 : f32
    %442 = vector.broadcast %cst_169 : f32 to vector<4x64xf32>
    %443 = arith.mulf %441, %442 : vector<4x64xf32>
    %c0_170 = arith.constant 0 : index
    %c0_171 = arith.constant 0 : index
    %444 = vector.load %arg28[%c0_170, %c0_171] : memref<64x32xbf16, #tpu.memory_space<vmem>>, vector<64x32xbf16>
    %445 = arith.truncf %443 : vector<4x64xf32> to vector<4x64xbf16>
    %cst_172 = arith.constant dense<0.000000e+00> : vector<4x32xf32>
    %446 = tpu.matmul %445, %444, %cst_172 {dimension_numbers = #tpu.dot_dimension_numbers<[1], [0], [0], [1], [0, 0, 1, 1], [], []>} : vector<4x64xbf16>, vector<64x32xbf16>, vector<4x32xf32> -> vector<4x32xf32>
    %c0_173 = arith.constant 0 : index
    %c0_174 = arith.constant 0 : index
    %447 = vector.load %arg29[%c0_173, %c0_174] : memref<1x32xf32, #tpu.memory_space<vmem>>, vector<1x32xf32>
    %448 = vector.broadcast %447 : vector<1x32xf32> to vector<4x32xf32>
    %449 = arith.addf %446, %448 : vector<4x32xf32>
    %c0_175 = arith.constant 0 : index
    %c0_176 = arith.constant 0 : index
    %450 = vector.load %arg30[%c0_175, %c0_176] : memref<64x32xbf16, #tpu.memory_space<vmem>>, vector<64x32xbf16>
    %451 = arith.truncf %443 : vector<4x64xf32> to vector<4x64xbf16>
    %cst_177 = arith.constant dense<0.000000e+00> : vector<4x32xf32>
    %452 = tpu.matmul %451, %450, %cst_177 {dimension_numbers = #tpu.dot_dimension_numbers<[1], [0], [0], [1], [0, 0, 1, 1], [], []>} : vector<4x64xbf16>, vector<64x32xbf16>, vector<4x32xf32> -> vector<4x32xf32>
    %c0_178 = arith.constant 0 : index
    %c0_179 = arith.constant 0 : index
    %453 = vector.load %arg31[%c0_178, %c0_179] : memref<1x32xf32, #tpu.memory_space<vmem>>, vector<1x32xf32>
    %454 = vector.broadcast %453 : vector<1x32xf32> to vector<4x32xf32>
    %455 = arith.addf %452, %454 : vector<4x32xf32>
    %c0_180 = arith.constant 0 : index
    %c0_181 = arith.constant 0 : index
    %456 = vector.load %arg1[%c0_180, %c0_181] : memref<4x32xf32, #tpu.memory_space<vmem>>, vector<4x32xf32>
    %cst_182 = arith.constant 5.000000e-01 : f32
    %457 = vector.broadcast %cst_182 : f32 to vector<4x32xf32>
    %458 = arith.mulf %457, %455 : vector<4x32xf32>
    %459 = math.exp %458 : vector<4x32xf32>
    %460 = arith.mulf %456, %459 : vector<4x32xf32>
    %461 = arith.addf %449, %460 : vector<4x32xf32>
    %c0_183 = arith.constant 0 : index
    %c0_184 = arith.constant 0 : index
    %462 = vector.load %arg32[%c0_183, %c0_184] : memref<32x64xbf16, #tpu.memory_space<vmem>>, vector<32x64xbf16>
    %463 = arith.truncf %461 : vector<4x32xf32> to vector<4x32xbf16>
    %cst_185 = arith.constant dense<0.000000e+00> : vector<4x64xf32>
    %464 = tpu.matmul %463, %462, %cst_185 {dimension_numbers = #tpu.dot_dimension_numbers<[1], [0], [0], [1], [0, 0, 1, 1], [], []>} : vector<4x32xbf16>, vector<32x64xbf16>, vector<4x64xf32> -> vector<4x64xf32>
    %c0_186 = arith.constant 0 : index
    %c0_187 = arith.constant 0 : index
    %465 = vector.load %arg33[%c0_186, %c0_187] : memref<1x64xf32, #tpu.memory_space<vmem>>, vector<1x64xf32>
    %466 = vector.broadcast %465 : vector<1x64xf32> to vector<4x64xf32>
    %467 = arith.addf %464, %466 : vector<4x64xf32>
    %468 = tpu.concatenate %467, %467, %467, %467, %467, %467, %467, %467 in 0 : vector<4x64xf32>, vector<4x64xf32>, vector<4x64xf32>, vector<4x64xf32>, vector<4x64xf32>, vector<4x64xf32>, vector<4x64xf32>, vector<4x64xf32> -> vector<32x64xf32>
    %c0_188 = arith.constant 0 : index
    %c0_189 = arith.constant 0 : index
    %c0_190 = arith.constant 0 : index
    %469 = vector.load %arg16[%c0_188, %c0_189, %c0_190] : memref<2x64x192xbf16, #tpu.memory_space<vmem>>, vector<1x64x192xbf16>
    %470 = vector.shape_cast %469 : vector<1x64x192xbf16> to vector<64x192xbf16>
    %471 = arith.truncf %468 : vector<32x64xf32> to vector<32x64xbf16>
    %cst_191 = arith.constant dense<0.000000e+00> : vector<32x192xf32>
    %472 = tpu.matmul %471, %470, %cst_191 {dimension_numbers = #tpu.dot_dimension_numbers<[1], [0], [0], [1], [0, 0, 1, 1], [], []>} : vector<32x64xbf16>, vector<64x192xbf16>, vector<32x192xf32> -> vector<32x192xf32>
    %c0_192 = arith.constant 0 : index
    %c0_193 = arith.constant 0 : index
    %c0_194 = arith.constant 0 : index
    %473 = vector.load %arg17[%c0_192, %c0_193, %c0_194] : memref<2x1x192xf32, #tpu.memory_space<vmem>>, vector<1x1x192xf32>
    %474 = vector.shape_cast %473 : vector<1x1x192xf32> to vector<1x192xf32>
    %475 = vector.broadcast %474 : vector<1x192xf32> to vector<32x192xf32>
    %476 = arith.addf %472, %475 : vector<32x192xf32>
    %477 = vector.extract_strided_slice %476 {offsets = [0, 0], sizes = [32, 16], strides = [1, 1]} : vector<32x192xf32> to vector<32x16xf32>
    %478 = vector.extract_strided_slice %476 {offsets = [0, 64], sizes = [32, 16], strides = [1, 1]} : vector<32x192xf32> to vector<32x16xf32>
    %479 = vector.extract_strided_slice %476 {offsets = [0, 128], sizes = [32, 16], strides = [1, 1]} : vector<32x192xf32> to vector<32x16xf32>
    %480 = arith.truncf %477 : vector<32x16xf32> to vector<32x16xbf16>
    %481 = arith.truncf %478 : vector<32x16xf32> to vector<32x16xbf16>
    %cst_195 = arith.constant dense<0.000000e+00> : vector<32x32xf32>
    %482 = tpu.matmul %480, %481, %cst_195 {dimension_numbers = #tpu.dot_dimension_numbers<[1], [1], [0], [0], [0, 0, 1, 0], [], []>} : vector<32x16xbf16>, vector<32x16xbf16>, vector<32x32xf32> -> vector<32x32xf32>
    %cst_196 = arith.constant 2.500000e-01 : f32
    %483 = vector.broadcast %cst_196 : f32 to vector<32x32xf32>
    %484 = arith.mulf %482, %483 : vector<32x32xf32>
    %485 = arith.addf %484, %65 : vector<32x32xf32>
    %cst_197 = arith.constant dense<0xFF800000> : vector<32xf32>
    %486 = vector.multi_reduction <maximumf>, %485, %cst_197 [1] : vector<32x32xf32> to vector<32xf32>
    %487 = vector.shape_cast %486 : vector<32xf32> to vector<32x1xf32>
    %488 = vector.broadcast %487 : vector<32x1xf32> to vector<32x32xf32>
    %489 = arith.subf %485, %488 : vector<32x32xf32>
    %490 = math.exp %489 : vector<32x32xf32>
    %cst_198 = arith.constant dense<0.000000e+00> : vector<32xf32>
    %491 = vector.multi_reduction <add>, %490, %cst_198 [1] : vector<32x32xf32> to vector<32xf32>
    %492 = vector.shape_cast %491 : vector<32xf32> to vector<32x1xf32>
    %493 = tpu.reciprocal %492 {approx = true} : vector<32x1xf32> -> vector<32x1xf32>
    %494 = vector.broadcast %493 : vector<32x1xf32> to vector<32x32xf32>
    %495 = arith.mulf %490, %494 : vector<32x32xf32>
    %496 = arith.truncf %495 : vector<32x32xf32> to vector<32x32xbf16>
    %497 = arith.truncf %479 : vector<32x16xf32> to vector<32x16xbf16>
    %cst_199 = arith.constant dense<0.000000e+00> : vector<32x16xf32>
    %498 = tpu.matmul %496, %497, %cst_199 {dimension_numbers = #tpu.dot_dimension_numbers<[1], [0], [0], [1], [0, 0, 1, 1], [], []>} : vector<32x32xbf16>, vector<32x16xbf16>, vector<32x16xf32> -> vector<32x16xf32>
    %499 = vector.extract_strided_slice %476 {offsets = [0, 16], sizes = [32, 16], strides = [1, 1]} : vector<32x192xf32> to vector<32x16xf32>
    %500 = vector.extract_strided_slice %476 {offsets = [0, 80], sizes = [32, 16], strides = [1, 1]} : vector<32x192xf32> to vector<32x16xf32>
    %501 = vector.extract_strided_slice %476 {offsets = [0, 144], sizes = [32, 16], strides = [1, 1]} : vector<32x192xf32> to vector<32x16xf32>
    %502 = arith.truncf %499 : vector<32x16xf32> to vector<32x16xbf16>
    %503 = arith.truncf %500 : vector<32x16xf32> to vector<32x16xbf16>
    %cst_200 = arith.constant dense<0.000000e+00> : vector<32x32xf32>
    %504 = tpu.matmul %502, %503, %cst_200 {dimension_numbers = #tpu.dot_dimension_numbers<[1], [1], [0], [0], [0, 0, 1, 0], [], []>} : vector<32x16xbf16>, vector<32x16xbf16>, vector<32x32xf32> -> vector<32x32xf32>
    %cst_201 = arith.constant 2.500000e-01 : f32
    %505 = vector.broadcast %cst_201 : f32 to vector<32x32xf32>
    %506 = arith.mulf %504, %505 : vector<32x32xf32>
    %507 = arith.addf %506, %65 : vector<32x32xf32>
    %cst_202 = arith.constant dense<0xFF800000> : vector<32xf32>
    %508 = vector.multi_reduction <maximumf>, %507, %cst_202 [1] : vector<32x32xf32> to vector<32xf32>
    %509 = vector.shape_cast %508 : vector<32xf32> to vector<32x1xf32>
    %510 = vector.broadcast %509 : vector<32x1xf32> to vector<32x32xf32>
    %511 = arith.subf %507, %510 : vector<32x32xf32>
    %512 = math.exp %511 : vector<32x32xf32>
    %cst_203 = arith.constant dense<0.000000e+00> : vector<32xf32>
    %513 = vector.multi_reduction <add>, %512, %cst_203 [1] : vector<32x32xf32> to vector<32xf32>
    %514 = vector.shape_cast %513 : vector<32xf32> to vector<32x1xf32>
    %515 = tpu.reciprocal %514 {approx = true} : vector<32x1xf32> -> vector<32x1xf32>
    %516 = vector.broadcast %515 : vector<32x1xf32> to vector<32x32xf32>
    %517 = arith.mulf %512, %516 : vector<32x32xf32>
    %518 = arith.truncf %517 : vector<32x32xf32> to vector<32x32xbf16>
    %519 = arith.truncf %501 : vector<32x16xf32> to vector<32x16xbf16>
    %cst_204 = arith.constant dense<0.000000e+00> : vector<32x16xf32>
    %520 = tpu.matmul %518, %519, %cst_204 {dimension_numbers = #tpu.dot_dimension_numbers<[1], [0], [0], [1], [0, 0, 1, 1], [], []>} : vector<32x32xbf16>, vector<32x16xbf16>, vector<32x16xf32> -> vector<32x16xf32>
    %521 = vector.extract_strided_slice %476 {offsets = [0, 32], sizes = [32, 16], strides = [1, 1]} : vector<32x192xf32> to vector<32x16xf32>
    %522 = vector.extract_strided_slice %476 {offsets = [0, 96], sizes = [32, 16], strides = [1, 1]} : vector<32x192xf32> to vector<32x16xf32>
    %523 = vector.extract_strided_slice %476 {offsets = [0, 160], sizes = [32, 16], strides = [1, 1]} : vector<32x192xf32> to vector<32x16xf32>
    %524 = arith.truncf %521 : vector<32x16xf32> to vector<32x16xbf16>
    %525 = arith.truncf %522 : vector<32x16xf32> to vector<32x16xbf16>
    %cst_205 = arith.constant dense<0.000000e+00> : vector<32x32xf32>
    %526 = tpu.matmul %524, %525, %cst_205 {dimension_numbers = #tpu.dot_dimension_numbers<[1], [1], [0], [0], [0, 0, 1, 0], [], []>} : vector<32x16xbf16>, vector<32x16xbf16>, vector<32x32xf32> -> vector<32x32xf32>
    %cst_206 = arith.constant 2.500000e-01 : f32
    %527 = vector.broadcast %cst_206 : f32 to vector<32x32xf32>
    %528 = arith.mulf %526, %527 : vector<32x32xf32>
    %529 = arith.addf %528, %65 : vector<32x32xf32>
    %cst_207 = arith.constant dense<0xFF800000> : vector<32xf32>
    %530 = vector.multi_reduction <maximumf>, %529, %cst_207 [1] : vector<32x32xf32> to vector<32xf32>
    %531 = vector.shape_cast %530 : vector<32xf32> to vector<32x1xf32>
    %532 = vector.broadcast %531 : vector<32x1xf32> to vector<32x32xf32>
    %533 = arith.subf %529, %532 : vector<32x32xf32>
    %534 = math.exp %533 : vector<32x32xf32>
    %cst_208 = arith.constant dense<0.000000e+00> : vector<32xf32>
    %535 = vector.multi_reduction <add>, %534, %cst_208 [1] : vector<32x32xf32> to vector<32xf32>
    %536 = vector.shape_cast %535 : vector<32xf32> to vector<32x1xf32>
    %537 = tpu.reciprocal %536 {approx = true} : vector<32x1xf32> -> vector<32x1xf32>
    %538 = vector.broadcast %537 : vector<32x1xf32> to vector<32x32xf32>
    %539 = arith.mulf %534, %538 : vector<32x32xf32>
    %540 = arith.truncf %539 : vector<32x32xf32> to vector<32x32xbf16>
    %541 = arith.truncf %523 : vector<32x16xf32> to vector<32x16xbf16>
    %cst_209 = arith.constant dense<0.000000e+00> : vector<32x16xf32>
    %542 = tpu.matmul %540, %541, %cst_209 {dimension_numbers = #tpu.dot_dimension_numbers<[1], [0], [0], [1], [0, 0, 1, 1], [], []>} : vector<32x32xbf16>, vector<32x16xbf16>, vector<32x16xf32> -> vector<32x16xf32>
    %543 = vector.extract_strided_slice %476 {offsets = [0, 48], sizes = [32, 16], strides = [1, 1]} : vector<32x192xf32> to vector<32x16xf32>
    %544 = vector.extract_strided_slice %476 {offsets = [0, 112], sizes = [32, 16], strides = [1, 1]} : vector<32x192xf32> to vector<32x16xf32>
    %545 = vector.extract_strided_slice %476 {offsets = [0, 176], sizes = [32, 16], strides = [1, 1]} : vector<32x192xf32> to vector<32x16xf32>
    %546 = arith.truncf %543 : vector<32x16xf32> to vector<32x16xbf16>
    %547 = arith.truncf %544 : vector<32x16xf32> to vector<32x16xbf16>
    %cst_210 = arith.constant dense<0.000000e+00> : vector<32x32xf32>
    %548 = tpu.matmul %546, %547, %cst_210 {dimension_numbers = #tpu.dot_dimension_numbers<[1], [1], [0], [0], [0, 0, 1, 0], [], []>} : vector<32x16xbf16>, vector<32x16xbf16>, vector<32x32xf32> -> vector<32x32xf32>
    %cst_211 = arith.constant 2.500000e-01 : f32
    %549 = vector.broadcast %cst_211 : f32 to vector<32x32xf32>
    %550 = arith.mulf %548, %549 : vector<32x32xf32>
    %551 = arith.addf %550, %65 : vector<32x32xf32>
    %cst_212 = arith.constant dense<0xFF800000> : vector<32xf32>
    %552 = vector.multi_reduction <maximumf>, %551, %cst_212 [1] : vector<32x32xf32> to vector<32xf32>
    %553 = vector.shape_cast %552 : vector<32xf32> to vector<32x1xf32>
    %554 = vector.broadcast %553 : vector<32x1xf32> to vector<32x32xf32>
    %555 = arith.subf %551, %554 : vector<32x32xf32>
    %556 = math.exp %555 : vector<32x32xf32>
    %cst_213 = arith.constant dense<0.000000e+00> : vector<32xf32>
    %557 = vector.multi_reduction <add>, %556, %cst_213 [1] : vector<32x32xf32> to vector<32xf32>
    %558 = vector.shape_cast %557 : vector<32xf32> to vector<32x1xf32>
    %559 = tpu.reciprocal %558 {approx = true} : vector<32x1xf32> -> vector<32x1xf32>
    %560 = vector.broadcast %559 : vector<32x1xf32> to vector<32x32xf32>
    %561 = arith.mulf %556, %560 : vector<32x32xf32>
    %562 = arith.truncf %561 : vector<32x32xf32> to vector<32x32xbf16>
    %563 = arith.truncf %545 : vector<32x16xf32> to vector<32x16xbf16>
    %cst_214 = arith.constant dense<0.000000e+00> : vector<32x16xf32>
    %564 = tpu.matmul %562, %563, %cst_214 {dimension_numbers = #tpu.dot_dimension_numbers<[1], [0], [0], [1], [0, 0, 1, 1], [], []>} : vector<32x32xbf16>, vector<32x16xbf16>, vector<32x16xf32> -> vector<32x16xf32>
    %565 = tpu.concatenate %498, %520, %542, %564 in 1 : vector<32x16xf32>, vector<32x16xf32>, vector<32x16xf32>, vector<32x16xf32> -> vector<32x64xf32>
    %c0_215 = arith.constant 0 : index
    %c0_216 = arith.constant 0 : index
    %c0_217 = arith.constant 0 : index
    %566 = vector.load %arg18[%c0_215, %c0_216, %c0_217] : memref<2x64x64xbf16, #tpu.memory_space<vmem>>, vector<1x64x64xbf16>
    %567 = vector.shape_cast %566 : vector<1x64x64xbf16> to vector<64x64xbf16>
    %568 = arith.truncf %565 : vector<32x64xf32> to vector<32x64xbf16>
    %cst_218 = arith.constant dense<0.000000e+00> : vector<32x64xf32>
    %569 = tpu.matmul %568, %567, %cst_218 {dimension_numbers = #tpu.dot_dimension_numbers<[1], [0], [0], [1], [0, 0, 1, 1], [], []>} : vector<32x64xbf16>, vector<64x64xbf16>, vector<32x64xf32> -> vector<32x64xf32>
    %c0_219 = arith.constant 0 : index
    %c0_220 = arith.constant 0 : index
    %c0_221 = arith.constant 0 : index
    %570 = vector.load %arg19[%c0_219, %c0_220, %c0_221] : memref<2x1x64xf32, #tpu.memory_space<vmem>>, vector<1x1x64xf32>
    %571 = vector.shape_cast %570 : vector<1x1x64xf32> to vector<1x64xf32>
    %572 = vector.broadcast %571 : vector<1x64xf32> to vector<32x64xf32>
    %573 = arith.addf %569, %572 : vector<32x64xf32>
    %574 = arith.addf %468, %573 : vector<32x64xf32>
    %c0_222 = arith.constant 0 : index
    %c0_223 = arith.constant 0 : index
    %c0_224 = arith.constant 0 : index
    %575 = vector.load %arg20[%c0_222, %c0_223, %c0_224] : memref<2x1x64xf32, #tpu.memory_space<vmem>>, vector<1x1x64xf32>
    %576 = vector.shape_cast %575 : vector<1x1x64xf32> to vector<1x64xf32>
    %c0_225 = arith.constant 0 : index
    %c0_226 = arith.constant 0 : index
    %c0_227 = arith.constant 0 : index
    %577 = vector.load %arg21[%c0_225, %c0_226, %c0_227] : memref<2x1x64xf32, #tpu.memory_space<vmem>>, vector<1x1x64xf32>
    %578 = vector.shape_cast %577 : vector<1x1x64xf32> to vector<1x64xf32>
    %cst_228 = arith.constant dense<0.000000e+00> : vector<32xf32>
    %579 = vector.multi_reduction <add>, %574, %cst_228 [1] : vector<32x64xf32> to vector<32xf32>
    %580 = vector.shape_cast %579 : vector<32xf32> to vector<32x1xf32>
    %cst_229 = arith.constant 6.400000e+01 : f32
    %581 = vector.broadcast %cst_229 : f32 to vector<32x1xf32>
    %582 = arith.divf %580, %581 : vector<32x1xf32>
    %583 = vector.broadcast %582 : vector<32x1xf32> to vector<32x64xf32>
    %584 = arith.subf %574, %583 : vector<32x64xf32>
    %585 = arith.mulf %584, %584 : vector<32x64xf32>
    %cst_230 = arith.constant dense<0.000000e+00> : vector<32xf32>
    %586 = vector.multi_reduction <add>, %585, %cst_230 [1] : vector<32x64xf32> to vector<32xf32>
    %587 = vector.shape_cast %586 : vector<32xf32> to vector<32x1xf32>
    %cst_231 = arith.constant 6.400000e+01 : f32
    %588 = vector.broadcast %cst_231 : f32 to vector<32x1xf32>
    %589 = arith.divf %587, %588 : vector<32x1xf32>
    %590 = vector.broadcast %582 : vector<32x1xf32> to vector<32x64xf32>
    %591 = arith.subf %574, %590 : vector<32x64xf32>
    %cst_232 = arith.constant 9.99999974E-6 : f32
    %592 = vector.broadcast %cst_232 : f32 to vector<32x1xf32>
    %593 = arith.addf %589, %592 : vector<32x1xf32>
    %594 = math.rsqrt %593 : vector<32x1xf32>
    %595 = vector.broadcast %594 : vector<32x1xf32> to vector<32x64xf32>
    %596 = arith.mulf %591, %595 : vector<32x64xf32>
    %597 = vector.broadcast %576 : vector<1x64xf32> to vector<32x64xf32>
    %598 = arith.mulf %596, %597 : vector<32x64xf32>
    %599 = vector.broadcast %578 : vector<1x64xf32> to vector<32x64xf32>
    %600 = arith.addf %598, %599 : vector<32x64xf32>
    %c0_233 = arith.constant 0 : index
    %c0_234 = arith.constant 0 : index
    %c0_235 = arith.constant 0 : index
    %601 = vector.load %arg22[%c0_233, %c0_234, %c0_235] : memref<2x64x256xbf16, #tpu.memory_space<vmem>>, vector<1x64x256xbf16>
    %602 = vector.shape_cast %601 : vector<1x64x256xbf16> to vector<64x256xbf16>
    %603 = arith.truncf %600 : vector<32x64xf32> to vector<32x64xbf16>
    %cst_236 = arith.constant dense<0.000000e+00> : vector<32x256xf32>
    %604 = tpu.matmul %603, %602, %cst_236 {dimension_numbers = #tpu.dot_dimension_numbers<[1], [0], [0], [1], [0, 0, 1, 1], [], []>} : vector<32x64xbf16>, vector<64x256xbf16>, vector<32x256xf32> -> vector<32x256xf32>
    %c0_237 = arith.constant 0 : index
    %c0_238 = arith.constant 0 : index
    %c0_239 = arith.constant 0 : index
    %605 = vector.load %arg23[%c0_237, %c0_238, %c0_239] : memref<2x1x256xf32, #tpu.memory_space<vmem>>, vector<1x1x256xf32>
    %606 = vector.shape_cast %605 : vector<1x1x256xf32> to vector<1x256xf32>
    %607 = vector.broadcast %606 : vector<1x256xf32> to vector<32x256xf32>
    %608 = arith.addf %604, %607 : vector<32x256xf32>
    %cst_240 = arith.constant 0.000000e+00 : f32
    %609 = vector.broadcast %cst_240 : f32 to vector<32x256xf32>
    %610 = arith.maximumf %608, %609 : vector<32x256xf32>
    %c0_241 = arith.constant 0 : index
    %c0_242 = arith.constant 0 : index
    %c0_243 = arith.constant 0 : index
    %611 = vector.load %arg24[%c0_241, %c0_242, %c0_243] : memref<2x256x64xbf16, #tpu.memory_space<vmem>>, vector<1x256x64xbf16>
    %612 = vector.shape_cast %611 : vector<1x256x64xbf16> to vector<256x64xbf16>
    %613 = arith.truncf %610 : vector<32x256xf32> to vector<32x256xbf16>
    %cst_244 = arith.constant dense<0.000000e+00> : vector<32x64xf32>
    %614 = tpu.matmul %613, %612, %cst_244 {dimension_numbers = #tpu.dot_dimension_numbers<[1], [0], [0], [1], [0, 0, 1, 1], [], []>} : vector<32x256xbf16>, vector<256x64xbf16>, vector<32x64xf32> -> vector<32x64xf32>
    %c0_245 = arith.constant 0 : index
    %c0_246 = arith.constant 0 : index
    %c0_247 = arith.constant 0 : index
    %615 = vector.load %arg25[%c0_245, %c0_246, %c0_247] : memref<2x1x64xf32, #tpu.memory_space<vmem>>, vector<1x1x64xf32>
    %616 = vector.shape_cast %615 : vector<1x1x64xf32> to vector<1x64xf32>
    %617 = vector.broadcast %616 : vector<1x64xf32> to vector<32x64xf32>
    %618 = arith.addf %614, %617 : vector<32x64xf32>
    %619 = arith.addf %600, %618 : vector<32x64xf32>
    %c0_248 = arith.constant 0 : index
    %c0_249 = arith.constant 0 : index
    %c0_250 = arith.constant 0 : index
    %620 = vector.load %arg26[%c0_248, %c0_249, %c0_250] : memref<2x1x64xf32, #tpu.memory_space<vmem>>, vector<1x1x64xf32>
    %621 = vector.shape_cast %620 : vector<1x1x64xf32> to vector<1x64xf32>
    %c0_251 = arith.constant 0 : index
    %c0_252 = arith.constant 0 : index
    %c0_253 = arith.constant 0 : index
    %622 = vector.load %arg27[%c0_251, %c0_252, %c0_253] : memref<2x1x64xf32, #tpu.memory_space<vmem>>, vector<1x1x64xf32>
    %623 = vector.shape_cast %622 : vector<1x1x64xf32> to vector<1x64xf32>
    %cst_254 = arith.constant dense<0.000000e+00> : vector<32xf32>
    %624 = vector.multi_reduction <add>, %619, %cst_254 [1] : vector<32x64xf32> to vector<32xf32>
    %625 = vector.shape_cast %624 : vector<32xf32> to vector<32x1xf32>
    %cst_255 = arith.constant 6.400000e+01 : f32
    %626 = vector.broadcast %cst_255 : f32 to vector<32x1xf32>
    %627 = arith.divf %625, %626 : vector<32x1xf32>
    %628 = vector.broadcast %627 : vector<32x1xf32> to vector<32x64xf32>
    %629 = arith.subf %619, %628 : vector<32x64xf32>
    %630 = arith.mulf %629, %629 : vector<32x64xf32>
    %cst_256 = arith.constant dense<0.000000e+00> : vector<32xf32>
    %631 = vector.multi_reduction <add>, %630, %cst_256 [1] : vector<32x64xf32> to vector<32xf32>
    %632 = vector.shape_cast %631 : vector<32xf32> to vector<32x1xf32>
    %cst_257 = arith.constant 6.400000e+01 : f32
    %633 = vector.broadcast %cst_257 : f32 to vector<32x1xf32>
    %634 = arith.divf %632, %633 : vector<32x1xf32>
    %635 = vector.broadcast %627 : vector<32x1xf32> to vector<32x64xf32>
    %636 = arith.subf %619, %635 : vector<32x64xf32>
    %cst_258 = arith.constant 9.99999974E-6 : f32
    %637 = vector.broadcast %cst_258 : f32 to vector<32x1xf32>
    %638 = arith.addf %634, %637 : vector<32x1xf32>
    %639 = math.rsqrt %638 : vector<32x1xf32>
    %640 = vector.broadcast %639 : vector<32x1xf32> to vector<32x64xf32>
    %641 = arith.mulf %636, %640 : vector<32x64xf32>
    %642 = vector.broadcast %621 : vector<1x64xf32> to vector<32x64xf32>
    %643 = arith.mulf %641, %642 : vector<32x64xf32>
    %644 = vector.broadcast %623 : vector<1x64xf32> to vector<32x64xf32>
    %645 = arith.addf %643, %644 : vector<32x64xf32>
    %c1_259 = arith.constant 1 : index
    %c0_260 = arith.constant 0 : index
    %c0_261 = arith.constant 0 : index
    %646 = vector.load %arg16[%c1_259, %c0_260, %c0_261] : memref<2x64x192xbf16, #tpu.memory_space<vmem>>, vector<1x64x192xbf16>
    %647 = vector.shape_cast %646 : vector<1x64x192xbf16> to vector<64x192xbf16>
    %648 = arith.truncf %645 : vector<32x64xf32> to vector<32x64xbf16>
    %cst_262 = arith.constant dense<0.000000e+00> : vector<32x192xf32>
    %649 = tpu.matmul %648, %647, %cst_262 {dimension_numbers = #tpu.dot_dimension_numbers<[1], [0], [0], [1], [0, 0, 1, 1], [], []>} : vector<32x64xbf16>, vector<64x192xbf16>, vector<32x192xf32> -> vector<32x192xf32>
    %c1_263 = arith.constant 1 : index
    %c0_264 = arith.constant 0 : index
    %c0_265 = arith.constant 0 : index
    %650 = vector.load %arg17[%c1_263, %c0_264, %c0_265] : memref<2x1x192xf32, #tpu.memory_space<vmem>>, vector<1x1x192xf32>
    %651 = vector.shape_cast %650 : vector<1x1x192xf32> to vector<1x192xf32>
    %652 = vector.broadcast %651 : vector<1x192xf32> to vector<32x192xf32>
    %653 = arith.addf %649, %652 : vector<32x192xf32>
    %654 = vector.extract_strided_slice %653 {offsets = [0, 0], sizes = [32, 16], strides = [1, 1]} : vector<32x192xf32> to vector<32x16xf32>
    %655 = vector.extract_strided_slice %653 {offsets = [0, 64], sizes = [32, 16], strides = [1, 1]} : vector<32x192xf32> to vector<32x16xf32>
    %656 = vector.extract_strided_slice %653 {offsets = [0, 128], sizes = [32, 16], strides = [1, 1]} : vector<32x192xf32> to vector<32x16xf32>
    %657 = arith.truncf %654 : vector<32x16xf32> to vector<32x16xbf16>
    %658 = arith.truncf %655 : vector<32x16xf32> to vector<32x16xbf16>
    %cst_266 = arith.constant dense<0.000000e+00> : vector<32x32xf32>
    %659 = tpu.matmul %657, %658, %cst_266 {dimension_numbers = #tpu.dot_dimension_numbers<[1], [1], [0], [0], [0, 0, 1, 0], [], []>} : vector<32x16xbf16>, vector<32x16xbf16>, vector<32x32xf32> -> vector<32x32xf32>
    %cst_267 = arith.constant 2.500000e-01 : f32
    %660 = vector.broadcast %cst_267 : f32 to vector<32x32xf32>
    %661 = arith.mulf %659, %660 : vector<32x32xf32>
    %662 = arith.addf %661, %65 : vector<32x32xf32>
    %cst_268 = arith.constant dense<0xFF800000> : vector<32xf32>
    %663 = vector.multi_reduction <maximumf>, %662, %cst_268 [1] : vector<32x32xf32> to vector<32xf32>
    %664 = vector.shape_cast %663 : vector<32xf32> to vector<32x1xf32>
    %665 = vector.broadcast %664 : vector<32x1xf32> to vector<32x32xf32>
    %666 = arith.subf %662, %665 : vector<32x32xf32>
    %667 = math.exp %666 : vector<32x32xf32>
    %cst_269 = arith.constant dense<0.000000e+00> : vector<32xf32>
    %668 = vector.multi_reduction <add>, %667, %cst_269 [1] : vector<32x32xf32> to vector<32xf32>
    %669 = vector.shape_cast %668 : vector<32xf32> to vector<32x1xf32>
    %670 = tpu.reciprocal %669 {approx = true} : vector<32x1xf32> -> vector<32x1xf32>
    %671 = vector.broadcast %670 : vector<32x1xf32> to vector<32x32xf32>
    %672 = arith.mulf %667, %671 : vector<32x32xf32>
    %673 = arith.truncf %672 : vector<32x32xf32> to vector<32x32xbf16>
    %674 = arith.truncf %656 : vector<32x16xf32> to vector<32x16xbf16>
    %cst_270 = arith.constant dense<0.000000e+00> : vector<32x16xf32>
    %675 = tpu.matmul %673, %674, %cst_270 {dimension_numbers = #tpu.dot_dimension_numbers<[1], [0], [0], [1], [0, 0, 1, 1], [], []>} : vector<32x32xbf16>, vector<32x16xbf16>, vector<32x16xf32> -> vector<32x16xf32>
    %676 = vector.extract_strided_slice %653 {offsets = [0, 16], sizes = [32, 16], strides = [1, 1]} : vector<32x192xf32> to vector<32x16xf32>
    %677 = vector.extract_strided_slice %653 {offsets = [0, 80], sizes = [32, 16], strides = [1, 1]} : vector<32x192xf32> to vector<32x16xf32>
    %678 = vector.extract_strided_slice %653 {offsets = [0, 144], sizes = [32, 16], strides = [1, 1]} : vector<32x192xf32> to vector<32x16xf32>
    %679 = arith.truncf %676 : vector<32x16xf32> to vector<32x16xbf16>
    %680 = arith.truncf %677 : vector<32x16xf32> to vector<32x16xbf16>
    %cst_271 = arith.constant dense<0.000000e+00> : vector<32x32xf32>
    %681 = tpu.matmul %679, %680, %cst_271 {dimension_numbers = #tpu.dot_dimension_numbers<[1], [1], [0], [0], [0, 0, 1, 0], [], []>} : vector<32x16xbf16>, vector<32x16xbf16>, vector<32x32xf32> -> vector<32x32xf32>
    %cst_272 = arith.constant 2.500000e-01 : f32
    %682 = vector.broadcast %cst_272 : f32 to vector<32x32xf32>
    %683 = arith.mulf %681, %682 : vector<32x32xf32>
    %684 = arith.addf %683, %65 : vector<32x32xf32>
    %cst_273 = arith.constant dense<0xFF800000> : vector<32xf32>
    %685 = vector.multi_reduction <maximumf>, %684, %cst_273 [1] : vector<32x32xf32> to vector<32xf32>
    %686 = vector.shape_cast %685 : vector<32xf32> to vector<32x1xf32>
    %687 = vector.broadcast %686 : vector<32x1xf32> to vector<32x32xf32>
    %688 = arith.subf %684, %687 : vector<32x32xf32>
    %689 = math.exp %688 : vector<32x32xf32>
    %cst_274 = arith.constant dense<0.000000e+00> : vector<32xf32>
    %690 = vector.multi_reduction <add>, %689, %cst_274 [1] : vector<32x32xf32> to vector<32xf32>
    %691 = vector.shape_cast %690 : vector<32xf32> to vector<32x1xf32>
    %692 = tpu.reciprocal %691 {approx = true} : vector<32x1xf32> -> vector<32x1xf32>
    %693 = vector.broadcast %692 : vector<32x1xf32> to vector<32x32xf32>
    %694 = arith.mulf %689, %693 : vector<32x32xf32>
    %695 = arith.truncf %694 : vector<32x32xf32> to vector<32x32xbf16>
    %696 = arith.truncf %678 : vector<32x16xf32> to vector<32x16xbf16>
    %cst_275 = arith.constant dense<0.000000e+00> : vector<32x16xf32>
    %697 = tpu.matmul %695, %696, %cst_275 {dimension_numbers = #tpu.dot_dimension_numbers<[1], [0], [0], [1], [0, 0, 1, 1], [], []>} : vector<32x32xbf16>, vector<32x16xbf16>, vector<32x16xf32> -> vector<32x16xf32>
    %698 = vector.extract_strided_slice %653 {offsets = [0, 32], sizes = [32, 16], strides = [1, 1]} : vector<32x192xf32> to vector<32x16xf32>
    %699 = vector.extract_strided_slice %653 {offsets = [0, 96], sizes = [32, 16], strides = [1, 1]} : vector<32x192xf32> to vector<32x16xf32>
    %700 = vector.extract_strided_slice %653 {offsets = [0, 160], sizes = [32, 16], strides = [1, 1]} : vector<32x192xf32> to vector<32x16xf32>
    %701 = arith.truncf %698 : vector<32x16xf32> to vector<32x16xbf16>
    %702 = arith.truncf %699 : vector<32x16xf32> to vector<32x16xbf16>
    %cst_276 = arith.constant dense<0.000000e+00> : vector<32x32xf32>
    %703 = tpu.matmul %701, %702, %cst_276 {dimension_numbers = #tpu.dot_dimension_numbers<[1], [1], [0], [0], [0, 0, 1, 0], [], []>} : vector<32x16xbf16>, vector<32x16xbf16>, vector<32x32xf32> -> vector<32x32xf32>
    %cst_277 = arith.constant 2.500000e-01 : f32
    %704 = vector.broadcast %cst_277 : f32 to vector<32x32xf32>
    %705 = arith.mulf %703, %704 : vector<32x32xf32>
    %706 = arith.addf %705, %65 : vector<32x32xf32>
    %cst_278 = arith.constant dense<0xFF800000> : vector<32xf32>
    %707 = vector.multi_reduction <maximumf>, %706, %cst_278 [1] : vector<32x32xf32> to vector<32xf32>
    %708 = vector.shape_cast %707 : vector<32xf32> to vector<32x1xf32>
    %709 = vector.broadcast %708 : vector<32x1xf32> to vector<32x32xf32>
    %710 = arith.subf %706, %709 : vector<32x32xf32>
    %711 = math.exp %710 : vector<32x32xf32>
    %cst_279 = arith.constant dense<0.000000e+00> : vector<32xf32>
    %712 = vector.multi_reduction <add>, %711, %cst_279 [1] : vector<32x32xf32> to vector<32xf32>
    %713 = vector.shape_cast %712 : vector<32xf32> to vector<32x1xf32>
    %714 = tpu.reciprocal %713 {approx = true} : vector<32x1xf32> -> vector<32x1xf32>
    %715 = vector.broadcast %714 : vector<32x1xf32> to vector<32x32xf32>
    %716 = arith.mulf %711, %715 : vector<32x32xf32>
    %717 = arith.truncf %716 : vector<32x32xf32> to vector<32x32xbf16>
    %718 = arith.truncf %700 : vector<32x16xf32> to vector<32x16xbf16>
    %cst_280 = arith.constant dense<0.000000e+00> : vector<32x16xf32>
    %719 = tpu.matmul %717, %718, %cst_280 {dimension_numbers = #tpu.dot_dimension_numbers<[1], [0], [0], [1], [0, 0, 1, 1], [], []>} : vector<32x32xbf16>, vector<32x16xbf16>, vector<32x16xf32> -> vector<32x16xf32>
    %720 = vector.extract_strided_slice %653 {offsets = [0, 48], sizes = [32, 16], strides = [1, 1]} : vector<32x192xf32> to vector<32x16xf32>
    %721 = vector.extract_strided_slice %653 {offsets = [0, 112], sizes = [32, 16], strides = [1, 1]} : vector<32x192xf32> to vector<32x16xf32>
    %722 = vector.extract_strided_slice %653 {offsets = [0, 176], sizes = [32, 16], strides = [1, 1]} : vector<32x192xf32> to vector<32x16xf32>
    %723 = arith.truncf %720 : vector<32x16xf32> to vector<32x16xbf16>
    %724 = arith.truncf %721 : vector<32x16xf32> to vector<32x16xbf16>
    %cst_281 = arith.constant dense<0.000000e+00> : vector<32x32xf32>
    %725 = tpu.matmul %723, %724, %cst_281 {dimension_numbers = #tpu.dot_dimension_numbers<[1], [1], [0], [0], [0, 0, 1, 0], [], []>} : vector<32x16xbf16>, vector<32x16xbf16>, vector<32x32xf32> -> vector<32x32xf32>
    %cst_282 = arith.constant 2.500000e-01 : f32
    %726 = vector.broadcast %cst_282 : f32 to vector<32x32xf32>
    %727 = arith.mulf %725, %726 : vector<32x32xf32>
    %728 = arith.addf %727, %65 : vector<32x32xf32>
    %cst_283 = arith.constant dense<0xFF800000> : vector<32xf32>
    %729 = vector.multi_reduction <maximumf>, %728, %cst_283 [1] : vector<32x32xf32> to vector<32xf32>
    %730 = vector.shape_cast %729 : vector<32xf32> to vector<32x1xf32>
    %731 = vector.broadcast %730 : vector<32x1xf32> to vector<32x32xf32>
    %732 = arith.subf %728, %731 : vector<32x32xf32>
    %733 = math.exp %732 : vector<32x32xf32>
    %cst_284 = arith.constant dense<0.000000e+00> : vector<32xf32>
    %734 = vector.multi_reduction <add>, %733, %cst_284 [1] : vector<32x32xf32> to vector<32xf32>
    %735 = vector.shape_cast %734 : vector<32xf32> to vector<32x1xf32>
    %736 = tpu.reciprocal %735 {approx = true} : vector<32x1xf32> -> vector<32x1xf32>
    %737 = vector.broadcast %736 : vector<32x1xf32> to vector<32x32xf32>
    %738 = arith.mulf %733, %737 : vector<32x32xf32>
    %739 = arith.truncf %738 : vector<32x32xf32> to vector<32x32xbf16>
    %740 = arith.truncf %722 : vector<32x16xf32> to vector<32x16xbf16>
    %cst_285 = arith.constant dense<0.000000e+00> : vector<32x16xf32>
    %741 = tpu.matmul %739, %740, %cst_285 {dimension_numbers = #tpu.dot_dimension_numbers<[1], [0], [0], [1], [0, 0, 1, 1], [], []>} : vector<32x32xbf16>, vector<32x16xbf16>, vector<32x16xf32> -> vector<32x16xf32>
    %742 = tpu.concatenate %675, %697, %719, %741 in 1 : vector<32x16xf32>, vector<32x16xf32>, vector<32x16xf32>, vector<32x16xf32> -> vector<32x64xf32>
    %c1_286 = arith.constant 1 : index
    %c0_287 = arith.constant 0 : index
    %c0_288 = arith.constant 0 : index
    %743 = vector.load %arg18[%c1_286, %c0_287, %c0_288] : memref<2x64x64xbf16, #tpu.memory_space<vmem>>, vector<1x64x64xbf16>
    %744 = vector.shape_cast %743 : vector<1x64x64xbf16> to vector<64x64xbf16>
    %745 = arith.truncf %742 : vector<32x64xf32> to vector<32x64xbf16>
    %cst_289 = arith.constant dense<0.000000e+00> : vector<32x64xf32>
    %746 = tpu.matmul %745, %744, %cst_289 {dimension_numbers = #tpu.dot_dimension_numbers<[1], [0], [0], [1], [0, 0, 1, 1], [], []>} : vector<32x64xbf16>, vector<64x64xbf16>, vector<32x64xf32> -> vector<32x64xf32>
    %c1_290 = arith.constant 1 : index
    %c0_291 = arith.constant 0 : index
    %c0_292 = arith.constant 0 : index
    %747 = vector.load %arg19[%c1_290, %c0_291, %c0_292] : memref<2x1x64xf32, #tpu.memory_space<vmem>>, vector<1x1x64xf32>
    %748 = vector.shape_cast %747 : vector<1x1x64xf32> to vector<1x64xf32>
    %749 = vector.broadcast %748 : vector<1x64xf32> to vector<32x64xf32>
    %750 = arith.addf %746, %749 : vector<32x64xf32>
    %751 = arith.addf %645, %750 : vector<32x64xf32>
    %c1_293 = arith.constant 1 : index
    %c0_294 = arith.constant 0 : index
    %c0_295 = arith.constant 0 : index
    %752 = vector.load %arg20[%c1_293, %c0_294, %c0_295] : memref<2x1x64xf32, #tpu.memory_space<vmem>>, vector<1x1x64xf32>
    %753 = vector.shape_cast %752 : vector<1x1x64xf32> to vector<1x64xf32>
    %c1_296 = arith.constant 1 : index
    %c0_297 = arith.constant 0 : index
    %c0_298 = arith.constant 0 : index
    %754 = vector.load %arg21[%c1_296, %c0_297, %c0_298] : memref<2x1x64xf32, #tpu.memory_space<vmem>>, vector<1x1x64xf32>
    %755 = vector.shape_cast %754 : vector<1x1x64xf32> to vector<1x64xf32>
    %cst_299 = arith.constant dense<0.000000e+00> : vector<32xf32>
    %756 = vector.multi_reduction <add>, %751, %cst_299 [1] : vector<32x64xf32> to vector<32xf32>
    %757 = vector.shape_cast %756 : vector<32xf32> to vector<32x1xf32>
    %cst_300 = arith.constant 6.400000e+01 : f32
    %758 = vector.broadcast %cst_300 : f32 to vector<32x1xf32>
    %759 = arith.divf %757, %758 : vector<32x1xf32>
    %760 = vector.broadcast %759 : vector<32x1xf32> to vector<32x64xf32>
    %761 = arith.subf %751, %760 : vector<32x64xf32>
    %762 = arith.mulf %761, %761 : vector<32x64xf32>
    %cst_301 = arith.constant dense<0.000000e+00> : vector<32xf32>
    %763 = vector.multi_reduction <add>, %762, %cst_301 [1] : vector<32x64xf32> to vector<32xf32>
    %764 = vector.shape_cast %763 : vector<32xf32> to vector<32x1xf32>
    %cst_302 = arith.constant 6.400000e+01 : f32
    %765 = vector.broadcast %cst_302 : f32 to vector<32x1xf32>
    %766 = arith.divf %764, %765 : vector<32x1xf32>
    %767 = vector.broadcast %759 : vector<32x1xf32> to vector<32x64xf32>
    %768 = arith.subf %751, %767 : vector<32x64xf32>
    %cst_303 = arith.constant 9.99999974E-6 : f32
    %769 = vector.broadcast %cst_303 : f32 to vector<32x1xf32>
    %770 = arith.addf %766, %769 : vector<32x1xf32>
    %771 = math.rsqrt %770 : vector<32x1xf32>
    %772 = vector.broadcast %771 : vector<32x1xf32> to vector<32x64xf32>
    %773 = arith.mulf %768, %772 : vector<32x64xf32>
    %774 = vector.broadcast %753 : vector<1x64xf32> to vector<32x64xf32>
    %775 = arith.mulf %773, %774 : vector<32x64xf32>
    %776 = vector.broadcast %755 : vector<1x64xf32> to vector<32x64xf32>
    %777 = arith.addf %775, %776 : vector<32x64xf32>
    %c1_304 = arith.constant 1 : index
    %c0_305 = arith.constant 0 : index
    %c0_306 = arith.constant 0 : index
    %778 = vector.load %arg22[%c1_304, %c0_305, %c0_306] : memref<2x64x256xbf16, #tpu.memory_space<vmem>>, vector<1x64x256xbf16>
    %779 = vector.shape_cast %778 : vector<1x64x256xbf16> to vector<64x256xbf16>
    %780 = arith.truncf %777 : vector<32x64xf32> to vector<32x64xbf16>
    %cst_307 = arith.constant dense<0.000000e+00> : vector<32x256xf32>
    %781 = tpu.matmul %780, %779, %cst_307 {dimension_numbers = #tpu.dot_dimension_numbers<[1], [0], [0], [1], [0, 0, 1, 1], [], []>} : vector<32x64xbf16>, vector<64x256xbf16>, vector<32x256xf32> -> vector<32x256xf32>
    %c1_308 = arith.constant 1 : index
    %c0_309 = arith.constant 0 : index
    %c0_310 = arith.constant 0 : index
    %782 = vector.load %arg23[%c1_308, %c0_309, %c0_310] : memref<2x1x256xf32, #tpu.memory_space<vmem>>, vector<1x1x256xf32>
    %783 = vector.shape_cast %782 : vector<1x1x256xf32> to vector<1x256xf32>
    %784 = vector.broadcast %783 : vector<1x256xf32> to vector<32x256xf32>
    %785 = arith.addf %781, %784 : vector<32x256xf32>
    %cst_311 = arith.constant 0.000000e+00 : f32
    %786 = vector.broadcast %cst_311 : f32 to vector<32x256xf32>
    %787 = arith.maximumf %785, %786 : vector<32x256xf32>
    %c1_312 = arith.constant 1 : index
    %c0_313 = arith.constant 0 : index
    %c0_314 = arith.constant 0 : index
    %788 = vector.load %arg24[%c1_312, %c0_313, %c0_314] : memref<2x256x64xbf16, #tpu.memory_space<vmem>>, vector<1x256x64xbf16>
    %789 = vector.shape_cast %788 : vector<1x256x64xbf16> to vector<256x64xbf16>
    %790 = arith.truncf %787 : vector<32x256xf32> to vector<32x256xbf16>
    %cst_315 = arith.constant dense<0.000000e+00> : vector<32x64xf32>
    %791 = tpu.matmul %790, %789, %cst_315 {dimension_numbers = #tpu.dot_dimension_numbers<[1], [0], [0], [1], [0, 0, 1, 1], [], []>} : vector<32x256xbf16>, vector<256x64xbf16>, vector<32x64xf32> -> vector<32x64xf32>
    %c1_316 = arith.constant 1 : index
    %c0_317 = arith.constant 0 : index
    %c0_318 = arith.constant 0 : index
    %792 = vector.load %arg25[%c1_316, %c0_317, %c0_318] : memref<2x1x64xf32, #tpu.memory_space<vmem>>, vector<1x1x64xf32>
    %793 = vector.shape_cast %792 : vector<1x1x64xf32> to vector<1x64xf32>
    %794 = vector.broadcast %793 : vector<1x64xf32> to vector<32x64xf32>
    %795 = arith.addf %791, %794 : vector<32x64xf32>
    %796 = arith.addf %777, %795 : vector<32x64xf32>
    %c1_319 = arith.constant 1 : index
    %c0_320 = arith.constant 0 : index
    %c0_321 = arith.constant 0 : index
    %797 = vector.load %arg26[%c1_319, %c0_320, %c0_321] : memref<2x1x64xf32, #tpu.memory_space<vmem>>, vector<1x1x64xf32>
    %798 = vector.shape_cast %797 : vector<1x1x64xf32> to vector<1x64xf32>
    %c1_322 = arith.constant 1 : index
    %c0_323 = arith.constant 0 : index
    %c0_324 = arith.constant 0 : index
    %799 = vector.load %arg27[%c1_322, %c0_323, %c0_324] : memref<2x1x64xf32, #tpu.memory_space<vmem>>, vector<1x1x64xf32>
    %800 = vector.shape_cast %799 : vector<1x1x64xf32> to vector<1x64xf32>
    %cst_325 = arith.constant dense<0.000000e+00> : vector<32xf32>
    %801 = vector.multi_reduction <add>, %796, %cst_325 [1] : vector<32x64xf32> to vector<32xf32>
    %802 = vector.shape_cast %801 : vector<32xf32> to vector<32x1xf32>
    %cst_326 = arith.constant 6.400000e+01 : f32
    %803 = vector.broadcast %cst_326 : f32 to vector<32x1xf32>
    %804 = arith.divf %802, %803 : vector<32x1xf32>
    %805 = vector.broadcast %804 : vector<32x1xf32> to vector<32x64xf32>
    %806 = arith.subf %796, %805 : vector<32x64xf32>
    %807 = arith.mulf %806, %806 : vector<32x64xf32>
    %cst_327 = arith.constant dense<0.000000e+00> : vector<32xf32>
    %808 = vector.multi_reduction <add>, %807, %cst_327 [1] : vector<32x64xf32> to vector<32xf32>
    %809 = vector.shape_cast %808 : vector<32xf32> to vector<32x1xf32>
    %cst_328 = arith.constant 6.400000e+01 : f32
    %810 = vector.broadcast %cst_328 : f32 to vector<32x1xf32>
    %811 = arith.divf %809, %810 : vector<32x1xf32>
    %812 = vector.broadcast %804 : vector<32x1xf32> to vector<32x64xf32>
    %813 = arith.subf %796, %812 : vector<32x64xf32>
    %cst_329 = arith.constant 9.99999974E-6 : f32
    %814 = vector.broadcast %cst_329 : f32 to vector<32x1xf32>
    %815 = arith.addf %811, %814 : vector<32x1xf32>
    %816 = math.rsqrt %815 : vector<32x1xf32>
    %817 = vector.broadcast %816 : vector<32x1xf32> to vector<32x64xf32>
    %818 = arith.mulf %813, %817 : vector<32x64xf32>
    %819 = vector.broadcast %798 : vector<1x64xf32> to vector<32x64xf32>
    %820 = arith.mulf %818, %819 : vector<32x64xf32>
    %821 = vector.broadcast %800 : vector<1x64xf32> to vector<32x64xf32>
    %822 = arith.addf %820, %821 : vector<32x64xf32>
    %c0_330 = arith.constant 0 : index
    %c0_331 = arith.constant 0 : index
    %823 = vector.load %arg34[%c0_330, %c0_331] : memref<64x32xbf16, #tpu.memory_space<vmem>>, vector<64x32xbf16>
    %824 = arith.truncf %822 : vector<32x64xf32> to vector<32x64xbf16>
    %cst_332 = arith.constant dense<0.000000e+00> : vector<32x32xf32>
    %825 = tpu.matmul %824, %823, %cst_332 {dimension_numbers = #tpu.dot_dimension_numbers<[1], [0], [0], [1], [0, 0, 1, 1], [], []>} : vector<32x64xbf16>, vector<64x32xbf16>, vector<32x32xf32> -> vector<32x32xf32>
    %c0_333 = arith.constant 0 : index
    %c0_334 = arith.constant 0 : index
    %826 = vector.load %arg35[%c0_333, %c0_334] : memref<1x32xf32, #tpu.memory_space<vmem>>, vector<1x32xf32>
    %827 = vector.broadcast %826 : vector<1x32xf32> to vector<32x32xf32>
    %828 = arith.addf %825, %827 : vector<32x32xf32>
    %c0_335 = arith.constant 0 : index
    %c0_336 = arith.constant 0 : index
    %829 = vector.load %arg36[%c0_335, %c0_336] : memref<32x32xf32, #tpu.memory_space<vmem>>, vector<32x32xf32>
    tpu.vector_store %arg36[%c0_335, %c0_336], %828 {strides = array<i32>} : memref<32x32xf32, #tpu.memory_space<vmem>>, vector<32x32xf32>,
    %c0_337 = arith.constant 0 : index
    %c0_338 = arith.constant 0 : index
    %830 = vector.load %arg37[%c0_337, %c0_338] : memref<4x32xf32, #tpu.memory_space<vmem>>, vector<4x32xf32>
    tpu.vector_store %arg37[%c0_337, %c0_338], %449 {strides = array<i32>} : memref<4x32xf32, #tpu.memory_space<vmem>>, vector<4x32xf32>,
    %c0_339 = arith.constant 0 : index
    %c0_340 = arith.constant 0 : index
    %831 = vector.load %arg38[%c0_339, %c0_340] : memref<4x32xf32, #tpu.memory_space<vmem>>, vector<4x32xf32>
    tpu.vector_store %arg38[%c0_339, %c0_340], %455 {strides = array<i32>} : memref<4x32xf32, #tpu.memory_space<vmem>>, vector<4x32xf32>,
    return
  }
}

</mosaic_0001>

<bundles_post_ra>
// kernel: vae_transformer_forward.1
= control target key start
LH: loop header
LB: loop body
LE: loop exit
PB: predicated region body
PF: predicated region fallthrough
CT: control target
= control target key end

     0   :  { %s8736_s6 = smov 1   ;;  %s8737_s10 = smov 2   ;;  %s10477_s0 = inlined_call_operand.smem [shape: u32[39], index: -1, kind: input, shape index: {}] }
   0x1   :  { %s8803_s5 = sld [smem:[%s10477_s0]]   ;;  %s8738_s14 = smov 3  }
   0x2   :  { %s8808_s9 = sld [smem:[%s10477_s0 + %s8736_s6]]   ;;  %s8739_s18 = smov 4  }
   0x3   :  { %s8813_s13 = sld [smem:[%s10477_s0 + %s8737_s10]]   ;;  %s8740_s22 = smov 5  }
   0x4   :  { %s8818_s17 = sld [smem:[%s10477_s0 + %s8738_s14]]   ;;  %s8741_s26 = smov 6  }
   0x5   :  { %s8823_s21 = sld [smem:[%s10477_s0 + %s8739_s18]]   ;;  %s8742_s30 = smov 7  }
   0x6   :  { %s8828_s25 = sld [smem:[%s10477_s0 + %s8740_s22]]   ;;  %s8743_s4 = smov 8  }
   0x7   :  { %s8833_s29 = sld [smem:[%s10477_s0 + %s8741_s26]]   ;;  %s8744_s10 = smov 9  }
   0x8   :  { %10499 = sst [smem:[#allocation23_spill]] %s8808_s9  ;;  %s8745_s15 = smov 10  }
   0x9   :  { %s8838_s3 = sld [smem:[%s10477_s0 + %s8742_s30]]   ;;  %s8746_s20 = smov 11  }
   0xa   :  { %s8843_s8 = sld [smem:[%s10477_s0 + %s8743_s4]]   ;;  %s8747_s26 = smov 12  }
   0xb   :  { %s8848_s14 = sld [smem:[%s10477_s0 + %s8744_s10]]   ;;  %s8748_s1 = smov 13  }
   0xc   :  { %s8853_s19 = sld [smem:[%s10477_s0 + %s8745_s15]]   ;;  %s8749_s7 = smov 14  }
   0xd   :  { %s8858_s24 = sld [smem:[%s10477_s0 + %s8746_s20]]   ;;  %s8750_s15 = smov 15  }
   0xe   :  { %s8863_s30 = sld [smem:[%s10477_s0 + %s8747_s26]]   ;;  %s8751_s22 = smov 16  }
   0xf   :  { %s8868_s6 = sld [smem:[%s10477_s0 + %s8748_s1]]   ;;  %s8752_s28 = smov 17  }
  0x10   :  { %10500 = sst [smem:[#allocation24_spill]] %s8843_s8 }
  0x11   :  { %10501 = sst [smem:[#allocation25_spill]] %s8848_s14 }
  0x12   :  { %s8873_s12 = sld [smem:[%s10477_s0 + %s8749_s7]]   ;;  %s8753_s7 = smov 18  }
  0x13   :  { %10502 = sst [smem:[#allocation26_spill]] %s8858_s24 }
  0x14   :  { %10503 = sst [smem:[#allocation27_spill]] %s8863_s30 }
  0x15   :  { %10504 = sst [smem:[#allocation28_spill]] %s8868_s6 }
  0x16   :  { %s8878_s20 = sld [smem:[%s10477_s0 + %s8750_s15]]   ;;  %s8754_s15 = smov 19  }
  0x17   :  { %s8883_s27 = sld [smem:[%s10477_s0 + %s8751_s22]]   ;;  %s8755_s22 = smov 20  }
  0x18   :  { %10505 = sst [smem:[#allocation29_spill]] %s8873_s12 }
  0x19   :  { %s8888_s4 = sld [smem:[%s10477_s0 + %s8752_s28]]   ;;  %s8756_s28 = smov 21  }
  0x1a   :  { %s8893_s9 = sld [smem:[%s10477_s0 + %s8753_s7]]   ;;  %s8757_s7 = smov 22  }
  0x1c   :  { %10506 = sst [smem:[#allocation30_spill]] %s8878_s20 }
  0x1d   :  { %10507 = sst [smem:[#allocation31_spill]] %s8883_s27 }
  0x1e   :  { %s8898_s20 = sld [smem:[%s10477_s0 + %s8754_s15]]   ;;  %s8758_s15 = smov 23  }
  0x1f   :  { %10508 = sst [smem:[#allocation32_spill]] %s8888_s4 }
  0x20   :  { %10509 = sst [smem:[#allocation33_spill]] %s8893_s9 }
  0x21   :  { %s8903_s27 = sld [smem:[%s10477_s0 + %s8755_s22]]   ;;  %s8759_s22 = smov 24  }
  0x22   :  { %s8908_s4 = sld [smem:[%s10477_s0 + %s8756_s28]]   ;;  %s8760_s28 = smov 25  }
  0x23   :  { %s8913_s9 = sld [smem:[%s10477_s0 + %s8757_s7]]   ;;  %s8761_s7 = smov 26  }
  0x24   :  { %10510 = sst [smem:[#allocation34_spill]] %s8898_s20 }
  0x25   :  { %s8918_s20 = sld [smem:[%s10477_s0 + %s8758_s15]]   ;;  %s8762_s15 = smov 27  }
  0x26   :  { %s8923_s12 = sld [smem:[%s10477_s0 + %s8759_s22]]   ;;  %s8763_s22 = smov 28  }
  0x27   :  { %s8928_s6 = sld [smem:[%s10477_s0 + %s8760_s28]]   ;;  %s8764_s28 = smov 29  }
  0x28   :  { %s8948_s24 = sld [smem:[%s10477_s0 + %s8764_s28]]   ;;  %s8768_s28 = smov 33  }
  0x29   :  { %10511 = sst [smem:[#allocation35_spill]] %s8913_s9 }
  0x2a   :  { %s8933_s9 = sld [smem:[%s10477_s0 + %s8761_s7]]   ;;  %s8765_s7 = smov 30  }
  0x2b   :  { %10512 = sst [smem:[#allocation36_spill]] %s8918_s20 }
  0x2c   :  { %10513 = sst [smem:[#allocation37_spill]] %s8923_s12 }
  0x2d   :  { %s8938_s20 = sld [smem:[%s10477_s0 + %s8762_s15]]   ;;  %s8766_s15 = smov 31  }
  0x2e   :  { %s8943_s12 = sld [smem:[%s10477_s0 + %s8763_s22]]   ;;  %s8767_s22 = smov 32  }
  0x2f   :  { %10515 = sst [smem:[#allocation39_spill]] %s8948_s24 }
  0x30   :  { %s8953_s14 = sld [smem:[%s10477_s0 + %s8765_s7]]   ;;  %s8769_s7 = smov 34  }
  0x31   :  { %s8958_s8 = sld [smem:[%s10477_s0 + %s8766_s15]]   ;;  %s8770_s15 = smov 35  }
  0x32   :  { %s8968_s24 = sld [smem:[%s10477_s0 + %s8768_s28]]   ;;  %s8772_s28 = smov 37  }
  0x33   :  { %s8988_s30 = sld [smem:[%s10477_s0 + %s8772_s28]]  }
  0x34   :  { %10514 = sst [smem:[#allocation38_spill]] %s8943_s12 }
  0x35   :  { %s8963_s12 = sld [smem:[%s10477_s0 + %s8767_s22]]   ;;  %s8771_s22 = smov 36  }
  0x36   :  { %10516 = sst [smem:[#allocation40_spill]] %s8953_s14 }
  0x37   :  { %10517 = sst [smem:[#allocation41_spill]] %s8958_s8 }
  0x38   :  { %s8973_s14 = sld [smem:[%s10477_s0 + %s8769_s7]]   ;;  %s8773_s7 = smov 38  }
  0x39   :  { %s8978_s8 = sld [smem:[%s10477_s0 + %s8770_s15]]  }
  0x3b   :  { %10518 = sst [smem:[#allocation42_spill]] %s8963_s12 }
  0x3c   :  { %s8983_s12 = sld [smem:[%s10477_s0 + %s8771_s22]]  }
  0x3e   :  { %10519 = sst [smem:[#allocation43_spill]] %s8973_s14 }
  0x3f   :  { %s8993_s14 = sld [smem:[%s10477_s0 + %s8773_s7]]  }
  0x40   :  { %83 = vsyncpa [#allocation3], 0 }
  0x41   :  { %84 = vsyncpa [#allocation6], 0 }
  0x42   :  { %85 = vsyncpa [#allocation9], 0 }
  0x43   :  { %86 = vsyncpa [#allocation12], 0 }
  0x44   :  { %87 = vsyncpa [#allocation4], 0 }
  0x45   :  { %88 = vsyncpa [#allocation16], 0  ;;  %s8774_s15 = smov [#allocation5]  }
  0x46   :  { %s142_s16 = sshll.u32 %s8774_s15, 4  ;;  %s143_s16 = int_to_ptr.vmem [resolvable:$true] %s142_s16 }
  0x47   :  { %s8552_s18 = scalar_lea.vmem %s143_s16, 32  ;;  %p8557_p1 = scmp.lt.s32.totalorder %s143_s16, %s143_s16 }
  0x48   :  { %p8553_p0 = scmp.ne.s32.totalorder %s143_s16, %s8552_s18  ;;  %p8558_p2 = scmp.lt.s32.totalorder %s8552_s18, %s8552_s18 }
  0x4a   :  { %p8559_p3 = por %p8558_p2, %p8557_p1 }
  0x4c   :  { %p8560_p4 = pnand %p8559_p3, %p8553_p0 }
  0x4e   :  { %8563 = shalt.err (!%p8560_p4)
}
  0x4f   :  { %s8775_s22 = smov 16   ;;  %s8776_s0 = smov 1  }
  0x50   :  { %148 = dma.hbm_to_vmem [thread:$0]  %s8903_s27, 32, %s143_s16, [#allocation6], %s8775_s22, %s8775_s22, %s8776_s0  }
  0x51   :  { %s8777_s23 = smov [#allocation8]   ;;  %s8778_s28 = smov [#allocation11]  }
  0x52   :  { %s172_s26 = sshll.u32 %s8777_s23, 4  ;;  %s196_s1 = sshll.u32 %s8778_s28, 4  ;;  %s173_s26 = int_to_ptr.vmem [resolvable:$true] %s172_s26  ;;  %s197_s1 = int_to_ptr.vmem [resolvable:$true] %s196_s1 }
  0x53   :  { %s8572_s2 = scalar_lea.vmem %s173_s26, 32  ;;  %p8577_p6 = scmp.lt.s32.totalorder %s173_s26, %s173_s26 }
  0x54   :  { %p8573_p5 = scmp.ne.s32.totalorder %s173_s26, %s8572_s2  ;;  %p8578_p7 = scmp.lt.s32.totalorder %s8572_s2, %s8572_s2 }
  0x56   :  { %p8579_p8 = por %p8578_p7, %p8577_p6 }
  0x58   :  { %p8580_p9 = pnand %p8579_p8, %p8573_p5 }
  0x5a   :  { %8583 = shalt.err (!%p8580_p9)
}
  0x5b   :  { %178 = dma.hbm_to_vmem [thread:$0]  %s8928_s6, 32, %s173_s26, [#allocation9], %s8775_s22, %s8775_s22, %s8776_s0  }
  0x5c   :  { %s8592_s7 = scalar_lea.vmem %s197_s1, 32  ;;  %p8597_p11 = scmp.lt.s32.totalorder %s197_s1, %s197_s1 }
  0x5d   :  { %p8593_p10 = scmp.ne.s32.totalorder %s197_s1, %s8592_s7  ;;  %p8598_p12 = scmp.lt.s32.totalorder %s8592_s7, %s8592_s7 }
  0x5f   :  { %p8599_p13 = por %p8598_p12, %p8597_p11 }
  0x61   :  { %p8600_p0 = pnand %p8599_p13, %p8593_p10 }
  0x63   :  { %8603 = shalt.err (!%p8600_p0)
}
  0x64   :  { %202 = dma.hbm_to_vmem [thread:$0]  %s8938_s20, 32, %s197_s1, [#allocation12], %s8775_s22, %s8775_s22, %s8776_s0  }
  0x65   :  { %s8779_s27 = smov [#allocation2]   ;;  %s8780_s11 = smov [#allocation7]  }
  0x66   :  { %s101_s10 = sshll.u32 %s8779_s27, 4  ;;  %s154_s15 = sshll.u32 %s8780_s11, 4  ;;  %s102_s10 = int_to_ptr.vmem [resolvable:$true] %s101_s10  ;;  %s155_s15 = int_to_ptr.vmem [resolvable:$true] %s154_s15 }
  0x67   :  { %s8612_s16 = scalar_lea.vmem %s102_s10, 16  ;;  %s8616_s6 = scalar_lea.vmem %s102_s10, 32 }
  0x68   :  { %p8613_p1 = scmp.ne.s32.totalorder %s102_s10, %s8612_s16  ;;  %p8617_p2 = scmp.lt.s32.totalorder %s102_s10, %s102_s10 }
  0x69   :  { %p8618_p3 = scmp.lt.s32.totalorder %s8616_s6, %s8612_s16 }
  0x6b   :  { %p8619_p4 = por %p8618_p3, %p8617_p2 }
  0x6d   :  { %p8620_p5 = pnand %p8619_p4, %p8613_p1 }
  0x6f   :  { %8623 = shalt.err (!%p8620_p5)
}
  0x70   :  { %104 = dma.hbm_to_vmem [thread:$0]  %s8818_s17, 16, %s102_s10, [#allocation3]  }
  0x71   :  { %s8632_s18 = scalar_lea.vmem %s155_s15, 32  ;;  %p8637_p7 = scmp.lt.s32.totalorder %s155_s15, %s155_s15 }
  0x72   :  { %p8633_p6 = scmp.ne.s32.totalorder %s155_s15, %s8632_s18  ;;  %p8638_p8 = scmp.lt.s32.totalorder %s8632_s18, %s8632_s18 }
  0x74   :  { %p8639_p9 = por %p8638_p8, %p8637_p7 }
  0x76   :  { %p8640_p10 = pnand %p8639_p9, %p8633_p6 }
  0x78   :  { %8643 = shalt.err (!%p8640_p10)
}
  0x79   :  { %160 = dma.hbm_to_vmem [thread:$0]  %s8908_s4, 32, %s155_s15, [#allocation6], %s8775_s22, %s8775_s22, %s8776_s0  }
  0x7a   :  { %s8781_s20 = smov [#allocation10]   ;;  %s8782_s26 = smov [#allocation13]  }
  0x7b   :  { %s184_s23 = sshll.u32 %s8781_s20, 4  ;;  %s219_s28 = sshll.u32 %s8782_s26, 4  ;;  %s185_s23 = int_to_ptr.vmem [resolvable:$true] %s184_s23  ;;  %s220_s28 = int_to_ptr.vmem [resolvable:$true] %s219_s28 }
  0x7c   :  { %s8652_s1 = scalar_lea.vmem %s185_s23, 32  ;;  %p8657_p12 = scmp.lt.s32.totalorder %s185_s23, %s185_s23 }
  0x7d   :  { %p8653_p11 = scmp.ne.s32.totalorder %s185_s23, %s8652_s1  ;;  %p8658_p13 = scmp.lt.s32.totalorder %s8652_s1, %s8652_s1 }
  0x7f   :  { %p8659_p0 = por %p8658_p13, %p8657_p12 }
  0x81   :  { %p8660_p1 = pnand %p8659_p0, %p8653_p11 }
  0x83   :  { %8663 = shalt.err (!%p8660_p1)
}
  0x84   :  { %190 = dma.hbm_to_vmem [thread:$0]  %s8933_s9, 32, %s185_s23, [#allocation9], %s8775_s22, %s8775_s22, %s8776_s0  }
  0x85   :  { %s8672_s17 = scalar_lea.vmem %s220_s28, 16  ;;  %s8676_s4 = scalar_lea.vmem %s220_s28, 32 }
  0x86   :  { %p8673_p2 = scmp.ne.s32.totalorder %s220_s28, %s8672_s17  ;;  %p8677_p3 = scmp.lt.s32.totalorder %s220_s28, %s220_s28 }
  0x87   :  { %p8678_p4 = scmp.lt.s32.totalorder %s8676_s4, %s8672_s17 }
  0x89   :  { %p8679_p5 = por %p8678_p4, %p8677_p3 }
  0x8b   :  { %p8680_p6 = pnand %p8679_p5, %p8673_p2 }
  0x8d   :  { %8683 = shalt.err (!%p8680_p6)
}
  0x8e   :  { %222 = dma.hbm_to_vmem [thread:$0]  %s8968_s24, 16, %s220_s28, [#allocation12]  }
  0x8f   :  { %8724 = dma.done.wait [#allocation3], 16  }
  0x90   :  { %8725 = vsyncadd [#allocation3], 4294967280 }
  0x91   :  { %8726 = dma.done.wait [#allocation6], 64  }
  0x92   :  { %8727 = vsyncadd [#allocation6], 4294967232 }
  0x93   :  { %8728 = dma.done.wait [#allocation9], 64  }
  0x94   :  { %8729 = vsyncadd [#allocation9], 4294967232 }
  0x95   :  { %8730 = dma.done.wait [#allocation12], 48  }
  0x96   :  { %8731 = vsyncadd [#allocation12], 4294967248  ;;  %v8030_v0 = vld [vmem:[%s8813_s13 + $0x8] sm:$0xff]   ;;  %v8031_v1 = vld [vmem:[%s8813_s13] sm:$0xff]   ;;  %vm10498_vm0 = vcmask 261120   ;;  %v8783_v16 = vmov 0   ;;  %v249_v28 = vlaneseq }
  0x97   :  { %7463 = vmatprep.subr.bf16.mxu0 %v8030_v0  ;;  %v288_v2 = vld [vmem:[%s8803_s5] sm:$0xff]  ;;  %v289_v3 = vld [vmem:[%s8803_s5 + $0x8] sm:$0xff]  ;;  %v290_v4 = vld [vmem:[%s8803_s5 + $0x10] sm:$0xff]  ;;  %474 = vmatprep.mubr.bf16.mxu1 %v8783_v16  ;;  %vm10496_vm1 = vcmask 523264   ;;  %vm10497_vm2 = vcmask 130048   ;;  %s8785_s9 = smov 48  }
  0x98   :  { %7464 = vmatpush3.bf16.msra.mxu0 %v8030_v0  ;;  %v296_v5 = vpack.c.bf16 %v289_v3, %v288_v2  ;;  %v291_v6 = vld [vmem:[%s8803_s5 + $0x18] sm:$0xff]  ;;  %v8035_v9 = vld [vmem:[%s8823_s21 + $0x24] ss:$8 sps:$4 sm:$0xff]   ;;  %v8037_v11 = vld [vmem:[%s8823_s21 + $0x20] ss:$8 sps:$4 sm:$0xff]   ;;  %v386_v29 = vshrl.u32 %v249_v28, 7 }
  0x99   :  { %7465 = vmatprep.subr.bf16.mxu0 %v8031_v1  ;;  %v8032_v7 = vld [vmem:[%s8823_s21 + $0x34] ss:$8 sps:$4 sm:$0xff]   ;;  %v8034_v8 = vld [vmem:[%s8823_s21 + $0x30] ss:$8 sps:$4 sm:$0xff]   ;;  %v297_v10 = vpack.c.bf16 %v291_v6, %v290_v4  ;;  %v8041_v14 = vld [vmem:[%s8823_s21 + $0x4] ss:$8 sps:$4 sm:$0xff]  }
  0x9a   :  { %7467 = vmatprep.mubr.msk.bf16.mxu0 %vm10498_vm0, %v296_v5  ;;  %450 = vmatprep.subr.bf16.mxu1 %v8032_v7  ;;  %v8038_v12 = vld [vmem:[%s8823_s21 + $0x14] ss:$8 sps:$4 sm:$0xff]   ;;  %v8040_v13 = vld [vmem:[%s8823_s21 + $0x10] ss:$8 sps:$4 sm:$0xff]   ;;  %v8043_v15 = vld [vmem:[%s8823_s21] ss:$8 sps:$4 sm:$0xff]  }
  0x9b   :  { %451 = vmatpush1.bf16.msra.mxu1 %v8034_v8  ;;  %v6769_v20 = vld [vmem:[#allocation2] ss:$0 sm:$0xff]  ;;  %v9050_v30 = vsub.s32 0, %v386_v29  ;;  %v9053_v32 = vsub.s32 1, %v386_v29  ;;  %s8784_s5 = smov 64   ;;  %s8786_s13 = smov 32  }
  0x9c   :  { %7466 = vmatpush3.bf16.msra.mxu0 %v8031_v1  ;;  %452 = vmatprep.subr.bf16.mxu1 %v8035_v9  ;;  %v383_v31 = vld [vmem:[%s8828_s25] sm:$0x3]  ;;  %s8787_s24 = smov 112   ;;  %s8788_s0 = smov 96   ;;  %v250_v7 = vand.u32 127, %v249_v28  ;;  %vm283_vm15 = vcmask 1043456  }
  0x9d   :  { %v388_v34 = vrot.slane %v383_v31, %v9050_v30  ;;  %v392_v36 = vrot.slane %v383_v31, %v9053_v32  ;;  %v8789_v8 = vmov -1e+30   ;;  %s8790_s2 = smov 80   ;;  %s10581_s7 = sld [smem:[#allocation27_spill]] }
  0x9e   :  { %vm267_vm3 = vcmp.ge.s32.totalorder %v250_v7, 16  ;;  %vm268_vm4 = vcmp.lt.s32.totalorder %v250_v7, 20  ;;  %vm271_vm5 = vcmp.ge.s32.totalorder %v250_v7, 20  ;;  %vm272_vm6 = vcmp.lt.s32.totalorder %v250_v7, 24  ;;  %s10582_s27 = sld [smem:[#allocation24_spill]] }
  0x9f   :  { %7468 = vmatmul.mubr.msk.bf16.vlgmr.msra.gmra.mxu0 %vm10498_vm0, %v297_v10  ;;  %453 = vmatpush1.bf16.msra.mxu1 %v8037_v11  ;;  %vm269_vm7 = vmand %vm267_vm3, %vm268_vm4  ;;  %vm255_vm8 = vcmp.ge.s32.totalorder %v250_v7, 4  ;;  %vm256_vm9 = vcmp.lt.s32.totalorder %v250_v7, 8  ;;  %vm252_vm11 = vcmp.lt.s32.totalorder %v250_v7, 4  ;;  %vm275_vm13 = vcmp.ge.s32.totalorder %v250_v7, 24  ;;  %s10583_s10 = sld [smem:[#allocation25_spill]] }
  0xa0   :  { %454 = vmatprep.subr.bf16.mxu1 %v8038_v12  ;;  %vm273_vm10 = vmand %vm271_vm5, %vm272_vm6  ;;  %v270_v9 = vsel %vm269_vm7, 0.0, %v8789_v8  ;;  %vm276_vm14 = vcmp.lt.s32.totalorder %v250_v7, 28  ;;  %v254_v11 = vsel %vm252_vm11, 0.0, %v8789_v8  ;;  %vm259_vm4 = vcmp.ge.s32.totalorder %v250_v7, 8  ;;  %s10585_s11 = sld [smem:[#allocation26_spill]] }
  0xa1   :  { %vm257_vm12 = vmand %vm255_vm8, %vm256_vm9  ;;  %v274_v10 = vsel %vm273_vm10, 0.0, %v8789_v8  ;;  %vm260_vm5 = vcmp.lt.s32.totalorder %v250_v7, 12  ;;  %vm263_vm6 = vcmp.ge.s32.totalorder %v250_v7, 12  ;;  %vm264_vm7 = vcmp.lt.s32.totalorder %v250_v7, 16  ;;  %s10587_s15 = sld [smem:[#allocation28_spill]] }
  0xa2   :  { %v258_v12 = vsel %vm257_vm12, 0.0, %v8789_v8  ;;  %vm277_vm0 = vmand %vm275_vm13, %vm276_vm14  ;;  %s10595_s16 = sld [smem:[#allocation29_spill]] }
  0xa3   :  { %455 = vmatpush1.bf16.msra.mxu1 %v8040_v13  ;;  %vm261_vm8 = vmand %vm259_vm4, %vm260_vm5  ;;  %s10596_s6 = sld [smem:[#allocation30_spill]] }
  0xa4   :  { %456 = vmatprep.subr.bf16.mxu1 %v8041_v14  ;;  %v9111_v14 = vsel %vm283_vm15, %v270_v9, %v274_v10  ;;  %vm265_vm9 = vmand %vm263_vm6, %vm264_vm7  ;;  %s10694_s18 = sld [smem:[#allocation41_spill]] }
  0xa5   :  { %s10695_s20 = sld [smem:[#allocation23_spill]] }
  0xa6   :  { %s10697_s23 = sld [smem:[#allocation32_spill]] }
  0xa7   :  { %457 = vmatpush1.bf16.msra.mxu1 %v8043_v15  ;;  %s10758_s26 = sld [smem:[#allocation33_spill]] }
  0xa8   :  { %s10765_s28 = sld [smem:[#allocation34_spill]] }
  0xa9   :  { %s10774_s1 = sld [smem:[#allocation35_spill]] }
  0xaa   :  { %s10779_s17 = sld [smem:[#allocation37_spill]] }
  0xab   :  { %s10781_s4 = sld [smem:[#allocation36_spill]] }
 0x15f   :  { %v7469_v17 = vpop.f32.mrf.mxu0 }
 0x160   :  { %v9044_v26 = vadd.f32 %v7469_v17, %v6769_v20 }
 0x161   :  { %v358_v18 = vpop.f32.mrf.mxu0 }
 0x162   :  { %v9034_v22 = vadd.f32 %v6769_v20, %v358_v18  ;;  %v9114_v18 = vsel %vm283_vm15, %v254_v11, %v258_v12 }
 0x163   :  { %v7470_v19 = vpop.f32.mrf.mxu0 }
 0x164   :  { %v9042_v25 = vadd.f32 %v7470_v19, %v6769_v20 }
 0x165   :  { %v361_v21 = vpop.f32.mrf.mxu0 }
 0x166   :  { %v9036_v23 = vadd.f32 %v6769_v20, %v361_v21  ;;  %v382_v27 = vpack.c.bf16 %v9042_v25, %v9044_v26  ;;  %v278_v21 = vsel %vm277_vm0, 0.0, %v8789_v8 }
 0x168   :  { %v381_v24 = vpack.c.bf16 %v9036_v23, %v9034_v22 }
 0x16a   :  { %6782 = vmatmul.mubr.msk.bf16.vlgmr.msra.gmra.mxu1 %vm10496_vm1, %v381_v24 }
 0x16b   :  { %484 = vmatprep.mubr.bf16.mxu1 %v8783_v16 }
 0x172   :  { %6783 = vmatmul.mubr.msk.bf16.gmra.mxu1 %vm10496_vm1, %v382_v27  ;;  %vm279_vm1 = vcmp.ge.s32.totalorder %v250_v7, 28 }
 0x22a   :  { %v476_v33 = vpop.f32.mrf.mxu1 }
 0x22b   :  { %v477_v38 = vadd.f32 %v476_v33, %v388_v34 }
 0x22c   :  { %v478_v35 = vpop.f32.mrf.mxu1 }
 0x22d   :  { %v479_v41 = vadd.f32 %v478_v35, %v392_v36 }
 0x22e   :  { %v480_v37 = vpop.f32.mrf.mxu1 }
 0x22f   :  { %v481_v39 = vadd.f32 %v480_v37, %v388_v34 }
 0x230   :  { %v482_v40 = vpop.f32.mrf.mxu1 }
 0x231   :  { %v9057_v42 = vpack.c.bf16 %v481_v39, %v477_v38  ;;  %v483_v43 = vadd.f32 %v482_v40, %v392_v36  ;;  %v262_v40 = vsel %vm261_vm8, 0.0, %v8789_v8 }
 0x232   :  { %v486_v44 = vpop.f32.mrf.mxu1 }
 0x233   :  { %v9059_v45 = vpack.c.bf16 %v483_v43, %v479_v41  ;;  %499 = vrot.lane.b32.xlu1 %v9057_v42, %s8784_s5  ;;  %7475 = vmatprep.mubr.msk.bf16.mxu0 %vm10497_vm2, %v9057_v42  ;;  %v487_v48 = vadd.f32 %v486_v44, %v388_v34  ;;  %v266_v41 = vsel %vm265_vm9, 0.0, %v8789_v8 }
 0x234   :  { %v488_v46 = vpop.f32.mrf.mxu1 }
 0x235   :  { %v489_v59 = vadd.f32 %v488_v46, %v392_v36 }
 0x236   :  { %v490_v47 = vpop.f32.mrf.mxu1 }
 0x237   :  { %v491_v49 = vadd.f32 %v490_v47, %v388_v34  ;;  %680 = vrot.lane.b32.xlu1 %v9057_v42, %s8785_s9 }
 0x238   :  { %v492_v54 = vpop.f32.mrf.mxu1 }
 0x239   :  { %v9067_v50 = vpack.c.bf16 %v491_v49, %v487_v48  ;;  %v493_v56 = vadd.f32 %v492_v54, %v392_v36 }
 0x23b   :  { %501 = vrot.lane.b32.xlu0 %v9067_v50, %s8784_s5  ;;  %868 = vrot.lane.b32.xlu1 %v9067_v50, %s8786_s13  ;;  %v9091_v61 = vpack.c.bf16 %v493_v56, %v489_v59 }
 0x23f   :  { %682 = vrot.lane.b32.xlu0 %v9067_v50, %s8785_s9  ;;  %866 = vrot.lane.b32.xlu1 %v9057_v42, %s8786_s13 }
 0x243   :  { %676 = vrot.lane.b32.xlu0 %v9057_v42, %s8787_s24  ;;  %864 = vrot.lane.b32.xlu1 %v9067_v50, %s8788_s0 }
 0x247   :  { %678 = vrot.lane.b32.xlu0 %v9067_v50, %s8787_s24 }
 0x24b   :  { %862 = vrot.lane.b32.xlu0 %v9057_v42, %s8788_s0 }
 0x2a5   :  { %v500_v51 = vpop.permute.xlu1 %499 }
 0x2a6   :  { %v511_v62 = vsel %vm10497_vm2, %v500_v51, 0 }
 0x2a9   :  { %v681_v58 = vpop.permute.xlu1 %680 }
 0x2aa   :  { %v691_v63 = vsel %vm10497_vm2, %v681_v58, 0 }
 0x2ad   :  { %v502_v52 = vpop.permute.xlu0 %501  ;;  %v869_v0 = vpop.permute.xlu1 %868 }
 0x2ae   :  { %7819 = vmatprep.subr.msk.bf16.mxu0 %vm10497_vm2, %v502_v52  ;;  %v514_v53 = vsel %vm10497_vm2, %v502_v52, 0  ;;  %v880_v2 = vsel %vm10497_vm2, %v869_v0, 0  ;;  %v9134_v52 = vsel %vm283_vm15, %v262_v40, %v266_v41 }
 0x2af   :  { %7472 = vmatpush3.bf16.xpose.msra.mxu0 %v514_v53 }
 0x2b0   :  { %7820 = vmatprep.subr.msk.bf16.mxu0 %vm10497_vm2, %v500_v51 }
 0x2b1   :  { %v683_v55 = vpop.permute.xlu0 %682  ;;  %v867_v3 = vpop.permute.xlu1 %866 }
 0x2b2   :  { %7821 = vmatprep.subr.msk.bf16.mxu1 %vm10497_vm2, %v683_v55  ;;  %v694_v57 = vsel %vm10497_vm2, %v683_v55, 0  ;;  %v877_v5 = vsel %vm10497_vm2, %v867_v3, 0 }
 0x2b3   :  { %7488 = vmatpush3.bf16.xpose.msra.mxu1 %v694_v57 }
 0x2b4   :  { %7822 = vmatprep.subr.msk.bf16.mxu1 %vm10497_vm2, %v681_v58 }
 0x2b5   :  { %v677_v60 = vpop.permute.xlu0 %676  ;;  %v865_v6 = vpop.permute.xlu1 %864 }
 0x2b6   :  { %7491 = vmatprep.mubr.msk.bf16.mxu1 %vm10497_vm2, %v677_v60 }
 0x2b7   :  { %7474 = vmatpush3.bf16.xpose.msra.mxu0 %v511_v62 }
 0x2b8   :  { %7479 = vmatprep.subr.bf16.mxu0 %v9091_v61 }
 0x2b9   :  { %v679_v1 = vpop.permute.xlu0 %678 }
 0x2bb   :  { %7490 = vmatpush3.bf16.xpose.msra.mxu1 %v691_v63 }
 0x2bc   :  { %7823 = vmatprep.subr.msk.bf16.mxu1 %vm10497_vm2, %v869_v0 }
 0x2bd   :  { %v863_v4 = vpop.permute.xlu0 %862 }
 0x2be   :  { %7476 = vmatmul.mubr.msk.bf16.vlgmr.msra.gmra.mxu0 %vm10497_vm2, %v9067_v50 }
 0x2bf   :  { %7480 = vmatpush3.bf16.msra.mxu0 %v9091_v61 }
 0x2c0   :  { %7481 = vmatprep.subr.bf16.mxu0 %v9059_v45 }
 0x2c2   :  { %7492 = vmatmul.mubr.msk.bf16.vlgmr.msra.gmra.mxu1 %vm10497_vm2, %v679_v1 }
 0x2c3   :  { %7482 = vmatpush3.bf16.msra.mxu0 %v9059_v45  ;;  %7504 = vmatpush3.bf16.xpose.msra.mxu1 %v880_v2 }
 0x2c4   :  { %7507 = vmatprep.mubr.msk.bf16.mxu1 %vm10497_vm2, %v863_v4  ;;  %7824 = vmatprep.subr.msk.bf16.mxu1 %vm10497_vm2, %v867_v3 }
 0x2cb   :  { %7506 = vmatpush3.bf16.xpose.msra.mxu1 %v877_v5 }
 0x2d2   :  { %7508 = vmatmul.mubr.msk.bf16.vlgmr.msra.gmra.mxu1 %vm10497_vm2, %v865_v6  ;;  %vm280_vm2 = vcmp.lt.s32.totalorder %v250_v7, 32 }
 0x2d3   :  { %vm281_vm3 = vmand %vm279_vm1, %vm280_vm2  ;;  %vm10520_vm1 = vcmask 261120  }
 0x2d4   :  { %v282_v24 = vsel %vm281_vm3, 0.0, %v8789_v8  ;;  %vm10521_vm0 = vmmov %vm10520_vm1 }
 0x2d5   :  { %v9125_v37 = vsel %vm283_vm15, %v278_v21, %v282_v24  ;;  %vm10522_vm2 = vmmov %vm10521_vm0 }
 0x2d6   :  { %vm10523_vm10 = vmmov %vm10521_vm0 }
 0x2d7   :  { %vm10524_vm11 = vmmov %vm10521_vm0 }
 0x2d8   :  { %vm10525_vm12 = vmmov %vm10521_vm0 }
 0x2d9   :  { %vm10526_vm13 = vmmov %vm10521_vm0 }
 0x2da   :  { %vm10527_vm14 = vmmov %vm10521_vm0 }
 0x2db   :  { %vm10528_vm3 = vmmov %vm10521_vm0 }
 0x2dc   :  { %vm10529_vm4 = vmmov %vm10521_vm0 }
 0x2dd   :  { %vm10530_vm5 = vmmov %vm10521_vm0 }
 0x2de   :  { %vm10531_vm6 = vmmov %vm10521_vm0 }
 0x2df   :  { %vm10532_vm7 = vmmov %vm10521_vm0 }
 0x2e0   :  { %vm10533_vm8 = vmmov %vm10521_vm0 }
 0x2e1   :  { %vm10534_vm9 = vmmov %vm10521_vm0 }
 0x37e   :  { %v7477_v13 = vpop.f32.mrf.mxu0 }
 0x37f   :  { %v567_v15 = vmul.f32 0.25, %v7477_v13 }
 0x380   :  { %v550_v17 = vpop.f32.mrf.mxu0 }
 0x381   :  { %v565_v19 = vmul.f32 0.25, %v550_v17  ;;  %v9117_v20 = vadd.f32 %v567_v15, %v9111_v14 }
 0x382   :  { %v7478_v27 = vpop.f32.mrf.mxu0  ;;  %v7493_v28 = vpop.f32.mrf.mxu1 }
 0x383   :  { %v568_v29 = vmul.f32 0.25, %v7478_v27  ;;  %v747_v31 = vmul.f32 0.25, %v7493_v28  ;;  %v579_v33 = vsel %vm10520_vm1, %v9117_v20, -inf  ;;  %v9122_v34 = vadd.f32 %v565_v19, %v9114_v18  ;;  %vm10535_vm1 = vmmov %vm10521_vm0 }
 0x384   :  { %v730_v35 = vpop.f32.mrf.mxu1  ;;  %580 = vmax.xlane.f32.xlu0 %v579_v33  ;;  %v553_v36 = vpop.f32.mrf.mxu0 }
 0x385   :  { %v745_v38 = vmul.f32 0.25, %v730_v35  ;;  %v751_v39 = vadd.f32 %v747_v31, %v9111_v14  ;;  %v566_v43 = vmul.f32 0.25, %v553_v36  ;;  %v573_v47 = vsel %vm10522_vm2, %v9122_v34, -inf  ;;  %vm10536_vm2 = vmmov %vm10521_vm0 }
 0x386   :  { %v7494_v44 = vpop.f32.mrf.mxu1  ;;  %v572_v49 = vadd.f32 %v568_v29, %v9125_v37 }
 0x387   :  { %v759_v46 = vsel %vm10521_vm0, %v751_v39, -inf  ;;  %v749_v48 = vadd.f32 %v745_v38, %v9114_v18  ;;  %v748_v54 = vmul.f32 0.25, %v7494_v44  ;;  %v570_v58 = vadd.f32 %v566_v43, %v9134_v52 }
 0x388   :  { %760 = vmax.xlane.f32.xlu1 %v759_v46  ;;  %v733_v51 = vpop.f32.mrf.mxu1  ;;  %574 = vmax.xlane.f32.xlu0 %v573_v47  ;;  %v582_v56 = vsel %vm10524_vm11, %v572_v49, -inf  ;;  %vm10538_vm11 = vmmov %vm10521_vm0 }
 0x389   :  { %v746_v53 = vmul.f32 0.25, %v733_v51  ;;  %v753_v55 = vsel %vm10523_vm10, %v749_v48, -inf  ;;  %v576_v60 = vsel %vm10526_vm13, %v570_v58, -inf  ;;  %v752_v62 = vadd.f32 %v748_v54, %v9125_v37  ;;  %vm10537_vm10 = vmmov %vm10521_vm0 }
 0x38a   :  { %vm10540_vm13 = vmmov %vm10521_vm0 }
 0x38b   :  { %v9139_v57 = vadd.f32 %v746_v53, %v9134_v52  ;;  %v762_v1 = vsel %vm10527_vm14, %v752_v62, -inf  ;;  %vm10541_vm14 = vmmov %vm10521_vm0 }
 0x38c   :  { %754 = vmax.xlane.f32.xlu1 %v753_v55  ;;  %583 = vmax.xlane.f32.xlu0 %v582_v56 }
 0x38d   :  { %v756_v59 = vsel %vm10525_vm12, %v9139_v57, -inf  ;;  %vm10539_vm12 = vmmov %vm10521_vm0 }
 0x390   :  { %757 = vmax.xlane.f32.xlu0 %v756_v59  ;;  %577 = vmax.xlane.f32.xlu1 %v576_v60 }
 0x392   :  { %v7509_v63 = vpop.f32.mrf.mxu1 }
 0x393   :  { %v933_v0 = vmul.f32 0.25, %v7509_v63 }
 0x394   :  { %v916_v2 = vpop.f32.mrf.mxu1  ;;  %763 = vmax.xlane.f32.xlu0 %v762_v1 }
 0x395   :  { %v931_v3 = vmul.f32 0.25, %v916_v2  ;;  %v9148_v4 = vadd.f32 %v933_v0, %v9111_v14 }
 0x396   :  { %v7510_v5 = vpop.f32.mrf.mxu1 }
 0x397   :  { %v945_v6 = vsel %vm10528_vm3, %v9148_v4, -inf  ;;  %v9153_v7 = vadd.f32 %v931_v3, %v9114_v18  ;;  %v934_v9 = vmul.f32 0.25, %v7510_v5  ;;  %vm10542_vm3 = vmmov %vm10521_vm0 }
 0x398   :  { %v919_v8 = vpop.f32.mrf.mxu1  ;;  %946 = vmax.xlane.f32.xlu1 %v945_v6 }
 0x399   :  { %v932_v10 = vmul.f32 0.25, %v919_v8  ;;  %v939_v11 = vsel %vm10529_vm4, %v9153_v7, -inf  ;;  %v9163_v15 = vadd.f32 %v934_v9, %v9125_v37  ;;  %vm10543_vm4 = vmmov %vm10521_vm0 }
 0x39b   :  { %v9158_v12 = vadd.f32 %v932_v10, %v9134_v52  ;;  %v948_v17 = vsel %vm10531_vm6, %v9163_v15, -inf  ;;  %vm10545_vm6 = vmmov %vm10521_vm0 }
 0x39c   :  { %940 = vmax.xlane.f32.xlu1 %v939_v11 }
 0x39d   :  { %v942_v13 = vsel %vm10530_vm5, %v9158_v12, -inf  ;;  %vm10544_vm5 = vmmov %vm10521_vm0 }
 0x39e   :  { %943 = vmax.xlane.f32.xlu0 %v942_v13 }
 0x3a2   :  { %949 = vmax.xlane.f32.xlu0 %v948_v17 }
 0x3ad   :  { %803 = vrot.lane.b32.xlu1 %v9091_v61, %s8787_s24 }
 0x40d   :  { %v581_v19 = vpop.xlane.xlu0 %580 }
 0x40e   :  { %v587_v21 = vsub.f32 %v9117_v20, %v581_v19 }
 0x410   :  { %v593_v24 = vmul.f32 1.442695, %v587_v21 }
 0x411   :  { %v761_v27 = vpop.xlane.xlu1 %760  ;;  %v575_v28 = vpop.xlane.xlu0 %574 }
 0x412   :  { %8222 = vpow2.f32 %v593_v24  ;;  %v767_v29 = vsub.f32 %v751_v39, %v761_v27  ;;  %v585_v31 = vsub.f32 %v9122_v34, %v575_v28 }
 0x414   :  { %v773_v33 = vmul.f32 1.442695, %v767_v29  ;;  %v589_v35 = vmul.f32 1.442695, %v585_v31 }
 0x415   :  { %v755_v36 = vpop.xlane.xlu1 %754  ;;  %v584_v38 = vpop.xlane.xlu0 %583 }
 0x416   :  { %8224 = vpow2.f32 %v773_v33  ;;  %v765_v40 = vsub.f32 %v749_v48, %v755_v36  ;;  %v588_v41 = vsub.f32 %v572_v49, %v584_v38 }
 0x417   :  { %8226 = vpow2.f32 %v589_v35 }
 0x418   :  { %v769_v43 = vmul.f32 1.442695, %v765_v40  ;;  %v595_v44 = vmul.f32 1.442695, %v588_v41 }
 0x419   :  { %v758_v46 = vpop.xlane.xlu0 %757  ;;  %v578_v47 = vpop.xlane.xlu1 %577 }
 0x41a   :  { %8228 = vpow2.f32 %v595_v44  ;;  %v586_v20 = vsub.f32 %v570_v58, %v578_v47  ;;  %v766_v17 = vsub.f32 %v9139_v57, %v758_v46 }
 0x41b   :  { %8230 = vpow2.f32 %v769_v43 }
 0x41c   :  { %v591_v34 = vmul.f32 1.442695, %v586_v20  ;;  %v771_v24 = vmul.f32 1.442695, %v766_v17 }
 0x41d   :  { %v764_v51 = vpop.xlane.xlu0 %763 }
 0x41e   :  { %v768_v53 = vsub.f32 %v752_v62, %v764_v51 }
 0x41f   :  { %v9171_v39 = vpop.eup %8222 }
 0x420   :  { %v775_v54 = vmul.f32 1.442695, %v768_v53  ;;  %v603_v55 = vsel %vm10532_vm7, %v9171_v39, 0.0  ;;  %vm10546_vm7 = vmmov %vm10521_vm0 }
 0x421   :  { %604 = vadd.xlane.f32.xlu1 %v603_v55  ;;  %v947_v48 = vpop.xlane.xlu1 %946 }
 0x422   :  { %8232 = vpow2.f32 %v775_v54  ;;  %v953_v9 = vsub.f32 %v9148_v4, %v947_v48 }
 0x423   :  { %v9175_v49 = vpop.eup %8224  ;;  %8234 = vpow2.f32 %v591_v34 }
 0x424   :  { %v783_v56 = vsel %vm10533_vm8, %v9175_v49, 0.0  ;;  %v9179_v59 = vpop.eup %8226  ;;  %v959_v11 = vmul.f32 1.442695, %v953_v9  ;;  %vm10547_vm8 = vcmask 130048  }
 0x425   :  { %784 = vadd.xlane.f32.xlu1 %v783_v56  ;;  %v941_v58 = vpop.xlane.xlu1 %940  ;;  %v597_v62 = vsel %vm10534_vm9, %v9179_v59, 0.0  ;;  %vm10548_vm9 = vmmov %vm10521_vm0 }
 0x426   :  { %v951_v13 = vsub.f32 %v9153_v7, %v941_v58  ;;  %8236 = vpow2.f32 %v959_v11 }
 0x427   :  { %v9181_v60 = vpop.eup %8228  ;;  %v944_v10 = vpop.xlane.xlu0 %943 }
 0x428   :  { %v9185_v63 = vpop.eup %8230  ;;  %v606_v0 = vsel %vm10535_vm1, %v9181_v60, 0.0  ;;  %v955_v19 = vmul.f32 1.442695, %v951_v13  ;;  %v952_v28 = vsub.f32 %v9158_v12, %v944_v10  ;;  %vm10549_vm1 = vmmov %vm10521_vm0 }
 0x429   :  { %598 = vadd.xlane.f32.xlu1 %v597_v62  ;;  %v9189_v1 = vpop.permute.xlu1 %803  ;;  %607 = vadd.xlane.f32.xlu0 %v606_v0  ;;  %v777_v2 = vsel %vm10521_vm0, %v9185_v63, 0.0  ;;  %vm10550_vm0 = vmmov %vm10547_vm8 }
 0x42a   :  { %7495 = vmatprep.subr.bf16.mxu0 %v9189_v1  ;;  %8238 = vpow2.f32 %v955_v19  ;;  %v957_v29 = vmul.f32 1.442695, %v952_v28 }
 0x42b   :  { %v950_v21 = vpop.xlane.xlu0 %949  ;;  %8240 = vpow2.f32 %v771_v24 }
 0x42c   :  { %v954_v27 = vsub.f32 %v9163_v15, %v950_v21 }
 0x42d   :  { %778 = vadd.xlane.f32.xlu1 %v777_v2 }
 0x42e   :  { %v961_v4 = vmul.f32 1.442695, %v954_v27 }
 0x42f   :  { %v9194_v3 = vpop.eup %8232 }
 0x430   :  { %v786_v5 = vsel %vm10536_vm2, %v9194_v3, 0.0  ;;  %v8235_v6 = vpop.eup %8234  ;;  %8242 = vpow2.f32 %v961_v4  ;;  %vm10551_vm2 = vmmov %vm10550_vm0 }
 0x431   :  { %787 = vadd.xlane.f32.xlu0 %v786_v5  ;;  %v600_v8 = vsel %vm10537_vm10, %v8235_v6, 0.0  ;;  %8244 = vpow2.f32 %v957_v29  ;;  %vm10552_vm10 = vmmov %vm10550_vm0 }
 0x433   :  { %v9208_v31 = vpop.eup %8236 }
 0x434   :  { %v969_v7 = vsel %vm10538_vm11, %v9208_v31, 0.0  ;;  %vm10553_vm11 = vmmov %vm10550_vm0 }
 0x435   :  { %601 = vadd.xlane.f32.xlu0 %v600_v8 }
 0x437   :  { %v9212_v57 = vpop.eup %8238 }
 0x438   :  { %v963_v33 = vsel %vm10539_vm12, %v9212_v57, 0.0  ;;  %v9216_v35 = vpop.eup %8240  ;;  %vm10554_vm12 = vmmov %vm10550_vm0 }
 0x439   :  { %v780_v12 = vsel %vm10540_vm13, %v9216_v35, 0.0  ;;  %vm10555_vm13 = vmmov %vm10549_vm1 }
 0x43d   :  { %v9220_v15 = vpop.eup %8242 }
 0x43e   :  { %987 = vrot.lane.b32.xlu1 %v9091_v61, %s8788_s0  ;;  %v972_v36 = vsel %vm10541_vm14, %v9220_v15, 0.0  ;;  %v9224_v38 = vpop.eup %8244  ;;  %vm10556_vm14 = vmmov %vm10549_vm1 }
 0x43f   :  { %v966_v40 = vsel %vm10542_vm3, %v9224_v38, 0.0  ;;  %vm10557_vm3 = vmmov %vm10549_vm1 }
 0x44b   :  { %801 = vrot.lane.b32.xlu0 %v9059_v45, %s8787_s24 }
 0x462   :  { %970 = vadd.xlane.f32.xlu1 %v969_v7 }
 0x466   :  { %964 = vadd.xlane.f32.xlu1 %v963_v33 }
 0x46a   :  { %781 = vadd.xlane.f32.xlu0 %v780_v12 }
 0x46e   :  { %973 = vadd.xlane.f32.xlu0 %v972_v36 }
 0x472   :  { %967 = vadd.xlane.f32.xlu0 %v966_v40 }
 0x477   :  { %985 = vrot.lane.b32.xlu1 %v9059_v45, %s8788_s0 }
 0x47b   :  { %1050 = vrot.lane.b32.xlu1 %v9057_v42, %s8775_s22 }
 0x47f   :  { %1048 = vrot.lane.b32.xlu1 %v9067_v50, %s8790_s2 }
 0x488   :  { %1052 = vrot.lane.b32.xlu0 %v9067_v50, %s8775_s22 }
 0x48c   :  { %1046 = vrot.lane.b32.xlu0 %v9057_v42, %s8790_s2 }
 0x4aa   :  { %v605_v41 = vpop.xlane.xlu1 %604 }
 0x4ae   :  { %v785_v43 = vpop.xlane.xlu1 %784 }
 0x4b2   :  { %v608_v44 = vpop.xlane.xlu0 %607  ;;  %v599_v46 = vpop.xlane.xlu1 %598 }
 0x4b3   :  { %8246 = vrcp.f32 %v608_v44 }
 0x4b4   :  { %8248 = vrcp.f32 %v599_v46 }
 0x4b5   :  { %8250 = vrcp.f32 %v605_v41 }
 0x4b6   :  { %v779_v62 = vpop.xlane.xlu1 %778 }
 0x4ba   :  { %v788_v47 = vpop.xlane.xlu0 %787  ;;  %v988_v2 = vpop.permute.xlu1 %987 }
 0x4be   :  { %v602_v20 = vpop.xlane.xlu0 %601 }
 0x4bf   :  { %8252 = vrcp.f32 %v602_v20 }
 0x4c0   :  { %v8247_v51 = vpop.eup %8246  ;;  %8254 = vrcp.f32 %v788_v47 }
 0x4c1   :  { %v8249_v53 = vpop.eup %8248  ;;  %v616_v55 = vmul.f32 %v8247_v51, %v9181_v60  ;;  %8256 = vrcp.f32 %v779_v62 }
 0x4c2   :  { %v8251_v34 = vpop.eup %8250  ;;  %v613_v50 = vmul.f32 %v8249_v53, %v9179_v59  ;;  %v802_v0 = vpop.permute.xlu0 %801  ;;  %8258 = vrcp.f32 %v785_v43 }
 0x4c3   :  { %v615_v42 = vmul.f32 %v8251_v34, %v9171_v39 }
 0x4c5   :  { %v618_v58 = vpack.c.bf16 %v616_v55, %v615_v42 }
 0x4cc   :  { %v8253_v54 = vpop.eup %8252 }
 0x4cd   :  { %v614_v48 = vmul.f32 %v8253_v54, %v8235_v6  ;;  %v8255_v8 = vpop.eup %8254 }
 0x4ce   :  { %v8257_v9 = vpop.eup %8256  ;;  %v796_v11 = vmul.f32 %v8255_v8, %v9194_v3 }
 0x4cf   :  { %v617_v56 = vpack.c.bf16 %v614_v48, %v613_v50  ;;  %v793_v13 = vmul.f32 %v8257_v9, %v9185_v63 }
 0x4d1   :  { %7483 = vmatprep.mubr.msk.bf16.mxu0 %vm10543_vm4, %v617_v56  ;;  %vm10558_vm4 = vmmov %vm10549_vm1 }
 0x4d2   :  { %7484 = vmatmul.mubr.msk.bf16.vlgmr.msra.gmra.mxu0 %vm10544_vm5, %v618_v58  ;;  %vm10559_vm5 = vmmov %vm10549_vm1 }
 0x4d3   :  { %7496 = vmatpush3.bf16.msra.mxu0 %v9189_v1  ;;  %v8259_v1 = vpop.eup %8258 }
 0x4d4   :  { %7497 = vmatprep.subr.bf16.mxu0 %v802_v0  ;;  %v795_v19 = vmul.f32 %v8259_v1, %v9175_v49 }
 0x4d6   :  { %v798_v24 = vpack.c.bf16 %v796_v11, %v795_v19 }
 0x4d7   :  { %7498 = vmatpush3.bf16.msra.mxu0 %v802_v0 }
 0x4d8   :  { %7511 = vmatprep.subr.bf16.mxu0 %v988_v2 }
 0x4eb   :  { %v971_v60 = vpop.xlane.xlu1 %970 }
 0x4ef   :  { %v965_v39 = vpop.xlane.xlu1 %964 }
 0x4f3   :  { %v782_v59 = vpop.xlane.xlu0 %781  ;;  %v986_v29 = vpop.permute.xlu1 %985 }
 0x4f4   :  { %8260 = vrcp.f32 %v782_v59 }
 0x4f7   :  { %v974_v5 = vpop.xlane.xlu0 %973  ;;  %v1051_v43 = vpop.permute.xlu1 %1050 }
 0x4f8   :  { %8262 = vrcp.f32 %v974_v5 }
 0x4f9   :  { %8264 = vrcp.f32 %v965_v39 }
 0x4fa   :  { %8266 = vrcp.f32 %v971_v60 }
 0x4fb   :  { %v968_v6 = vpop.xlane.xlu0 %967 }
 0x4fc   :  { %8268 = vrcp.f32 %v968_v6 }
 0x4ff   :  { %v1053_v33 = vpop.permute.xlu0 %1052 }
 0x500   :  { %v1064_v41 = vsel %vm10550_vm0, %v1053_v33, 0  ;;  %vm1286_vm0 = vcmask 392192  }
 0x501   :  { %v8261_v10 = vpop.eup %8260 }
 0x502   :  { %v794_v17 = vmul.f32 %v8261_v10, %v9216_v35 }
 0x503   :  { %v1047_v40 = vpop.permute.xlu0 %1046 }
 0x504   :  { %v797_v21 = vpack.c.bf16 %v794_v17, %v793_v13 }
 0x505   :  { %v8263_v27 = vpop.eup %8262 }
 0x506   :  { %7499 = vmatprep.mubr.msk.bf16.mxu0 %vm10545_vm6, %v797_v21  ;;  %v8265_v28 = vpop.eup %8264  ;;  %v982_v63 = vmul.f32 %v8263_v27, %v9220_v15  ;;  %vm10560_vm6 = vmmov %vm10549_vm1 }
 0x507   :  { %7500 = vmatmul.mubr.msk.bf16.vlgmr.msra.gmra.mxu0 %vm10546_vm7, %v798_v24  ;;  %v8267_v4 = vpop.eup %8266  ;;  %v979_v3 = vmul.f32 %v8265_v28, %v9212_v57  ;;  %v1049_v57 = vpop.permute.xlu1 %1048  ;;  %vm10561_vm7 = vmmov %vm10549_vm1 }
 0x508   :  { %7512 = vmatpush3.bf16.msra.mxu0 %v988_v2  ;;  %v981_v35 = vmul.f32 %v8267_v4, %v9208_v31  ;;  %v1061_v31 = vsel %vm10553_vm11, %v1051_v43, 0  ;;  %vm10565_vm11 = vmmov %vm10551_vm2 }
 0x509   :  { %v8269_v7 = vpop.eup %8268  ;;  %7513 = vmatprep.subr.bf16.mxu0 %v986_v29 }
 0x50a   :  { %v980_v49 = vmul.f32 %v8269_v7, %v9224_v38  ;;  %v984_v36 = vpack.c.bf16 %v982_v63, %v981_v35 }
 0x50c   :  { %7514 = vmatpush3.bf16.msra.mxu0 %v986_v29  ;;  %v983_v12 = vpack.c.bf16 %v980_v49, %v979_v3 }
 0x50d   :  { %7825 = vmatprep.subr.msk.bf16.mxu0 %vm10547_vm8, %v1053_v33  ;;  %vm10562_vm8 = vmmov %vm10549_vm1 }
 0x50e   :  { %7515 = vmatprep.mubr.msk.bf16.mxu0 %vm10548_vm9, %v983_v12  ;;  %vm10563_vm9 = vmmov %vm10549_vm1 }
 0x50f   :  { %7516 = vmatmul.mubr.msk.bf16.vlgmr.msra.gmra.mxu0 %vm10549_vm1, %v984_v36 }
 0x510   :  { %7520 = vmatpush3.bf16.xpose.msra.mxu0 %v1064_v41  ;;  %7523 = vmatprep.mubr.msk.bf16.mxu0 %vm10551_vm2, %v1047_v40 }
 0x511   :  { %7826 = vmatprep.subr.msk.bf16.mxu0 %vm10552_vm10, %v1051_v43  ;;  %vm10564_vm10 = vmmov %vm10551_vm2 }
 0x518   :  { %7522 = vmatpush3.bf16.xpose.msra.mxu0 %v1061_v31 }
 0x51f   :  { %7524 = vmatmul.mubr.msk.bf16.vlgmr.msra.gmra.mxu0 %vm10554_vm12, %v1049_v57  ;;  %vm10566_vm12 = vmmov %vm10551_vm2 }
 0x592   :  { %v9262_v15 = vpop.f32.mrf.mxu0 }
 0x594   :  { %v9264_v38 = vpop.f32.mrf.mxu0 }
 0x596   :  { %v9266_v44 = vpop.f32.mrf.mxu0 }
 0x598   :  { %v9268_v46 = vpop.f32.mrf.mxu0 }
 0x5c7   :  { %v7501_v47 = vpop.f32.mrf.mxu0 }
 0x5c9   :  { %v847_v20 = vpop.f32.mrf.mxu0 }
 0x5cb   :  { %v7502_v51 = vpop.f32.mrf.mxu0 }
 0x5cc   :  { %v7915_v53 = vpack.i.bf16 %v7502_v51, %v7501_v47 }
 0x5cd   :  { %v850_v34 = vpop.f32.mrf.mxu0 }
 0x5ce   :  { %v7910_v57 = vpack.i.bf16 %v850_v34, %v847_v20 }
 0x5cf   :  { %v7517_v54 = vpop.f32.mrf.mxu0 }
 0x5d1   :  { %v1031_v55 = vpop.f32.mrf.mxu0 }
 0x5d3   :  { %v7518_v50 = vpop.f32.mrf.mxu0 }
 0x5d4   :  { %v7925_v48 = vpack.i.bf16 %v7518_v50, %v7517_v54 }
 0x5d5   :  { %v1034_v42 = vpop.f32.mrf.mxu0 }
 0x5d6   :  { %v7920_v47 = vpack.i.bf16 %v1034_v42, %v1031_v55 }
 0x5df   :  { %v7525_v56 = vpop.f32.mrf.mxu0 }
 0x5e0   :  { %v1117_v62 = vmul.f32 0.25, %v7525_v56 }
 0x5e1   :  { %v1100_v58 = vpop.f32.mrf.mxu0 }
 0x5e2   :  { %v1115_v0 = vmul.f32 0.25, %v1100_v58  ;;  %v1121_v8 = vadd.f32 %v1117_v62, %v9111_v14 }
 0x5e3   :  { %v7526_v2 = vpop.f32.mrf.mxu0 }
 0x5e4   :  { %v1119_v60 = vadd.f32 %v1115_v0, %v9114_v18  ;;  %v1118_v39 = vmul.f32 0.25, %v7526_v2  ;;  %v1129_v1 = vsel %vm10556_vm14, %v1121_v8, -inf  ;;  %vm10568_vm14 = vmmov %vm10549_vm1 }
 0x5e5   :  { %v1103_v59 = vpop.f32.mrf.mxu0 }
 0x5e6   :  { %v1116_v5 = vmul.f32 0.25, %v1103_v59  ;;  %v1123_v6 = vsel %vm10555_vm13, %v1119_v60, -inf  ;;  %v1122_v11 = vadd.f32 %v1118_v39, %v9125_v37  ;;  %v8045_v59 = vld [vmem:[%s8833_s29 + $0x10] sm:$0xff]   ;;  %v8046_v39 = vld [vmem:[%s8833_s29 + $0x8] sm:$0xff]   ;;  %vm10567_vm13 = vmmov %vm10549_vm1 }
 0x5e7   :  { %1124 = vmax.xlane.f32.xlu0 %v1123_v6 }
 0x5e8   :  { %v1120_v9 = vadd.f32 %v1116_v5, %v9134_v52  ;;  %v1132_v13 = vsel %vm10558_vm4, %v1122_v11, -inf  ;;  %v8047_v5 = vld [vmem:[%s8833_s29] sm:$0xff]   ;;  %vm10570_vm4 = vmmov %vm10549_vm1 }
 0x5ea   :  { %v1126_v10 = vsel %vm10557_vm3, %v1120_v9, -inf  ;;  %vm10569_vm3 = vmmov %vm10549_vm1 }
 0x5eb   :  { %1130 = vmax.xlane.f32.xlu0 %v1129_v1  ;;  %1127 = vmax.xlane.f32.xlu1 %v1126_v10 }
 0x5ef   :  { %1133 = vmax.xlane.f32.xlu0 %v1132_v13 }
 0x670   :  { %v1125_v17 = vpop.xlane.xlu0 %1124 }
 0x671   :  { %v1135_v19 = vsub.f32 %v1119_v60, %v1125_v17  ;;  %v8044_v60 = vld [vmem:[%s8833_s29 + $0x18] sm:$0xff]  }
 0x672   :  { %7535 = vmatprep.subr.bf16.mxu1 %v8044_v60 }
 0x673   :  { %v1139_v28 = vmul.f32 1.442695, %v1135_v19  ;;  %7536 = vmatpush3.bf16.msra.mxu1 %v8044_v60 }
 0x674   :  { %v1131_v21 = vpop.xlane.xlu0 %1130  ;;  %v1128_v24 = vpop.xlane.xlu1 %1127  ;;  %7537 = vmatprep.subr.bf16.mxu1 %v8045_v59 }
 0x675   :  { %v1137_v27 = vsub.f32 %v1121_v8, %v1131_v21  ;;  %v1136_v29 = vsub.f32 %v1120_v9, %v1128_v24 }
 0x677   :  { %v1143_v4 = vmul.f32 1.442695, %v1137_v27  ;;  %v1141_v63 = vmul.f32 1.442695, %v1136_v29  ;;  %7538 = vmatpush3.bf16.msra.mxu1 %v8045_v59 }
 0x678   :  { %v1134_v7 = vpop.xlane.xlu0 %1133  ;;  %7539 = vmatprep.subr.bf16.mxu1 %v8046_v39 }
 0x679   :  { %8270 = vpow2.f32 %v1143_v4  ;;  %v1138_v33 = vsub.f32 %v1122_v11, %v1134_v7 }
 0x67a   :  { %8272 = vpow2.f32 %v1139_v28 }
 0x67b   :  { %v1145_v3 = vmul.f32 1.442695, %v1138_v33  ;;  %7540 = vmatpush3.bf16.msra.mxu1 %v8046_v39 }
 0x67c   :  { %7541 = vmatprep.subr.bf16.mxu1 %v8047_v5 }
 0x67d   :  { %8274 = vpow2.f32 %v1145_v3 }
 0x67e   :  { %8276 = vpow2.f32 %v1141_v63 }
 0x67f   :  { %7542 = vmatpush3.bf16.msra.mxu1 %v8047_v5 }
 0x686   :  { %v8271_v49 = vpop.eup %8270 }
 0x687   :  { %v1153_v35 = vsel %vm10559_vm5, %v8271_v49, 0.0  ;;  %v8273_v12 = vpop.eup %8272  ;;  %vm10571_vm5 = vcmask 523264  }
 0x688   :  { %1154 = vadd.xlane.f32.xlu1 %v1153_v35  ;;  %v1147_v41 = vsel %vm10561_vm7, %v8273_v12, 0.0  ;;  %vm10573_vm7 = vmmov %vm10571_vm5 }
 0x68a   :  { %v8275_v36 = vpop.eup %8274 }
 0x68b   :  { %v1156_v40 = vsel %vm10560_vm6, %v8275_v36, 0.0  ;;  %v8277_v43 = vpop.eup %8276  ;;  %vm10572_vm6 = vmmov %vm10571_vm5 }
 0x68c   :  { %1157 = vadd.xlane.f32.xlu0 %v1156_v40  ;;  %1148 = vadd.xlane.f32.xlu1 %v1147_v41  ;;  %v1150_v31 = vsel %vm10562_vm8, %v8277_v43, 0.0  ;;  %vm10574_vm8 = vmmov %vm10571_vm5 }
 0x690   :  { %1151 = vadd.xlane.f32.xlu0 %v1150_v31 }
 0x69d   :  { %1171 = vrot.lane.b32.xlu1 %v9091_v61, %s8790_s2 }
 0x6a1   :  { %7911 = vrot.lane.b32.xlu1 %v7910_v57, %s8775_s22 }
 0x6a5   :  { %7916 = vrot.lane.b32.xlu1 %v7915_v53, %s8775_s22 }
 0x6a6   :  { %1169 = vrot.lane.b32.xlu0 %v9059_v45, %s8790_s2 }
 0x6a9   :  { %7926 = vrot.lane.b32.xlu1 %v7925_v48, %s8786_s13 }
 0x6aa   :  { %7921 = vrot.lane.b32.xlu0 %v7920_v47, %s8786_s13 }
 0x711   :  { %v1155_v51 = vpop.xlane.xlu1 %1154 }
 0x715   :  { %v1158_v54 = vpop.xlane.xlu0 %1157  ;;  %v1149_v50 = vpop.xlane.xlu1 %1148 }
 0x716   :  { %8278 = vrcp.f32 %v1158_v54 }
 0x717   :  { %8280 = vrcp.f32 %v1149_v50 }
 0x718   :  { %8282 = vrcp.f32 %v1155_v51 }
 0x719   :  { %v1152_v61 = vpop.xlane.xlu0 %1151  ;;  %v1172_v20 = vpop.permute.xlu1 %1171 }
 0x71a   :  { %8284 = vrcp.f32 %v1152_v61  ;;  %7527 = vmatprep.subr.bf16.mxu0 %v1172_v20 }
 0x71b   :  { %7528 = vmatpush3.bf16.msra.mxu0 %v1172_v20 }
 0x71d   :  { %v1170_v53 = vpop.permute.xlu0 %1169  ;;  %v7912_v13 = vpop.permute.xlu1 %7911 }
 0x71e   :  { %7529 = vmatprep.subr.bf16.mxu0 %v1170_v53  ;;  %v7914_v24 = vunpack.i.h.bf16 %v7912_v13  ;;  %v7913_v27 = vunpack.i.l.bf16 %v7912_v13 }
 0x71f   :  { %7530 = vmatpush3.bf16.msra.mxu0 %v1170_v53 }
 0x721   :  { %v7917_v17 = vpop.permute.xlu1 %7916  ;;  %v7922_v21 = vpop.permute.xlu0 %7921 }
 0x722   :  { %v7919_v28 = vunpack.i.h.bf16 %v7917_v17  ;;  %v7918_v4 = vunpack.i.l.bf16 %v7917_v17  ;;  %v7924_v33 = vunpack.i.h.bf16 %v7922_v21  ;;  %v7923_v63 = vunpack.i.l.bf16 %v7922_v21 }
 0x723   :  { %v8279_v45 = vpop.eup %8278 }
 0x724   :  { %v8281_v34 = vpop.eup %8280  ;;  %v1166_v42 = vmul.f32 %v8279_v45, %v8275_v36  ;;  %v1278_v36 = vsel %vm10564_vm10, %v9264_v38, %v7913_v27  ;;  %v1281_v40 = vsel %vm10565_vm11, %v9266_v44, %v7919_v28  ;;  %v1280_v41 = vsel %vm10566_vm12, %v9262_v15, %v7918_v4  ;;  %v6800_v45 = vld [vmem:[%s8838_s3] ss:$0 sm:$0xff] }
 0x725   :  { %v8283_v55 = vpop.eup %8282  ;;  %v1163_v56 = vmul.f32 %v8281_v34, %v8273_v12  ;;  %v7927_v19 = vpop.permute.xlu1 %7926  ;;  %v1279_v12 = vsel %vm10551_vm2, %v9268_v46, %v7914_v24  ;;  %v1282_v54 = vsel %vm10569_vm3, %v1278_v36, %v7923_v63  ;;  %v8056_v36 = vld [vmem:[%s8853_s19 + $0x14] ss:$8 sps:$4 sm:$0xff]  }
 0x726   :  { %v1165_v62 = vmul.f32 %v8283_v55, %v8271_v49  ;;  %v7929_v29 = vunpack.i.h.bf16 %v7927_v19  ;;  %v7928_v7 = vunpack.i.l.bf16 %v7927_v19  ;;  %v1283_v46 = vsel %vm10570_vm4, %v1279_v12, %v7924_v33  ;;  %v8051_v12 = vld [vmem:[%s8853_s19 + $0x20] ss:$8 sps:$4 sm:$0xff]  }
 0x727   :  { %v8285_v48 = vpop.eup %8284 }
 0x728   :  { %v1164_v58 = vmul.f32 %v8285_v48, %v8277_v43  ;;  %v1168_v2 = vpack.c.bf16 %v1166_v42, %v1165_v62  ;;  %v1284_v31 = vsel %vm10567_vm13, %v1280_v41, %v7928_v7  ;;  %v1285_v57 = vsel %vm10568_vm14, %v1281_v40, %v7929_v29  ;;  %v8054_v40 = vld [vmem:[%s8853_s19 + $0x10] ss:$8 sps:$4 sm:$0xff]   ;;  %v8059_v41 = vld [vmem:[%s8853_s19 + $0x4] ss:$8 sps:$4 sm:$0xff]  }
 0x72a   :  { %v1167_v0 = vpack.c.bf16 %v1164_v58, %v1163_v56 }
 0x72c   :  { %7531 = vmatprep.mubr.msk.bf16.mxu0 %vm10563_vm9, %v1167_v0  ;;  %vm10575_vm9 = vmmov %vm10571_vm5 }
 0x72d   :  { %7532 = vmatmul.mubr.msk.bf16.vlgmr.msra.gmra.mxu0 %vm10549_vm1, %v1168_v2  ;;  %vm10576_vm1 = vmmov %vm10571_vm5 }
 0x72e   :  { %1566 = vmatprep.mubr.bf16.mxu0 %v8783_v16  ;;  %vm10577_vm2 = vmmov %vm10576_vm1 }
 0x72f   :  { %vm10578_vm10 = vmmov %vm10576_vm1 }
 0x730   :  { %vm10579_vm11 = vmmov %vm10576_vm1 }
 0x731   :  { %vm10580_vm12 = vmmov %vm10576_vm1 }
 0x732   :  { %vm10584_vm13 = vmmov %vm10576_vm1 }
 0x733   :  { %vm10586_vm14 = vmmov %vm10576_vm1 }
 0x734   :  { %vm10588_vm3 = vmmov %vm10576_vm1 }
 0x735   :  { %vm10589_vm4 = vmmov %vm10576_vm1 }
 0x7ed   :  { %v7533_v6 = vpop.f32.mrf.mxu0 }
 0x7ef   :  { %v1215_v8 = vpop.f32.mrf.mxu0 }
 0x7f1   :  { %v7534_v9 = vpop.f32.mrf.mxu0 }
 0x7f2   :  { %v7935_v1 = vpack.i.bf16 %v7534_v9, %v7533_v6 }
 0x7f3   :  { %v1218_v10 = vpop.f32.mrf.mxu0 }
 0x7f4   :  { %v7930_v11 = vpack.i.bf16 %v1218_v10, %v1215_v8  ;;  %7936 = vrot.lane.b32.xlu1 %v7935_v1, %s8785_s9 }
 0x7f6   :  { %7931 = vrot.lane.b32.xlu0 %v7930_v11, %s8785_s9 }
 0x866   :  { %v7937_v3 = vpop.permute.xlu1 %7936 }
 0x867   :  { %v7939_v49 = vunpack.i.h.bf16 %v7937_v3  ;;  %v7938_v35 = vunpack.i.l.bf16 %v7937_v3  ;;  %v8050_v3 = vld [vmem:[%s8853_s19 + $0x34] ss:$8 sps:$4 sm:$0xff]  }
 0x868   :  { %v7932_v43 = vpop.permute.xlu0 %7931  ;;  %1542 = vmatprep.subr.bf16.mxu0 %v8050_v3 }
 0x869   :  { %v7934_v47 = vunpack.i.h.bf16 %v7932_v43  ;;  %v7933_v51 = vunpack.i.l.bf16 %v7932_v43  ;;  %v1289_v38 = vsel %vm1286_vm0, %v1284_v31, %v7938_v35  ;;  %v1290_v50 = vsel %vm1286_vm0, %v1285_v57, %v7939_v49  ;;  %v8048_v49 = vld [vmem:[%s8853_s19 + $0x30] ss:$8 sps:$4 sm:$0xff]   ;;  %v8053_v35 = vld [vmem:[%s8853_s19 + $0x24] ss:$8 sps:$4 sm:$0xff]   ;;  %v8057_v43 = vld [vmem:[%s8853_s19] ss:$8 sps:$4 sm:$0xff]  }
 0x86a   :  { %v1300_v20 = vpack.c.bf16 %v1290_v50, %v1289_v38  ;;  %1543 = vmatpush1.bf16.msra.mxu0 %v8048_v49  ;;  %v8060_v31 = vld [vmem:[%s10581_s7 + $0x78] sm:$0xff]   ;;  %v8066_v38 = vld [vmem:[%s10581_s7 + $0x60] sm:$0xff]  }
 0x86b   :  { %v1287_v44 = vsel %vm1286_vm0, %v1282_v54, %v7933_v51  ;;  %v1288_v15 = vsel %vm1286_vm0, %v1283_v46, %v7934_v47  ;;  %1544 = vmatprep.subr.bf16.mxu0 %v8053_v35  ;;  %v8061_v57 = vld [vmem:[%s10581_s7 + $0x38] sm:$0xff]   ;;  %v8062_v47 = vld [vmem:[%s10581_s7 + $0x70] sm:$0xff]   ;;  %7218 = vmatprep.subr.bf16.mxu1 %v8060_v31  ;;  %v8064_v54 = vld [vmem:[%s10581_s7 + $0x68] sm:$0xff]  }
 0x86c   :  { %v1299_v61 = vpack.c.bf16 %v1288_v15, %v1287_v44  ;;  %v8063_v51 = vld [vmem:[%s10581_s7 + $0x30] sm:$0xff]   ;;  %v8065_v46 = vld [vmem:[%s10581_s7 + $0x28] sm:$0xff]   ;;  %v8067_v50 = vld [vmem:[%s10581_s7 + $0x20] sm:$0xff]  }
 0x86d   :  { %v8068_v44 = vld [vmem:[%s10581_s7 + $0x58] sm:$0xff]  }
 0x86e   :  { %7543 = vmatprep.mubr.msk.bf16.mxu1 %vm10571_vm5, %v1299_v61  ;;  %1545 = vmatpush1.bf16.msra.mxu0 %v8051_v12  ;;  %v8069_v15 = vld [vmem:[%s10581_s7 + $0x18] sm:$0xff]   ;;  %vm10590_vm5 = vmmov %vm10576_vm1 }
 0x86f   :  { %7544 = vmatmul.mubr.msk.bf16.vlgmr.msra.gmra.mxu1 %vm10572_vm6, %v1300_v20  ;;  %1546 = vmatprep.subr.bf16.mxu0 %v8056_v36  ;;  %vm10591_vm6 = vmmov %vm10576_vm1 }
 0x870   :  { %7219 = vmatpush3.bf16.msra.mxu1 %v8061_v57 }
 0x871   :  { %7220 = vmatprep.subr.bf16.mxu1 %v8062_v47 }
 0x872   :  { %1547 = vmatpush1.bf16.msra.mxu0 %v8054_v40 }
 0x873   :  { %1548 = vmatprep.subr.bf16.mxu0 %v8059_v41 }
 0x874   :  { %7221 = vmatpush3.bf16.msra.mxu1 %v8063_v51 }
 0x875   :  { %7222 = vmatprep.subr.bf16.mxu1 %v8064_v54 }
 0x876   :  { %1549 = vmatpush1.bf16.msra.mxu0 %v8057_v43 }
 0x878   :  { %7223 = vmatpush3.bf16.msra.mxu1 %v8065_v46 }
 0x879   :  { %7224 = vmatprep.subr.bf16.mxu1 %v8066_v38 }
 0x87c   :  { %7225 = vmatpush3.bf16.msra.mxu1 %v8067_v50 }
 0x87d   :  { %7226 = vmatprep.subr.bf16.mxu1 %v8068_v44 }
 0x880   :  { %7227 = vmatpush3.bf16.msra.mxu1 %v8069_v15 }
 0x92f   :  { %v7545_v53 = vpop.f32.mrf.mxu1 }
 0x930   :  { %v1381_v55 = vadd.f32 %v7545_v53, %v6800_v45 }
 0x931   :  { %v1372_v34 = vpop.f32.mrf.mxu1 }
 0x932   :  { %v1373_v48 = vadd.f32 %v6800_v45, %v1372_v34  ;;  %v1389_v60 = vadd.f32 %v1381_v55, %v9044_v26 }
 0x933   :  { %v7546_v42 = vpop.f32.mrf.mxu1 }
 0x934   :  { %v1387_v56 = vadd.f32 %v1373_v48, %v9034_v22  ;;  %v1384_v62 = vadd.f32 %v7546_v42, %v6800_v45  ;;  %v1399_v5 = vsel %vm10575_vm9, %v1389_v60, 0.0  ;;  %vm10594_vm9 = vmmov %vm10576_vm1 }
 0x935   :  { %v1375_v58 = vpop.f32.mrf.mxu1 }
 0x936   :  { %v1376_v0 = vadd.f32 %v6800_v45, %v1375_v58  ;;  %v1393_v2 = vsel %vm10573_vm7, %v1387_v56, 0.0  ;;  %v1390_v6 = vadd.f32 %v1384_v62, %v9042_v25  ;;  %vm10592_vm7 = vmmov %vm10576_vm1 }
 0x937   :  { %1394 = vadd.xlane.f32.xlu0 %v1393_v2 }
 0x938   :  { %v1388_v59 = vadd.f32 %v1376_v0, %v9036_v23  ;;  %v1402_v22 = vsel %vm10576_vm1, %v1390_v6, 0.0 }
 0x93a   :  { %v1396_v39 = vsel %vm10574_vm8, %v1388_v59, 0.0  ;;  %vm10593_vm8 = vmmov %vm10576_vm1 }
 0x93b   :  { %1397 = vadd.xlane.f32.xlu1 %v1396_v39  ;;  %1400 = vadd.xlane.f32.xlu0 %v1399_v5 }
 0x93f   :  { %1403 = vadd.xlane.f32.xlu0 %v1402_v22 }
 0x9c0   :  { %v1395_v8 = vpop.xlane.xlu0 %1394 }
 0x9c1   :  { %v1406_v9 = vmul.f32 0.015625, %v1395_v8  ;;  %v6808_v8 = vld [vmem:[%s10583_s10] ss:$0 sm:$0xff] }
 0x9c3   :  { %v9326_v1 = vsub.f32 %v1387_v56, %v1406_v9 }
 0x9c4   :  { %v1398_v10 = vpop.xlane.xlu1 %1397  ;;  %v1401_v26 = vpop.xlane.xlu0 %1400 }
 0x9c5   :  { %v1407_v11 = vmul.f32 0.015625, %v1398_v10  ;;  %v1408_v13 = vmul.f32 0.015625, %v1401_v26  ;;  %v1414_v23 = vmul.f32 %v9326_v1, %v9326_v1 }
 0x9c7   :  { %v9330_v17 = vsub.f32 %v1388_v59, %v1407_v11  ;;  %v9332_v25 = vsub.f32 %v1389_v60, %v1408_v13  ;;  %v1418_v19 = vsel %vm10577_vm2, %v1414_v23, 0.0  ;;  %v6807_v59 = vld [vmem:[%s10582_s27] ss:$0 sm:$0xff]  ;;  %vm10597_vm2 = vmmov %vm10576_vm1 }
 0x9c8   :  { %1419 = vadd.xlane.f32.xlu1 %v1418_v19  ;;  %v1404_v21 = vpop.xlane.xlu0 %1403 }
 0x9c9   :  { %v1409_v24 = vmul.f32 0.015625, %v1404_v21  ;;  %v1415_v27 = vmul.f32 %v9330_v17, %v9330_v17  ;;  %v1416_v28 = vmul.f32 %v9332_v25, %v9332_v25 }
 0x9cb   :  { %v9339_v4 = vsub.f32 %v1390_v6, %v1409_v24  ;;  %v1421_v29 = vsel %vm10578_vm10, %v1415_v27, 0.0  ;;  %v1424_v7 = vsel %vm10579_vm11, %v1416_v28, 0.0  ;;  %v8070_v27 = vld [vmem:[%s10581_s7 + $0x50] sm:$0xff]   ;;  %vm10598_vm10 = vmmov %vm10576_vm1  ;;  %vm10599_vm11 = vcmask 130048  }
 0x9cc   :  { %1422 = vadd.xlane.f32.xlu0 %v1421_v29  ;;  %1425 = vadd.xlane.f32.xlu1 %v1424_v7  ;;  %v8071_v28 = vld [vmem:[%s10581_s7 + $0x10] sm:$0xff]   ;;  %v8073_v29 = vld [vmem:[%s10581_s7 + $0x8] sm:$0xff]   ;;  %v8074_v7 = vld [vmem:[%s10581_s7 + $0x40] sm:$0xff]  }
 0x9cd   :  { %v1417_v33 = vmul.f32 %v9339_v4, %v9339_v4  ;;  %7228 = vmatprep.subr.bf16.mxu1 %v8070_v27 }
 0x9ce   :  { %7229 = vmatpush3.bf16.msra.mxu1 %v8071_v28 }
 0x9cf   :  { %v1427_v63 = vsel %vm10580_vm12, %v1417_v33, 0.0  ;;  %v8075_v33 = vld [vmem:[%s10581_s7] sm:$0xff]   ;;  %vm10600_vm12 = vmmov %vm10599_vm11 }
 0x9d0   :  { %1428 = vadd.xlane.f32.xlu0 %v1427_v63  ;;  %v1476_v63 = vld [vmem:[%s10585_s11] sm:$0x3] }
 0x9d1   :  { %v1485_v49 = vrot.slane %v1476_v63, %v9053_v32  ;;  %v1481_v35 = vrot.slane %v1476_v63, %v9050_v30 }
 0xa51   :  { %v1420_v61 = vpop.xlane.xlu1 %1419 }
 0xa52   :  { %v1430_v20 = vmul.f32 0.015625, %v1420_v61 }
 0xa54   :  { %v1434_v53 = vadd.f32 1e-05, %v1430_v20 }
 0xa55   :  { %v1426_v45 = vpop.xlane.xlu1 %1425  ;;  %v1423_v34 = vpop.xlane.xlu0 %1422 }
 0xa56   :  { %8286 = vrsqrt.f32 %v1434_v53  ;;  %v1432_v55 = vmul.f32 0.015625, %v1426_v45  ;;  %v1431_v48 = vmul.f32 0.015625, %v1423_v34 }
 0xa58   :  { %v1435_v42 = vadd.f32 1e-05, %v1431_v48  ;;  %v1436_v56 = vadd.f32 1e-05, %v1432_v55 }
 0xa59   :  { %v1429_v58 = vpop.xlane.xlu0 %1428 }
 0xa5a   :  { %v1433_v62 = vmul.f32 0.015625, %v1429_v58  ;;  %8288 = vrsqrt.f32 %v1435_v42 }
 0xa5b   :  { %8290 = vrsqrt.f32 %v1436_v56 }
 0xa5c   :  { %v1437_v0 = vadd.f32 1e-05, %v1433_v62 }
 0xa5e   :  { %8292 = vrsqrt.f32 %v1437_v0 }
 0xa63   :  { %v8287_v2 = vpop.eup %8286 }
 0xa64   :  { %v1442_v60 = vmul.f32 %v8287_v2, %v9326_v1 }
 0xa66   :  { %v1452_v6 = vmul.f32 %v6807_v59, %v1442_v60  ;;  %v6819_v60 = vld [vmem:[%s10587_s15] ss:$0 sm:$0xff] }
 0xa67   :  { %v8289_v39 = vpop.eup %8288 }
 0xa68   :  { %v1443_v5 = vmul.f32 %v8289_v39, %v9330_v17  ;;  %v8291_v22 = vpop.eup %8290  ;;  %v9369_v11 = vadd.f32 %v6808_v8, %v1452_v6 }
 0xa69   :  { %v1444_v1 = vmul.f32 %v8291_v22, %v9332_v25 }
 0xa6a   :  { %v1453_v10 = vmul.f32 %v6807_v59, %v1443_v5 }
 0xa6b   :  { %v8293_v9 = vpop.eup %8292  ;;  %v1454_v19 = vmul.f32 %v6807_v59, %v1444_v1 }
 0xa6c   :  { %v1445_v26 = vmul.f32 %v8293_v9, %v9339_v4  ;;  %v9371_v13 = vadd.f32 %v6808_v8, %v1453_v10  ;;  %v8072_v4 = vld [vmem:[%s10581_s7 + $0x48] sm:$0xff]  }
 0xa6d   :  { %v9380_v24 = vadd.f32 %v6808_v8, %v1454_v19  ;;  %7230 = vmatprep.subr.bf16.mxu1 %v8072_v4 }
 0xa6e   :  { %v1474_v23 = vpack.c.bf16 %v9371_v13, %v9369_v11  ;;  %v1455_v17 = vmul.f32 %v6807_v59, %v1445_v26  ;;  %7231 = vmatpush3.bf16.msra.mxu1 %v8073_v29 }
 0xa6f   :  { %7232 = vmatprep.subr.bf16.mxu1 %v8074_v7 }
 0xa70   :  { %6817 = vmatmul.mubr.msk.bf16.vlgmr.msra.gmra.mxu0 %vm10584_vm13, %v1474_v23  ;;  %v9378_v21 = vadd.f32 %v6808_v8, %v1455_v17  ;;  %vm10601_vm13 = vmmov %vm10599_vm11 }
 0xa71   :  { %1576 = vmatprep.mubr.bf16.mxu0 %v8783_v16 }
 0xa72   :  { %v1475_v25 = vpack.c.bf16 %v9378_v21, %v9380_v24  ;;  %7233 = vmatpush3.bf16.msra.mxu1 %v8075_v33 }
 0xa78   :  { %6818 = vmatmul.mubr.msk.bf16.gmra.mxu0 %vm10586_vm14, %v1475_v25  ;;  %vm10602_vm14 = vmmov %vm10599_vm11 }
 0xa79   :  { %1963 = vmatprep.mubr.bf16.mxu0 %v8783_v16 }
 0xb30   :  { %v1568_v3 = vpop.f32.mrf.mxu0 }
 0xb31   :  { %v1569_v43 = vadd.f32 %v1568_v3, %v1481_v35 }
 0xb32   :  { %v1570_v12 = vpop.f32.mrf.mxu0 }
 0xb33   :  { %v1571_v40 = vadd.f32 %v1570_v12, %v1485_v49  ;;  %v1587_v38 = vmax.f32 %v1569_v43, 0.0 }
 0xb34   :  { %v1572_v36 = vpop.f32.mrf.mxu0 }
 0xb35   :  { %v1573_v41 = vadd.f32 %v1572_v36, %v1481_v35  ;;  %v1588_v54 = vmax.f32 %v1571_v40, 0.0 }
 0xb36   :  { %v1574_v31 = vpop.f32.mrf.mxu0 }
 0xb37   :  { %v1575_v57 = vadd.f32 %v1574_v31, %v1485_v49  ;;  %v1589_v47 = vmax.f32 %v1573_v41, 0.0 }
 0xb38   :  { %v1578_v51 = vpop.f32.mrf.mxu0 }
 0xb39   :  { %v1590_v46 = vmax.f32 %v1575_v57, 0.0  ;;  %v1627_v15 = vpack.c.bf16 %v1589_v47, %v1587_v38  ;;  %v1579_v45 = vadd.f32 %v1578_v51, %v1481_v35 }
 0xb3a   :  { %v1580_v50 = vpop.f32.mrf.mxu0 }
 0xb3b   :  { %v1628_v44 = vpack.c.bf16 %v1590_v46, %v1588_v54  ;;  %v1581_v20 = vadd.f32 %v1580_v50, %v1485_v49  ;;  %v1591_v58 = vmax.f32 %v1579_v45, 0.0  ;;  %v8079_v45 = vld [vmem:[%s8823_s21 + $0x60] ss:$8 sps:$4 sm:$0xff]  }
 0xb3c   :  { %v1582_v61 = vpop.f32.mrf.mxu0 }
 0xb3d   :  { %v1583_v53 = vadd.f32 %v1582_v61, %v1481_v35  ;;  %1766 = vmatprep.mubr.bf16.mxu1 %v1628_v44  ;;  %v1592_v42 = vmax.f32 %v1581_v20, 0.0  ;;  %v8078_v61 = vld [vmem:[%s8823_s21 + $0x74] ss:$8 sps:$4 sm:$0xff]   ;;  %v8076_v20 = vld [vmem:[%s8823_s21 + $0x70] ss:$8 sps:$4 sm:$0xff]  }
 0xb3e   :  { %v1584_v34 = vpop.f32.mrf.mxu0  ;;  %1767 = vmatmul.mubr.bf16.vlgmr.msra.gmra.mxu1 %v1627_v15  ;;  %1939 = vmatprep.subr.bf16.mxu0 %v8078_v61 }
 0xb3f   :  { %v1585_v55 = vadd.f32 %v1584_v34, %v1485_v49  ;;  %v1593_v48 = vmax.f32 %v1583_v53, 0.0  ;;  %1940 = vmatpush1.bf16.msra.mxu0 %v8076_v20  ;;  %v8081_v53 = vld [vmem:[%s8823_s21 + $0x64] ss:$8 sps:$4 sm:$0xff]   ;;  %v8084_v34 = vld [vmem:[%s8823_s21 + $0x54] ss:$8 sps:$4 sm:$0xff]  }
 0xb40   :  { %1941 = vmatprep.subr.bf16.mxu0 %v8081_v53 }
 0xb41   :  { %v1594_v56 = vmax.f32 %v1585_v55, 0.0  ;;  %v1629_v0 = vpack.c.bf16 %v1593_v48, %v1591_v58  ;;  %v8082_v55 = vld [vmem:[%s8823_s21 + $0x50] ss:$8 sps:$4 sm:$0xff]   ;;  %v8085_v48 = vld [vmem:[%s8823_s21 + $0x40] ss:$8 sps:$4 sm:$0xff]  }
 0xb43   :  { %v1630_v62 = vpack.c.bf16 %v1594_v56, %v1592_v42  ;;  %1942 = vmatpush1.bf16.msra.mxu0 %v8079_v45  ;;  %v8087_v42 = vld [vmem:[%s8823_s21 + $0x44] ss:$8 sps:$4 sm:$0xff]   ;;  %s10684_s21 = sld [smem:[#allocation38_spill]] }
 0xb44   :  { %1943 = vmatprep.subr.bf16.mxu0 %v8084_v34 }
 0xb45   :  { %1774 = vmatprep.mubr.bf16.mxu1 %v1630_v62 }
 0xb46   :  { %1775 = vmatmul.mubr.bf16.gmra.mxu1 %v1629_v0 }
 0xb47   :  { %1944 = vmatpush1.bf16.msra.mxu0 %v8082_v55 }
 0xb48   :  { %1945 = vmatprep.subr.bf16.mxu0 %v8087_v42 }
 0xb4b   :  { %1946 = vmatpush1.bf16.msra.mxu0 %v8085_v48 }
 0xbfe   :  { %v7234_v2 = vpop.f32.mrf.mxu1 }
 0xc00   :  { %v7235_v59 = vpop.f32.mrf.mxu1 }
 0xc01   :  { %v7236_v39 = vadd.f32 %v7235_v59, %v7234_v2 }
 0xc02   :  { %v7237_v5 = vpop.f32.mrf.mxu1 }
 0xc03   :  { %v1769_v6 = vadd.f32 %v7236_v39, %v6819_v60 }
 0xc04   :  { %v7238_v22 = vpop.f32.mrf.mxu1 }
 0xc05   :  { %v7239_v8 = vadd.f32 %v7238_v22, %v7237_v5  ;;  %v1783_v9 = vadd.f32 %v1769_v6, %v9369_v11 }
 0xc06   :  { %v7240_v10 = vpop.f32.mrf.mxu1 }
 0xc07   :  { %v1772_v26 = vadd.f32 %v7239_v8, %v6819_v60  ;;  %v1789_v1 = vsel %vm10588_vm3, %v1783_v9, 0.0  ;;  %vm10603_vm3 = vmmov %vm10599_vm11 }
 0xc08   :  { %1790 = vadd.xlane.f32.xlu1 %v1789_v1  ;;  %v7241_v23 = vpop.f32.mrf.mxu1 }
 0xc09   :  { %v7242_v17 = vadd.f32 %v7241_v23, %v7240_v10  ;;  %v1784_v19 = vadd.f32 %v1772_v26, %v9371_v13  ;;  %v6836_v26 = vld [vmem:[%s10595_s16] ss:$0 sm:$0xff] }
 0xc0a   :  { %v7243_v25 = vpop.f32.mrf.mxu1 }
 0xc0b   :  { %v1777_v27 = vadd.f32 %v7242_v17, %v6819_v60  ;;  %v1792_v28 = vsel %vm10589_vm4, %v1784_v19, 0.0  ;;  %vm10604_vm4 = vmmov %vm10603_vm3 }
 0xc0c   :  { %1793 = vadd.xlane.f32.xlu0 %v1792_v28  ;;  %v7244_v4 = vpop.f32.mrf.mxu1 }
 0xc0d   :  { %v7245_v29 = vadd.f32 %v7244_v4, %v7243_v25  ;;  %v1785_v7 = vadd.f32 %v1777_v27, %v9380_v24 }
 0xc0f   :  { %v1780_v33 = vadd.f32 %v7245_v29, %v6819_v60  ;;  %v1795_v11 = vsel %vm10590_vm5, %v1785_v7, 0.0  ;;  %vm10605_vm5 = vmmov %vm10603_vm3 }
 0xc10   :  { %1796 = vadd.xlane.f32.xlu1 %v1795_v11 }
 0xc11   :  { %v1786_v63 = vadd.f32 %v1780_v33, %v9378_v21 }
 0xc13   :  { %v1798_v3 = vsel %vm10591_vm6, %v1786_v63, 0.0  ;;  %vm10606_vm6 = vmmov %vm10603_vm3 }
 0xc14   :  { %1799 = vadd.xlane.f32.xlu0 %v1798_v3 }
 0xc91   :  { %v1791_v49 = vpop.xlane.xlu1 %1790 }
 0xc92   :  { %v1801_v13 = vmul.f32 0.015625, %v1791_v49 }
 0xc94   :  { %v1805_v35 = vsub.f32 %v1783_v9, %v1801_v13 }
 0xc95   :  { %v1794_v12 = vpop.xlane.xlu0 %1793 }
 0xc96   :  { %v1802_v36 = vmul.f32 0.015625, %v1794_v12  ;;  %v1809_v40 = vmul.f32 %v1805_v35, %v1805_v35  ;;  %v6846_v12 = vld [vmem:[%s8828_s25 + $0x2] sm:$0x3]  ;;  %s10688_s25 = sld [smem:[#allocation40_spill]] }
 0xc98   :  { %v1806_v41 = vsub.f32 %v1784_v19, %v1802_v36  ;;  %v1813_v43 = vsel %vm10592_vm7, %v1809_v40, 0.0  ;;  %v6837_v19 = vld [vmem:[%s10596_s6] ss:$0 sm:$0xff]  ;;  %v1878_v40 = vrot.slane %v6846_v12, %v9050_v30  ;;  %vm10607_vm7 = vmmov %vm10603_vm3 }
 0xc99   :  { %1814 = vadd.xlane.f32.xlu1 %v1813_v43  ;;  %v1797_v24 = vpop.xlane.xlu1 %1796  ;;  %v1882_v43 = vrot.slane %v6846_v12, %v9053_v32 }
 0xc9a   :  { %v1803_v31 = vmul.f32 0.015625, %v1797_v24  ;;  %v1810_v57 = vmul.f32 %v1806_v41, %v1806_v41 }
 0xc9c   :  { %v1807_v47 = vsub.f32 %v1785_v7, %v1803_v31  ;;  %v1816_v21 = vsel %vm10593_vm8, %v1810_v57, 0.0  ;;  %vm10608_vm8 = vmmov %vm10603_vm3 }
 0xc9d   :  { %1817 = vadd.xlane.f32.xlu0 %v1816_v21  ;;  %v1800_v51 = vpop.xlane.xlu0 %1799 }
 0xc9e   :  { %v1804_v54 = vmul.f32 0.015625, %v1800_v51  ;;  %v1811_v46 = vmul.f32 %v1807_v47, %v1807_v47 }
 0xca0   :  { %v1808_v38 = vsub.f32 %v1786_v63, %v1804_v54  ;;  %v1819_v50 = vsel %vm10594_vm9, %v1811_v46, 0.0  ;;  %vm10609_vm9 = vmmov %vm10603_vm3 }
 0xca1   :  { %1820 = vadd.xlane.f32.xlu1 %v1819_v50 }
 0xca2   :  { %v1812_v44 = vmul.f32 %v1808_v38, %v1808_v38 }
 0xca4   :  { %v1822_v15 = vsel %vm10576_vm1, %v1812_v44, 0.0  ;;  %vm10610_vm1 = vmmov %vm10603_vm3 }
 0xca5   :  { %1823 = vadd.xlane.f32.xlu0 %v1822_v15 }
 0xd22   :  { %v1815_v56 = vpop.xlane.xlu1 %1814 }
 0xd23   :  { %v1825_v58 = vmul.f32 0.015625, %v1815_v56 }
 0xd25   :  { %v1829_v62 = vadd.f32 1e-05, %v1825_v58 }
 0xd26   :  { %v1818_v0 = vpop.xlane.xlu0 %1817 }
 0xd27   :  { %8294 = vrsqrt.f32 %v1829_v62  ;;  %v1826_v2 = vmul.f32 0.015625, %v1818_v0 }
 0xd29   :  { %v1830_v60 = vadd.f32 1e-05, %v1826_v2 }
 0xd2a   :  { %v1821_v59 = vpop.xlane.xlu1 %1820 }
 0xd2b   :  { %8296 = vrsqrt.f32 %v1830_v60  ;;  %v1827_v39 = vmul.f32 0.015625, %v1821_v59 }
 0xd2d   :  { %v1831_v5 = vadd.f32 1e-05, %v1827_v39 }
 0xd2e   :  { %v1824_v6 = vpop.xlane.xlu0 %1823 }
 0xd2f   :  { %8298 = vrsqrt.f32 %v1831_v5  ;;  %v1828_v22 = vmul.f32 0.015625, %v1824_v6 }
 0xd31   :  { %v1832_v8 = vadd.f32 1e-05, %v1828_v22 }
 0xd33   :  { %8300 = vrsqrt.f32 %v1832_v8 }
 0xd34   :  { %v8295_v9 = vpop.eup %8294 }
 0xd35   :  { %v1837_v10 = vmul.f32 %v8295_v9, %v1805_v35 }
 0xd37   :  { %v1847_v23 = vmul.f32 %v6836_v26, %v1837_v10 }
 0xd38   :  { %v8297_v1 = vpop.eup %8296 }
 0xd39   :  { %v1838_v17 = vmul.f32 %v8297_v1, %v1806_v41  ;;  %v9418_v28 = vadd.f32 %v6837_v19, %v1847_v23 }
 0xd3b   :  { %v1848_v25 = vmul.f32 %v6836_v26, %v1838_v17 }
 0xd3c   :  { %v8299_v27 = vpop.eup %8298 }
 0xd3d   :  { %v9420_v4 = vadd.f32 %v6837_v19, %v1848_v25  ;;  %v1839_v29 = vmul.f32 %v8299_v27, %v1807_v47 }
 0xd3f   :  { %v1870_v7 = vpack.c.bf16 %v9420_v4, %v9418_v28  ;;  %v1849_v63 = vmul.f32 %v6836_v26, %v1839_v29 }
 0xd40   :  { %v8301_v33 = vpop.eup %8300 }
 0xd41   :  { %6855 = vmatmul.mubr.msk.bf16.vlgmr.msra.gmra.mxu0 %vm10597_vm2, %v1870_v7  ;;  %v1840_v11 = vmul.f32 %v8301_v33, %v1808_v38  ;;  %v9426_v49 = vadd.f32 %v6837_v19, %v1849_v63  ;;  %vm10611_vm2 = vmmov %vm10610_vm1 }
 0xd42   :  { %1973 = vmatprep.mubr.bf16.mxu0 %v8783_v16 }
 0xd43   :  { %v1850_v3 = vmul.f32 %v6836_v26, %v1840_v11 }
 0xd45   :  { %v9428_v13 = vadd.f32 %v6837_v19, %v1850_v3 }
 0xd47   :  { %v1871_v35 = vpack.c.bf16 %v9428_v13, %v9426_v49 }
 0xd49   :  { %6856 = vmatmul.mubr.msk.bf16.gmra.mxu0 %vm10598_vm10, %v1871_v35  ;;  %vm10612_vm10 = vmmov %vm10610_vm1 }
 0xe01   :  { %v1965_v36 = vpop.f32.mrf.mxu0 }
 0xe02   :  { %v1966_v31 = vadd.f32 %v1965_v36, %v1878_v40 }
 0xe03   :  { %v1967_v41 = vpop.f32.mrf.mxu0 }
 0xe04   :  { %v1968_v21 = vadd.f32 %v1967_v41, %v1882_v43 }
 0xe05   :  { %v1969_v24 = vpop.f32.mrf.mxu0 }
 0xe06   :  { %v1970_v57 = vadd.f32 %v1969_v24, %v1878_v40 }
 0xe07   :  { %v1971_v47 = vpop.f32.mrf.mxu0 }
 0xe08   :  { %v9436_v51 = vpack.c.bf16 %v1970_v57, %v1966_v31  ;;  %v1972_v54 = vadd.f32 %v1971_v47, %v1882_v43 }
 0xe09   :  { %v1975_v46 = vpop.f32.mrf.mxu0 }
 0xe0a   :  { %v9438_v38 = vpack.c.bf16 %v1972_v54, %v1968_v21  ;;  %7551 = vmatprep.mubr.msk.bf16.mxu0 %vm10599_vm11, %v9436_v51  ;;  %v1976_v15 = vadd.f32 %v1975_v46, %v1878_v40  ;;  %vm10613_vm11 = vmmov %vm10610_vm1 }
 0xe0b   :  { %v1977_v50 = vpop.f32.mrf.mxu0 }
 0xe0c   :  { %v1978_v62 = vadd.f32 %v1977_v50, %v1882_v43 }
 0xe0d   :  { %v1979_v44 = vpop.f32.mrf.mxu0 }
 0xe0e   :  { %v1980_v61 = vadd.f32 %v1979_v44, %v1878_v40 }
 0xe0f   :  { %v1981_v48 = vpop.f32.mrf.mxu0 }
 0xe10   :  { %v9442_v20 = vpack.c.bf16 %v1980_v61, %v1976_v15  ;;  %v1982_v58 = vadd.f32 %v1981_v48, %v1882_v43 }
 0xe12   :  { %2170 = vrot.lane.b32.xlu0 %v9442_v20, %s8785_s9  ;;  %1990 = vrot.lane.b32.xlu1 %v9442_v20, %s8784_s5  ;;  %v9470_v2 = vpack.c.bf16 %v1982_v58, %v1978_v62 }
 0xe16   :  { %2164 = vrot.lane.b32.xlu0 %v9436_v51, %s8787_s24  ;;  %1988 = vrot.lane.b32.xlu1 %v9436_v51, %s8784_s5 }
 0xe1a   :  { %2166 = vrot.lane.b32.xlu0 %v9442_v20, %s8787_s24  ;;  %2168 = vrot.lane.b32.xlu1 %v9436_v51, %s8785_s9 }
 0xe1e   :  { %2350 = vrot.lane.b32.xlu0 %v9436_v51, %s8788_s0  ;;  %2356 = vrot.lane.b32.xlu1 %v9442_v20, %s8786_s13 }
 0xe22   :  { %2354 = vrot.lane.b32.xlu1 %v9436_v51, %s8786_s13 }
 0xe26   :  { %2352 = vrot.lane.b32.xlu1 %v9442_v20, %s8788_s0 }
 0xe84   :  { %v2171_v53 = vpop.permute.xlu0 %2170  ;;  %v1991_v45 = vpop.permute.xlu1 %1990 }
 0xe85   :  { %7827 = vmatprep.subr.msk.bf16.mxu0 %vm10600_vm12, %v1991_v45  ;;  %7829 = vmatprep.subr.msk.bf16.mxu1 %vm10601_vm13, %v2171_v53  ;;  %v2002_v34 = vsel %vm10602_vm14, %v1991_v45, 0  ;;  %v2182_v55 = vsel %vm10603_vm3, %v2171_v53, 0  ;;  %vm10614_vm12 = vmmov %vm10610_vm1  ;;  %vm10617_vm3 = vcmask 261120  }
 0xe86   :  { %7548 = vmatpush3.bf16.xpose.msra.mxu0 %v2002_v34  ;;  %7564 = vmatpush3.bf16.xpose.msra.mxu1 %v2182_v55  ;;  %vm10615_vm13 = vmmov %vm10610_vm1 }
 0xe87   :  { %vm10616_vm14 = vmmov %vm10610_vm1 }
 0xe88   :  { %v2165_v42 = vpop.permute.xlu0 %2164  ;;  %v1989_v56 = vpop.permute.xlu1 %1988 }
 0xe89   :  { %7828 = vmatprep.subr.msk.bf16.mxu0 %vm10604_vm4, %v1989_v56  ;;  %7567 = vmatprep.mubr.msk.bf16.mxu1 %vm10605_vm5, %v2165_v42  ;;  %v1999_v60 = vsel %vm10607_vm7, %v1989_v56, 0  ;;  %vm10618_vm4 = vmmov %vm10617_vm3 }
 0xe8a   :  { %vm10619_vm5 = vmmov %vm10617_vm3 }
 0xe8b   :  { %vm10621_vm7 = vmmov %vm10617_vm3 }
 0xe8c   :  { %v2169_v0 = vpop.permute.xlu1 %2168  ;;  %v2167_v39 = vpop.permute.xlu0 %2166 }
 0xe8d   :  { %7830 = vmatprep.subr.msk.bf16.mxu1 %vm10606_vm6, %v2169_v0  ;;  %v2179_v59 = vsel %vm10608_vm8, %v2169_v0, 0  ;;  %vm10620_vm6 = vmmov %vm10617_vm3 }
 0xe8e   :  { %7550 = vmatpush3.bf16.xpose.msra.mxu0 %v1999_v60  ;;  %7566 = vmatpush3.bf16.xpose.msra.mxu1 %v2179_v59  ;;  %vm10622_vm8 = vmmov %vm10617_vm3 }
 0xe8f   :  { %7555 = vmatprep.subr.bf16.mxu0 %v9470_v2 }
 0xe90   :  { %v2357_v5 = vpop.permute.xlu1 %2356  ;;  %v2351_v22 = vpop.permute.xlu0 %2350 }
 0xe91   :  { %7831 = vmatprep.subr.msk.bf16.mxu1 %vm10609_vm9, %v2357_v5  ;;  %v2368_v6 = vsel %vm10612_vm10, %v2357_v5, 0  ;;  %vm10623_vm9 = vmmov %vm10617_vm3 }
 0xe94   :  { %v2355_v8 = vpop.permute.xlu1 %2354 }
 0xe95   :  { %7552 = vmatmul.mubr.msk.bf16.vlgmr.msra.gmra.mxu0 %vm10610_vm1, %v9442_v20  ;;  %7568 = vmatmul.mubr.msk.bf16.vlgmr.msra.gmra.mxu1 %vm10611_vm2, %v2167_v39  ;;  %v2365_v9 = vsel %vm10615_vm13, %v2355_v8, 0  ;;  %vm10624_vm1 = vmmov %vm10617_vm3 }
 0xe96   :  { %7556 = vmatpush3.bf16.msra.mxu0 %v9470_v2  ;;  %7580 = vmatpush3.bf16.xpose.msra.mxu1 %v2368_v6  ;;  %vm10625_vm2 = vmmov %vm10624_vm1 }
 0xe97   :  { %7583 = vmatprep.mubr.msk.bf16.mxu1 %vm10613_vm11, %v2351_v22  ;;  %7557 = vmatprep.subr.bf16.mxu0 %v9438_v38  ;;  %vm10626_vm10 = vmmov %vm10624_vm1 }
 0xe98   :  { %7832 = vmatprep.subr.msk.bf16.mxu1 %vm10614_vm12, %v2355_v8  ;;  %v2353_v10 = vpop.permute.xlu1 %2352  ;;  %vm10627_vm11 = vmmov %vm10624_vm1 }
 0xe99   :  { %vm10628_vm12 = vmmov %vm10624_vm1 }
 0xe9a   :  { %7558 = vmatpush3.bf16.msra.mxu0 %v9438_v38  ;;  %vm10629_vm13 = vmmov %vm10624_vm1 }
 0xe9e   :  { %7582 = vmatpush3.bf16.xpose.msra.mxu1 %v2365_v9 }
 0xea5   :  { %7584 = vmatmul.mubr.msk.bf16.vlgmr.msra.gmra.mxu1 %vm10616_vm14, %v2353_v10  ;;  %vm10630_vm14 = vmmov %vm10624_vm1 }
 0xf55   :  { %v7553_v26 = vpop.f32.mrf.mxu0  ;;  %v7569_v1 = vpop.f32.mrf.mxu1 }
 0xf56   :  { %v2055_v23 = vmul.f32 0.25, %v7553_v26  ;;  %v2235_v17 = vmul.f32 0.25, %v7569_v1 }
 0xf57   :  { %v2038_v19 = vpop.f32.mrf.mxu0  ;;  %v2218_v25 = vpop.f32.mrf.mxu1 }
 0xf58   :  { %v2053_v27 = vmul.f32 0.25, %v2038_v19  ;;  %v2233_v29 = vmul.f32 0.25, %v2218_v25  ;;  %v2059_v7 = vadd.f32 %v2055_v23, %v9111_v14  ;;  %v2239_v33 = vadd.f32 %v2235_v17, %v9111_v14 }
 0xf59   :  { %v7554_v11 = vpop.f32.mrf.mxu0  ;;  %v7570_v63 = vpop.f32.mrf.mxu1 }
 0xf5a   :  { %v2056_v3 = vmul.f32 0.25, %v7554_v11  ;;  %v2067_v35 = vsel %vm10617_vm3, %v2059_v7, -inf  ;;  %v2247_v12 = vsel %vm10618_vm4, %v2239_v33, -inf  ;;  %v2057_v41 = vadd.f32 %v2053_v27, %v9114_v18  ;;  %vm10631_vm3 = vmmov %vm10624_vm1 }
 0xf5b   :  { %2068 = vmax.xlane.f32.xlu0 %v2067_v35  ;;  %v2041_v36 = vpop.f32.mrf.mxu0  ;;  %2248 = vmax.xlane.f32.xlu1 %v2247_v12  ;;  %v2221_v40 = vpop.f32.mrf.mxu1  ;;  %v2237_v43 = vadd.f32 %v2233_v29, %v9114_v18  ;;  %v2236_v46 = vmul.f32 0.25, %v7570_v63  ;;  %vm10632_vm4 = vmmov %vm10624_vm1 }
 0xf5c   :  { %v2054_v24 = vmul.f32 0.25, %v2041_v36  ;;  %v2234_v31 = vmul.f32 0.25, %v2221_v40  ;;  %v2061_v57 = vsel %vm10619_vm5, %v2057_v41, -inf  ;;  %v2060_v21 = vadd.f32 %v2056_v3, %v9125_v37  ;;  %vm10633_vm5 = vmmov %vm10624_vm1 }
 0xf5d   :  { %v2241_v47 = vsel %vm10620_vm6, %v2237_v43, -inf  ;;  %v2240_v34 = vadd.f32 %v2236_v46, %v9125_v37  ;;  %vm10634_vm6 = vmmov %vm10624_vm1 }
 0xf5e   :  { %v2058_v54 = vadd.f32 %v2054_v24, %v9134_v52  ;;  %v2070_v50 = vsel %vm10621_vm7, %v2060_v21, -inf  ;;  %v9501_v15 = vadd.f32 %v2234_v31, %v9134_v52  ;;  %vm10635_vm7 = vmmov %vm10624_vm1 }
 0xf5f   :  { %2062 = vmax.xlane.f32.xlu0 %v2061_v57  ;;  %2242 = vmax.xlane.f32.xlu1 %v2241_v47  ;;  %v2250_v58 = vsel %vm10624_vm1, %v2240_v34, -inf }
 0xf60   :  { %v2064_v44 = vsel %vm10622_vm8, %v2058_v54, -inf  ;;  %v2244_v45 = vsel %vm10623_vm9, %v9501_v15, -inf  ;;  %vm10636_vm8 = vmmov %vm10624_vm1 }
 0xf61   :  { %vm10637_vm9 = vmmov %vm10624_vm1 }
 0xf63   :  { %2071 = vmax.xlane.f32.xlu0 %v2070_v50  ;;  %2065 = vmax.xlane.f32.xlu1 %v2064_v44 }
 0xf65   :  { %v7585_v61 = vpop.f32.mrf.mxu1 }
 0xf66   :  { %v2421_v53 = vmul.f32 0.25, %v7585_v61 }
 0xf67   :  { %2245 = vmax.xlane.f32.xlu0 %v2244_v45  ;;  %v2404_v55 = vpop.f32.mrf.mxu1 }
 0xf68   :  { %v2419_v48 = vmul.f32 0.25, %v2404_v55  ;;  %v9507_v42 = vadd.f32 %v2421_v53, %v9111_v14 }
 0xf69   :  { %v7586_v56 = vpop.f32.mrf.mxu1 }
 0xf6a   :  { %v2433_v62 = vsel %vm10625_vm2, %v9507_v42, -inf  ;;  %v9513_v0 = vadd.f32 %v2419_v48, %v9114_v18  ;;  %v2422_v59 = vmul.f32 0.25, %v7586_v56  ;;  %vm10638_vm2 = vmmov %vm10624_vm1 }
 0xf6b   :  { %2251 = vmax.xlane.f32.xlu0 %v2250_v58  ;;  %2434 = vmax.xlane.f32.xlu1 %v2433_v62  ;;  %v2407_v60 = vpop.f32.mrf.mxu1 }
 0xf6c   :  { %v2420_v39 = vmul.f32 0.25, %v2407_v60  ;;  %v2427_v5 = vsel %vm10626_vm10, %v9513_v0, -inf  ;;  %v9523_v8 = vadd.f32 %v2422_v59, %v9125_v37  ;;  %vm10639_vm10 = vmmov %vm10624_vm1 }
 0xf6e   :  { %v9518_v6 = vadd.f32 %v2420_v39, %v9134_v52  ;;  %v2436_v9 = vsel %vm10628_vm12, %v9523_v8, -inf  ;;  %vm10641_vm12 = vmmov %vm10624_vm1 }
 0xf6f   :  { %2428 = vmax.xlane.f32.xlu1 %v2427_v5 }
 0xf70   :  { %v2430_v22 = vsel %vm10627_vm11, %v9518_v6, -inf  ;;  %vm10640_vm11 = vmmov %vm10624_vm1 }
 0xf71   :  { %2431 = vmax.xlane.f32.xlu0 %v2430_v22 }
 0xf75   :  { %2437 = vmax.xlane.f32.xlu0 %v2436_v9 }
 0xf80   :  { %2291 = vrot.lane.b32.xlu1 %v9470_v2, %s8787_s24 }
 0xfe4   :  { %v2069_v10 = vpop.xlane.xlu0 %2068  ;;  %v2249_v26 = vpop.xlane.xlu1 %2248 }
 0xfe5   :  { %v2075_v1 = vsub.f32 %v2059_v7, %v2069_v10  ;;  %v2255_v23 = vsub.f32 %v2239_v33, %v2249_v26 }
 0xfe7   :  { %v2081_v17 = vmul.f32 1.442695, %v2075_v1  ;;  %v2261_v19 = vmul.f32 1.442695, %v2255_v23 }
 0xfe8   :  { %v2063_v25 = vpop.xlane.xlu0 %2062  ;;  %v2243_v27 = vpop.xlane.xlu1 %2242 }
 0xfe9   :  { %8302 = vpow2.f32 %v2081_v17  ;;  %v2073_v29 = vsub.f32 %v2057_v41, %v2063_v25  ;;  %v2253_v63 = vsub.f32 %v2237_v43, %v2243_v27 }
 0xfea   :  { %8304 = vpow2.f32 %v2261_v19 }
 0xfeb   :  { %v2077_v11 = vmul.f32 1.442695, %v2073_v29  ;;  %v2257_v12 = vmul.f32 1.442695, %v2253_v63 }
 0xfec   :  { %v2072_v3 = vpop.xlane.xlu0 %2071  ;;  %v2066_v40 = vpop.xlane.xlu1 %2065 }
 0xfed   :  { %v2076_v35 = vsub.f32 %v2060_v21, %v2072_v3  ;;  %8306 = vpow2.f32 %v2077_v11  ;;  %v2074_v7 = vsub.f32 %v2058_v54, %v2066_v40 }
 0xfef   :  { %v2083_v36 = vmul.f32 1.442695, %v2076_v35  ;;  %v2079_v46 = vmul.f32 1.442695, %v2074_v7 }
 0xff0   :  { %v2246_v24 = vpop.xlane.xlu0 %2245 }
 0xff1   :  { %8308 = vpow2.f32 %v2083_v36  ;;  %v2254_v9 = vsub.f32 %v9501_v15, %v2246_v24 }
 0xff2   :  { %8310 = vpow2.f32 %v2257_v12 }
 0xff3   :  { %v2259_v1 = vmul.f32 1.442695, %v2254_v9 }
 0xff4   :  { %v2252_v33 = vpop.xlane.xlu0 %2251  ;;  %v2435_v31 = vpop.xlane.xlu1 %2434 }
 0xff5   :  { %v2256_v57 = vsub.f32 %v2240_v34, %v2252_v33  ;;  %v2441_v59 = vsub.f32 %v9507_v42, %v2435_v31 }
 0xff6   :  { %v9529_v47 = vpop.eup %8302 }
 0xff7   :  { %v2263_v41 = vmul.f32 1.442695, %v2256_v57  ;;  %v2091_v43 = vsel %vm10629_vm13, %v9529_v47, 0.0  ;;  %v9533_v50 = vpop.eup %8304  ;;  %v2447_v5 = vmul.f32 1.442695, %v2441_v59  ;;  %vm10642_vm13 = vmmov %vm10624_vm1 }
 0xff8   :  { %2092 = vadd.xlane.f32.xlu1 %v2091_v43  ;;  %v2429_v21 = vpop.xlane.xlu1 %2428  ;;  %v2271_v44 = vsel %vm10630_vm14, %v9533_v50, 0.0  ;;  %vm10643_vm14 = vmmov %vm10624_vm1 }
 0xff9   :  { %8312 = vpow2.f32 %v2263_v41  ;;  %v2439_v22 = vsub.f32 %v9513_v0, %v2429_v21 }
 0xffa   :  { %8314 = vpow2.f32 %v2079_v46  ;;  %v9537_v54 = vpop.eup %8306  ;;  %v2432_v39 = vpop.xlane.xlu0 %2431 }
 0xffb   :  { %v2085_v34 = vsel %vm10632_vm4, %v9537_v54, 0.0  ;;  %8316 = vpow2.f32 %v2447_v5  ;;  %v2443_v10 = vmul.f32 1.442695, %v2439_v22  ;;  %v2440_v17 = vsub.f32 %v9518_v6, %v2432_v39  ;;  %vm10645_vm4 = vmmov %vm10624_vm1 }
 0xffc   :  { %2272 = vadd.xlane.f32.xlu1 %v2271_v44  ;;  %v9539_v61 = vpop.permute.xlu1 %2291 }
 0xffd   :  { %7571 = vmatprep.subr.bf16.mxu0 %v9539_v61  ;;  %8318 = vpow2.f32 %v2443_v10  ;;  %v2445_v19 = vmul.f32 1.442695, %v2440_v17 }
 0xffe   :  { %v9542_v53 = vpop.eup %8308  ;;  %v2438_v26 = vpop.xlane.xlu0 %2437  ;;  %8320 = vpow2.f32 %v2259_v1 }
 0xfff   :  { %v2094_v45 = vsel %vm10631_vm3, %v9542_v53, 0.0  ;;  %v9548_v55 = vpop.eup %8310  ;;  %v2442_v23 = vsub.f32 %v9523_v8, %v2438_v26  ;;  %vm10644_vm3 = vcmask 130048  }
0x1000   :  { %2095 = vadd.xlane.f32.xlu0 %v2094_v45  ;;  %2086 = vadd.xlane.f32.xlu1 %v2085_v34  ;;  %v2265_v48 = vsel %vm10633_vm5, %v9548_v55, 0.0  ;;  %vm10646_vm5 = vmmov %vm10624_vm1 }
0x1001   :  { %v2449_v42 = vmul.f32 1.442695, %v2442_v23 }
0x1003   :  { %8322 = vpow2.f32 %v2449_v42 }
0x1004   :  { %2266 = vadd.xlane.f32.xlu1 %v2265_v48  ;;  %8324 = vpow2.f32 %v2445_v19 }
0x1006   :  { %v9552_v56 = vpop.eup %8312 }
0x1007   :  { %v2274_v58 = vsel %vm10634_vm6, %v9552_v56, 0.0  ;;  %v8315_v62 = vpop.eup %8314  ;;  %vm10647_vm6 = vmmov %vm10644_vm3 }
0x1008   :  { %2275 = vadd.xlane.f32.xlu0 %v2274_v58  ;;  %v2088_v60 = vsel %vm10635_vm7, %v8315_v62, 0.0  ;;  %v9566_v25 = vpop.eup %8316  ;;  %vm10648_vm7 = vmmov %vm10644_vm3 }
0x1009   :  { %v2457_v0 = vsel %vm10636_vm8, %v9566_v25, 0.0  ;;  %vm10649_vm8 = vmmov %vm10644_vm3 }
0x100a   :  { %v9570_v15 = vpop.eup %8318 }
0x100b   :  { %v2451_v27 = vsel %vm10637_vm9, %v9570_v15, 0.0  ;;  %v9574_v29 = vpop.eup %8320  ;;  %vm10650_vm9 = vmmov %vm10644_vm3 }
0x100c   :  { %2089 = vadd.xlane.f32.xlu0 %v2088_v60  ;;  %v2268_v6 = vsel %vm10624_vm1, %v9574_v29, 0.0  ;;  %vm10651_vm1 = vmmov %vm10644_vm3 }
0x1010   :  { %v9578_v8 = vpop.eup %8322 }
0x1011   :  { %v2460_v11 = vsel %vm10638_vm2, %v9578_v8, 0.0  ;;  %v9582_v63 = vpop.eup %8324 }
0x1012   :  { %v2454_v3 = vsel %vm10639_vm10, %v9582_v63, 0.0  ;;  %vm10652_vm10 = vmmov %vm10638_vm2 }
0x1015   :  { %2475 = vrot.lane.b32.xlu1 %v9470_v2, %s8788_s0 }
0x1022   :  { %2289 = vrot.lane.b32.xlu0 %v9438_v38, %s8787_s24 }
0x1039   :  { %2458 = vadd.xlane.f32.xlu1 %v2457_v0 }
0x103d   :  { %2452 = vadd.xlane.f32.xlu1 %v2451_v27 }
0x1041   :  { %2269 = vadd.xlane.f32.xlu0 %v2268_v6 }
0x1045   :  { %2461 = vadd.xlane.f32.xlu0 %v2460_v11 }
0x1049   :  { %2455 = vadd.xlane.f32.xlu0 %v2454_v3 }
0x104e   :  { %2473 = vrot.lane.b32.xlu1 %v9438_v38, %s8788_s0 }
0x1052   :  { %2538 = vrot.lane.b32.xlu1 %v9436_v51, %s8775_s22 }
0x1056   :  { %2536 = vrot.lane.b32.xlu1 %v9442_v20, %s8790_s2 }
0x105f   :  { %2540 = vrot.lane.b32.xlu0 %v9442_v20, %s8775_s22 }
0x1063   :  { %2534 = vrot.lane.b32.xlu0 %v9436_v51, %s8790_s2 }
0x1081   :  { %v2093_v35 = vpop.xlane.xlu1 %2092 }
0x1085   :  { %v2273_v12 = vpop.xlane.xlu1 %2272 }
0x1089   :  { %v2096_v36 = vpop.xlane.xlu0 %2095  ;;  %v2087_v40 = vpop.xlane.xlu1 %2086 }
0x108a   :  { %8326 = vrcp.f32 %v2096_v36 }
0x108b   :  { %8328 = vrcp.f32 %v2087_v40 }
0x108c   :  { %8330 = vrcp.f32 %v2093_v35 }
0x108d   :  { %v2267_v45 = vpop.xlane.xlu1 %2266 }
0x1091   :  { %v2276_v24 = vpop.xlane.xlu0 %2275  ;;  %v2476_v48 = vpop.permute.xlu1 %2475 }
0x1095   :  { %v2090_v7 = vpop.xlane.xlu0 %2089 }
0x1096   :  { %8332 = vrcp.f32 %v2090_v7 }
0x1097   :  { %v8327_v33 = vpop.eup %8326  ;;  %8334 = vrcp.f32 %v2276_v24 }
0x1098   :  { %v8329_v31 = vpop.eup %8328  ;;  %v2104_v41 = vmul.f32 %v8327_v33, %v9542_v53  ;;  %8336 = vrcp.f32 %v2267_v45 }
0x1099   :  { %v8331_v57 = vpop.eup %8330  ;;  %v2101_v20 = vmul.f32 %v8329_v31, %v9537_v54  ;;  %v2290_v34 = vpop.permute.xlu0 %2289  ;;  %8338 = vrcp.f32 %v2273_v12 }
0x109a   :  { %v2103_v51 = vmul.f32 %v8331_v57, %v9529_v47 }
0x109c   :  { %v2106_v44 = vpack.c.bf16 %v2104_v41, %v2103_v51 }
0x10a3   :  { %v8333_v46 = vpop.eup %8332 }
0x10a4   :  { %v2102_v43 = vmul.f32 %v8333_v46, %v8315_v62  ;;  %v8335_v60 = vpop.eup %8334 }
0x10a5   :  { %v8337_v59 = vpop.eup %8336  ;;  %v2284_v5 = vmul.f32 %v8335_v60, %v9552_v56 }
0x10a6   :  { %v2105_v21 = vpack.c.bf16 %v2102_v43, %v2101_v20  ;;  %v2281_v22 = vmul.f32 %v8337_v59, %v9548_v55 }
0x10a8   :  { %7559 = vmatprep.mubr.msk.bf16.mxu0 %vm10640_vm11, %v2105_v21  ;;  %vm10653_vm11 = vmmov %vm10638_vm2 }
0x10a9   :  { %7560 = vmatmul.mubr.msk.bf16.vlgmr.msra.gmra.mxu0 %vm10641_vm12, %v2106_v44  ;;  %vm10654_vm12 = vmmov %vm10638_vm2 }
0x10aa   :  { %7572 = vmatpush3.bf16.msra.mxu0 %v9539_v61  ;;  %v8339_v61 = vpop.eup %8338 }
0x10ab   :  { %7573 = vmatprep.subr.bf16.mxu0 %v2290_v34  ;;  %v2283_v10 = vmul.f32 %v8339_v61, %v9533_v50 }
0x10ad   :  { %v2286_v1 = vpack.c.bf16 %v2284_v5, %v2283_v10 }
0x10ae   :  { %7574 = vmatpush3.bf16.msra.mxu0 %v2290_v34 }
0x10af   :  { %7587 = vmatprep.subr.bf16.mxu0 %v2476_v48 }
0x10c2   :  { %v2459_v53 = vpop.xlane.xlu1 %2458 }
0x10c6   :  { %v2453_v47 = vpop.xlane.xlu1 %2452 }
0x10ca   :  { %v2270_v54 = vpop.xlane.xlu0 %2269  ;;  %v2474_v19 = vpop.permute.xlu1 %2473 }
0x10cb   :  { %8340 = vrcp.f32 %v2270_v54 }
0x10ce   :  { %v2462_v58 = vpop.xlane.xlu0 %2461  ;;  %v2539_v12 = vpop.permute.xlu1 %2538 }
0x10cf   :  { %8342 = vrcp.f32 %v2462_v58 }
0x10d0   :  { %8344 = vrcp.f32 %v2453_v47 }
0x10d1   :  { %8346 = vrcp.f32 %v2459_v53 }
0x10d2   :  { %v2456_v62 = vpop.xlane.xlu0 %2455 }
0x10d3   :  { %8348 = vrcp.f32 %v2456_v62 }
0x10d6   :  { %v2541_v27 = vpop.permute.xlu0 %2540 }
0x10d7   :  { %v2552_v35 = vsel %vm10647_vm6, %v2541_v27, 0  ;;  %vm10660_vm6 = vmmov %vm10638_vm2 }
0x10d8   :  { %v8341_v39 = vpop.eup %8340 }
0x10d9   :  { %v2282_v9 = vmul.f32 %v8341_v39, %v9574_v29 }
0x10da   :  { %v2535_v3 = vpop.permute.xlu0 %2534 }
0x10db   :  { %v2285_v26 = vpack.c.bf16 %v2282_v9, %v2281_v22 }
0x10dc   :  { %v8343_v23 = vpop.eup %8342 }
0x10dd   :  { %7575 = vmatprep.mubr.msk.bf16.mxu0 %vm10642_vm13, %v2285_v26  ;;  %v8345_v17 = vpop.eup %8344  ;;  %v2470_v55 = vmul.f32 %v8343_v23, %v9578_v8  ;;  %vm10655_vm13 = vmmov %vm10638_vm2 }
0x10de   :  { %7576 = vmatmul.mubr.msk.bf16.vlgmr.msra.gmra.mxu0 %vm10643_vm14, %v2286_v1  ;;  %v8347_v42 = vpop.eup %8346  ;;  %v2467_v56 = vmul.f32 %v8345_v17, %v9570_v15  ;;  %v2537_v15 = vpop.permute.xlu1 %2536  ;;  %vm10656_vm14 = vmmov %vm10638_vm2 }
0x10df   :  { %7588 = vmatpush3.bf16.msra.mxu0 %v2476_v48  ;;  %v2469_v29 = vmul.f32 %v8347_v42, %v9566_v25  ;;  %v2549_v25 = vsel %vm10650_vm9, %v2539_v12, 0  ;;  %vm10663_vm9 = vmmov %vm10651_vm1 }
0x10e0   :  { %v8349_v0 = vpop.eup %8348  ;;  %7589 = vmatprep.subr.bf16.mxu0 %v2474_v19 }
0x10e1   :  { %v2468_v50 = vmul.f32 %v8349_v0, %v9582_v63  ;;  %v2472_v11 = vpack.c.bf16 %v2470_v55, %v2469_v29 }
0x10e3   :  { %7590 = vmatpush3.bf16.msra.mxu0 %v2474_v19  ;;  %v2471_v6 = vpack.c.bf16 %v2468_v50, %v2467_v56 }
0x10e4   :  { %7833 = vmatprep.subr.msk.bf16.mxu0 %vm10644_vm3, %v2541_v27  ;;  %vm10657_vm3 = vmmov %vm10638_vm2 }
0x10e5   :  { %7591 = vmatprep.mubr.msk.bf16.mxu0 %vm10645_vm4, %v2471_v6  ;;  %vm10658_vm4 = vmmov %vm10638_vm2 }
0x10e6   :  { %7592 = vmatmul.mubr.msk.bf16.vlgmr.msra.gmra.mxu0 %vm10646_vm5, %v2472_v11  ;;  %vm10659_vm5 = vmmov %vm10638_vm2 }
0x10e7   :  { %7596 = vmatpush3.bf16.xpose.msra.mxu0 %v2552_v35  ;;  %7599 = vmatprep.mubr.msk.bf16.mxu0 %vm10648_vm7, %v2535_v3  ;;  %vm10661_vm7 = vmmov %vm10651_vm1 }
0x10e8   :  { %7834 = vmatprep.subr.msk.bf16.mxu0 %vm10649_vm8, %v2539_v12  ;;  %vm10662_vm8 = vmmov %vm10651_vm1 }
0x10ef   :  { %7598 = vmatpush3.bf16.xpose.msra.mxu0 %v2549_v25 }
0x10f6   :  { %7600 = vmatmul.mubr.msk.bf16.vlgmr.msra.gmra.mxu0 %vm10651_vm1, %v2537_v15 }
0x10f7   :  { %3058 = vmatprep.mubr.bf16.mxu0 %v8783_v16 }
0x1169   :  { %v9621_v8 = vpop.f32.mrf.mxu0 }
0x116b   :  { %v9623_v63 = vpop.f32.mrf.mxu0 }
0x116d   :  { %v9625_v36 = vpop.f32.mrf.mxu0 }
0x116f   :  { %v9627_v40 = vpop.f32.mrf.mxu0 }
0x119e   :  { %v7577_v24 = vpop.f32.mrf.mxu0 }
0x11a0   :  { %v2335_v7 = vpop.f32.mrf.mxu0 }
0x11a2   :  { %v7578_v33 = vpop.f32.mrf.mxu0 }
0x11a3   :  { %v7945_v31 = vpack.i.bf16 %v7578_v33, %v7577_v24 }
0x11a4   :  { %v2338_v57 = vpop.f32.mrf.mxu0 }
0x11a5   :  { %v7940_v46 = vpack.i.bf16 %v2338_v57, %v2335_v7 }
0x11a6   :  { %v7593_v41 = vpop.f32.mrf.mxu0 }
0x11a8   :  { %v2519_v20 = vpop.f32.mrf.mxu0 }
0x11aa   :  { %v7594_v43 = vpop.f32.mrf.mxu0 }
0x11ab   :  { %v7955_v51 = vpack.i.bf16 %v7594_v43, %v7593_v41 }
0x11ac   :  { %v2522_v21 = vpop.f32.mrf.mxu0 }
0x11ad   :  { %v7950_v44 = vpack.i.bf16 %v2522_v21, %v2519_v20 }
0x11b6   :  { %v7601_v45 = vpop.f32.mrf.mxu0 }
0x11b7   :  { %v2605_v48 = vmul.f32 0.25, %v7601_v45 }
0x11b8   :  { %v2588_v34 = vpop.f32.mrf.mxu0 }
0x11b9   :  { %v2603_v53 = vmul.f32 0.25, %v2588_v34  ;;  %v2609_v62 = vadd.f32 %v2605_v48, %v9111_v14 }
0x11ba   :  { %v7602_v54 = vpop.f32.mrf.mxu0 }
0x11bb   :  { %v2607_v47 = vadd.f32 %v2603_v53, %v9114_v18  ;;  %v2606_v60 = vmul.f32 0.25, %v7602_v54  ;;  %v2617_v22 = vsel %vm10652_vm10, %v2609_v62, -inf  ;;  %v8088_v53 = vld [vmem:[%s8833_s29 + $0x38] sm:$0xff]   ;;  %v8089_v54 = vld [vmem:[%s8833_s29 + $0x30] sm:$0xff]   ;;  %vm10664_vm10 = vmmov %vm10638_vm2 }
0x11bc   :  { %v2591_v58 = vpop.f32.mrf.mxu0 }
0x11bd   :  { %v2604_v59 = vmul.f32 0.25, %v2591_v58  ;;  %v2611_v61 = vsel %vm10638_vm2, %v2607_v47, -inf  ;;  %v2610_v5 = vadd.f32 %v2606_v60, %v9125_v37  ;;  %v8091_v58 = vld [vmem:[%s8833_s29 + $0x20] sm:$0xff]  }
0x11be   :  { %2612 = vmax.xlane.f32.xlu0 %v2611_v61 }
0x11bf   :  { %v2608_v39 = vadd.f32 %v2604_v59, %v9134_v52  ;;  %v2620_v10 = vsel %vm10654_vm12, %v2610_v5, -inf  ;;  %vm10666_vm12 = vmmov %vm10638_vm2 }
0x11c1   :  { %v2614_v9 = vsel %vm10653_vm11, %v2608_v39, -inf  ;;  %vm10665_vm11 = vmmov %vm10638_vm2 }
0x11c2   :  { %2618 = vmax.xlane.f32.xlu0 %v2617_v22  ;;  %2615 = vmax.xlane.f32.xlu1 %v2614_v9 }
0x11c6   :  { %2621 = vmax.xlane.f32.xlu0 %v2620_v10 }
0x1247   :  { %v2613_v26 = vpop.xlane.xlu0 %2612 }
0x1248   :  { %v2623_v1 = vsub.f32 %v2607_v47, %v2613_v26  ;;  %v8090_v47 = vld [vmem:[%s8833_s29 + $0x28] sm:$0xff]   ;;  %s10690_s29 = sld [smem:[#allocation42_spill]] }
0x124a   :  { %v2627_v19 = vmul.f32 1.442695, %v2623_v1 }
0x124b   :  { %v2619_v23 = vpop.xlane.xlu0 %2618  ;;  %v2616_v17 = vpop.xlane.xlu1 %2615 }
0x124c   :  { %v2625_v42 = vsub.f32 %v2609_v62, %v2619_v23  ;;  %v2624_v27 = vsub.f32 %v2608_v39, %v2616_v17 }
0x124e   :  { %v2631_v0 = vmul.f32 1.442695, %v2625_v42  ;;  %v2629_v50 = vmul.f32 1.442695, %v2624_v27 }
0x124f   :  { %v2622_v55 = vpop.xlane.xlu0 %2621 }
0x1250   :  { %8350 = vpow2.f32 %v2631_v0  ;;  %v2626_v56 = vsub.f32 %v2610_v5, %v2622_v55 }
0x1251   :  { %8352 = vpow2.f32 %v2627_v19 }
0x1252   :  { %v2633_v29 = vmul.f32 1.442695, %v2626_v56 }
0x1254   :  { %8354 = vpow2.f32 %v2633_v29 }
0x1255   :  { %8356 = vpow2.f32 %v2629_v50 }
0x125d   :  { %v8351_v6 = vpop.eup %8350 }
0x125e   :  { %v2641_v11 = vsel %vm10655_vm13, %v8351_v6, 0.0  ;;  %v8353_v3 = vpop.eup %8352  ;;  %vm10667_vm13 = vcmask 523264  }
0x125f   :  { %2642 = vadd.xlane.f32.xlu1 %v2641_v11  ;;  %v2635_v25 = vsel %vm10657_vm3, %v8353_v3, 0.0  ;;  %vm10669_vm3 = vmmov %vm10667_vm13 }
0x1261   :  { %v8355_v35 = vpop.eup %8354 }
0x1262   :  { %v2644_v12 = vsel %vm10656_vm14, %v8355_v35, 0.0  ;;  %v8357_v15 = vpop.eup %8356  ;;  %vm10668_vm14 = vmmov %vm10667_vm13 }
0x1263   :  { %2645 = vadd.xlane.f32.xlu0 %v2644_v12  ;;  %2636 = vadd.xlane.f32.xlu1 %v2635_v25  ;;  %v2638_v24 = vsel %vm10658_vm4, %v8357_v15, 0.0  ;;  %vm10670_vm4 = vmmov %vm10669_vm3 }
0x1267   :  { %2639 = vadd.xlane.f32.xlu0 %v2638_v24 }
0x1274   :  { %2659 = vrot.lane.b32.xlu1 %v9470_v2, %s8790_s2 }
0x1278   :  { %7941 = vrot.lane.b32.xlu1 %v7940_v46, %s8775_s22 }
0x127c   :  { %7946 = vrot.lane.b32.xlu1 %v7945_v31, %s8775_s22 }
0x127d   :  { %2657 = vrot.lane.b32.xlu0 %v9438_v38, %s8790_s2 }
0x1280   :  { %7956 = vrot.lane.b32.xlu1 %v7955_v51, %s8786_s13 }
0x1281   :  { %7951 = vrot.lane.b32.xlu0 %v7950_v44, %s8786_s13 }
0x12e8   :  { %v2643_v7 = vpop.xlane.xlu1 %2642 }
0x12ec   :  { %v2646_v33 = vpop.xlane.xlu0 %2645  ;;  %v2637_v57 = vpop.xlane.xlu1 %2636 }
0x12ed   :  { %8358 = vrcp.f32 %v2646_v33 }
0x12ee   :  { %8360 = vrcp.f32 %v2637_v57 }
0x12ef   :  { %8362 = vrcp.f32 %v2643_v7 }
0x12f0   :  { %v2640_v41 = vpop.xlane.xlu0 %2639  ;;  %v2660_v20 = vpop.permute.xlu1 %2659 }
0x12f1   :  { %8364 = vrcp.f32 %v2640_v41  ;;  %7603 = vmatprep.subr.bf16.mxu1 %v2660_v20 }
0x12f2   :  { %7604 = vmatpush3.bf16.msra.mxu1 %v2660_v20 }
0x12f4   :  { %v2658_v2 = vpop.permute.xlu0 %2657  ;;  %v7942_v22 = vpop.permute.xlu1 %7941 }
0x12f5   :  { %7605 = vmatprep.subr.bf16.mxu1 %v2658_v2  ;;  %v7944_v1 = vunpack.i.h.bf16 %v7942_v22  ;;  %v7943_v23 = vunpack.i.l.bf16 %v7942_v22 }
0x12f6   :  { %7606 = vmatpush3.bf16.msra.mxu1 %v2658_v2 }
0x12f7   :  { %7611 = vmatprep.subr.bf16.mxu1 %v8088_v53  ;;  %v2766_v11 = vsel %vm10662_vm8, %v9623_v63, %v7943_v23  ;;  %vm10674_vm8 = vmmov %vm10669_vm3 }
0x12f8   :  { %v7947_v9 = vpop.permute.xlu1 %7946  ;;  %v7952_v26 = vpop.permute.xlu0 %7951 }
0x12f9   :  { %v7949_v17 = vunpack.i.h.bf16 %v7947_v9  ;;  %v7948_v42 = vunpack.i.l.bf16 %v7947_v9  ;;  %v7954_v27 = vunpack.i.h.bf16 %v7952_v26  ;;  %v7953_v55 = vunpack.i.l.bf16 %v7952_v26 }
0x12fa   :  { %v8359_v38 = vpop.eup %8358 }
0x12fb   :  { %v8361_v31 = vpop.eup %8360  ;;  %v2654_v51 = vmul.f32 %v8359_v38, %v8355_v35  ;;  %v2768_v35 = vsel %vm10651_vm1, %v9621_v8, %v7948_v42  ;;  %v2770_v33 = vsel %vm10665_vm11, %v2766_v11, %v7953_v55  ;;  %v6882_v38 = vld [vmem:[%s8838_s3 + $0x1] ss:$0 sm:$0xff]  ;;  %vm10676_vm1 = vmmov %vm10669_vm3  ;;  %v8100_v11 = vld [vmem:[%s8853_s19 + $0x54] ss:$8 sps:$4 sm:$0xff]   ;;  %s10691_s3 = sld [smem:[#allocation31_spill]] }
0x12fc   :  { %v8363_v46 = vpop.eup %8362  ;;  %v2651_v21 = vmul.f32 %v8361_v31, %v8353_v3  ;;  %v7957_v10 = vpop.permute.xlu1 %7956  ;;  %v2769_v3 = vsel %vm10663_vm9, %v9625_v36, %v7949_v17  ;;  %vm10675_vm9 = vmmov %vm10669_vm3 }
0x12fd   :  { %v2653_v45 = vmul.f32 %v8363_v46, %v8351_v6  ;;  %v7959_v19 = vunpack.i.h.bf16 %v7957_v10  ;;  %v7958_v0 = vunpack.i.l.bf16 %v7957_v10  ;;  %v2767_v6 = vsel %vm10661_vm7, %v9627_v40, %v7944_v1  ;;  %vm10673_vm7 = vmmov %vm10669_vm3 }
0x12fe   :  { %v8365_v43 = vpop.eup %8364  ;;  %v2771_v40 = vsel %vm10666_vm12, %v2767_v6, %v7954_v27  ;;  %v8095_v6 = vld [vmem:[%s8853_s19 + $0x60] ss:$8 sps:$4 sm:$0xff]   ;;  %vm10679_vm11 = vmmov %vm10676_vm1 }
0x12ff   :  { %v2652_v44 = vmul.f32 %v8365_v43, %v8357_v15  ;;  %v2656_v48 = vpack.c.bf16 %v2654_v51, %v2653_v45  ;;  %v2772_v25 = vsel %vm10638_vm2, %v2768_v35, %v7958_v0  ;;  %v2773_v15 = vsel %vm10664_vm10, %v2769_v3, %v7959_v19  ;;  %v8098_v3 = vld [vmem:[%s8853_s19 + $0x50] ss:$8 sps:$4 sm:$0xff]   ;;  %v8103_v35 = vld [vmem:[%s8853_s19 + $0x44] ss:$8 sps:$4 sm:$0xff]   ;;  %vm10677_vm2 = vmmov %vm10676_vm1 }
0x1300   :  { %vm10678_vm10 = vmmov %vm10676_vm1 }
0x1301   :  { %v2655_v34 = vpack.c.bf16 %v2652_v44, %v2651_v21  ;;  %vm10680_vm12 = vmmov %vm10676_vm1 }
0x1303   :  { %7607 = vmatprep.mubr.msk.bf16.mxu1 %vm10659_vm5, %v2655_v34  ;;  %vm10671_vm5 = vmmov %vm10669_vm3 }
0x1304   :  { %7608 = vmatmul.mubr.msk.bf16.vlgmr.msra.gmra.mxu1 %vm10660_vm6, %v2656_v48  ;;  %vm10672_vm6 = vmmov %vm10669_vm3 }
0x1305   :  { %7612 = vmatpush3.bf16.msra.mxu1 %v8088_v53 }
0x1306   :  { %7613 = vmatprep.subr.bf16.mxu1 %v8089_v54 }
0x1309   :  { %7614 = vmatpush3.bf16.msra.mxu1 %v8089_v54 }
0x130a   :  { %7615 = vmatprep.subr.bf16.mxu1 %v8090_v47 }
0x130d   :  { %7616 = vmatpush3.bf16.msra.mxu1 %v8090_v47 }
0x130e   :  { %7617 = vmatprep.subr.bf16.mxu1 %v8091_v58 }
0x1311   :  { %7618 = vmatpush3.bf16.msra.mxu1 %v8091_v58 }
0x13c4   :  { %v7609_v62 = vpop.f32.mrf.mxu1 }
0x13c6   :  { %v2703_v60 = vpop.f32.mrf.mxu1 }
0x13c8   :  { %v7610_v59 = vpop.f32.mrf.mxu1 }
0x13c9   :  { %v7965_v61 = vpack.i.bf16 %v7610_v59, %v7609_v62 }
0x13ca   :  { %v2706_v39 = vpop.f32.mrf.mxu1 }
0x13cb   :  { %v7960_v5 = vpack.i.bf16 %v2706_v39, %v2703_v60  ;;  %7966 = vrot.lane.b32.xlu1 %v7965_v61, %s8785_s9 }
0x13cd   :  { %7961 = vrot.lane.b32.xlu0 %v7960_v5, %s8785_s9 }
0x143d   :  { %v7967_v56 = vpop.permute.xlu1 %7966 }
0x143e   :  { %v7969_v50 = vunpack.i.h.bf16 %v7967_v56  ;;  %v7968_v29 = vunpack.i.l.bf16 %v7967_v56  ;;  %v8094_v56 = vld [vmem:[%s8853_s19 + $0x74] ss:$8 sps:$4 sm:$0xff]  }
0x143f   :  { %v7962_v12 = vpop.permute.xlu0 %7961  ;;  %3034 = vmatprep.subr.bf16.mxu0 %v8094_v56 }
0x1440   :  { %v7964_v24 = vunpack.i.h.bf16 %v7962_v12  ;;  %v7963_v7 = vunpack.i.l.bf16 %v7962_v12  ;;  %v2776_v63 = vsel %vm1286_vm0, %v2772_v25, %v7968_v29  ;;  %v2777_v57 = vsel %vm1286_vm0, %v2773_v15, %v7969_v50  ;;  %v8092_v50 = vld [vmem:[%s8853_s19 + $0x70] ss:$8 sps:$4 sm:$0xff]   ;;  %v8097_v29 = vld [vmem:[%s8853_s19 + $0x64] ss:$8 sps:$4 sm:$0xff]   ;;  %v8101_v12 = vld [vmem:[%s8853_s19 + $0x40] ss:$8 sps:$4 sm:$0xff]  }
0x1441   :  { %v2788_v20 = vpack.c.bf16 %v2777_v57, %v2776_v63  ;;  %3035 = vmatpush1.bf16.msra.mxu0 %v8092_v50  ;;  %v8104_v25 = vld [vmem:[%s10581_s7 + $0xf8] sm:$0xff]   ;;  %v8110_v63 = vld [vmem:[%s10581_s7 + $0xe0] sm:$0xff]   ;;  %s10693_s19 = sld [smem:[#allocation39_spill]] }
0x1442   :  { %v2774_v36 = vsel %vm1286_vm0, %v2770_v33, %v7963_v7  ;;  %v2775_v8 = vsel %vm1286_vm0, %v2771_v40, %v7964_v24  ;;  %3036 = vmatprep.subr.bf16.mxu0 %v8097_v29  ;;  %v8105_v15 = vld [vmem:[%s10581_s7 + $0xb8] sm:$0xff]   ;;  %v8106_v24 = vld [vmem:[%s10581_s7 + $0xf0] sm:$0xff]   ;;  %7284 = vmatprep.subr.bf16.mxu1 %v8104_v25  ;;  %v8108_v33 = vld [vmem:[%s10581_s7 + $0xe8] sm:$0xff]  }
0x1443   :  { %v2787_v41 = vpack.c.bf16 %v2775_v8, %v2774_v36  ;;  %v8107_v7 = vld [vmem:[%s10581_s7 + $0xb0] sm:$0xff]   ;;  %v8109_v40 = vld [vmem:[%s10581_s7 + $0xa8] sm:$0xff]   ;;  %v8111_v57 = vld [vmem:[%s10581_s7 + $0xa0] sm:$0xff]  }
0x1444   :  { %v8112_v36 = vld [vmem:[%s10581_s7 + $0xd8] sm:$0xff]  }
0x1445   :  { %7619 = vmatprep.mubr.msk.bf16.mxu1 %vm10667_vm13, %v2787_v41  ;;  %3037 = vmatpush1.bf16.msra.mxu0 %v8095_v6  ;;  %v8113_v8 = vld [vmem:[%s10581_s7 + $0x98] sm:$0xff]   ;;  %vm10681_vm13 = vmmov %vm10676_vm1 }
0x1446   :  { %7620 = vmatmul.mubr.msk.bf16.vlgmr.msra.gmra.mxu1 %vm10668_vm14, %v2788_v20  ;;  %3038 = vmatprep.subr.bf16.mxu0 %v8100_v11  ;;  %vm10682_vm14 = vmmov %vm10676_vm1 }
0x1447   :  { %7285 = vmatpush3.bf16.msra.mxu1 %v8105_v15 }
0x1448   :  { %7286 = vmatprep.subr.bf16.mxu1 %v8106_v24 }
0x1449   :  { %3039 = vmatpush1.bf16.msra.mxu0 %v8098_v3 }
0x144a   :  { %3040 = vmatprep.subr.bf16.mxu0 %v8103_v35 }
0x144b   :  { %7287 = vmatpush3.bf16.msra.mxu1 %v8107_v7 }
0x144c   :  { %7288 = vmatprep.subr.bf16.mxu1 %v8108_v33 }
0x144d   :  { %3041 = vmatpush1.bf16.msra.mxu0 %v8101_v12 }
0x144f   :  { %7289 = vmatpush3.bf16.msra.mxu1 %v8109_v40 }
0x1450   :  { %7290 = vmatprep.subr.bf16.mxu1 %v8110_v63 }
0x1453   :  { %7291 = vmatpush3.bf16.msra.mxu1 %v8111_v57 }
0x1454   :  { %7292 = vmatprep.subr.bf16.mxu1 %v8112_v36 }
0x1457   :  { %7293 = vmatpush3.bf16.msra.mxu1 %v8113_v8 }
0x1506   :  { %v7621_v2 = vpop.f32.mrf.mxu1 }
0x1507   :  { %v2870_v46 = vadd.f32 %v7621_v2, %v6882_v38 }
0x1508   :  { %v2861_v31 = vpop.f32.mrf.mxu1 }
0x1509   :  { %v2862_v43 = vadd.f32 %v6882_v38, %v2861_v31  ;;  %v2878_v45 = vadd.f32 %v2870_v46, %v9426_v49 }
0x150a   :  { %v7622_v51 = vpop.f32.mrf.mxu1 }
0x150b   :  { %v2876_v21 = vadd.f32 %v2862_v43, %v9418_v28  ;;  %v2873_v34 = vadd.f32 %v7622_v51, %v6882_v38  ;;  %v2890_v62 = vsel %vm10671_vm5, %v2878_v45, 0.0  ;;  %vm10686_vm5 = vmmov %vm10676_vm1 }
0x150c   :  { %v2864_v44 = vpop.f32.mrf.mxu1 }
0x150d   :  { %v2865_v48 = vadd.f32 %v6882_v38, %v2864_v44  ;;  %v2884_v53 = vsel %vm10669_vm3, %v2876_v21, 0.0  ;;  %v2879_v47 = vadd.f32 %v2873_v34, %v9428_v13  ;;  %vm10683_vm3 = vmmov %vm10676_vm1 }
0x150e   :  { %2885 = vadd.xlane.f32.xlu0 %v2884_v53 }
0x150f   :  { %v2877_v54 = vadd.f32 %v2865_v48, %v9420_v4  ;;  %v2893_v28 = vsel %vm10672_vm6, %v2879_v47, 0.0  ;;  %vm10687_vm6 = vmmov %vm10676_vm1 }
0x1511   :  { %v2887_v58 = vsel %vm10670_vm4, %v2877_v54, 0.0  ;;  %vm10685_vm4 = vmmov %vm10676_vm1 }
0x1512   :  { %2888 = vadd.xlane.f32.xlu1 %v2887_v58  ;;  %2891 = vadd.xlane.f32.xlu0 %v2890_v62 }
0x1516   :  { %2894 = vadd.xlane.f32.xlu0 %v2893_v28 }
0x1597   :  { %v2886_v60 = vpop.xlane.xlu0 %2885 }
0x1598   :  { %v2896_v49 = vmul.f32 0.015625, %v2886_v60  ;;  %v6892_v60 = vld [vmem:[%s10583_s10 + $0x1] ss:$0 sm:$0xff] }
0x159a   :  { %v9684_v59 = vsub.f32 %v2876_v21, %v2896_v49 }
0x159b   :  { %v2889_v61 = vpop.xlane.xlu1 %2888  ;;  %v2892_v39 = vpop.xlane.xlu0 %2891 }
0x159c   :  { %v2897_v5 = vmul.f32 0.015625, %v2889_v61  ;;  %v2898_v22 = vmul.f32 0.015625, %v2892_v39  ;;  %v2904_v4 = vmul.f32 %v9684_v59, %v9684_v59 }
0x159e   :  { %v9688_v13 = vsub.f32 %v2877_v54, %v2897_v5  ;;  %v9690_v9 = vsub.f32 %v2878_v45, %v2898_v22  ;;  %v2908_v10 = vsel %vm10673_vm7, %v2904_v4, 0.0  ;;  %v6891_v54 = vld [vmem:[%s10582_s27 + $0x1] ss:$0 sm:$0xff]  ;;  %vm8792_vm7 = vmmov 0  }
0x159f   :  { %2909 = vadd.xlane.f32.xlu1 %v2908_v10  ;;  %v2895_v26 = vpop.xlane.xlu0 %2894 }
0x15a0   :  { %v2899_v1 = vmul.f32 0.015625, %v2895_v26  ;;  %v2905_v23 = vmul.f32 %v9688_v13, %v9688_v13  ;;  %v2906_v17 = vmul.f32 %v9690_v9, %v9690_v9 }
0x15a2   :  { %v9697_v42 = vsub.f32 %v2879_v47, %v2899_v1  ;;  %v2911_v19 = vsel %vm10674_vm8, %v2905_v23, 0.0  ;;  %v2914_v0 = vsel %vm10675_vm9, %v2906_v17, 0.0  ;;  %v8115_v17 = vld [vmem:[%s10581_s7 + $0x90] sm:$0xff]   ;;  %vm10689_vm8 = vmmov %vm10676_vm1 }
0x15a3   :  { %2912 = vadd.xlane.f32.xlu0 %v2911_v19  ;;  %2915 = vadd.xlane.f32.xlu1 %v2914_v0  ;;  %v8117_v19 = vld [vmem:[%s10581_s7 + $0x88] sm:$0xff]   ;;  %v8118_v0 = vld [vmem:[%s10581_s7 + $0xc0] sm:$0xff]   ;;  %vm10692_vm9 = vmmov %vm10676_vm1 }
0x15a4   :  { %v2907_v27 = vmul.f32 %v9697_v42, %v9697_v42 }
0x15a6   :  { %v2917_v55 = vsel %vm10676_vm1, %v2907_v27, 0.0  ;;  %v8119_v27 = vld [vmem:[%s10581_s7 + $0x80] sm:$0xff]   ;;  %vm6692_vm1 = vcmask 257024  }
0x15a7   :  { %2918 = vadd.xlane.f32.xlu0 %v2917_v55  ;;  %v6901_v55 = vld [vmem:[%s10585_s11 + $0x2] sm:$0x3] }
0x15a8   :  { %v2977_v50 = vrot.slane %v6901_v55, %v9053_v32  ;;  %v2973_v29 = vrot.slane %v6901_v55, %v9050_v30 }
0x1628   :  { %v2910_v41 = vpop.xlane.xlu1 %2909 }
0x1629   :  { %v2920_v20 = vmul.f32 0.015625, %v2910_v41 }
0x162b   :  { %v2924_v2 = vadd.f32 1e-05, %v2920_v20 }
0x162c   :  { %v2916_v38 = vpop.xlane.xlu1 %2915  ;;  %v2913_v31 = vpop.xlane.xlu0 %2912 }
0x162d   :  { %8366 = vrsqrt.f32 %v2924_v2  ;;  %v2922_v46 = vmul.f32 0.015625, %v2916_v38  ;;  %v2921_v43 = vmul.f32 0.015625, %v2913_v31 }
0x162f   :  { %v2925_v51 = vadd.f32 1e-05, %v2921_v43  ;;  %v2926_v21 = vadd.f32 1e-05, %v2922_v46 }
0x1630   :  { %v2919_v44 = vpop.xlane.xlu0 %2918 }
0x1631   :  { %v2923_v45 = vmul.f32 0.015625, %v2919_v44  ;;  %8368 = vrsqrt.f32 %v2925_v51 }
0x1632   :  { %8370 = vrsqrt.f32 %v2926_v21 }
0x1633   :  { %v2927_v34 = vadd.f32 1e-05, %v2923_v45 }
0x1635   :  { %8372 = vrsqrt.f32 %v2927_v34 }
0x163a   :  { %v8367_v48 = vpop.eup %8366 }
0x163b   :  { %v2932_v53 = vmul.f32 %v8367_v48, %v9684_v59 }
0x163d   :  { %v2942_v62 = vmul.f32 %v6891_v54, %v2932_v53  ;;  %v6945_v53 = vld [vmem:[%s10587_s15 + $0x1] ss:$0 sm:$0xff] }
0x163e   :  { %v8369_v47 = vpop.eup %8368 }
0x163f   :  { %v2933_v58 = vmul.f32 %v8369_v47, %v9688_v13  ;;  %v8371_v28 = vpop.eup %8370  ;;  %v9727_v5 = vadd.f32 %v6892_v60, %v2942_v62 }
0x1640   :  { %v2934_v59 = vmul.f32 %v8371_v28, %v9690_v9  ;;  %v8114_v9 = vld [vmem:[%s10581_s7 + $0xd0] sm:$0xff]  }
0x1641   :  { %v2943_v61 = vmul.f32 %v6891_v54, %v2933_v58  ;;  %7294 = vmatprep.subr.bf16.mxu1 %v8114_v9 }
0x1642   :  { %v8373_v49 = vpop.eup %8372  ;;  %v2944_v10 = vmul.f32 %v6891_v54, %v2934_v59  ;;  %7295 = vmatpush3.bf16.msra.mxu1 %v8115_v17 }
0x1643   :  { %v2935_v39 = vmul.f32 %v8373_v49, %v9697_v42  ;;  %v9729_v22 = vadd.f32 %v6892_v60, %v2943_v61  ;;  %v8116_v42 = vld [vmem:[%s10581_s7 + $0xc8] sm:$0xff]  }
0x1644   :  { %v9738_v1 = vadd.f32 %v6892_v60, %v2944_v10  ;;  %7296 = vmatprep.subr.bf16.mxu1 %v8116_v42 }
0x1645   :  { %v2965_v4 = vpack.c.bf16 %v9729_v22, %v9727_v5  ;;  %v2945_v13 = vmul.f32 %v6891_v54, %v2935_v39 }
0x1646   :  { %7297 = vmatpush3.bf16.msra.mxu1 %v8117_v19 }
0x1647   :  { %6910 = vmatmul.mubr.msk.bf16.vlgmr.msra.gmra.mxu0 %vm10677_vm2, %v2965_v4  ;;  %v9736_v26 = vadd.f32 %v6892_v60, %v2945_v13  ;;  %7298 = vmatprep.subr.bf16.mxu1 %v8118_v0  ;;  %vm10696_vm2 = vcmask 261120  }
0x1648   :  { %3068 = vmatprep.mubr.bf16.mxu0 %v8783_v16 }
0x1649   :  { %v2966_v23 = vpack.c.bf16 %v9736_v26, %v9738_v1 }
0x164a   :  { %7299 = vmatpush3.bf16.msra.mxu1 %v8119_v27 }
0x164f   :  { %6911 = vmatmul.mubr.msk.bf16.gmra.mxu0 %vm10678_vm10, %v2966_v23  ;;  %vm10698_vm10 = vmmov %vm10683_vm3 }
0x1707   :  { %v3060_v56 = vpop.f32.mrf.mxu0 }
0x1708   :  { %v3061_v12 = vadd.f32 %v3060_v56, %v2973_v29 }
0x1709   :  { %v3062_v6 = vpop.f32.mrf.mxu0 }
0x170a   :  { %v3063_v3 = vadd.f32 %v3062_v6, %v2977_v50  ;;  %v3079_v63 = vmax.f32 %v3061_v12, 0.0 }
0x170b   :  { %v3064_v11 = vpop.f32.mrf.mxu0 }
0x170c   :  { %v3065_v35 = vadd.f32 %v3064_v11, %v2973_v29  ;;  %v3080_v33 = vmax.f32 %v3063_v3, 0.0 }
0x170d   :  { %v3066_v25 = vpop.f32.mrf.mxu0 }
0x170e   :  { %v3067_v15 = vadd.f32 %v3066_v25, %v2977_v50  ;;  %v3081_v24 = vmax.f32 %v3065_v35, 0.0 }
0x170f   :  { %v3070_v7 = vpop.f32.mrf.mxu0 }
0x1710   :  { %v3082_v40 = vmax.f32 %v3067_v15, 0.0  ;;  %v3120_v8 = vpack.c.bf16 %v3081_v24, %v3079_v63  ;;  %v3071_v38 = vadd.f32 %v3070_v7, %v2973_v29 }
0x1711   :  { %v3072_v57 = vpop.f32.mrf.mxu0 }
0x1712   :  { %v3121_v36 = vpack.c.bf16 %v3082_v40, %v3080_v33  ;;  %v3073_v20 = vadd.f32 %v3072_v57, %v2977_v50  ;;  %v3083_v44 = vmax.f32 %v3071_v38, 0.0  ;;  %v8122_v38 = vld [vmem:[%s10684_s21 + $0x8] sm:$0xff]  }
0x1713   :  { %v3074_v41 = vpop.f32.mrf.mxu0 }
0x1714   :  { %v3075_v2 = vadd.f32 %v3074_v41, %v2973_v29  ;;  %3260 = vmatprep.mubr.bf16.mxu1 %v3121_v36  ;;  %v3084_v51 = vmax.f32 %v3073_v20, 0.0  ;;  %v8120_v41 = vld [vmem:[%s10684_s21 + $0x18] sm:$0xff]   ;;  %v8791_v20 = vmov 0.0  }
0x1715   :  { %v3076_v31 = vpop.f32.mrf.mxu0  ;;  %3261 = vmatmul.mubr.bf16.vlgmr.msra.gmra.mxu1 %v3120_v8  ;;  %7623 = vmatprep.subr.bf16.mxu0 %v8791_v20 }
0x1716   :  { %v3077_v46 = vadd.f32 %v3076_v31, %v2977_v50  ;;  %v3085_v43 = vmax.f32 %v3075_v2, 0.0  ;;  %7624 = vmatpush3.bf16.msra.mxu0 %v8120_v41  ;;  %v8121_v2 = vld [vmem:[%s10684_s21 + $0x10] sm:$0xff]   ;;  %7631 = vmatprep.mubr.msk.bf16.mxu0 %vm8792_vm7, %v8791_v20  ;;  %v8123_v31 = vld [vmem:[%s10684_s21] sm:$0xff]  }
0x1717   :  { %7625 = vmatprep.subr.bf16.mxu0 %v8791_v20  ;;  %v8133_v41 = vld [vmem:[%s10691_s3 + $0x20] ss:$8 sps:$4 sm:$0xff]  }
0x1718   :  { %v3086_v21 = vmax.f32 %v3077_v46, 0.0  ;;  %v3122_v34 = vpack.c.bf16 %v3085_v43, %v3083_v44 }
0x171a   :  { %v3123_v45 = vpack.c.bf16 %v3086_v21, %v3084_v51  ;;  %7626 = vmatpush3.bf16.msra.mxu0 %v8121_v2  ;;  %v6966_v2 = vld [vmem:[%s10693_s19] ss:$0 sm:$0xff] }
0x171b   :  { %7627 = vmatprep.subr.bf16.mxu0 %v8791_v20 }
0x171c   :  { %3268 = vmatprep.mubr.bf16.mxu1 %v3123_v45 }
0x171d   :  { %3269 = vmatmul.mubr.bf16.gmra.mxu1 %v3122_v34 }
0x171e   :  { %3712 = vmatprep.mubr.bf16.mxu1 %v8783_v16  ;;  %7628 = vmatpush3.bf16.msra.mxu0 %v8122_v38 }
0x171f   :  { %7629 = vmatprep.subr.bf16.mxu0 %v8791_v20 }
0x1722   :  { %7630 = vmatpush3.bf16.msra.mxu0 %v8123_v31 }
0x1723   :  { %7635 = vmatprep.subr.bf16.mxu0 %v8791_v20 }
0x17d5   :  { %v7300_v48 = vpop.f32.mrf.mxu1 }
0x17d7   :  { %v7301_v54 = vpop.f32.mrf.mxu1 }
0x17d8   :  { %v7302_v47 = vadd.f32 %v7301_v54, %v7300_v48 }
0x17d9   :  { %v7303_v58 = vpop.f32.mrf.mxu1 }
0x17da   :  { %v3263_v62 = vadd.f32 %v7302_v47, %v6945_v53 }
0x17db   :  { %v7304_v28 = vpop.f32.mrf.mxu1 }
0x17dc   :  { %v7305_v60 = vadd.f32 %v7304_v28, %v7303_v58  ;;  %v3277_v49 = vadd.f32 %v3263_v62, %v9727_v5  ;;  %v6964_v28 = vld [vmem:[%s10595_s16 + $0x1] ss:$0 sm:$0xff] }
0x17dd   :  { %v7306_v61 = vpop.f32.mrf.mxu1 }
0x17de   :  { %v3266_v39 = vadd.f32 %v7305_v60, %v6945_v53  ;;  %v3285_v59 = vsel %vm10679_vm11, %v3277_v49, 0.0  ;;  %vm10699_vm11 = vmmov %vm10683_vm3 }
0x17df   :  { %3286 = vadd.xlane.f32.xlu1 %v3285_v59  ;;  %v7307_v4 = vpop.f32.mrf.mxu1 }
0x17e0   :  { %v7308_v13 = vadd.f32 %v7307_v4, %v7306_v61  ;;  %v3278_v10 = vadd.f32 %v3266_v39, %v9729_v22 }
0x17e1   :  { %v7309_v23 = vpop.f32.mrf.mxu1 }
0x17e2   :  { %v3271_v9 = vadd.f32 %v7308_v13, %v6945_v53  ;;  %v3288_v17 = vsel %vm10680_vm12, %v3278_v10, 0.0 }
0x17e3   :  { %3289 = vadd.xlane.f32.xlu0 %v3288_v17  ;;  %v7310_v42 = vpop.f32.mrf.mxu1 }
0x17e4   :  { %v7311_v19 = vadd.f32 %v7310_v42, %v7309_v23  ;;  %v3279_v0 = vadd.f32 %v3271_v9, %v9738_v1 }
0x17e6   :  { %v3274_v27 = vadd.f32 %v7311_v19, %v6945_v53  ;;  %v3291_v5 = vsel %vm10681_vm13, %v3279_v0, 0.0 }
0x17e7   :  { %3292 = vadd.xlane.f32.xlu1 %v3291_v5 }
0x17e8   :  { %v3280_v55 = vadd.f32 %v3274_v27, %v9736_v26 }
0x17ea   :  { %v3294_v56 = vsel %vm10682_vm14, %v3280_v55, 0.0 }
0x17eb   :  { %3295 = vadd.xlane.f32.xlu0 %v3294_v56 }
0x1868   :  { %v3287_v50 = vpop.xlane.xlu1 %3286 }
0x1869   :  { %v3297_v22 = vmul.f32 0.015625, %v3287_v50 }
0x186b   :  { %v3301_v29 = vsub.f32 %v3277_v49, %v3297_v22  ;;  %v6965_v49 = vld [vmem:[%s10596_s6 + $0x1] ss:$0 sm:$0xff] }
0x186c   :  { %v3290_v6 = vpop.xlane.xlu0 %3289 }
0x186d   :  { %v3298_v11 = vmul.f32 0.015625, %v3290_v6  ;;  %v3305_v3 = vmul.f32 %v3301_v29, %v3301_v29 }
0x186f   :  { %v3302_v35 = vsub.f32 %v3278_v10, %v3298_v11  ;;  %v3309_v12 = vsel %vm10683_vm3, %v3305_v3, 0.0 }
0x1870   :  { %3310 = vadd.xlane.f32.xlu1 %v3309_v12  ;;  %v3293_v1 = vpop.xlane.xlu1 %3292 }
0x1871   :  { %v3299_v25 = vmul.f32 0.015625, %v3293_v1  ;;  %v3306_v15 = vmul.f32 %v3302_v35, %v3302_v35 }
0x1873   :  { %v3303_v24 = vsub.f32 %v3279_v0, %v3299_v25  ;;  %v3312_v26 = vsel %vm10685_vm4, %v3306_v15, 0.0  ;;  %v8124_v15 = vld [vmem:[%s10688_s25 + $0x18] sm:$0xff]  }
0x1874   :  { %3313 = vadd.xlane.f32.xlu0 %v3312_v26  ;;  %v3296_v7 = vpop.xlane.xlu0 %3295  ;;  %v8125_v26 = vld [vmem:[%s10688_s25 + $0x10] sm:$0xff]  }
0x1875   :  { %v3300_v33 = vmul.f32 0.015625, %v3296_v7  ;;  %v3307_v40 = vmul.f32 %v3303_v24, %v3303_v24  ;;  %v8126_v7 = vld [vmem:[%s10688_s25 + $0x8] sm:$0xff]  }
0x1877   :  { %v3304_v63 = vsub.f32 %v3280_v55, %v3300_v33  ;;  %v3315_v57 = vsel %vm10686_vm5, %v3307_v40, 0.0  ;;  %v8127_v33 = vld [vmem:[%s10688_s25] sm:$0xff]   ;;  %v8128_v40 = vld [vmem:[%s10690_s29 + $0x8] sm:$0xff]  }
0x1878   :  { %3316 = vadd.xlane.f32.xlu1 %v3315_v57  ;;  %v8130_v57 = vld [vmem:[%s10691_s3 + $0x30] ss:$8 sps:$4 sm:$0xff]  }
0x1879   :  { %v3308_v36 = vmul.f32 %v3304_v63, %v3304_v63 }
0x187b   :  { %v3318_v8 = vsel %vm10687_vm6, %v3308_v36, 0.0  ;;  %v8132_v36 = vld [vmem:[%s10691_s3 + $0x34] ss:$8 sps:$4 sm:$0xff]  }
0x187c   :  { %3319 = vadd.xlane.f32.xlu0 %v3318_v8  ;;  %v8135_v8 = vld [vmem:[%s10691_s3 + $0x24] ss:$8 sps:$4 sm:$0xff]   ;;  %3688 = vmatprep.subr.bf16.mxu1 %v8132_v36 }
0x187d   :  { %3689 = vmatpush1.bf16.msra.mxu1 %v8130_v57 }
0x187e   :  { %3690 = vmatprep.subr.bf16.mxu1 %v8135_v8 }
0x1881   :  { %3691 = vmatpush1.bf16.msra.mxu1 %v8133_v41 }
0x18f9   :  { %v3311_v46 = vpop.xlane.xlu1 %3310 }
0x18fa   :  { %v3321_v43 = vmul.f32 0.015625, %v3311_v46 }
0x18fc   :  { %v3325_v51 = vadd.f32 1e-05, %v3321_v43 }
0x18fd   :  { %v3314_v21 = vpop.xlane.xlu0 %3313 }
0x18fe   :  { %8374 = vrsqrt.f32 %v3325_v51  ;;  %v3322_v44 = vmul.f32 0.015625, %v3314_v21 }
0x1900   :  { %v3326_v45 = vadd.f32 1e-05, %v3322_v44 }
0x1901   :  { %v3317_v34 = vpop.xlane.xlu1 %3316 }
0x1902   :  { %8376 = vrsqrt.f32 %v3326_v45  ;;  %v3323_v48 = vmul.f32 0.015625, %v3317_v34 }
0x1904   :  { %v3327_v53 = vadd.f32 1e-05, %v3323_v48 }
0x1905   :  { %v3320_v54 = vpop.xlane.xlu0 %3319 }
0x1906   :  { %8378 = vrsqrt.f32 %v3327_v53  ;;  %v3324_v47 = vmul.f32 0.015625, %v3320_v54 }
0x1908   :  { %v3328_v58 = vadd.f32 1e-05, %v3324_v47  ;;  %v3539_v47 = vld [vmem:[%s10695_s20] sm:$0xf] }
0x190a   :  { %8380 = vrsqrt.f32 %v3328_v58 }
0x190b   :  { %v8375_v62 = vpop.eup %8374 }
0x190c   :  { %v3333_v60 = vmul.f32 %v8375_v62, %v3301_v29 }
0x190e   :  { %v3343_v61 = vmul.f32 %v6964_v28, %v3333_v60 }
0x190f   :  { %v8377_v39 = vpop.eup %8376 }
0x1910   :  { %v3353_v59 = vadd.f32 %v6965_v49, %v3343_v61  ;;  %v3334_v4 = vmul.f32 %v8377_v39, %v3302_v35  ;;  %v8136_v61 = vld [vmem:[%s10691_s3 + $0x10] ss:$8 sps:$4 sm:$0xff]   ;;  %v8141_v39 = vld [vmem:[%s10691_s3 + $0x4] ss:$8 sps:$4 sm:$0xff]  }
0x1912   :  { %v3358_v13 = vrot.slane %v3353_v59, 4  ;;  %v3344_v10 = vmul.f32 %v6964_v28, %v3334_v4  ;;  %v6978_v4 = vld [vmem:[#allocation13] ss:$0 sm:$0xff] }
0x1913   :  { %v8379_v23 = vpop.eup %8378 }
0x1914   :  { %v3360_v9 = vadd.f32 %v3358_v13, %v3353_v59  ;;  %v3354_v17 = vadd.f32 %v6965_v49, %v3344_v10  ;;  %v3335_v42 = vmul.f32 %v8379_v23, %v3303_v24  ;;  %v8139_v59 = vld [vmem:[%s10691_s3] ss:$8 sps:$4 sm:$0xff]  }
0x1916   :  { %v3361_v19 = vadd.f32 %v3360_v9, %v3354_v17  ;;  %v3363_v0 = vrot.slane %v3354_v17, 4  ;;  %v3345_v27 = vmul.f32 %v6964_v28, %v3335_v42 }
0x1917   :  { %v8381_v5 = vpop.eup %8380 }
0x1918   :  { %v3355_v55 = vadd.f32 %v6965_v49, %v3345_v27  ;;  %v3365_v56 = vadd.f32 %v3363_v0, %v3361_v19  ;;  %v3336_v50 = vmul.f32 %v8381_v5, %v3304_v63  ;;  %v8129_v63 = vld [vmem:[%s10690_s29] sm:$0xff]  }
0x1919   :  { %v3625_v27 = vld [vmem:[%s10697_s23] sm:$0x3] }
0x191a   :  { %v3366_v22 = vadd.f32 %v3365_v56, %v3355_v55  ;;  %v3368_v29 = vrot.slane %v3355_v55, 4  ;;  %v3346_v6 = vmul.f32 %v6964_v28, %v3336_v50  ;;  %v3630_v55 = vrot.slane %v3625_v27, %v9050_v30 }
0x191c   :  { %v3356_v11 = vadd.f32 %v6965_v49, %v3346_v6  ;;  %v3370_v3 = vadd.f32 %v3368_v29, %v3366_v22  ;;  %v8138_v49 = vld [vmem:[%s10691_s3 + $0x14] ss:$8 sps:$4 sm:$0xff]  }
0x191d   :  { %3692 = vmatprep.subr.bf16.mxu1 %v8138_v49 }
0x191e   :  { %v3371_v35 = vadd.f32 %v3370_v3, %v3356_v11  ;;  %v3373_v12 = vrot.slane %v3356_v11, 4  ;;  %3693 = vmatpush1.bf16.msra.mxu1 %v8136_v61 }
0x191f   :  { %3694 = vmatprep.subr.bf16.mxu1 %v8141_v39 }
0x1920   :  { %v3375_v1 = vadd.f32 %v3373_v12, %v3371_v35 }
0x1922   :  { %v3376_v25 = vmul.f32 0.125, %v3375_v1  ;;  %3695 = vmatpush1.bf16.msra.mxu1 %v8139_v59  ;;  %v3634_v1 = vrot.slane %v3625_v27, %v9053_v32 }
0x1924   :  { %v3385_v24 = vpack.c.bf16 %v3376_v25, %v3376_v25 }
0x1926   :  { %7632 = vmatmul.mubr.msk.bf16.vlgmr.msra.gmra.mxu0 %vm10689_vm8, %v3385_v24 }
0x1927   :  { %7636 = vmatpush3.bf16.msra.mxu0 %v8124_v15  ;;  %7643 = vmatprep.mubr.msk.bf16.mxu0 %vm8792_vm7, %v8791_v20 }
0x1928   :  { %7637 = vmatprep.subr.bf16.mxu0 %v8791_v20 }
0x192b   :  { %7638 = vmatpush3.bf16.msra.mxu0 %v8125_v26 }
0x192c   :  { %7639 = vmatprep.subr.bf16.mxu0 %v8791_v20 }
0x192f   :  { %7640 = vmatpush3.bf16.msra.mxu0 %v8126_v7 }
0x1930   :  { %7641 = vmatprep.subr.bf16.mxu0 %v8791_v20 }
0x1933   :  { %7642 = vmatpush3.bf16.msra.mxu0 %v8127_v33 }
0x1934   :  { %7647 = vmatprep.subr.bf16.mxu0 %v8791_v20 }
0x1936   :  { %7644 = vmatmul.mubr.msk.bf16.vlgmr.msra.gmra.mxu0 %vm10692_vm9, %v3385_v24 }
0x1937   :  { %7651 = vmatprep.mubr.msk.bf16.mxu0 %vm8792_vm7, %v8791_v20  ;;  %7648 = vmatpush3.bf16.msra.mxu0 %v8128_v40 }
0x1938   :  { %7649 = vmatprep.subr.bf16.mxu0 %v8791_v20  ;;  %v6972_v20 = vld [vmem:[%s10694_s18] ss:$0 sm:$0xff] }
0x193b   :  { %7650 = vmatpush3.bf16.msra.mxu0 %v8129_v63 }
0x19e6   :  { %v3454_v38 = vpop.f32.mrf.mxu0 }
0x19e7   :  { %v3455_v31 = vadd.f32 %v6966_v2, %v3454_v38 }
0x19e8   :  { %v7633_v46 = vpop.f32.mrf.mxu0 }
0x19e9   :  { %6693 = vst.msk [vmem:[#allocation14] sm:$0xf] %vm6692_vm1, %v3455_v31 }
0x19ea   :  { %v3457_v43 = vpop.f32.mrf.mxu0 }
0x19ec   :  { %v7634_v51 = vpop.f32.mrf.mxu0 }
0x19f6   :  { %v3533_v21 = vpop.f32.mrf.mxu0 }
0x19f7   :  { %v3534_v44 = vadd.f32 %v6972_v20, %v3533_v21 }
0x19f8   :  { %v7645_v45 = vpop.f32.mrf.mxu0 }
0x19f9   :  { %v3540_v34 = vmul.f32 0.5, %v3534_v44  ;;  %6694 = vst.msk [vmem:[#allocation15] sm:$0xf] %vm6692_vm1, %v3534_v44 }
0x19fa   :  { %v3536_v48 = vpop.f32.mrf.mxu0 }
0x19fb   :  { %v3541_v53 = vmul.f32 1.442695, %v3540_v34 }
0x19fc   :  { %v7646_v54 = vpop.f32.mrf.mxu0 }
0x19fd   :  { %8382 = vpow2.f32 %v3541_v53 }
0x1a0a   :  { %v8383_v58 = vpop.eup %8382 }
0x1a0b   :  { %v3543_v62 = vmul.f32 %v8383_v58, %v3539_v47 }
0x1a0d   :  { %v3544_v28 = vadd.f32 %v3543_v62, %v3455_v31 }
0x1a0f   :  { %v3549_v60 = vpack.c.bf16 %v3544_v28, %v3544_v28 }
0x1a11   :  { %7652 = vmatmul.mubr.msk.bf16.vlgmr.msra.gmra.mxu0 %vm10696_vm2, %v3549_v60 }
0x1ad1   :  { %v3606_v13 = vpop.f32.mrf.mxu0 }
0x1ad2   :  { %v3607_v10 = vadd.f32 %v6978_v4, %v3606_v13 }
0x1ad3   :  { %v7653_v23 = vpop.f32.mrf.mxu0 }
0x1ad4   :  { %v3613_v9 = vrot.slane %v3607_v10, 4 }
0x1ad5   :  { %v3609_v17 = vpop.f32.mrf.mxu0 }
0x1ad6   :  { %v9809_v42 = vsel %vm283_vm15, %v3607_v10, %v3613_v9  ;;  %vm10700_vm15 = vcmask 130048  }
0x1ad7   :  { %v3624_v19 = vpack.c.bf16 %v9809_v42, %v9809_v42  ;;  %v7654_v0 = vpop.f32.mrf.mxu0  ;;  %vm10701_vm12 = vmmov %vm10700_vm15 }
0x1ad8   :  { %vm10702_vm13 = vmmov %vm10701_vm12 }
0x1ad9   :  { %6990 = vmatmul.mubr.msk.bf16.vlgmr.msra.gmra.mxu1 %vm10698_vm10, %v3624_v19  ;;  %vm10703_vm14 = vmmov %vm10701_vm12 }
0x1ada   :  { %3722 = vmatprep.mubr.bf16.mxu1 %v8783_v16  ;;  %vm10704_vm3 = vmmov %vm10701_vm12 }
0x1adb   :  { %vm10705_vm4 = vmmov %vm10704_vm3 }
0x1adc   :  { %vm10706_vm5 = vmmov %vm10704_vm3 }
0x1add   :  { %vm10707_vm6 = vmmov %vm10704_vm3 }
0x1ade   :  { %vm10708_vm7 = vmmov %vm10704_vm3 }
0x1adf   :  { %vm10709_vm8 = vmmov %vm10704_vm3 }
0x1ae0   :  { %vm10710_vm9 = vmmov %vm10704_vm3 }
0x1ae1   :  { %6991 = vmatmul.mubr.msk.bf16.gmra.mxu1 %vm10699_vm11, %v3624_v19  ;;  %vm10711_vm1 = vmmov %vm10704_vm3 }
0x1ae2   :  { %vm10712_vm10 = vmmov %vm10696_vm2 }
0x1ae3   :  { %vm10713_vm11 = vmmov %vm10696_vm2 }
0x1b99   :  { %v3714_v5 = vpop.f32.mrf.mxu1 }
0x1b9a   :  { %v3715_v22 = vadd.f32 %v3714_v5, %v3630_v55 }
0x1b9b   :  { %v3716_v56 = vpop.f32.mrf.mxu1 }
0x1b9c   :  { %v3717_v63 = vadd.f32 %v3716_v56, %v3634_v1 }
0x1b9d   :  { %v3718_v50 = vpop.f32.mrf.mxu1 }
0x1b9e   :  { %v3719_v29 = vadd.f32 %v3718_v50, %v3630_v55 }
0x1b9f   :  { %v3720_v6 = vpop.f32.mrf.mxu1 }
0x1ba0   :  { %v9818_v11 = vpack.c.bf16 %v3719_v29, %v3715_v22  ;;  %v3721_v26 = vadd.f32 %v3720_v6, %v3634_v1 }
0x1ba1   :  { %v3724_v3 = vpop.f32.mrf.mxu1 }
0x1ba2   :  { %3737 = vrot.lane.b32.xlu0 %v9818_v11, %s8784_s5  ;;  %7659 = vmatprep.mubr.msk.bf16.mxu0 %vm10700_vm15, %v9818_v11  ;;  %v3725_v25 = vadd.f32 %v3724_v3, %v3630_v55  ;;  %v9833_v36 = vpack.c.bf16 %v3721_v26, %v3717_v63  ;;  %vm10714_vm15 = vmmov %vm10696_vm2 }
0x1ba3   :  { %v3726_v35 = vpop.f32.mrf.mxu1 }
0x1ba4   :  { %v3727_v7 = vadd.f32 %v3726_v35, %v3634_v1 }
0x1ba5   :  { %v3728_v12 = vpop.f32.mrf.mxu1 }
0x1ba6   :  { %v3729_v15 = vadd.f32 %v3728_v12, %v3630_v55  ;;  %3913 = vrot.lane.b32.xlu0 %v9818_v11, %s8787_s24 }
0x1ba7   :  { %v3730_v24 = vpop.f32.mrf.mxu1 }
0x1ba8   :  { %v9827_v33 = vpack.c.bf16 %v3729_v15, %v3725_v25  ;;  %v3731_v40 = vadd.f32 %v3730_v24, %v3634_v1 }
0x1baa   :  { %v9829_v57 = vpack.c.bf16 %v3731_v40, %v3727_v7  ;;  %3739 = vrot.lane.b32.xlu1 %v9827_v33, %s8784_s5 }
0x1bac   :  { %7663 = vmatprep.subr.bf16.mxu1 %v9829_v57 }
0x1bad   :  { %7664 = vmatpush3.bf16.msra.mxu1 %v9829_v57 }
0x1bae   :  { %3919 = vrot.lane.b32.xlu1 %v9827_v33, %s8785_s9  ;;  %7665 = vmatprep.subr.bf16.mxu1 %v9833_v36 }
0x1bb1   :  { %7666 = vmatpush3.bf16.msra.mxu1 %v9833_v36 }
0x1bb2   :  { %3917 = vrot.lane.b32.xlu1 %v9818_v11, %s8785_s9 }
0x1bb6   :  { %3915 = vrot.lane.b32.xlu1 %v9827_v33, %s8787_s24 }
0x1c14   :  { %v3738_v2 = vpop.permute.xlu0 %3737 }
0x1c15   :  { %v3748_v38 = vsel %vm10704_vm3, %v3738_v2, 0  ;;  %vm10718_vm3 = vmmov %vm10696_vm2 }
0x1c18   :  { %v3914_v46 = vpop.permute.xlu0 %3913 }
0x1c1c   :  { %v3740_v8 = vpop.permute.xlu1 %3739 }
0x1c1d   :  { %7835 = vmatprep.subr.msk.bf16.mxu0 %vm10701_vm12, %v3740_v8  ;;  %v3751_v41 = vsel %vm10702_vm13, %v3740_v8, 0  ;;  %vm10715_vm12 = vmmov %vm10696_vm2 }
0x1c1e   :  { %7656 = vmatpush3.bf16.xpose.msra.mxu0 %v3751_v41  ;;  %vm10716_vm13 = vmmov %vm10696_vm2 }
0x1c1f   :  { %7836 = vmatprep.subr.msk.bf16.mxu0 %vm10703_vm14, %v3738_v2  ;;  %vm10717_vm14 = vmmov %vm10696_vm2 }
0x1c20   :  { %v3920_v31 = vpop.permute.xlu1 %3919 }
0x1c21   :  { %v3931_v43 = vsel %vm10707_vm6, %v3920_v31, 0  ;;  %vm10721_vm6 = vmmov %vm10696_vm2 }
0x1c24   :  { %v3918_v51 = vpop.permute.xlu1 %3917 }
0x1c25   :  { %v3928_v20 = vsel %vm10710_vm9, %v3918_v51, 0  ;;  %vm10724_vm9 = vmmov %vm10696_vm2 }
0x1c26   :  { %7658 = vmatpush3.bf16.xpose.msra.mxu0 %v3748_v38 }
0x1c27   :  { %7837 = vmatprep.subr.msk.bf16.mxu0 %vm10705_vm4, %v3920_v31  ;;  %vm10719_vm4 = vmmov %vm10696_vm2 }
0x1c28   :  { %v3916_v21 = vpop.permute.xlu1 %3915 }
0x1c2d   :  { %7660 = vmatmul.mubr.msk.bf16.vlgmr.msra.gmra.mxu0 %vm10706_vm5, %v9827_v33  ;;  %vm10720_vm5 = vmmov %vm10696_vm2 }
0x1c2e   :  { %7672 = vmatpush3.bf16.xpose.msra.mxu0 %v3931_v43  ;;  %7675 = vmatprep.mubr.msk.bf16.mxu0 %vm10708_vm7, %v3914_v46  ;;  %vm10722_vm7 = vmmov %vm10696_vm2 }
0x1c2f   :  { %7838 = vmatprep.subr.msk.bf16.mxu0 %vm10709_vm8, %v3918_v51  ;;  %vm10723_vm8 = vmmov %vm10696_vm2 }
0x1c36   :  { %7674 = vmatpush3.bf16.xpose.msra.mxu0 %v3928_v20 }
0x1c3d   :  { %7676 = vmatmul.mubr.msk.bf16.vlgmr.msra.gmra.mxu0 %vm10711_vm1, %v3916_v21  ;;  %vm10725_vm1 = vmmov %vm10696_vm2 }
0x1ced   :  { %v7661_v44 = vpop.f32.mrf.mxu0 }
0x1cee   :  { %v3804_v34 = vmul.f32 0.25, %v7661_v44 }
0x1cef   :  { %v3787_v45 = vpop.f32.mrf.mxu0 }
0x1cf0   :  { %v3802_v48 = vmul.f32 0.25, %v3787_v45  ;;  %v3808_v58 = vadd.f32 %v3804_v34, %v9111_v14 }
0x1cf1   :  { %v7662_v53 = vpop.f32.mrf.mxu0 }
0x1cf2   :  { %v3806_v54 = vadd.f32 %v3802_v48, %v9114_v18  ;;  %v3805_v62 = vmul.f32 0.25, %v7662_v53  ;;  %v3816_v39 = vsel %vm10712_vm10, %v3808_v58, -inf  ;;  %vm10727_vm10 = vmmov %vm10725_vm1 }
0x1cf3   :  { %v3790_v47 = vpop.f32.mrf.mxu0 }
0x1cf4   :  { %v3803_v28 = vmul.f32 0.25, %v3790_v47  ;;  %v3810_v60 = vsel %vm10696_vm2, %v3806_v54, -inf  ;;  %v3809_v61 = vadd.f32 %v3805_v62, %v9125_v37  ;;  %vm10726_vm2 = vmmov %vm10725_vm1 }
0x1cf5   :  { %3811 = vmax.xlane.f32.xlu0 %v3810_v60 }
0x1cf6   :  { %v3807_v49 = vadd.f32 %v3803_v28, %v9134_v52  ;;  %v3819_v4 = vsel %vm10714_vm15, %v3809_v61, -inf  ;;  %vm10729_vm15 = vcmask 130048  }
0x1cf8   :  { %v3813_v59 = vsel %vm10713_vm11, %v3807_v49, -inf  ;;  %vm10728_vm11 = vmmov %vm10725_vm1 }
0x1cf9   :  { %3817 = vmax.xlane.f32.xlu0 %v3816_v39  ;;  %3814 = vmax.xlane.f32.xlu1 %v3813_v59 }
0x1cfd   :  { %3820 = vmax.xlane.f32.xlu0 %v3819_v4  ;;  %v7677_v13 = vpop.f32.mrf.mxu0 }
0x1cfe   :  { %v3984_v23 = vmul.f32 0.25, %v7677_v13 }
0x1cff   :  { %v3967_v10 = vpop.f32.mrf.mxu0 }
0x1d00   :  { %v3982_v9 = vmul.f32 0.25, %v3967_v10  ;;  %v3988_v27 = vadd.f32 %v3984_v23, %v9111_v14 }
0x1d01   :  { %v7678_v17 = vpop.f32.mrf.mxu0 }
0x1d02   :  { %v3986_v19 = vadd.f32 %v3982_v9, %v9114_v18  ;;  %v3985_v5 = vmul.f32 0.25, %v7678_v17  ;;  %v3996_v6 = vsel %vm10717_vm14, %v3988_v27, -inf  ;;  %vm10732_vm14 = vmmov %vm10729_vm15 }
0x1d03   :  { %v3970_v0 = vpop.f32.mrf.mxu0 }
0x1d04   :  { %v3983_v55 = vmul.f32 0.25, %v3970_v0  ;;  %v3990_v56 = vsel %vm10715_vm12, %v3986_v19, -inf  ;;  %v3989_v22 = vadd.f32 %v3985_v5, %v9125_v37  ;;  %vm10730_vm12 = vmmov %vm10725_vm1 }
0x1d05   :  { %3991 = vmax.xlane.f32.xlu1 %v3990_v56 }
0x1d06   :  { %v3987_v50 = vadd.f32 %v3983_v55, %v9134_v52  ;;  %v3999_v3 = vsel %vm10718_vm3, %v3989_v22, -inf  ;;  %vm10733_vm3 = vmmov %vm10732_vm14 }
0x1d08   :  { %v3993_v29 = vsel %vm10716_vm13, %v3987_v50, -inf  ;;  %vm10731_vm13 = vmmov %vm10725_vm1 }
0x1d09   :  { %3994 = vmax.xlane.f32.xlu0 %v3993_v29  ;;  %3997 = vmax.xlane.f32.xlu1 %v3996_v6 }
0x1d0d   :  { %4000 = vmax.xlane.f32.xlu0 %v3999_v3 }
0x1d1a   :  { %4040 = vrot.lane.b32.xlu1 %v9829_v57, %s8787_s24 }
0x1d7e   :  { %v3812_v35 = vpop.xlane.xlu0 %3811 }
0x1d7f   :  { %v3822_v12 = vsub.f32 %v3806_v54, %v3812_v35 }
0x1d81   :  { %v3826_v24 = vmul.f32 1.442695, %v3822_v12 }
0x1d82   :  { %v3818_v1 = vpop.xlane.xlu0 %3817  ;;  %v3815_v25 = vpop.xlane.xlu1 %3814 }
0x1d83   :  { %v3824_v15 = vsub.f32 %v3808_v58, %v3818_v1  ;;  %v3823_v7 = vsub.f32 %v3807_v49, %v3815_v25 }
0x1d85   :  { %v3830_v26 = vmul.f32 1.442695, %v3824_v15  ;;  %v3828_v8 = vmul.f32 1.442695, %v3823_v7 }
0x1d86   :  { %v3821_v40 = vpop.xlane.xlu0 %3820 }
0x1d87   :  { %8384 = vpow2.f32 %v3830_v26  ;;  %v3825_v63 = vsub.f32 %v3809_v61, %v3821_v40 }
0x1d88   :  { %8386 = vpow2.f32 %v3826_v24 }
0x1d89   :  { %v3832_v41 = vmul.f32 1.442695, %v3825_v63 }
0x1d8b   :  { %8388 = vpow2.f32 %v3832_v41 }
0x1d8c   :  { %8390 = vpow2.f32 %v3828_v8 }
0x1d8e   :  { %v3992_v2 = vpop.xlane.xlu1 %3991 }
0x1d8f   :  { %v4002_v38 = vsub.f32 %v3986_v19, %v3992_v2 }
0x1d91   :  { %v4006_v34 = vmul.f32 1.442695, %v4002_v38 }
0x1d92   :  { %v3995_v31 = vpop.xlane.xlu0 %3994  ;;  %v3998_v46 = vpop.xlane.xlu1 %3997 }
0x1d93   :  { %v4004_v43 = vsub.f32 %v3988_v27, %v3998_v46  ;;  %v4003_v20 = vsub.f32 %v3987_v50, %v3995_v31 }
0x1d94   :  { %v8385_v51 = vpop.eup %8384 }
0x1d95   :  { %v4010_v21 = vmul.f32 1.442695, %v4004_v43  ;;  %v3840_v44 = vsel %vm10719_vm4, %v8385_v51, 0.0  ;;  %v8387_v45 = vpop.eup %8386  ;;  %v4008_v58 = vmul.f32 1.442695, %v4003_v20  ;;  %vm10734_vm4 = vmmov %vm10733_vm3 }
0x1d96   :  { %v4001_v48 = vpop.xlane.xlu0 %4000  ;;  %3841 = vadd.xlane.f32.xlu1 %v3840_v44  ;;  %v9876_v53 = vpop.permute.xlu1 %4040  ;;  %v3834_v60 = vsel %vm10721_vm6, %v8387_v45, 0.0  ;;  %vm10736_vm6 = vmmov %vm10733_vm3 }
0x1d97   :  { %v4005_v54 = vsub.f32 %v3989_v22, %v4001_v48  ;;  %7679 = vmatprep.subr.bf16.mxu1 %v9876_v53  ;;  %8392 = vpow2.f32 %v4010_v21 }
0x1d98   :  { %v8389_v47 = vpop.eup %8388  ;;  %8394 = vpow2.f32 %v4006_v34 }
0x1d99   :  { %v4012_v62 = vmul.f32 1.442695, %v4005_v54  ;;  %v3843_v28 = vsel %vm10720_vm5, %v8389_v47, 0.0  ;;  %v8391_v49 = vpop.eup %8390  ;;  %vm10735_vm5 = vmmov %vm10733_vm3 }
0x1d9a   :  { %3844 = vadd.xlane.f32.xlu0 %v3843_v28  ;;  %3835 = vadd.xlane.f32.xlu1 %v3834_v60  ;;  %v3837_v61 = vsel %vm10722_vm7, %v8391_v49, 0.0  ;;  %vm10737_vm7 = vmmov %vm10725_vm1 }
0x1d9b   :  { %8396 = vpow2.f32 %v4012_v62 }
0x1d9c   :  { %8398 = vpow2.f32 %v4008_v58 }
0x1d9e   :  { %3838 = vadd.xlane.f32.xlu0 %v3837_v61 }
0x1da4   :  { %v8393_v39 = vpop.eup %8392 }
0x1da5   :  { %v4020_v59 = vsel %vm10723_vm8, %v8393_v39, 0.0  ;;  %v8395_v4 = vpop.eup %8394  ;;  %vm10738_vm8 = vmmov %vm10725_vm1 }
0x1da6   :  { %4021 = vadd.xlane.f32.xlu1 %v4020_v59  ;;  %v4014_v9 = vsel %vm10725_vm1, %v8395_v4, 0.0 }
0x1da8   :  { %v8397_v13 = vpop.eup %8396 }
0x1da9   :  { %v4023_v10 = vsel %vm10724_vm9, %v8397_v13, 0.0  ;;  %v8399_v23 = vpop.eup %8398  ;;  %vm10739_vm9 = vmmov %vm10725_vm1 }
0x1daa   :  { %4024 = vadd.xlane.f32.xlu0 %v4023_v10  ;;  %4015 = vadd.xlane.f32.xlu1 %v4014_v9  ;;  %v4017_v17 = vsel %vm10726_vm2, %v8399_v23, 0.0  ;;  %vm10740_vm2 = vmmov %vm10725_vm1 }
0x1dae   :  { %4018 = vadd.xlane.f32.xlu0 %v4017_v17 }
0x1dbb   :  { %4105 = vrot.lane.b32.xlu1 %v9827_v33, %s8786_s13 }
0x1dbf   :  { %4103 = vrot.lane.b32.xlu1 %v9818_v11, %s8786_s13 }
0x1dc3   :  { %4101 = vrot.lane.b32.xlu1 %v9827_v33, %s8788_s0 }
0x1dc4   :  { %4038 = vrot.lane.b32.xlu0 %v9833_v36, %s8787_s24 }
0x1dc8   :  { %4099 = vrot.lane.b32.xlu0 %v9818_v11, %s8788_s0 }
0x1e1f   :  { %v3842_v19 = vpop.xlane.xlu1 %3841 }
0x1e23   :  { %v3845_v0 = vpop.xlane.xlu0 %3844  ;;  %v3836_v27 = vpop.xlane.xlu1 %3835 }
0x1e24   :  { %8400 = vrcp.f32 %v3845_v0 }
0x1e25   :  { %8402 = vrcp.f32 %v3836_v27 }
0x1e26   :  { %8404 = vrcp.f32 %v3842_v19 }
0x1e27   :  { %v3839_v5 = vpop.xlane.xlu0 %3838 }
0x1e28   :  { %8406 = vrcp.f32 %v3839_v5 }
0x1e2f   :  { %v4022_v55 = vpop.xlane.xlu1 %4021 }
0x1e31   :  { %v8401_v56 = vpop.eup %8400 }
0x1e32   :  { %v8403_v50 = vpop.eup %8402  ;;  %v3853_v35 = vmul.f32 %v8401_v56, %v8389_v47 }
0x1e33   :  { %v4025_v22 = vpop.xlane.xlu0 %4024  ;;  %v8405_v29 = vpop.eup %8404  ;;  %v3850_v12 = vmul.f32 %v8403_v50, %v8387_v45 }
0x1e34   :  { %v4016_v6 = vpop.xlane.xlu1 %4015  ;;  %8408 = vrcp.f32 %v4025_v22  ;;  %v3852_v25 = vmul.f32 %v8405_v29, %v8385_v51 }
0x1e35   :  { %v8407_v3 = vpop.eup %8406  ;;  %8410 = vrcp.f32 %v4016_v6 }
0x1e36   :  { %v3851_v1 = vmul.f32 %v8407_v3, %v8391_v49  ;;  %8412 = vrcp.f32 %v4022_v55  ;;  %v3855_v26 = vpack.c.bf16 %v3853_v35, %v3852_v25 }
0x1e37   :  { %v4019_v15 = vpop.xlane.xlu0 %4018 }
0x1e38   :  { %8414 = vrcp.f32 %v4019_v15  ;;  %v3854_v24 = vpack.c.bf16 %v3851_v1, %v3850_v12  ;;  %v4106_v40 = vpop.permute.xlu1 %4105 }
0x1e39   :  { %v4117_v44 = vsel %vm10732_vm14, %v4106_v40, 0  ;;  %vm10746_vm14 = vmmov %vm10725_vm1 }
0x1e3a   :  { %7667 = vmatprep.mubr.msk.bf16.mxu1 %vm10727_vm10, %v3854_v24  ;;  %vm10741_vm10 = vmmov %vm10725_vm1 }
0x1e3b   :  { %v4039_v7 = vpop.permute.xlu0 %4038  ;;  %7668 = vmatmul.mubr.msk.bf16.vlgmr.msra.gmra.mxu1 %vm10728_vm11, %v3855_v26  ;;  %vm10742_vm11 = vmmov %vm10725_vm1 }
0x1e3c   :  { %7680 = vmatpush3.bf16.msra.mxu1 %v9876_v53  ;;  %v4104_v45 = vpop.permute.xlu1 %4103 }
0x1e3d   :  { %7681 = vmatprep.subr.bf16.mxu1 %v4039_v7  ;;  %v4114_v34 = vsel %vm10735_vm5, %v4104_v45, 0  ;;  %vm10748_vm5 = vmmov %vm10733_vm3 }
0x1e3f   :  { %v4100_v21 = vpop.permute.xlu0 %4099 }
0x1e40   :  { %7682 = vmatpush3.bf16.msra.mxu1 %v4039_v7  ;;  %v4102_v48 = vpop.permute.xlu1 %4101 }
0x1e41   :  { %7839 = vmatprep.subr.msk.bf16.mxu1 %vm10729_vm15, %v4106_v40  ;;  %v8409_v63 = vpop.eup %8408  ;;  %vm10743_vm15 = vmmov %vm10725_vm1 }
0x1e42   :  { %v8411_v8 = vpop.eup %8410  ;;  %v4033_v38 = vmul.f32 %v8409_v63, %v8397_v13 }
0x1e43   :  { %v8413_v41 = vpop.eup %8412  ;;  %v4030_v31 = vmul.f32 %v8411_v8, %v8395_v4 }
0x1e44   :  { %v4032_v43 = vmul.f32 %v8413_v41, %v8393_v39 }
0x1e45   :  { %v8415_v2 = vpop.eup %8414 }
0x1e46   :  { %v4031_v46 = vmul.f32 %v8415_v2, %v8399_v23  ;;  %v4035_v20 = vpack.c.bf16 %v4033_v38, %v4032_v43 }
0x1e48   :  { %v4034_v51 = vpack.c.bf16 %v4031_v46, %v4030_v31 }
0x1e4a   :  { %7683 = vmatprep.mubr.msk.bf16.mxu1 %vm10730_vm12, %v4034_v51  ;;  %vm10744_vm12 = vmmov %vm10733_vm3 }
0x1e4b   :  { %7684 = vmatmul.mubr.msk.bf16.vlgmr.msra.gmra.mxu1 %vm10731_vm13, %v4035_v20  ;;  %vm10745_vm13 = vmmov %vm10725_vm1 }
0x1e4c   :  { %7688 = vmatpush3.bf16.xpose.msra.mxu1 %v4117_v44  ;;  %7691 = vmatprep.mubr.msk.bf16.mxu1 %vm10733_vm3, %v4100_v21 }
0x1e4d   :  { %7840 = vmatprep.subr.msk.bf16.mxu1 %vm10734_vm4, %v4104_v45  ;;  %vm10747_vm4 = vmmov %vm10733_vm3 }
0x1e54   :  { %7690 = vmatpush3.bf16.xpose.msra.mxu1 %v4114_v34 }
0x1e5b   :  { %7692 = vmatmul.mubr.msk.bf16.vlgmr.msra.gmra.mxu1 %vm10736_vm6, %v4102_v48  ;;  %vm10749_vm6 = vmmov %vm10733_vm3 }
0x1efb   :  { %v9907_v53 = vpop.f32.mrf.mxu1 }
0x1efd   :  { %v9909_v54 = vpop.f32.mrf.mxu1 }
0x1eff   :  { %v9911_v47 = vpop.f32.mrf.mxu1 }
0x1f01   :  { %v9913_v58 = vpop.f32.mrf.mxu1 }
0x1f0b   :  { %v9915_v62 = vpop.f32.mrf.mxu1 }
0x1f0d   :  { %v9917_v28 = vpop.f32.mrf.mxu1 }
0x1f0f   :  { %v9919_v60 = vpop.f32.mrf.mxu1 }
0x1f10   :  { %v7975_v49 = vpack.i.bf16 %v9919_v60, %v9915_v62 }
0x1f11   :  { %v9923_v61 = vpop.f32.mrf.mxu1 }
0x1f12   :  { %v7970_v39 = vpack.i.bf16 %v9923_v61, %v9917_v28 }
0x1f1b   :  { %v7693_v59 = vpop.f32.mrf.mxu1 }
0x1f1c   :  { %v4170_v13 = vmul.f32 0.25, %v7693_v59 }
0x1f1d   :  { %v4153_v4 = vpop.f32.mrf.mxu1 }
0x1f1e   :  { %v4168_v10 = vmul.f32 0.25, %v4153_v4  ;;  %v4174_v19 = vadd.f32 %v4170_v13, %v9111_v14 }
0x1f1f   :  { %v7694_v23 = vpop.f32.mrf.mxu1 }
0x1f20   :  { %v4172_v9 = vadd.f32 %v4168_v10, %v9114_v18  ;;  %v4171_v0 = vmul.f32 0.25, %v7694_v23  ;;  %v4182_v50 = vsel %vm10738_vm8, %v4174_v19, -inf  ;;  %vm10751_vm8 = vmmov %vm10725_vm1 }
0x1f21   :  { %v4156_v17 = vpop.f32.mrf.mxu1 }
0x1f22   :  { %v4169_v27 = vmul.f32 0.25, %v4156_v17  ;;  %v4176_v5 = vsel %vm10737_vm7, %v4172_v9, -inf  ;;  %v4175_v56 = vadd.f32 %v4171_v0, %v9125_v37  ;;  %vm10750_vm7 = vmmov %vm10733_vm3 }
0x1f23   :  { %4177 = vmax.xlane.f32.xlu0 %v4176_v5 }
0x1f24   :  { %v4173_v55 = vadd.f32 %v4169_v27, %v9134_v52  ;;  %v4185_v29 = vsel %vm10725_vm1, %v4175_v56, -inf }
0x1f26   :  { %v4179_v22 = vsel %vm10739_vm9, %v4173_v55, -inf  ;;  %vm10752_vm9 = vmmov %vm10725_vm1 }
0x1f27   :  { %4183 = vmax.xlane.f32.xlu0 %v4182_v50  ;;  %4180 = vmax.xlane.f32.xlu1 %v4179_v22 }
0x1f2b   :  { %4186 = vmax.xlane.f32.xlu0 %v4185_v29 }
0x1f38   :  { %4224 = vrot.lane.b32.xlu1 %v9829_v57, %s8788_s0 }
0x1fac   :  { %v4178_v6 = vpop.xlane.xlu0 %4177 }
0x1fad   :  { %v4188_v3 = vsub.f32 %v4172_v9, %v4178_v6 }
0x1faf   :  { %v4192_v25 = vmul.f32 1.442695, %v4188_v3 }
0x1fb0   :  { %v4184_v35 = vpop.xlane.xlu0 %4183  ;;  %v4181_v12 = vpop.xlane.xlu1 %4180 }
0x1fb1   :  { %v4190_v1 = vsub.f32 %v4174_v19, %v4184_v35  ;;  %v4189_v24 = vsub.f32 %v4173_v55, %v4181_v12 }
0x1fb3   :  { %v4196_v15 = vmul.f32 1.442695, %v4190_v1  ;;  %v4194_v63 = vmul.f32 1.442695, %v4189_v24 }
0x1fb4   :  { %v4187_v26 = vpop.xlane.xlu0 %4186  ;;  %v4225_v7 = vpop.permute.xlu1 %4224 }
0x1fb5   :  { %8416 = vpow2.f32 %v4196_v15  ;;  %v4191_v40 = vsub.f32 %v4175_v56, %v4187_v26  ;;  %7695 = vmatprep.subr.bf16.mxu0 %v4225_v7 }
0x1fb6   :  { %7696 = vmatpush3.bf16.msra.mxu0 %v4225_v7  ;;  %8418 = vpow2.f32 %v4192_v25 }
0x1fb7   :  { %v4198_v8 = vmul.f32 1.442695, %v4191_v40 }
0x1fb9   :  { %8420 = vpow2.f32 %v4198_v8 }
0x1fba   :  { %8422 = vpow2.f32 %v4194_v63 }
0x1fc2   :  { %v8417_v41 = vpop.eup %8416 }
0x1fc3   :  { %v4206_v2 = vsel %vm10740_vm2, %v8417_v41, 0.0  ;;  %v8419_v38 = vpop.eup %8418  ;;  %vm10753_vm2 = vmmov %vm10725_vm1 }
0x1fc4   :  { %4207 = vadd.xlane.f32.xlu1 %v4206_v2  ;;  %v4200_v43 = vsel %vm10742_vm11, %v8419_v38, 0.0  ;;  %vm10755_vm11 = vmmov %vm10725_vm1 }
0x1fc6   :  { %v8421_v31 = vpop.eup %8420 }
0x1fc7   :  { %v4209_v46 = vsel %vm10741_vm10, %v8421_v31, 0.0  ;;  %v8423_v51 = vpop.eup %8422  ;;  %vm10754_vm10 = vmmov %vm10725_vm1 }
0x1fc8   :  { %4210 = vadd.xlane.f32.xlu0 %v4209_v46  ;;  %4201 = vadd.xlane.f32.xlu1 %v4200_v43  ;;  %v4203_v20 = vsel %vm10743_vm15, %v8423_v51, 0.0  ;;  %vm10756_vm15 = vmmov %vm10725_vm1 }
0x1fcc   :  { %4204 = vadd.xlane.f32.xlu0 %v4203_v20 }
0x1fd9   :  { %4289 = vrot.lane.b32.xlu1 %v9827_v33, %s8775_s22 }
0x1fdd   :  { %4287 = vrot.lane.b32.xlu1 %v9818_v11, %s8775_s22 }
0x1fe1   :  { %4285 = vrot.lane.b32.xlu1 %v9827_v33, %s8790_s2 }
0x1fe2   :  { %4222 = vrot.lane.b32.xlu0 %v9833_v36, %s8788_s0 }
0x1fe6   :  { %4283 = vrot.lane.b32.xlu0 %v9818_v11, %s8790_s2 }
0x204d   :  { %v4208_v21 = vpop.xlane.xlu1 %4207 }
0x2051   :  { %v4211_v44 = vpop.xlane.xlu0 %4210  ;;  %v4202_v45 = vpop.xlane.xlu1 %4201 }
0x2052   :  { %8424 = vrcp.f32 %v4211_v44 }
0x2053   :  { %8426 = vrcp.f32 %v4202_v45 }
0x2054   :  { %8428 = vrcp.f32 %v4208_v21 }
0x2055   :  { %v4205_v34 = vpop.xlane.xlu0 %4204  ;;  %v4290_v59 = vpop.permute.xlu1 %4289 }
0x2056   :  { %8430 = vrcp.f32 %v4205_v34  ;;  %v4301_v5 = vsel %vm10733_vm3, %v4290_v59, 0 }
0x2059   :  { %v4223_v48 = vpop.permute.xlu0 %4222  ;;  %v4288_v55 = vpop.permute.xlu1 %4287 }
0x205a   :  { %7697 = vmatprep.subr.bf16.mxu0 %v4223_v48  ;;  %v4298_v56 = vsel %vm10749_vm6, %v4288_v55, 0  ;;  %vm10763_vm6 = vmmov %vm10733_vm3 }
0x205b   :  { %7698 = vmatpush3.bf16.msra.mxu0 %v4223_v48 }
0x205c   :  { %7841 = vmatprep.subr.msk.bf16.mxu0 %vm10744_vm12, %v4290_v59  ;;  %vm10757_vm12 = vmmov %vm10725_vm1 }
0x205d   :  { %v4284_v27 = vpop.permute.xlu0 %4283  ;;  %v4286_v50 = vpop.permute.xlu1 %4285 }
0x205f   :  { %v8425_v33 = vpop.eup %8424 }
0x2060   :  { %v8427_v4 = vpop.eup %8426  ;;  %v4219_v23 = vmul.f32 %v8425_v33, %v8421_v31 }
0x2061   :  { %v8429_v13 = vpop.eup %8428  ;;  %v4216_v11 = vmul.f32 %v8427_v4, %v8419_v38 }
0x2062   :  { %v4218_v17 = vmul.f32 %v8429_v13, %v8417_v41 }
0x2063   :  { %v8431_v10 = vpop.eup %8430 }
0x2064   :  { %v4217_v9 = vmul.f32 %v8431_v10, %v8423_v51  ;;  %v4221_v0 = vpack.c.bf16 %v4219_v23, %v4218_v17 }
0x2066   :  { %v4220_v19 = vpack.c.bf16 %v4217_v9, %v4216_v11 }
0x2068   :  { %7699 = vmatprep.mubr.msk.bf16.mxu0 %vm10745_vm13, %v4220_v19  ;;  %vm10759_vm13 = vmmov %vm10725_vm1 }
0x2069   :  { %7700 = vmatmul.mubr.msk.bf16.vlgmr.msra.gmra.mxu0 %vm10746_vm14, %v4221_v0  ;;  %vm10760_vm14 = vmmov %vm10725_vm1 }
0x206a   :  { %7704 = vmatpush3.bf16.xpose.msra.mxu0 %v4301_v5  ;;  %7707 = vmatprep.mubr.msk.bf16.mxu0 %vm10747_vm4, %v4284_v27  ;;  %vm10761_vm4 = vmmov %vm10733_vm3 }
0x206b   :  { %7842 = vmatprep.subr.msk.bf16.mxu0 %vm10748_vm5, %v4288_v55  ;;  %vm10762_vm5 = vmmov %vm10733_vm3 }
0x2072   :  { %7706 = vmatpush3.bf16.xpose.msra.mxu0 %v4298_v56 }
0x2079   :  { %7708 = vmatmul.mubr.msk.bf16.vlgmr.msra.gmra.mxu0 %vm10750_vm7, %v4286_v50  ;;  %vm10764_vm7 = vmmov %vm10725_vm1 }
0x207a   :  { %4801 = vmatprep.mubr.bf16.mxu0 %v8783_v16 }
0x2129   :  { %v7701_v22 = vpop.f32.mrf.mxu0 }
0x212b   :  { %v4268_v29 = vpop.f32.mrf.mxu0 }
0x212d   :  { %v7702_v6 = vpop.f32.mrf.mxu0 }
0x212e   :  { %v7985_v3 = vpack.i.bf16 %v7702_v6, %v7701_v22 }
0x212f   :  { %v4271_v35 = vpop.f32.mrf.mxu0 }
0x2130   :  { %v7980_v12 = vpack.i.bf16 %v4271_v35, %v4268_v29 }
0x2139   :  { %v7709_v1 = vpop.f32.mrf.mxu0 }
0x213a   :  { %v4354_v15 = vmul.f32 0.25, %v7709_v1  ;;  %v8142_v1 = vld [vmem:[%s10758_s26 + $0x18] sm:$0xff]  }
0x213b   :  { %v4337_v25 = vpop.f32.mrf.mxu0 }
0x213c   :  { %v4352_v24 = vmul.f32 0.25, %v4337_v25  ;;  %v4358_v63 = vadd.f32 %v4354_v15, %v9111_v14  ;;  %v8143_v25 = vld [vmem:[%s10758_s26 + $0x10] sm:$0xff]   ;;  %v8144_v15 = vld [vmem:[%s10758_s26 + $0x8] sm:$0xff]  }
0x213d   :  { %v7710_v26 = vpop.f32.mrf.mxu0 }
0x213e   :  { %v4356_v7 = vadd.f32 %v4352_v24, %v9114_v18  ;;  %v4355_v8 = vmul.f32 0.25, %v7710_v26  ;;  %v4366_v46 = vsel %vm10752_vm9, %v4358_v63, -inf  ;;  %v8145_v24 = vld [vmem:[%s10758_s26] sm:$0xff]   ;;  %vm10767_vm9 = vmmov %vm10725_vm1 }
0x213f   :  { %v4340_v40 = vpop.f32.mrf.mxu0 }
0x2140   :  { %v4353_v41 = vmul.f32 0.25, %v4340_v40  ;;  %v4360_v2 = vsel %vm10751_vm8, %v4356_v7, -inf  ;;  %v4359_v31 = vadd.f32 %v4355_v8, %v9125_v37  ;;  %vm10766_vm8 = vmmov %vm10725_vm1 }
0x2141   :  { %4361 = vmax.xlane.f32.xlu0 %v4360_v2 }
0x2142   :  { %v4357_v38 = vadd.f32 %v4353_v41, %v9134_v52  ;;  %v4369_v51 = vsel %vm10753_vm2, %v4359_v31, -inf  ;;  %vm10768_vm2 = vcmask 523264  }
0x2144   :  { %v4363_v43 = vsel %vm10725_vm1, %v4357_v38, -inf }
0x2145   :  { %4367 = vmax.xlane.f32.xlu0 %v4366_v46  ;;  %4364 = vmax.xlane.f32.xlu1 %v4363_v43 }
0x2149   :  { %4370 = vmax.xlane.f32.xlu0 %v4369_v51 }
0x21ca   :  { %v4362_v20 = vpop.xlane.xlu0 %4361 }
0x21cb   :  { %v4372_v21 = vsub.f32 %v4356_v7, %v4362_v20 }
0x21cd   :  { %v4376_v48 = vmul.f32 1.442695, %v4372_v21 }
0x21ce   :  { %v4368_v44 = vpop.xlane.xlu0 %4367  ;;  %v4365_v45 = vpop.xlane.xlu1 %4364 }
0x21cf   :  { %v4374_v34 = vsub.f32 %v4358_v63, %v4368_v44  ;;  %v4373_v33 = vsub.f32 %v4357_v38, %v4365_v45 }
0x21d1   :  { %v4380_v59 = vmul.f32 1.442695, %v4374_v34  ;;  %v4378_v10 = vmul.f32 1.442695, %v4373_v33 }
0x21d2   :  { %v4371_v4 = vpop.xlane.xlu0 %4370 }
0x21d3   :  { %8432 = vpow2.f32 %v4380_v59  ;;  %v4375_v13 = vsub.f32 %v4359_v31, %v4371_v4 }
0x21d4   :  { %8434 = vpow2.f32 %v4376_v48 }
0x21d5   :  { %v4382_v23 = vmul.f32 1.442695, %v4375_v13 }
0x21d7   :  { %8436 = vpow2.f32 %v4382_v23 }
0x21d8   :  { %8438 = vpow2.f32 %v4378_v10 }
0x21e0   :  { %v8433_v11 = vpop.eup %8432 }
0x21e1   :  { %v4390_v9 = vsel %vm10754_vm10, %v8433_v11, 0.0  ;;  %v8435_v17 = vpop.eup %8434  ;;  %vm10769_vm10 = vmmov %vm10768_vm2 }
0x21e2   :  { %4391 = vadd.xlane.f32.xlu1 %v4390_v9  ;;  %v4384_v27 = vsel %vm10756_vm15, %v8435_v17, 0.0  ;;  %vm10771_vm15 = vmmov %vm10768_vm2 }
0x21e4   :  { %v8437_v19 = vpop.eup %8436 }
0x21e5   :  { %v4393_v0 = vsel %vm10755_vm11, %v8437_v19, 0.0  ;;  %v8439_v5 = vpop.eup %8438  ;;  %vm10770_vm11 = vmmov %vm10768_vm2 }
0x21e6   :  { %4394 = vadd.xlane.f32.xlu0 %v4393_v0  ;;  %4385 = vadd.xlane.f32.xlu1 %v4384_v27  ;;  %v4387_v55 = vsel %vm10757_vm12, %v8439_v5, 0.0  ;;  %vm10772_vm12 = vmmov %vm10768_vm2 }
0x21ea   :  { %4388 = vadd.xlane.f32.xlu0 %v4387_v55 }
0x21f7   :  { %4408 = vrot.lane.b32.xlu1 %v9829_v57, %s8790_s2 }
0x21fb   :  { %7971 = vrot.lane.b32.xlu1 %v7970_v39, %s8775_s22 }
0x21ff   :  { %7976 = vrot.lane.b32.xlu1 %v7975_v49, %s8775_s22 }
0x2200   :  { %4406 = vrot.lane.b32.xlu0 %v9833_v36, %s8790_s2 }
0x2203   :  { %7986 = vrot.lane.b32.xlu1 %v7985_v3, %s8786_s13 }
0x2204   :  { %7981 = vrot.lane.b32.xlu0 %v7980_v12, %s8786_s13 }
0x226b   :  { %v4392_v56 = vpop.xlane.xlu1 %4391 }
0x226f   :  { %v4395_v50 = vpop.xlane.xlu0 %4394  ;;  %v4386_v57 = vpop.xlane.xlu1 %4385 }
0x2270   :  { %8440 = vrcp.f32 %v4395_v50 }
0x2271   :  { %8442 = vrcp.f32 %v4386_v57 }
0x2272   :  { %8444 = vrcp.f32 %v4392_v56 }
0x2273   :  { %v4389_v28 = vpop.xlane.xlu0 %4388  ;;  %v4409_v61 = vpop.permute.xlu1 %4408 }
0x2274   :  { %8446 = vrcp.f32 %v4389_v28  ;;  %7711 = vmatprep.subr.bf16.mxu1 %v4409_v61  ;;  %v7008_v28 = vld [vmem:[%s10765_s28] ss:$0 sm:$0xff] }
0x2275   :  { %7712 = vmatpush3.bf16.msra.mxu1 %v4409_v61 }
0x2277   :  { %v4407_v62 = vpop.permute.xlu0 %4406  ;;  %v7972_v2 = vpop.permute.xlu1 %7971 }
0x2278   :  { %7713 = vmatprep.subr.bf16.mxu1 %v4407_v62  ;;  %v7974_v43 = vunpack.i.h.bf16 %v7972_v2  ;;  %v7973_v51 = vunpack.i.l.bf16 %v7972_v2 }
0x2279   :  { %7714 = vmatpush3.bf16.msra.mxu1 %v4407_v62 }
0x227a   :  { %7719 = vmatprep.subr.bf16.mxu1 %v8142_v1  ;;  %v4516_v13 = vsel %vm10733_vm3, %v9913_v58, %v7974_v43  ;;  %v4515_v10 = vsel %vm10761_vm4, %v9909_v54, %v7973_v51  ;;  %vm10776_vm3 = vmmov %vm10768_vm2 }
0x227b   :  { %v7977_v38 = vpop.permute.xlu1 %7976  ;;  %v7982_v46 = vpop.permute.xlu0 %7981  ;;  %vm10777_vm4 = vmmov %vm10768_vm2 }
0x227c   :  { %v7979_v20 = vunpack.i.h.bf16 %v7977_v38  ;;  %v7978_v21 = vunpack.i.l.bf16 %v7977_v38  ;;  %v7984_v34 = vunpack.i.h.bf16 %v7982_v46  ;;  %v7983_v48 = vunpack.i.l.bf16 %v7982_v46 }
0x227d   :  { %v8441_v36 = vpop.eup %8440 }
0x227e   :  { %v8443_v60 = vpop.eup %8442  ;;  %v4403_v22 = vmul.f32 %v8441_v36, %v8437_v19  ;;  %v4518_v23 = vsel %vm10762_vm5, %v9911_v47, %v7979_v20  ;;  %v4520_v58 = vsel %vm10725_vm1, %v4516_v13, %v7984_v34  ;;  %vm10778_vm5 = vmmov %vm10768_vm2  ;;  %v8149_v13 = vld [vmem:[%s10774_s1 + $0x20] ss:$8 sps:$4 sm:$0xff]  }
0x227f   :  { %v8445_v49 = vpop.eup %8444  ;;  %v4400_v29 = vmul.f32 %v8443_v60, %v8435_v17  ;;  %v7987_v31 = vpop.permute.xlu1 %7986  ;;  %vm10785_vm1 = vmmov %vm10768_vm2 }
0x2280   :  { %v4402_v3 = vmul.f32 %v8445_v49, %v8433_v11  ;;  %v7989_v44 = vunpack.i.h.bf16 %v7987_v31  ;;  %v7988_v45 = vunpack.i.l.bf16 %v7987_v31  ;;  %v4517_v11 = vsel %vm10763_vm6, %v9907_v53, %v7978_v21  ;;  %vm10780_vm6 = vmmov %vm10768_vm2 }
0x2281   :  { %v8447_v39 = vpop.eup %8446 }
0x2282   :  { %v4401_v6 = vmul.f32 %v8447_v39, %v8439_v5  ;;  %v4405_v12 = vpack.c.bf16 %v4403_v22, %v4402_v3  ;;  %v4521_v17 = vsel %vm10764_vm7, %v4517_v11, %v7988_v45  ;;  %v4522_v19 = vsel %vm10766_vm8, %v4518_v23, %v7989_v44  ;;  %v8152_v23 = vld [vmem:[%s10774_s1 + $0x10] ss:$8 sps:$4 sm:$0xff]   ;;  %v8157_v11 = vld [vmem:[%s10774_s1 + $0x4] ss:$8 sps:$4 sm:$0xff]   ;;  %vm10782_vm7 = vmmov %vm10768_vm2 }
0x2283   :  { %v4519_v5 = vsel %vm10767_vm9, %v4515_v10, %v7983_v48  ;;  %v8154_v10 = vld [vmem:[%s10774_s1 + $0x14] ss:$8 sps:$4 sm:$0xff]   ;;  %vm10783_vm8 = vmmov %vm10768_vm2 }
0x2284   :  { %v4404_v35 = vpack.c.bf16 %v4401_v6, %v4400_v29  ;;  %vm10784_vm9 = vmmov %vm10768_vm2 }
0x2286   :  { %7715 = vmatprep.mubr.msk.bf16.mxu1 %vm10759_vm13, %v4404_v35  ;;  %vm10773_vm13 = vmmov %vm10768_vm2 }
0x2287   :  { %7716 = vmatmul.mubr.msk.bf16.vlgmr.msra.gmra.mxu1 %vm10760_vm14, %v4405_v12  ;;  %vm10775_vm14 = vmmov %vm10768_vm2 }
0x2288   :  { %7720 = vmatpush3.bf16.msra.mxu1 %v8142_v1 }
0x2289   :  { %7721 = vmatprep.subr.bf16.mxu1 %v8143_v25 }
0x228c   :  { %7722 = vmatpush3.bf16.msra.mxu1 %v8143_v25 }
0x228d   :  { %7723 = vmatprep.subr.bf16.mxu1 %v8144_v15 }
0x2290   :  { %7724 = vmatpush3.bf16.msra.mxu1 %v8144_v15 }
0x2291   :  { %7725 = vmatprep.subr.bf16.mxu1 %v8145_v24 }
0x2294   :  { %7726 = vmatpush3.bf16.msra.mxu1 %v8145_v24 }
0x2347   :  { %v7717_v26 = vpop.f32.mrf.mxu1 }
0x2349   :  { %v4452_v7 = vpop.f32.mrf.mxu1 }
0x234b   :  { %v7718_v40 = vpop.f32.mrf.mxu1 }
0x234c   :  { %v7995_v63 = vpack.i.bf16 %v7718_v40, %v7717_v26 }
0x234d   :  { %v4455_v8 = vpop.f32.mrf.mxu1 }
0x234e   :  { %v7990_v41 = vpack.i.bf16 %v4455_v8, %v4452_v7  ;;  %7996 = vrot.lane.b32.xlu1 %v7995_v63, %s8785_s9 }
0x2350   :  { %7991 = vrot.lane.b32.xlu0 %v7990_v41, %s8785_s9 }
0x23c0   :  { %v7997_v59 = vpop.permute.xlu1 %7996 }
0x23c1   :  { %v7999_v33 = vunpack.i.h.bf16 %v7997_v59  ;;  %v7998_v4 = vunpack.i.l.bf16 %v7997_v59  ;;  %v8148_v59 = vld [vmem:[%s10774_s1 + $0x34] ss:$8 sps:$4 sm:$0xff]  }
0x23c2   :  { %v7992_v9 = vpop.permute.xlu0 %7991  ;;  %4777 = vmatprep.subr.bf16.mxu0 %v8148_v59 }
0x23c3   :  { %v7994_v0 = vunpack.i.h.bf16 %v7992_v9  ;;  %v7993_v27 = vunpack.i.l.bf16 %v7992_v9  ;;  %v4525_v54 = vsel %vm1286_vm0, %v4521_v17, %v7998_v4  ;;  %v4526_v55 = vsel %vm1286_vm0, %v4522_v19, %v7999_v33  ;;  %v8146_v33 = vld [vmem:[%s10774_s1 + $0x30] ss:$8 sps:$4 sm:$0xff]   ;;  %v8151_v4 = vld [vmem:[%s10774_s1 + $0x24] ss:$8 sps:$4 sm:$0xff]   ;;  %v8155_v9 = vld [vmem:[%s10774_s1] ss:$8 sps:$4 sm:$0xff]  }
0x23c4   :  { %v4536_v50 = vpack.c.bf16 %v4526_v55, %v4525_v54  ;;  %4778 = vmatpush1.bf16.msra.mxu0 %v8146_v33  ;;  %v8158_v17 = vld [vmem:[%s10779_s17 + $0x78] sm:$0xff]   ;;  %v8164_v54 = vld [vmem:[%s10779_s17 + $0x60] sm:$0xff]  }
0x23c5   :  { %v4523_v47 = vsel %vm1286_vm0, %v4519_v5, %v7993_v27  ;;  %v4524_v53 = vsel %vm1286_vm0, %v4520_v58, %v7994_v0  ;;  %4779 = vmatprep.subr.bf16.mxu0 %v8151_v4  ;;  %v8159_v19 = vld [vmem:[%s10779_s17 + $0x38] sm:$0xff]   ;;  %v8160_v0 = vld [vmem:[%s10779_s17 + $0x70] sm:$0xff]   ;;  %7363 = vmatprep.subr.bf16.mxu1 %v8158_v17  ;;  %v8162_v5 = vld [vmem:[%s10779_s17 + $0x68] sm:$0xff]  }
0x23c6   :  { %v4535_v56 = vpack.c.bf16 %v4524_v53, %v4523_v47  ;;  %v8161_v27 = vld [vmem:[%s10779_s17 + $0x30] sm:$0xff]   ;;  %v8163_v58 = vld [vmem:[%s10779_s17 + $0x28] sm:$0xff]   ;;  %v8165_v55 = vld [vmem:[%s10779_s17 + $0x20] sm:$0xff]  }
0x23c7   :  { %v8166_v47 = vld [vmem:[%s10779_s17 + $0x58] sm:$0xff]  }
0x23c8   :  { %7727 = vmatprep.mubr.msk.bf16.mxu1 %vm10768_vm2, %v4535_v56  ;;  %4780 = vmatpush1.bf16.msra.mxu0 %v8149_v13  ;;  %v8167_v53 = vld [vmem:[%s10779_s17 + $0x18] sm:$0xff]   ;;  %vm10786_vm2 = vmmov %vm10785_vm1 }
0x23c9   :  { %7728 = vmatmul.mubr.msk.bf16.vlgmr.msra.gmra.mxu1 %vm10769_vm10, %v4536_v50  ;;  %4781 = vmatprep.subr.bf16.mxu0 %v8154_v10  ;;  %vm10787_vm10 = vmmov %vm10785_vm1 }
0x23ca   :  { %7364 = vmatpush3.bf16.msra.mxu1 %v8159_v19 }
0x23cb   :  { %7365 = vmatprep.subr.bf16.mxu1 %v8160_v0 }
0x23cc   :  { %4782 = vmatpush1.bf16.msra.mxu0 %v8152_v23 }
0x23cd   :  { %4783 = vmatprep.subr.bf16.mxu0 %v8157_v11 }
0x23ce   :  { %7366 = vmatpush3.bf16.msra.mxu1 %v8161_v27 }
0x23cf   :  { %7367 = vmatprep.subr.bf16.mxu1 %v8162_v5 }
0x23d0   :  { %4784 = vmatpush1.bf16.msra.mxu0 %v8155_v9 }
0x23d2   :  { %7368 = vmatpush3.bf16.msra.mxu1 %v8163_v58 }
0x23d3   :  { %7369 = vmatprep.subr.bf16.mxu1 %v8164_v54 }
0x23d6   :  { %7370 = vmatpush3.bf16.msra.mxu1 %v8165_v55 }
0x23d7   :  { %7371 = vmatprep.subr.bf16.mxu1 %v8166_v47 }
0x23da   :  { %7372 = vmatpush3.bf16.msra.mxu1 %v8167_v53 }
0x2489   :  { %v7729_v57 = vpop.f32.mrf.mxu1 }
0x248a   :  { %v4617_v62 = vadd.f32 %v7729_v57, %v7008_v28 }
0x248b   :  { %v4608_v61 = vpop.f32.mrf.mxu1 }
0x248c   :  { %v4609_v36 = vadd.f32 %v7008_v28, %v4608_v61  ;;  %v4625_v22 = vadd.f32 %v4617_v62, %v9809_v42 }
0x248d   :  { %v7730_v60 = vpop.f32.mrf.mxu1 }
0x248e   :  { %v4623_v49 = vadd.f32 %v4609_v36, %v9809_v42  ;;  %v4620_v29 = vadd.f32 %v7730_v60, %v7008_v28  ;;  %v4635_v25 = vsel %vm10772_vm12, %v4625_v22, 0.0  ;;  %vm10790_vm12 = vmmov %vm10785_vm1 }
0x248f   :  { %v4611_v39 = vpop.f32.mrf.mxu1 }
0x2490   :  { %v4612_v6 = vadd.f32 %v7008_v28, %v4611_v39  ;;  %v4629_v3 = vsel %vm10770_vm11, %v4623_v49, 0.0  ;;  %v4626_v12 = vadd.f32 %v4620_v29, %v9809_v42  ;;  %vm10788_vm11 = vmmov %vm10785_vm1 }
0x2491   :  { %4630 = vadd.xlane.f32.xlu0 %v4629_v3 }
0x2492   :  { %v4624_v35 = vadd.f32 %v4612_v6, %v9809_v42  ;;  %v4638_v15 = vsel %vm10773_vm13, %v4626_v12, 0.0  ;;  %vm10791_vm13 = vmmov %vm10785_vm1 }
0x2494   :  { %v4632_v1 = vsel %vm10771_vm15, %v4624_v35, 0.0  ;;  %vm10789_vm15 = vmmov %vm10785_vm1 }
0x2495   :  { %4633 = vadd.xlane.f32.xlu1 %v4632_v1  ;;  %4636 = vadd.xlane.f32.xlu0 %v4635_v25 }
0x2499   :  { %4639 = vadd.xlane.f32.xlu0 %v4638_v15 }
0x251a   :  { %v4631_v24 = vpop.xlane.xlu0 %4630 }
0x251b   :  { %v4641_v26 = vmul.f32 0.015625, %v4631_v24  ;;  %v7016_v24 = vld [vmem:[#allocation7] ss:$0 sm:$0xff] }
0x251d   :  { %v10021_v7 = vsub.f32 %v4623_v49, %v4641_v26 }
0x251e   :  { %v4634_v40 = vpop.xlane.xlu1 %4633  ;;  %v4637_v63 = vpop.xlane.xlu0 %4636 }
0x251f   :  { %v4642_v8 = vmul.f32 0.015625, %v4634_v40  ;;  %v4643_v41 = vmul.f32 0.015625, %v4637_v63  ;;  %v4649_v42 = vmul.f32 %v10021_v7, %v10021_v7 }
0x2521   :  { %v10025_v2 = vsub.f32 %v4624_v35, %v4642_v8  ;;  %v10027_v38 = vsub.f32 %v4625_v22, %v4643_v41  ;;  %v4653_v31 = vsel %vm10775_vm14, %v4649_v42, 0.0  ;;  %v7015_v35 = vld [vmem:[#allocation5] ss:$0 sm:$0xff]  ;;  %vm10792_vm14 = vmmov %vm10785_vm1 }
0x2522   :  { %4654 = vadd.xlane.f32.xlu1 %v4653_v31  ;;  %v4640_v46 = vpop.xlane.xlu0 %4639 }
0x2523   :  { %v4644_v43 = vmul.f32 0.015625, %v4640_v46  ;;  %v4650_v51 = vmul.f32 %v10025_v2, %v10025_v2  ;;  %v4651_v20 = vmul.f32 %v10027_v38, %v10027_v38 }
0x2525   :  { %v10034_v21 = vsub.f32 %v4626_v12, %v4644_v43  ;;  %v4656_v44 = vsel %vm10776_vm3, %v4650_v51, 0.0  ;;  %v4659_v45 = vsel %vm10777_vm4, %v4651_v20, 0.0  ;;  %v8168_v51 = vld [vmem:[%s10779_s17 + $0x50] sm:$0xff]   ;;  %vm10793_vm3 = vcmask 130048  }
0x2526   :  { %4657 = vadd.xlane.f32.xlu0 %v4656_v44  ;;  %4660 = vadd.xlane.f32.xlu1 %v4659_v45  ;;  %v8169_v20 = vld [vmem:[%s10779_s17 + $0x10] sm:$0xff]   ;;  %v8171_v44 = vld [vmem:[%s10779_s17 + $0x8] sm:$0xff]   ;;  %v8172_v45 = vld [vmem:[%s10779_s17 + $0x40] sm:$0xff]  }
0x2527   :  { %v4652_v34 = vmul.f32 %v10034_v21, %v10034_v21  ;;  %7373 = vmatprep.subr.bf16.mxu1 %v8168_v51  ;;  %vm10794_vm4 = vmmov %vm10793_vm3 }
0x2528   :  { %7374 = vmatpush3.bf16.msra.mxu1 %v8169_v20 }
0x2529   :  { %v4662_v48 = vsel %vm10778_vm5, %v4652_v34, 0.0  ;;  %v8173_v34 = vld [vmem:[%s10779_s17] sm:$0xff]   ;;  %vm10795_vm5 = vmmov %vm10793_vm3 }
0x252a   :  { %4663 = vadd.xlane.f32.xlu0 %v4662_v48  ;;  %v4711_v48 = vld [vmem:[%s10781_s4] sm:$0x3] }
0x252b   :  { %v4720_v33 = vrot.slane %v4711_v48, %v9053_v32  ;;  %v4716_v4 = vrot.slane %v4711_v48, %v9050_v30 }
0x25ab   :  { %v4655_v56 = vpop.xlane.xlu1 %4654 }
0x25ac   :  { %v4665_v50 = vmul.f32 0.015625, %v4655_v56 }
0x25ae   :  { %v4669_v57 = vadd.f32 1e-05, %v4665_v50 }
0x25af   :  { %v4661_v28 = vpop.xlane.xlu1 %4660  ;;  %v4658_v61 = vpop.xlane.xlu0 %4657 }
0x25b0   :  { %8448 = vrsqrt.f32 %v4669_v57  ;;  %v4667_v62 = vmul.f32 0.015625, %v4661_v28  ;;  %v4666_v36 = vmul.f32 0.015625, %v4658_v61 }
0x25b2   :  { %v4670_v60 = vadd.f32 1e-05, %v4666_v36  ;;  %v4671_v49 = vadd.f32 1e-05, %v4667_v62 }
0x25b3   :  { %v4664_v39 = vpop.xlane.xlu0 %4663 }
0x25b4   :  { %v4668_v22 = vmul.f32 0.015625, %v4664_v39  ;;  %8450 = vrsqrt.f32 %v4670_v60 }
0x25b5   :  { %8452 = vrsqrt.f32 %v4671_v49 }
0x25b6   :  { %v4672_v29 = vadd.f32 1e-05, %v4668_v22 }
0x25b8   :  { %8454 = vrsqrt.f32 %v4672_v29 }
0x25bd   :  { %v8449_v6 = vpop.eup %8448 }
0x25be   :  { %v4677_v3 = vmul.f32 %v8449_v6, %v10021_v7 }
0x25c0   :  { %v4687_v25 = vmul.f32 %v7015_v35, %v4677_v3  ;;  %v7027_v3 = vld [vmem:[#allocation8] ss:$0 sm:$0xff] }
0x25c1   :  { %v8451_v12 = vpop.eup %8450 }
0x25c2   :  { %v4678_v1 = vmul.f32 %v8451_v12, %v10025_v2  ;;  %v8453_v15 = vpop.eup %8452  ;;  %v10062_v8 = vadd.f32 %v7016_v24, %v4687_v25 }
0x25c3   :  { %v4679_v7 = vmul.f32 %v8453_v15, %v10027_v38 }
0x25c4   :  { %v4688_v40 = vmul.f32 %v7015_v35, %v4678_v1 }
0x25c5   :  { %v8455_v26 = vpop.eup %8454  ;;  %v4689_v31 = vmul.f32 %v7015_v35, %v4679_v7 }
0x25c6   :  { %v4680_v63 = vmul.f32 %v8455_v26, %v10034_v21  ;;  %v10064_v41 = vadd.f32 %v7016_v24, %v4688_v40  ;;  %v8170_v21 = vld [vmem:[%s10779_s17 + $0x48] sm:$0xff]  }
0x25c7   :  { %v10073_v43 = vadd.f32 %v7016_v24, %v4689_v31  ;;  %7375 = vmatprep.subr.bf16.mxu1 %v8170_v21 }
0x25c8   :  { %v4709_v42 = vpack.c.bf16 %v10064_v41, %v10062_v8  ;;  %v4690_v2 = vmul.f32 %v7015_v35, %v4680_v63  ;;  %7376 = vmatpush3.bf16.msra.mxu1 %v8171_v44 }
0x25c9   :  { %7377 = vmatprep.subr.bf16.mxu1 %v8172_v45 }
0x25ca   :  { %7025 = vmatmul.mubr.msk.bf16.vlgmr.msra.gmra.mxu0 %vm10780_vm6, %v4709_v42  ;;  %v10071_v46 = vadd.f32 %v7016_v24, %v4690_v2  ;;  %vm10796_vm6 = vmmov %vm10793_vm3 }
0x25cb   :  { %4811 = vmatprep.mubr.bf16.mxu0 %v8783_v16 }
0x25cc   :  { %v4710_v38 = vpack.c.bf16 %v10071_v46, %v10073_v43  ;;  %7378 = vmatpush3.bf16.msra.mxu1 %v8173_v34 }
0x25d2   :  { %7026 = vmatmul.mubr.msk.bf16.gmra.mxu0 %vm10782_vm7, %v4710_v38  ;;  %vm10797_vm7 = vmmov %vm10793_vm3 }
0x25d3   :  { %5198 = vmatprep.mubr.bf16.mxu0 %v8783_v16 }
0x268a   :  { %v4803_v59 = vpop.f32.mrf.mxu0 }
0x268b   :  { %v4804_v9 = vadd.f32 %v4803_v59, %v4716_v4 }
0x268c   :  { %v4805_v13 = vpop.f32.mrf.mxu0 }
0x268d   :  { %v4806_v23 = vadd.f32 %v4805_v13, %v4720_v33  ;;  %v4822_v54 = vmax.f32 %v4804_v9, 0.0 }
0x268e   :  { %v4807_v10 = vpop.f32.mrf.mxu0 }
0x268f   :  { %v4808_v11 = vadd.f32 %v4807_v10, %v4716_v4  ;;  %v4823_v5 = vmax.f32 %v4806_v23, 0.0 }
0x2690   :  { %v4809_v17 = vpop.f32.mrf.mxu0 }
0x2691   :  { %v4810_v19 = vadd.f32 %v4809_v17, %v4720_v33  ;;  %v4824_v0 = vmax.f32 %v4808_v11, 0.0 }
0x2692   :  { %v4813_v27 = vpop.f32.mrf.mxu0 }
0x2693   :  { %v4825_v58 = vmax.f32 %v4810_v19, 0.0  ;;  %v4862_v53 = vpack.c.bf16 %v4824_v0, %v4822_v54  ;;  %v4814_v28 = vadd.f32 %v4813_v27, %v4716_v4 }
0x2694   :  { %v4815_v55 = vpop.f32.mrf.mxu0 }
0x2695   :  { %v4863_v47 = vpack.c.bf16 %v4825_v58, %v4823_v5  ;;  %v4816_v50 = vadd.f32 %v4815_v55, %v4720_v33  ;;  %v4826_v39 = vmax.f32 %v4814_v28, 0.0  ;;  %v8177_v28 = vld [vmem:[%s10691_s3 + $0x60] ss:$8 sps:$4 sm:$0xff]  }
0x2696   :  { %v4817_v56 = vpop.f32.mrf.mxu0 }
0x2697   :  { %v4818_v57 = vadd.f32 %v4817_v56, %v4716_v4  ;;  %5001 = vmatprep.mubr.bf16.mxu1 %v4863_v47  ;;  %v4827_v60 = vmax.f32 %v4816_v50, 0.0  ;;  %v8176_v56 = vld [vmem:[%s10691_s3 + $0x74] ss:$8 sps:$4 sm:$0xff]   ;;  %v8174_v50 = vld [vmem:[%s10691_s3 + $0x70] ss:$8 sps:$4 sm:$0xff]  }
0x2698   :  { %v4819_v61 = vpop.f32.mrf.mxu0  ;;  %5002 = vmatmul.mubr.bf16.vlgmr.msra.gmra.mxu1 %v4862_v53  ;;  %5174 = vmatprep.subr.bf16.mxu0 %v8176_v56 }
0x2699   :  { %v4820_v62 = vadd.f32 %v4819_v61, %v4720_v33  ;;  %v4828_v36 = vmax.f32 %v4818_v57, 0.0  ;;  %5175 = vmatpush1.bf16.msra.mxu0 %v8174_v50  ;;  %v8179_v57 = vld [vmem:[%s10691_s3 + $0x64] ss:$8 sps:$4 sm:$0xff]   ;;  %v8182_v61 = vld [vmem:[%s10691_s3 + $0x54] ss:$8 sps:$4 sm:$0xff]  }
0x269a   :  { %5176 = vmatprep.subr.bf16.mxu0 %v8179_v57 }
0x269b   :  { %v4829_v49 = vmax.f32 %v4820_v62, 0.0  ;;  %v4864_v29 = vpack.c.bf16 %v4828_v36, %v4826_v39  ;;  %v8180_v62 = vld [vmem:[%s10691_s3 + $0x50] ss:$8 sps:$4 sm:$0xff]   ;;  %v8185_v36 = vld [vmem:[%s10691_s3 + $0x44] ss:$8 sps:$4 sm:$0xff]  }
0x269d   :  { %v4865_v22 = vpack.c.bf16 %v4829_v49, %v4827_v60  ;;  %5177 = vmatpush1.bf16.msra.mxu0 %v8177_v28  ;;  %v8183_v60 = vld [vmem:[%s10691_s3 + $0x40] ss:$8 sps:$4 sm:$0xff]  }
0x269e   :  { %5178 = vmatprep.subr.bf16.mxu0 %v8182_v61 }
0x269f   :  { %5009 = vmatprep.mubr.bf16.mxu1 %v4865_v22 }
0x26a0   :  { %5010 = vmatmul.mubr.bf16.gmra.mxu1 %v4864_v29 }
0x26a1   :  { %5179 = vmatpush1.bf16.msra.mxu0 %v8180_v62 }
0x26a2   :  { %5180 = vmatprep.subr.bf16.mxu0 %v8185_v36 }
0x26a5   :  { %5181 = vmatpush1.bf16.msra.mxu0 %v8183_v60 }
0x2758   :  { %v7379_v6 = vpop.f32.mrf.mxu1 }
0x275a   :  { %v7380_v35 = vpop.f32.mrf.mxu1 }
0x275b   :  { %v7381_v12 = vadd.f32 %v7380_v35, %v7379_v6 }
0x275c   :  { %v7382_v1 = vpop.f32.mrf.mxu1 }
0x275d   :  { %v5004_v25 = vadd.f32 %v7381_v12, %v7027_v3 }
0x275e   :  { %v7383_v15 = vpop.f32.mrf.mxu1 }
0x275f   :  { %v7384_v24 = vadd.f32 %v7383_v15, %v7382_v1  ;;  %v5018_v26 = vadd.f32 %v5004_v25, %v10062_v8 }
0x2760   :  { %v7385_v40 = vpop.f32.mrf.mxu1 }
0x2761   :  { %v5007_v63 = vadd.f32 %v7384_v24, %v7027_v3  ;;  %v5024_v7 = vsel %vm10783_vm8, %v5018_v26, 0.0  ;;  %vm10798_vm8 = vmmov %vm10793_vm3 }
0x2762   :  { %5025 = vadd.xlane.f32.xlu1 %v5024_v7  ;;  %v7386_v42 = vpop.f32.mrf.mxu1 }
0x2763   :  { %v7387_v2 = vadd.f32 %v7386_v42, %v7385_v40  ;;  %v5019_v31 = vadd.f32 %v5007_v63, %v10064_v41  ;;  %v7044_v63 = vld [vmem:[#allocation10] ss:$0 sm:$0xff] }
0x2764   :  { %v7388_v38 = vpop.f32.mrf.mxu1 }
0x2765   :  { %v5012_v51 = vadd.f32 %v7387_v2, %v7027_v3  ;;  %v5027_v20 = vsel %vm10784_vm9, %v5019_v31, 0.0  ;;  %vm10799_vm9 = vmmov %vm10793_vm3 }
0x2766   :  { %5028 = vadd.xlane.f32.xlu0 %v5027_v20  ;;  %v7389_v21 = vpop.f32.mrf.mxu1 }
0x2767   :  { %v7390_v44 = vadd.f32 %v7389_v21, %v7388_v38  ;;  %v5020_v45 = vadd.f32 %v5012_v51, %v10073_v43 }
0x2769   :  { %v5015_v34 = vadd.f32 %v7390_v44, %v7027_v3  ;;  %v5030_v8 = vsel %vm10785_vm1, %v5020_v45, 0.0  ;;  %vm10800_vm1 = vmmov %vm10793_vm3 }
0x276a   :  { %5031 = vadd.xlane.f32.xlu1 %v5030_v8 }
0x276b   :  { %v5021_v48 = vadd.f32 %v5015_v34, %v10071_v46 }
0x276d   :  { %v5033_v59 = vsel %vm10786_vm2, %v5021_v48, 0.0  ;;  %vm10801_vm2 = vmmov %vm10800_vm1 }
0x276e   :  { %5034 = vadd.xlane.f32.xlu0 %v5033_v59 }
0x27eb   :  { %v5026_v33 = vpop.xlane.xlu1 %5025 }
0x27ec   :  { %v5036_v41 = vmul.f32 0.015625, %v5026_v33 }
0x27ee   :  { %v5040_v4 = vsub.f32 %v5018_v26, %v5036_v41 }
0x27ef   :  { %v5029_v13 = vpop.xlane.xlu0 %5028 }
0x27f0   :  { %v5037_v10 = vmul.f32 0.015625, %v5029_v13  ;;  %v5044_v23 = vmul.f32 %v5040_v4, %v5040_v4  ;;  %v7054_v13 = vld [vmem:[%s10697_s23 + $0x2] sm:$0x3] }
0x27f2   :  { %v5041_v11 = vsub.f32 %v5019_v31, %v5037_v10  ;;  %v5048_v9 = vsel %vm10787_vm10, %v5044_v23, 0.0  ;;  %v7045_v31 = vld [vmem:[#allocation11] ss:$0 sm:$0xff]  ;;  %v5113_v23 = vrot.slane %v7054_v13, %v9050_v30  ;;  %vm10802_vm10 = vmmov %vm10800_vm1 }
0x27f3   :  { %5049 = vadd.xlane.f32.xlu1 %v5048_v9  ;;  %v5032_v43 = vpop.xlane.xlu1 %5031  ;;  %v5117_v9 = vrot.slane %v7054_v13, %v9053_v32 }
0x27f4   :  { %v5038_v17 = vmul.f32 0.015625, %v5032_v43  ;;  %v5045_v19 = vmul.f32 %v5041_v11, %v5041_v11 }
0x27f6   :  { %v5042_v0 = vsub.f32 %v5020_v45, %v5038_v17  ;;  %v5051_v46 = vsel %vm10788_vm11, %v5045_v19, 0.0  ;;  %vm10803_vm11 = vmmov %vm10800_vm1 }
0x27f7   :  { %5052 = vadd.xlane.f32.xlu0 %v5051_v46  ;;  %v5035_v27 = vpop.xlane.xlu0 %5034 }
0x27f8   :  { %v5039_v5 = vmul.f32 0.015625, %v5035_v27  ;;  %v5046_v58 = vmul.f32 %v5042_v0, %v5042_v0 }
0x27fa   :  { %v5043_v54 = vsub.f32 %v5021_v48, %v5039_v5  ;;  %v5054_v55 = vsel %vm10789_vm15, %v5046_v58, 0.0  ;;  %vm10804_vm15 = vmmov %vm10800_vm1 }
0x27fb   :  { %5055 = vadd.xlane.f32.xlu1 %v5054_v55 }
0x27fc   :  { %v5047_v47 = vmul.f32 %v5043_v54, %v5043_v54 }
0x27fe   :  { %v5057_v53 = vsel %vm10790_vm12, %v5047_v47, 0.0  ;;  %vm10805_vm12 = vmmov %vm10800_vm1 }
0x27ff   :  { %5058 = vadd.xlane.f32.xlu0 %v5057_v53 }
0x287c   :  { %v5050_v49 = vpop.xlane.xlu1 %5049 }
0x287d   :  { %v5060_v39 = vmul.f32 0.015625, %v5050_v49 }
0x287f   :  { %v5064_v22 = vadd.f32 1e-05, %v5060_v39 }
0x2880   :  { %v5053_v29 = vpop.xlane.xlu0 %5052 }
0x2881   :  { %8456 = vrsqrt.f32 %v5064_v22  ;;  %v5061_v6 = vmul.f32 0.015625, %v5053_v29 }
0x2883   :  { %v5065_v3 = vadd.f32 1e-05, %v5061_v6 }
0x2884   :  { %v5056_v35 = vpop.xlane.xlu1 %5055 }
0x2885   :  { %8458 = vrsqrt.f32 %v5065_v3  ;;  %v5062_v12 = vmul.f32 0.015625, %v5056_v35 }
0x2887   :  { %v5066_v1 = vadd.f32 1e-05, %v5062_v12 }
0x2888   :  { %v5059_v25 = vpop.xlane.xlu0 %5058 }
0x2889   :  { %8460 = vrsqrt.f32 %v5066_v1  ;;  %v5063_v15 = vmul.f32 0.015625, %v5059_v25 }
0x288b   :  { %v5067_v24 = vadd.f32 1e-05, %v5063_v15 }
0x288d   :  { %8462 = vrsqrt.f32 %v5067_v24 }
0x288e   :  { %v8457_v26 = vpop.eup %8456 }
0x288f   :  { %v5072_v40 = vmul.f32 %v8457_v26, %v5040_v4 }
0x2891   :  { %v5082_v42 = vmul.f32 %v7044_v63, %v5072_v40 }
0x2892   :  { %v8459_v7 = vpop.eup %8458 }
0x2893   :  { %v5073_v2 = vmul.f32 %v8459_v7, %v5041_v11  ;;  %v10108_v21 = vadd.f32 %v7045_v31, %v5082_v42 }
0x2895   :  { %v5083_v38 = vmul.f32 %v7044_v63, %v5073_v2 }
0x2896   :  { %v8461_v51 = vpop.eup %8460 }
0x2897   :  { %v5074_v20 = vmul.f32 %v8461_v51, %v5042_v0  ;;  %v10110_v44 = vadd.f32 %v7045_v31, %v5083_v38 }
0x2899   :  { %v5105_v45 = vpack.c.bf16 %v10110_v44, %v10108_v21  ;;  %v5084_v48 = vmul.f32 %v7044_v63, %v5074_v20 }
0x289a   :  { %v8463_v34 = vpop.eup %8462 }
0x289b   :  { %v5075_v8 = vmul.f32 %v8463_v34, %v5043_v54  ;;  %7063 = vmatmul.mubr.msk.bf16.vlgmr.msra.gmra.mxu0 %vm10791_vm13, %v5105_v45  ;;  %v10116_v33 = vadd.f32 %v7045_v31, %v5084_v48  ;;  %vm10806_vm13 = vmmov %vm10800_vm1 }
0x289c   :  { %5208 = vmatprep.mubr.bf16.mxu0 %v8783_v16 }
0x289d   :  { %v5085_v59 = vmul.f32 %v7044_v63, %v5075_v8 }
0x289f   :  { %v10118_v41 = vadd.f32 %v7045_v31, %v5085_v59 }
0x28a1   :  { %v5106_v4 = vpack.c.bf16 %v10118_v41, %v10116_v33 }
0x28a3   :  { %7064 = vmatmul.mubr.msk.bf16.gmra.mxu0 %vm10792_vm14, %v5106_v4  ;;  %vm10807_vm14 = vmmov %vm10800_vm1 }
0x295b   :  { %v5200_v10 = vpop.f32.mrf.mxu0 }
0x295c   :  { %v5201_v17 = vadd.f32 %v5200_v10, %v5113_v23 }
0x295d   :  { %v5202_v11 = vpop.f32.mrf.mxu0 }
0x295e   :  { %v5203_v46 = vadd.f32 %v5202_v11, %v5117_v9 }
0x295f   :  { %v5204_v43 = vpop.f32.mrf.mxu0 }
0x2960   :  { %v5205_v19 = vadd.f32 %v5204_v43, %v5113_v23 }
0x2961   :  { %v5206_v0 = vpop.f32.mrf.mxu0 }
0x2962   :  { %v10126_v27 = vpack.c.bf16 %v5205_v19, %v5201_v17  ;;  %v5207_v5 = vadd.f32 %v5206_v0, %v5117_v9 }
0x2963   :  { %v5210_v58 = vpop.f32.mrf.mxu0 }
0x2964   :  { %v10128_v54 = vpack.c.bf16 %v5207_v5, %v5203_v46  ;;  %7735 = vmatprep.mubr.msk.bf16.mxu0 %vm10793_vm3, %v10126_v27  ;;  %v5211_v53 = vadd.f32 %v5210_v58, %v5113_v23  ;;  %vm10808_vm3 = vmmov %vm10800_vm1 }
0x2965   :  { %v5212_v55 = vpop.f32.mrf.mxu0 }
0x2966   :  { %v5213_v22 = vadd.f32 %v5212_v55, %v5117_v9 }
0x2967   :  { %v5214_v47 = vpop.f32.mrf.mxu0 }
0x2968   :  { %v5215_v56 = vadd.f32 %v5214_v47, %v5113_v23 }
0x2969   :  { %v5216_v36 = vpop.f32.mrf.mxu0 }
0x296a   :  { %v10132_v50 = vpack.c.bf16 %v5215_v56, %v5211_v53  ;;  %v5217_v39 = vadd.f32 %v5216_v36, %v5117_v9 }
0x296c   :  { %5405 = vrot.lane.b32.xlu0 %v10132_v50, %s8785_s9  ;;  %5225 = vrot.lane.b32.xlu1 %v10132_v50, %s8784_s5  ;;  %v10160_v6 = vpack.c.bf16 %v5217_v39, %v5213_v22 }
0x2970   :  { %5399 = vrot.lane.b32.xlu0 %v10126_v27, %s8787_s24  ;;  %5223 = vrot.lane.b32.xlu1 %v10126_v27, %s8784_s5  ;;  %s8793_s5 = smov [#allocation14]  }
0x2974   :  { %5401 = vrot.lane.b32.xlu0 %v10132_v50, %s8787_s24  ;;  %5403 = vrot.lane.b32.xlu1 %v10126_v27, %s8785_s9 }
0x2978   :  { %5585 = vrot.lane.b32.xlu0 %v10126_v27, %s8788_s0  ;;  %5591 = vrot.lane.b32.xlu1 %v10132_v50, %s8786_s13 }
0x297c   :  { %5589 = vrot.lane.b32.xlu1 %v10126_v27, %s8786_s13 }
0x2980   :  { %5587 = vrot.lane.b32.xlu1 %v10132_v50, %s8788_s0 }
0x29de   :  { %v5406_v57 = vpop.permute.xlu0 %5405  ;;  %v5226_v28 = vpop.permute.xlu1 %5225 }
0x29df   :  { %v5417_v61 = vsel %vm10794_vm4, %v5406_v57, 0  ;;  %v5237_v62 = vsel %vm10795_vm5, %v5226_v28, 0  ;;  %7843 = vmatprep.subr.msk.bf16.mxu0 %vm10796_vm6, %v5226_v28  ;;  %7845 = vmatprep.subr.msk.bf16.mxu1 %vm10797_vm7, %v5406_v57  ;;  %vm10809_vm4 = vmmov %vm10800_vm1  ;;  %vm10811_vm6 = vcmask 261120  }
0x29e0   :  { %7732 = vmatpush3.bf16.xpose.msra.mxu0 %v5237_v62  ;;  %7748 = vmatpush3.bf16.xpose.msra.mxu1 %v5417_v61  ;;  %vm10810_vm5 = vmmov %vm10800_vm1 }
0x29e1   :  { %vm10812_vm7 = vmmov %vm10811_vm6 }
0x29e2   :  { %v5400_v60 = vpop.permute.xlu0 %5399  ;;  %v5224_v49 = vpop.permute.xlu1 %5223 }
0x29e3   :  { %7844 = vmatprep.subr.msk.bf16.mxu0 %vm10798_vm8, %v5224_v49  ;;  %7751 = vmatprep.mubr.msk.bf16.mxu1 %vm10799_vm9, %v5400_v60  ;;  %v5234_v3 = vsel %vm10800_vm1, %v5224_v49, 0  ;;  %vm10813_vm8 = vmmov %vm10811_vm6 }
0x29e4   :  { %vm10814_vm9 = vmmov %vm10811_vm6 }
0x29e5   :  { %vm10815_vm1 = vmmov %vm10811_vm6 }
0x29e6   :  { %v5404_v29 = vpop.permute.xlu1 %5403  ;;  %v5402_v12 = vpop.permute.xlu0 %5401 }
0x29e7   :  { %v5414_v35 = vsel %vm10801_vm2, %v5404_v29, 0  ;;  %7846 = vmatprep.subr.msk.bf16.mxu1 %vm10802_vm10, %v5404_v29  ;;  %vm10816_vm2 = vmmov %vm10815_vm1 }
0x29e8   :  { %7734 = vmatpush3.bf16.xpose.msra.mxu0 %v5234_v3  ;;  %7750 = vmatpush3.bf16.xpose.msra.mxu1 %v5414_v35  ;;  %vm10817_vm10 = vmmov %vm10815_vm1 }
0x29e9   :  { %7739 = vmatprep.subr.bf16.mxu0 %v10160_v6 }
0x29ea   :  { %v5592_v1 = vpop.permute.xlu1 %5591  ;;  %v5586_v15 = vpop.permute.xlu0 %5585 }
0x29eb   :  { %7847 = vmatprep.subr.msk.bf16.mxu1 %vm10803_vm11, %v5592_v1  ;;  %v5603_v25 = vsel %vm10804_vm15, %v5592_v1, 0  ;;  %vm10818_vm11 = vmmov %vm10815_vm1 }
0x29ec   :  { %vm10819_vm15 = vmmov %vm10815_vm1 }
0x29ee   :  { %v5590_v24 = vpop.permute.xlu1 %5589 }
0x29ef   :  { %7736 = vmatmul.mubr.msk.bf16.vlgmr.msra.gmra.mxu0 %vm10805_vm12, %v10132_v50  ;;  %7752 = vmatmul.mubr.msk.bf16.vlgmr.msra.gmra.mxu1 %vm10806_vm13, %v5402_v12  ;;  %v5600_v26 = vsel %vm10809_vm4, %v5590_v24, 0  ;;  %vm10820_vm12 = vmmov %vm10815_vm1 }
0x29f0   :  { %7740 = vmatpush3.bf16.msra.mxu0 %v10160_v6  ;;  %7764 = vmatpush3.bf16.xpose.msra.mxu1 %v5603_v25  ;;  %vm10821_vm13 = vmmov %vm10815_vm1 }
0x29f1   :  { %7767 = vmatprep.mubr.msk.bf16.mxu1 %vm10807_vm14, %v5586_v15  ;;  %7741 = vmatprep.subr.bf16.mxu0 %v10128_v54  ;;  %vm10822_vm14 = vmmov %vm10815_vm1 }
0x29f2   :  { %7848 = vmatprep.subr.msk.bf16.mxu1 %vm10808_vm3, %v5590_v24  ;;  %v5588_v40 = vpop.permute.xlu1 %5587  ;;  %vm10823_vm3 = vmmov %vm10815_vm1 }
0x29f3   :  { %vm10824_vm4 = vmmov %vm10815_vm1 }
0x29f4   :  { %7742 = vmatpush3.bf16.msra.mxu0 %v10128_v54 }
0x29f8   :  { %7766 = vmatpush3.bf16.xpose.msra.mxu1 %v5600_v26 }
0x29ff   :  { %7768 = vmatmul.mubr.msk.bf16.vlgmr.msra.gmra.mxu1 %vm10810_vm5, %v5588_v40  ;;  %vm10825_vm5 = vmmov %vm10815_vm1 }
0x2aaf   :  { %v7737_v63 = vpop.f32.mrf.mxu0  ;;  %v7753_v7 = vpop.f32.mrf.mxu1 }
0x2ab0   :  { %v5290_v42 = vmul.f32 0.25, %v7737_v63  ;;  %v5470_v2 = vmul.f32 0.25, %v7753_v7 }
0x2ab1   :  { %v5273_v31 = vpop.f32.mrf.mxu0  ;;  %v5453_v38 = vpop.f32.mrf.mxu1 }
0x2ab2   :  { %v5294_v51 = vadd.f32 %v5290_v42, %v9111_v14  ;;  %v5474_v20 = vadd.f32 %v5470_v2, %v9111_v14  ;;  %v5288_v45 = vmul.f32 0.25, %v5273_v31  ;;  %v5468_v34 = vmul.f32 0.25, %v5453_v38 }
0x2ab3   :  { %v7738_v8 = vpop.f32.mrf.mxu0  ;;  %v7754_v48 = vpop.f32.mrf.mxu1 }
0x2ab4   :  { %v5291_v59 = vmul.f32 0.25, %v7738_v8  ;;  %v5292_v4 = vadd.f32 %v5288_v45, %v9114_v18  ;;  %v10182_v13 = vadd.f32 %v5468_v34, %v9114_v18  ;;  %v5302_v10 = vsel %vm10811_vm6, %v5294_v51, -inf  ;;  %vm10826_vm6 = vmmov %vm10815_vm1 }
0x2ab5   :  { %v5276_v23 = vpop.f32.mrf.mxu0  ;;  %v5482_v11 = vsel %vm10812_vm7, %v5474_v20, -inf  ;;  %5303 = vmax.xlane.f32.xlu0 %v5302_v10  ;;  %v5456_v43 = vpop.f32.mrf.mxu1  ;;  %v5471_v58 = vmul.f32 0.25, %v7754_v48  ;;  %vm10827_vm7 = vmmov %vm10815_vm1 }
0x2ab6   :  { %v5289_v9 = vmul.f32 0.25, %v5276_v23  ;;  %5483 = vmax.xlane.f32.xlu1 %v5482_v11  ;;  %v5295_v17 = vadd.f32 %v5291_v59, %v9125_v37  ;;  %v5469_v0 = vmul.f32 0.25, %v5456_v43  ;;  %v5296_v46 = vsel %vm10813_vm8, %v5292_v4, -inf  ;;  %vm10828_vm8 = vmmov %vm10815_vm1 }
0x2ab7   :  { %v5476_v5 = vsel %vm10814_vm9, %v10182_v13, -inf  ;;  %v5475_v28 = vadd.f32 %v5471_v58, %v9125_v37  ;;  %vm10829_vm9 = vmmov %vm10815_vm1 }
0x2ab8   :  { %v10188_v19 = vadd.f32 %v5289_v9, %v9134_v52  ;;  %v10194_v55 = vadd.f32 %v5469_v0, %v9134_v52  ;;  %v5305_v47 = vsel %vm10815_vm1, %v5295_v17, -inf }
0x2ab9   :  { %5297 = vmax.xlane.f32.xlu0 %v5296_v46  ;;  %v5485_v29 = vsel %vm10819_vm15, %v5475_v28, -inf  ;;  %vm10833_vm15 = vmmov %vm10815_vm1 }
0x2aba   :  { %5477 = vmax.xlane.f32.xlu1 %v5476_v5  ;;  %v5299_v53 = vsel %vm10816_vm2, %v10188_v19, -inf  ;;  %v5479_v61 = vsel %vm10817_vm10, %v10194_v55, -inf  ;;  %vm10830_vm2 = vmmov %vm10815_vm1 }
0x2abb   :  { %vm10831_vm10 = vmmov %vm10815_vm1 }
0x2abd   :  { %5306 = vmax.xlane.f32.xlu0 %v5305_v47 }
0x2abe   :  { %5300 = vmax.xlane.f32.xlu1 %v5299_v53 }
0x2abf   :  { %v7769_v56 = vpop.f32.mrf.mxu1 }
0x2ac0   :  { %v5656_v57 = vmul.f32 0.25, %v7769_v56 }
0x2ac1   :  { %v5639_v62 = vpop.f32.mrf.mxu1  ;;  %5480 = vmax.xlane.f32.xlu0 %v5479_v61 }
0x2ac2   :  { %v10203_v36 = vadd.f32 %v5656_v57, %v9111_v14  ;;  %v5654_v60 = vmul.f32 0.25, %v5639_v62 }
0x2ac3   :  { %v7770_v49 = vpop.f32.mrf.mxu1 }
0x2ac4   :  { %v10206_v39 = vadd.f32 %v5654_v60, %v9114_v18  ;;  %v5668_v22 = vsel %vm10818_vm11, %v10203_v36, -inf  ;;  %v5657_v35 = vmul.f32 0.25, %v7770_v49  ;;  %vm10832_vm11 = vmmov %vm10815_vm1 }
0x2ac5   :  { %5669 = vmax.xlane.f32.xlu1 %v5668_v22  ;;  %v5642_v3 = vpop.f32.mrf.mxu1  ;;  %5486 = vmax.xlane.f32.xlu0 %v5485_v29 }
0x2ac6   :  { %v5655_v12 = vmul.f32 0.25, %v5642_v3  ;;  %v5662_v25 = vsel %vm10820_vm12, %v10206_v39, -inf  ;;  %v10217_v15 = vadd.f32 %v5657_v35, %v9125_v37  ;;  %vm10834_vm12 = vmmov %vm10815_vm1 }
0x2ac8   :  { %v10212_v1 = vadd.f32 %v5655_v12, %v9134_v52  ;;  %v5671_v26 = vsel %vm10822_vm14, %v10217_v15, -inf  ;;  %vm10836_vm14 = vmmov %vm10815_vm1 }
0x2ac9   :  { %5663 = vmax.xlane.f32.xlu1 %v5662_v25 }
0x2aca   :  { %v5665_v24 = vsel %vm10821_vm13, %v10212_v1, -inf  ;;  %vm10835_vm13 = vmmov %vm10815_vm1 }
0x2acb   :  { %5666 = vmax.xlane.f32.xlu0 %v5665_v24 }
0x2acf   :  { %5672 = vmax.xlane.f32.xlu0 %v5671_v26 }
0x2ada   :  { %5526 = vrot.lane.b32.xlu1 %v10160_v6, %s8787_s24 }
0x2b3e   :  { %v5304_v40 = vpop.xlane.xlu0 %5303 }
0x2b3f   :  { %v5484_v63 = vpop.xlane.xlu1 %5483  ;;  %v5310_v7 = vsub.f32 %v5294_v51, %v5304_v40 }
0x2b40   :  { %v5490_v42 = vsub.f32 %v5474_v20, %v5484_v63 }
0x2b41   :  { %v5316_v2 = vmul.f32 1.442695, %v5310_v7 }
0x2b42   :  { %v5496_v31 = vmul.f32 1.442695, %v5490_v42  ;;  %v5298_v38 = vpop.xlane.xlu0 %5297 }
0x2b43   :  { %v5478_v45 = vpop.xlane.xlu1 %5477  ;;  %8464 = vpow2.f32 %v5316_v2  ;;  %v5308_v34 = vsub.f32 %v5292_v4, %v5298_v38 }
0x2b44   :  { %8466 = vpow2.f32 %v5496_v31  ;;  %v5488_v48 = vsub.f32 %v10182_v13, %v5478_v45 }
0x2b45   :  { %v5312_v8 = vmul.f32 1.442695, %v5308_v34 }
0x2b46   :  { %v5307_v59 = vpop.xlane.xlu0 %5306  ;;  %v5492_v23 = vmul.f32 1.442695, %v5488_v48 }
0x2b47   :  { %v5311_v10 = vsub.f32 %v5295_v17, %v5307_v59  ;;  %8468 = vpow2.f32 %v5312_v8  ;;  %v5301_v9 = vpop.xlane.xlu1 %5300 }
0x2b48   :  { %v5309_v51 = vsub.f32 %v10188_v19, %v5301_v9 }
0x2b49   :  { %v5318_v11 = vmul.f32 1.442695, %v5311_v10 }
0x2b4a   :  { %v5481_v43 = vpop.xlane.xlu0 %5480  ;;  %v5314_v4 = vmul.f32 1.442695, %v5309_v51 }
0x2b4b   :  { %8470 = vpow2.f32 %v5318_v11  ;;  %v5489_v26 = vsub.f32 %v10194_v55, %v5481_v43 }
0x2b4c   :  { %8472 = vpow2.f32 %v5492_v23 }
0x2b4d   :  { %v5494_v7 = vmul.f32 1.442695, %v5489_v26 }
0x2b4e   :  { %v5670_v20 = vpop.xlane.xlu1 %5669  ;;  %v5487_v0 = vpop.xlane.xlu0 %5486 }
0x2b4f   :  { %v5491_v46 = vsub.f32 %v5475_v28, %v5487_v0  ;;  %v5676_v35 = vsub.f32 %v10203_v36, %v5670_v20 }
0x2b50   :  { %v10227_v5 = vpop.eup %8464 }
0x2b51   :  { %v5498_v58 = vmul.f32 1.442695, %v5491_v46  ;;  %v5326_v13 = vsel %vm10823_vm3, %v10227_v5, 0.0  ;;  %v10231_v47 = vpop.eup %8466  ;;  %v5682_v25 = vmul.f32 1.442695, %v5676_v35  ;;  %vm10837_vm3 = vmmov %vm10815_vm1 }
0x2b52   :  { %v5664_v17 = vpop.xlane.xlu1 %5663  ;;  %5327 = vadd.xlane.f32.xlu1 %v5326_v13  ;;  %v5506_v53 = vsel %vm10824_vm4, %v10231_v47, 0.0  ;;  %vm10838_vm4 = vcmask 130048  }
0x2b53   :  { %8474 = vpow2.f32 %v5498_v58  ;;  %v5674_v24 = vsub.f32 %v10206_v39, %v5664_v17 }
0x2b54   :  { %8476 = vpow2.f32 %v5314_v4  ;;  %v10237_v56 = vpop.eup %8468  ;;  %v5667_v12 = vpop.xlane.xlu0 %5666 }
0x2b55   :  { %v5320_v61 = vsel %vm10826_vm6, %v10237_v56, 0.0  ;;  %8478 = vpow2.f32 %v5682_v25  ;;  %v5678_v40 = vmul.f32 1.442695, %v5674_v24  ;;  %v5675_v2 = vsub.f32 %v10212_v1, %v5667_v12  ;;  %vm10840_vm6 = vmmov %vm10838_vm4 }
0x2b56   :  { %v10235_v19 = vpop.permute.xlu1 %5526  ;;  %5507 = vadd.xlane.f32.xlu1 %v5506_v53 }
0x2b57   :  { %7755 = vmatprep.subr.bf16.mxu0 %v10235_v19  ;;  %8480 = vpow2.f32 %v5678_v40  ;;  %v5680_v31 = vmul.f32 1.442695, %v5675_v2 }
0x2b58   :  { %v10240_v57 = vpop.eup %8470  ;;  %v5673_v63 = vpop.xlane.xlu0 %5672  ;;  %8482 = vpow2.f32 %v5494_v7 }
0x2b59   :  { %v5329_v28 = vsel %vm10825_vm5, %v10240_v57, 0.0  ;;  %v10246_v62 = vpop.eup %8472  ;;  %v5677_v42 = vsub.f32 %v10217_v15, %v5673_v63  ;;  %vm10839_vm5 = vmmov %vm10815_vm1 }
0x2b5a   :  { %5330 = vadd.xlane.f32.xlu0 %v5329_v28  ;;  %5321 = vadd.xlane.f32.xlu1 %v5320_v61  ;;  %v5500_v60 = vsel %vm10827_vm7, %v10246_v62, 0.0  ;;  %vm10841_vm7 = vmmov %vm10815_vm1 }
0x2b5b   :  { %v5684_v36 = vmul.f32 1.442695, %v5677_v42 }
0x2b5d   :  { %8484 = vpow2.f32 %v5684_v36 }
0x2b5e   :  { %5501 = vadd.xlane.f32.xlu1 %v5500_v60  ;;  %8486 = vpow2.f32 %v5680_v31 }
0x2b60   :  { %v10250_v49 = vpop.eup %8474 }
0x2b61   :  { %v5509_v22 = vsel %vm10828_vm8, %v10250_v49, 0.0  ;;  %v8477_v29 = vpop.eup %8476  ;;  %vm10842_vm8 = vmmov %vm10838_vm4 }
0x2b62   :  { %5510 = vadd.xlane.f32.xlu0 %v5509_v22  ;;  %v5323_v3 = vsel %vm10829_vm9, %v8477_v29, 0.0  ;;  %v10264_v38 = vpop.eup %8478  ;;  %vm10843_vm9 = vmmov %vm10838_vm4 }
0x2b63   :  { %v5692_v39 = vsel %vm10815_vm1, %v10264_v38, 0.0  ;;  %vm10844_vm1 = vmmov %vm10838_vm4 }
0x2b64   :  { %v10268_v55 = vpop.eup %8480 }
0x2b65   :  { %v5686_v45 = vsel %vm10830_vm2, %v10268_v55, 0.0  ;;  %v10272_v34 = vpop.eup %8482  ;;  %vm10845_vm2 = vmmov %vm10844_vm1 }
0x2b66   :  { %5324 = vadd.xlane.f32.xlu0 %v5323_v3  ;;  %v5503_v1 = vsel %vm10831_vm10, %v10272_v34, 0.0  ;;  %vm10846_vm10 = vmmov %vm10837_vm3 }
0x2b6a   :  { %v10276_v15 = vpop.eup %8484 }
0x2b6b   :  { %v5695_v8 = vsel %vm10832_vm11, %v10276_v15, 0.0  ;;  %v10280_v48 = vpop.eup %8486  ;;  %vm10847_vm11 = vmmov %vm10837_vm3 }
0x2b6c   :  { %v5689_v59 = vsel %vm10833_vm15, %v10280_v48, 0.0  ;;  %vm10848_vm15 = vmmov %vm10837_vm3 }
0x2b6f   :  { %5710 = vrot.lane.b32.xlu1 %v10160_v6, %s8788_s0 }
0x2b7c   :  { %5524 = vrot.lane.b32.xlu0 %v10128_v54, %s8787_s24 }
0x2b93   :  { %5693 = vadd.xlane.f32.xlu1 %v5692_v39 }
0x2b97   :  { %5687 = vadd.xlane.f32.xlu1 %v5686_v45 }
0x2b9b   :  { %5504 = vadd.xlane.f32.xlu0 %v5503_v1 }
0x2b9f   :  { %5696 = vadd.xlane.f32.xlu0 %v5695_v8 }
0x2ba3   :  { %5690 = vadd.xlane.f32.xlu0 %v5689_v59 }
0x2ba8   :  { %5708 = vrot.lane.b32.xlu1 %v10128_v54, %s8788_s0 }
0x2bac   :  { %5773 = vrot.lane.b32.xlu1 %v10126_v27, %s8775_s22 }
0x2bb0   :  { %5771 = vrot.lane.b32.xlu1 %v10132_v50, %s8790_s2 }
0x2bb9   :  { %5775 = vrot.lane.b32.xlu0 %v10132_v50, %s8775_s22 }
0x2bbd   :  { %5769 = vrot.lane.b32.xlu0 %v10126_v27, %s8790_s2 }
0x2bdb   :  { %v5328_v10 = vpop.xlane.xlu1 %5327 }
0x2bdf   :  { %v5508_v23 = vpop.xlane.xlu1 %5507 }
0x2be3   :  { %v5331_v11 = vpop.xlane.xlu0 %5330  ;;  %v5322_v9 = vpop.xlane.xlu1 %5321 }
0x2be4   :  { %8488 = vrcp.f32 %v5331_v11 }
0x2be5   :  { %8490 = vrcp.f32 %v5322_v9 }
0x2be6   :  { %8492 = vrcp.f32 %v5328_v10 }
0x2be7   :  { %v5502_v28 = vpop.xlane.xlu1 %5501 }
0x2beb   :  { %v5511_v43 = vpop.xlane.xlu0 %5510  ;;  %v5711_v60 = vpop.permute.xlu1 %5710 }
0x2bef   :  { %v5325_v51 = vpop.xlane.xlu0 %5324 }
0x2bf0   :  { %8494 = vrcp.f32 %v5325_v51 }
0x2bf1   :  { %v8489_v20 = vpop.eup %8488  ;;  %8496 = vrcp.f32 %v5511_v43 }
0x2bf2   :  { %v8491_v0 = vpop.eup %8490  ;;  %v5339_v58 = vmul.f32 %v8489_v20, %v10240_v57  ;;  %8498 = vrcp.f32 %v5502_v28 }
0x2bf3   :  { %v8493_v46 = vpop.eup %8492  ;;  %v5336_v50 = vmul.f32 %v8491_v0, %v10237_v56  ;;  %v5525_v61 = vpop.permute.xlu0 %5524  ;;  %8500 = vrcp.f32 %v5508_v23 }
0x2bf4   :  { %v5338_v27 = vmul.f32 %v8493_v46, %v10227_v5 }
0x2bf6   :  { %v5341_v53 = vpack.c.bf16 %v5339_v58, %v5338_v27 }
0x2bfd   :  { %v8495_v4 = vpop.eup %8494 }
0x2bfe   :  { %v5337_v13 = vmul.f32 %v8495_v4, %v8477_v29  ;;  %v8497_v3 = vpop.eup %8496 }
0x2bff   :  { %v8499_v35 = vpop.eup %8498  ;;  %v5519_v25 = vmul.f32 %v8497_v3, %v10250_v49 }
0x2c00   :  { %v5340_v17 = vpack.c.bf16 %v5337_v13, %v5336_v50  ;;  %v5516_v24 = vmul.f32 %v8499_v35, %v10246_v62 }
0x2c02   :  { %7743 = vmatprep.mubr.msk.bf16.mxu0 %vm10834_vm12, %v5340_v17  ;;  %vm10849_vm12 = vmmov %vm10837_vm3 }
0x2c03   :  { %7744 = vmatmul.mubr.msk.bf16.vlgmr.msra.gmra.mxu0 %vm10835_vm13, %v5341_v53  ;;  %vm10850_vm13 = vmmov %vm10837_vm3 }
0x2c04   :  { %7756 = vmatpush3.bf16.msra.mxu0 %v10235_v19  ;;  %v8501_v19 = vpop.eup %8500 }
0x2c05   :  { %7757 = vmatprep.subr.bf16.mxu0 %v5525_v61  ;;  %v5518_v40 = vmul.f32 %v8501_v19, %v10231_v47 }
0x2c07   :  { %v5521_v7 = vpack.c.bf16 %v5519_v25, %v5518_v40 }
0x2c08   :  { %7758 = vmatpush3.bf16.msra.mxu0 %v5525_v61 }
0x2c09   :  { %7771 = vmatprep.subr.bf16.mxu0 %v5711_v60 }
0x2c1c   :  { %v5694_v57 = vpop.xlane.xlu1 %5693 }
0x2c20   :  { %v5688_v5 = vpop.xlane.xlu1 %5687 }
0x2c24   :  { %v5505_v56 = vpop.xlane.xlu0 %5504  ;;  %v5709_v31 = vpop.permute.xlu1 %5708 }
0x2c25   :  { %8502 = vrcp.f32 %v5505_v56 }
0x2c28   :  { %v5697_v22 = vpop.xlane.xlu0 %5696 }
0x2c29   :  { %8504 = vrcp.f32 %v5697_v22 }
0x2c2a   :  { %8506 = vrcp.f32 %v5688_v5 }
0x2c2b   :  { %8508 = vrcp.f32 %v5694_v57 }
0x2c2c   :  { %v5691_v29 = vpop.xlane.xlu0 %5690 }
0x2c2d   :  { %8510 = vrcp.f32 %v5691_v29 }
0x2c30   :  { %v5776_v45 = vpop.permute.xlu0 %5775 }
0x2c31   :  { %v5787_v59 = vsel %vm10840_vm6, %v5776_v45, 0  ;;  %vm10854_vm6 = vmmov %vm10837_vm3 }
0x2c32   :  { %v8503_v12 = vpop.eup %8502 }
0x2c33   :  { %v5517_v26 = vmul.f32 %v8503_v12, %v10272_v34 }
0x2c34   :  { %v5770_v10 = vpop.permute.xlu0 %5769 }
0x2c35   :  { %v5520_v63 = vpack.c.bf16 %v5517_v26, %v5516_v24 }
0x2c36   :  { %v8505_v42 = vpop.eup %8504 }
0x2c37   :  { %7759 = vmatprep.mubr.msk.bf16.mxu0 %vm10836_vm14, %v5520_v63  ;;  %v8507_v2 = vpop.eup %8506  ;;  %v5705_v49 = vmul.f32 %v8505_v42, %v10276_v15  ;;  %v5774_v15 = vpop.permute.xlu1 %5773  ;;  %vm10851_vm14 = vmmov %vm10837_vm3 }
0x2c38   :  { %7760 = vmatmul.mubr.msk.bf16.vlgmr.msra.gmra.mxu0 %vm10837_vm3, %v5521_v7  ;;  %v8509_v36 = vpop.eup %8508  ;;  %v5702_v62 = vmul.f32 %v8507_v2, %v10268_v55 }
0x2c39   :  { %7772 = vmatpush3.bf16.msra.mxu0 %v5711_v60  ;;  %v5704_v34 = vmul.f32 %v8509_v36, %v10264_v38  ;;  %v5784_v38 = vsel %vm10844_vm1, %v5774_v15, 0 }
0x2c3a   :  { %v8511_v39 = vpop.eup %8510  ;;  %7773 = vmatprep.subr.bf16.mxu0 %v5709_v31 }
0x2c3b   :  { %v5703_v47 = vmul.f32 %v8511_v39, %v10280_v48  ;;  %v5707_v8 = vpack.c.bf16 %v5705_v49, %v5704_v34  ;;  %v5772_v55 = vpop.permute.xlu1 %5771 }
0x2c3d   :  { %7774 = vmatpush3.bf16.msra.mxu0 %v5709_v31  ;;  %v5706_v1 = vpack.c.bf16 %v5703_v47, %v5702_v62 }
0x2c3e   :  { %7849 = vmatprep.subr.msk.bf16.mxu0 %vm10838_vm4, %v5776_v45  ;;  %vm10852_vm4 = vmmov %vm10837_vm3 }
0x2c3f   :  { %7775 = vmatprep.mubr.msk.bf16.mxu0 %vm10839_vm5, %v5706_v1  ;;  %vm10853_vm5 = vmmov %vm10837_vm3 }
0x2c40   :  { %7776 = vmatmul.mubr.msk.bf16.vlgmr.msra.gmra.mxu0 %vm10841_vm7, %v5707_v8  ;;  %vm10855_vm7 = vmmov %vm10844_vm1 }
0x2c41   :  { %7780 = vmatpush3.bf16.xpose.msra.mxu0 %v5787_v59  ;;  %7783 = vmatprep.mubr.msk.bf16.mxu0 %vm10842_vm8, %v5770_v10  ;;  %vm10856_vm8 = vmmov %vm10844_vm1 }
0x2c42   :  { %7850 = vmatprep.subr.msk.bf16.mxu0 %vm10843_vm9, %v5774_v15  ;;  %vm10857_vm9 = vmmov %vm10844_vm1 }
0x2c49   :  { %7782 = vmatpush3.bf16.xpose.msra.mxu0 %v5784_v38 }
0x2c50   :  { %7784 = vmatmul.mubr.msk.bf16.vlgmr.msra.gmra.mxu0 %vm10845_vm2, %v5772_v55  ;;  %vm10858_vm2 = vmmov %vm10837_vm3 }
0x2c51   :  { %6293 = vmatprep.mubr.bf16.mxu0 %v8783_v16 }
0x2cc3   :  { %v10319_v48 = vpop.f32.mrf.mxu0 }
0x2cc5   :  { %v10321_v23 = vpop.f32.mrf.mxu0 }
0x2cc7   :  { %v10323_v11 = vpop.f32.mrf.mxu0 }
0x2cc9   :  { %v10325_v9 = vpop.f32.mrf.mxu0 }
0x2cf8   :  { %v7761_v43 = vpop.f32.mrf.mxu0 }
0x2cfa   :  { %v5570_v51 = vpop.f32.mrf.mxu0 }
0x2cfc   :  { %v7762_v20 = vpop.f32.mrf.mxu0 }
0x2cfd   :  { %v8005_v0 = vpack.i.bf16 %v7762_v20, %v7761_v43 }
0x2cfe   :  { %v5573_v46 = vpop.f32.mrf.mxu0 }
0x2cff   :  { %v8000_v4 = vpack.i.bf16 %v5573_v46, %v5570_v51 }
0x2d00   :  { %v7777_v58 = vpop.f32.mrf.mxu0 }
0x2d02   :  { %v5754_v50 = vpop.f32.mrf.mxu0 }
0x2d04   :  { %v7778_v13 = vpop.f32.mrf.mxu0 }
0x2d05   :  { %v8015_v27 = vpack.i.bf16 %v7778_v13, %v7777_v58 }
0x2d06   :  { %v5757_v17 = vpop.f32.mrf.mxu0 }
0x2d07   :  { %v8010_v53 = vpack.i.bf16 %v5757_v17, %v5754_v50 }
0x2d10   :  { %v7785_v28 = vpop.f32.mrf.mxu0 }
0x2d11   :  { %v5840_v60 = vmul.f32 0.25, %v7785_v28  ;;  %v8187_v28 = vld [vmem:[%s10758_s26 + $0x30] sm:$0xff]  }
0x2d12   :  { %v5823_v61 = vpop.f32.mrf.mxu0 }
0x2d13   :  { %v5838_v57 = vmul.f32 0.25, %v5823_v61  ;;  %v5844_v29 = vadd.f32 %v5840_v60, %v9111_v14  ;;  %v8188_v61 = vld [vmem:[%s10758_s26 + $0x28] sm:$0xff]   ;;  %v8189_v60 = vld [vmem:[%s10758_s26 + $0x20] sm:$0xff]  }
0x2d14   :  { %v7786_v56 = vpop.f32.mrf.mxu0 }
0x2d15   :  { %v5842_v5 = vadd.f32 %v5838_v57, %v9114_v18  ;;  %v5841_v3 = vmul.f32 0.25, %v7786_v56  ;;  %v5852_v24 = vsel %vm10847_vm11, %v5844_v29, -inf  ;;  %vm10860_vm11 = vmmov %vm10858_vm2 }
0x2d16   :  { %v5826_v22 = vpop.f32.mrf.mxu0 }
0x2d17   :  { %v5839_v35 = vmul.f32 0.25, %v5826_v22  ;;  %v5846_v19 = vsel %vm10846_vm10, %v5842_v5, -inf  ;;  %v5845_v25 = vadd.f32 %v5841_v3, %v9125_v37  ;;  %vm10859_vm10 = vmmov %vm10858_vm2 }
0x2d18   :  { %5847 = vmax.xlane.f32.xlu0 %v5846_v19 }
0x2d19   :  { %v5843_v12 = vadd.f32 %v5839_v35, %v9134_v52  ;;  %v5855_v18 = vsel %vm10849_vm12, %v5845_v25, -inf  ;;  %vm10862_vm12 = vcmask 523264  }
0x2d1b   :  { %v5849_v26 = vsel %vm10848_vm15, %v5843_v12, -inf  ;;  %vm10861_vm15 = vmmov %vm10858_vm2 }
0x2d1c   :  { %5853 = vmax.xlane.f32.xlu0 %v5852_v24  ;;  %5850 = vmax.xlane.f32.xlu1 %v5849_v26 }
0x2d20   :  { %5856 = vmax.xlane.f32.xlu0 %v5855_v18 }
0x2da1   :  { %v5848_v40 = vpop.xlane.xlu0 %5847 }
0x2da2   :  { %v5858_v14 = vsub.f32 %v5842_v5, %v5848_v40 }
0x2da4   :  { %v5862_v2 = vmul.f32 1.442695, %v5858_v14 }
0x2da5   :  { %v5854_v63 = vpop.xlane.xlu0 %5853  ;;  %v5851_v7 = vpop.xlane.xlu1 %5850 }
0x2da6   :  { %v5860_v42 = vsub.f32 %v5844_v29, %v5854_v63  ;;  %v5859_v31 = vsub.f32 %v5843_v12, %v5851_v7 }
0x2da8   :  { %v5866_v36 = vmul.f32 1.442695, %v5860_v42  ;;  %v5864_v39 = vmul.f32 1.442695, %v5859_v31 }
0x2da9   :  { %v5857_v52 = vpop.xlane.xlu0 %5856 }
0x2daa   :  { %8512 = vpow2.f32 %v5866_v36  ;;  %v5861_v37 = vsub.f32 %v5845_v25, %v5857_v52 }
0x2dab   :  { %8514 = vpow2.f32 %v5862_v2 }
0x2dac   :  { %v5868_v49 = vmul.f32 1.442695, %v5861_v37 }
0x2dae   :  { %8516 = vpow2.f32 %v5868_v49 }
0x2daf   :  { %8518 = vpow2.f32 %v5864_v39 }
0x2db7   :  { %v8513_v45 = vpop.eup %8512 }
0x2db8   :  { %v5876_v62 = vsel %vm10850_vm13, %v8513_v45, 0.0  ;;  %v8515_v47 = vpop.eup %8514  ;;  %vm10863_vm13 = vmmov %vm10862_vm12 }
0x2db9   :  { %5877 = vadd.xlane.f32.xlu1 %v5876_v62  ;;  %v5870_v8 = vsel %vm10837_vm3, %v8515_v47, 0.0 }
0x2dbb   :  { %v8517_v34 = vpop.eup %8516 }
0x2dbc   :  { %v5879_v1 = vsel %vm10851_vm14, %v8517_v34, 0.0  ;;  %v8519_v59 = vpop.eup %8518 }
0x2dbd   :  { %5880 = vadd.xlane.f32.xlu0 %v5879_v1  ;;  %5871 = vadd.xlane.f32.xlu1 %v5870_v8  ;;  %v5873_v10 = vsel %vm10852_vm4, %v8519_v59, 0.0 }
0x2dc1   :  { %5874 = vadd.xlane.f32.xlu0 %v5873_v10 }
0x2dce   :  { %5894 = vrot.lane.b32.xlu1 %v10160_v6, %s8790_s2 }
0x2dd2   :  { %8001 = vrot.lane.b32.xlu1 %v8000_v4, %s8775_s22 }
0x2dd6   :  { %8006 = vrot.lane.b32.xlu1 %v8005_v0, %s8775_s22  ;;  %s10879_s22 = sld [smem:[#allocation43_spill]] }
0x2dd7   :  { %5892 = vrot.lane.b32.xlu0 %v10128_v54, %s8790_s2 }
0x2dda   :  { %8016 = vrot.lane.b32.xlu1 %v8015_v27, %s8786_s13 }
0x2ddb   :  { %8011 = vrot.lane.b32.xlu0 %v8010_v53, %s8786_s13  ;;  %v8186_v53 = vld [vmem:[%s10758_s26 + $0x38] sm:$0xff]   ;;  %s8794_s13 = smov [#allocation15]  }
0x2ddc   :  { %s6713_s24 = sshll.u32 %s8794_s13, 4  ;;  %s6714_s24 = int_to_ptr.vmem [resolvable:$true] %s6713_s24 }
0x2e42   :  { %v5878_v15 = vpop.xlane.xlu1 %5877 }
0x2e46   :  { %v5881_v38 = vpop.xlane.xlu0 %5880  ;;  %v5872_v55 = vpop.xlane.xlu1 %5871 }
0x2e47   :  { %8520 = vrcp.f32 %v5881_v38 }
0x2e48   :  { %8522 = vrcp.f32 %v5872_v55  ;;  %v7090_v55 = vld [vmem:[%s10765_s28 + $0x1] ss:$0 sm:$0xff] }
0x2e49   :  { %8524 = vrcp.f32 %v5878_v15 }
0x2e4a   :  { %v5875_v43 = vpop.xlane.xlu0 %5874  ;;  %v5895_v51 = vpop.permute.xlu1 %5894 }
0x2e4b   :  { %8526 = vrcp.f32 %v5875_v43  ;;  %7787 = vmatprep.subr.bf16.mxu1 %v5895_v51 }
0x2e4c   :  { %7788 = vmatpush3.bf16.msra.mxu1 %v5895_v51 }
0x2e4e   :  { %v5893_v6 = vpop.permute.xlu0 %5892  ;;  %v8002_v35 = vpop.permute.xlu1 %8001 }
0x2e4f   :  { %7789 = vmatprep.subr.bf16.mxu1 %v5893_v6  ;;  %v8004_v24 = vunpack.i.h.bf16 %v8002_v35  ;;  %v8003_v26 = vunpack.i.l.bf16 %v8002_v35 }
0x2e50   :  { %7790 = vmatpush3.bf16.msra.mxu1 %v5893_v6 }
0x2e51   :  { %7795 = vmatprep.subr.bf16.mxu1 %v8186_v53  ;;  %v6002_v52 = vsel %vm10855_vm7, %v10325_v9, %v8004_v24  ;;  %v6001_v37 = vsel %vm10856_vm8, %v10321_v23, %v8003_v26 }
0x2e52   :  { %v8007_v19 = vpop.permute.xlu1 %8006  ;;  %v8012_v25 = vpop.permute.xlu0 %8011 }
0x2e53   :  { %v8009_v18 = vunpack.i.h.bf16 %v8007_v19  ;;  %v8008_v40 = vunpack.i.l.bf16 %v8007_v19  ;;  %v8014_v7 = vunpack.i.h.bf16 %v8012_v25  ;;  %v8013_v42 = vunpack.i.l.bf16 %v8012_v25 }
0x2e54   :  { %v8521_v54 = vpop.eup %8520 }
0x2e55   :  { %v8523_v20 = vpop.eup %8522  ;;  %v5889_v4 = vmul.f32 %v8521_v54, %v8517_v34  ;;  %v6004_v39 = vsel %vm10857_vm9, %v10323_v11, %v8009_v18  ;;  %v6003_v49 = vsel %vm10844_vm1, %v10319_v48, %v8008_v40  ;;  %v6005_v8 = vsel %vm10860_vm11, %v6001_v37, %v8013_v42  ;;  %v8193_v42 = vld [vmem:[%s10774_s1 + $0x60] ss:$8 sps:$4 sm:$0xff]   ;;  %v8202_v37 = vld [vmem:[%s10779_s17 + $0xf8] sm:$0xff]  }
0x2e56   :  { %v8525_v0 = vpop.eup %8524  ;;  %v5886_v58 = vmul.f32 %v8523_v20, %v8515_v47  ;;  %v8017_v12 = vpop.permute.xlu1 %8016  ;;  %v6006_v9 = vsel %vm10861_vm15, %v6002_v52, %v8014_v7  ;;  %v8195_v7 = vld [vmem:[%s10774_s1 + $0x64] ss:$8 sps:$4 sm:$0xff]   ;;  %v8199_v52 = vld [vmem:[%s10774_s1 + $0x40] ss:$8 sps:$4 sm:$0xff]  }
0x2e57   :  { %v5888_v13 = vmul.f32 %v8525_v0, %v8513_v45  ;;  %v8019_v14 = vunpack.i.h.bf16 %v8017_v12  ;;  %v8018_v63 = vunpack.i.l.bf16 %v8017_v12 }
0x2e58   :  { %v8527_v46 = vpop.eup %8526 }
0x2e59   :  { %v5887_v50 = vmul.f32 %v8527_v46, %v8519_v59  ;;  %v5891_v17 = vpack.c.bf16 %v5889_v4, %v5888_v13  ;;  %v6007_v62 = vsel %vm10858_vm2, %v6003_v49, %v8018_v63  ;;  %v6008_v47 = vsel %vm10859_vm10, %v6004_v39, %v8019_v14  ;;  %v8192_v14 = vld [vmem:[%s10774_s1 + $0x74] ss:$8 sps:$4 sm:$0xff]   ;;  %v8190_v63 = vld [vmem:[%s10774_s1 + $0x70] ss:$8 sps:$4 sm:$0xff]  }
0x2e5a   :  { %6269 = vmatprep.subr.bf16.mxu0 %v8192_v14  ;;  %v8203_v39 = vld [vmem:[%s10779_s17 + $0xb8] sm:$0xff]   ;;  %v8204_v49 = vld [vmem:[%s10779_s17 + $0xf0] sm:$0xff]  }
0x2e5b   :  { %v5890_v27 = vpack.c.bf16 %v5887_v50, %v5886_v58  ;;  %6270 = vmatpush1.bf16.msra.mxu0 %v8190_v63 }
0x2e5c   :  { %6271 = vmatprep.subr.bf16.mxu0 %v8195_v7 }
0x2e5d   :  { %7791 = vmatprep.mubr.msk.bf16.mxu1 %vm10853_vm5, %v5890_v27 }
0x2e5e   :  { %7792 = vmatmul.mubr.msk.bf16.vlgmr.msra.gmra.mxu1 %vm10854_vm6, %v5891_v17 }
0x2e5f   :  { %7796 = vmatpush3.bf16.msra.mxu1 %v8186_v53  ;;  %6272 = vmatpush1.bf16.msra.mxu0 %v8193_v42 }
0x2e60   :  { %7797 = vmatprep.subr.bf16.mxu1 %v8187_v28 }
0x2e63   :  { %7798 = vmatpush3.bf16.msra.mxu1 %v8187_v28 }
0x2e64   :  { %7799 = vmatprep.subr.bf16.mxu1 %v8188_v61 }
0x2e67   :  { %7800 = vmatpush3.bf16.msra.mxu1 %v8188_v61 }
0x2e68   :  { %7801 = vmatprep.subr.bf16.mxu1 %v8189_v60 }
0x2e6b   :  { %7802 = vmatpush3.bf16.msra.mxu1 %v8189_v60 }
0x2e6c   :  { %7429 = vmatprep.subr.bf16.mxu1 %v8202_v37 }
0x2f1e   :  { %v7793_v57 = vpop.f32.mrf.mxu1 }
0x2f20   :  { %v5938_v56 = vpop.f32.mrf.mxu1 }
0x2f22   :  { %v7794_v5 = vpop.f32.mrf.mxu1 }
0x2f23   :  { %v8025_v22 = vpack.i.bf16 %v7794_v5, %v7793_v57 }
0x2f24   :  { %v5941_v29 = vpop.f32.mrf.mxu1 }
0x2f25   :  { %v8020_v3 = vpack.i.bf16 %v5941_v29, %v5938_v56  ;;  %8026 = vrot.lane.b32.xlu1 %v8025_v22, %s8785_s9 }
0x2f27   :  { %8021 = vrot.lane.b32.xlu0 %v8020_v3, %s8785_s9  ;;  %s6703_s9 = sshll.u32 %s8793_s5, 4  ;;  %s6704_s9 = int_to_ptr.vmem [resolvable:$true] %s6703_s9 }
0x2f28   :  { %s8684_s0 = scalar_lea.vmem %s6704_s9, 64  ;;  %p8689_p8 = scmp.lt.s32.totalorder %s6704_s9, %s6704_s9 }
0x2f29   :  { %p8685_p7 = scmp.ne.s32.totalorder %s6704_s9, %s8684_s0  ;;  %p8690_p9 = scmp.lt.s32.totalorder %s8684_s0, %s8684_s0 }
0x2f2b   :  { %p8691_p10 = por %p8690_p9, %p8689_p8 }
0x2f2d   :  { %p8692_p11 = pnand %p8691_p10, %p8685_p7 }
0x2f97   :  { %v8027_v2 = vpop.permute.xlu1 %8026 }
0x2f98   :  { %v8029_v36 = vunpack.i.h.bf16 %v8027_v2  ;;  %v8028_v31 = vunpack.i.l.bf16 %v8027_v2  ;;  %v8198_v2 = vld [vmem:[%s10774_s1 + $0x54] ss:$8 sps:$4 sm:$0xff]  }
0x2f99   :  { %v8022_v45 = vpop.permute.xlu0 %8021  ;;  %6273 = vmatprep.subr.bf16.mxu0 %v8198_v2 }
0x2f9a   :  { %v8024_v34 = vunpack.i.h.bf16 %v8022_v45  ;;  %v8023_v1 = vunpack.i.l.bf16 %v8022_v45  ;;  %v6011_v23 = vsel %vm1286_vm0, %v6007_v62, %v8028_v31  ;;  %v6012_v59 = vsel %vm1286_vm0, %v6008_v47, %v8029_v36  ;;  %v8196_v36 = vld [vmem:[%s10774_s1 + $0x50] ss:$8 sps:$4 sm:$0xff]   ;;  %v8201_v31 = vld [vmem:[%s10774_s1 + $0x44] ss:$8 sps:$4 sm:$0xff]  }
0x2f9b   :  { %v6023_v15 = vpack.c.bf16 %v6012_v59, %v6011_v23  ;;  %6274 = vmatpush1.bf16.msra.mxu0 %v8196_v36  ;;  %v8205_v45 = vld [vmem:[%s10779_s17 + $0xb0] sm:$0xff]   ;;  %v8206_v62 = vld [vmem:[%s10779_s17 + $0xe8] sm:$0xff]  }
0x2f9c   :  { %v6009_v11 = vsel %vm1286_vm0, %v6005_v8, %v8023_v1  ;;  %v6010_v48 = vsel %vm1286_vm0, %v6006_v9, %v8024_v34  ;;  %vm10864_vm0 = vmmov %vm10862_vm12  ;;  %6275 = vmatprep.subr.bf16.mxu0 %v8201_v31  ;;  %v8207_v47 = vld [vmem:[%s10779_s17 + $0xa8] sm:$0xff]   ;;  %v8208_v34 = vld [vmem:[%s10779_s17 + $0xe0] sm:$0xff]  }
0x2f9d   :  { %v6022_v10 = vpack.c.bf16 %v6010_v48, %v6009_v11  ;;  %vm10865_vm14 = vmmov %vm10864_vm0  ;;  %v8209_v1 = vld [vmem:[%s10779_s17 + $0xa0] sm:$0xff]   ;;  %v8210_v8 = vld [vmem:[%s10779_s17 + $0xd8] sm:$0xff]  }
0x2f9e   :  { %vm10866_vm3 = vmmov %vm10864_vm0  ;;  %v8211_v9 = vld [vmem:[%s10779_s17 + $0x98] sm:$0xff]  }
0x2f9f   :  { %7803 = vmatprep.mubr.msk.bf16.mxu1 %vm10862_vm12, %v6022_v10  ;;  %vm10867_vm4 = vmmov %vm10864_vm0  ;;  %6276 = vmatpush1.bf16.msra.mxu0 %v8199_v52 }
0x2fa0   :  { %7804 = vmatmul.mubr.msk.bf16.vlgmr.msra.gmra.mxu1 %vm10863_vm13, %v6023_v15  ;;  %vm10868_vm5 = vmmov %vm10864_vm0 }
0x2fa1   :  { %vm10869_vm6 = vmmov %vm10864_vm0  ;;  %7430 = vmatpush3.bf16.msra.mxu1 %v8203_v39 }
0x2fa2   :  { %vm10870_vm7 = vmmov %vm10864_vm0  ;;  %7431 = vmatprep.subr.bf16.mxu1 %v8204_v49 }
0x2fa3   :  { %vm10871_vm8 = vmmov %vm10864_vm0 }
0x2fa4   :  { %vm10872_vm9 = vmmov %vm10864_vm0 }
0x2fa5   :  { %7432 = vmatpush3.bf16.msra.mxu1 %v8205_v45  ;;  %vm10873_vm1 = vmmov %vm10864_vm0 }
0x2fa6   :  { %7433 = vmatprep.subr.bf16.mxu1 %v8206_v62  ;;  %vm10874_vm2 = vmmov %vm10864_vm0 }
0x2fa7   :  { %vm10875_vm10 = vmmov %vm10864_vm0 }
0x2fa8   :  { %vm10876_vm11 = vmmov %vm10864_vm0 }
0x2fa9   :  { %7434 = vmatpush3.bf16.msra.mxu1 %v8207_v47  ;;  %vm10877_vm15 = vmmov %vm10864_vm0 }
0x2faa   :  { %7435 = vmatprep.subr.bf16.mxu1 %v8208_v34  ;;  %vm10878_vm12 = vmmov %vm10864_vm0 }
0x2fab   :  { %vm10880_vm13 = vmmov %vm10864_vm0 }
0x2fad   :  { %7436 = vmatpush3.bf16.msra.mxu1 %v8209_v1 }
0x2fae   :  { %7437 = vmatprep.subr.bf16.mxu1 %v8210_v8 }
0x2fb1   :  { %7438 = vmatpush3.bf16.msra.mxu1 %v8211_v9 }
0x3060   :  { %v7805_v38 = vpop.f32.mrf.mxu1 }
0x3061   :  { %v6105_v51 = vadd.f32 %v7805_v38, %v7090_v55 }
0x3062   :  { %v6096_v43 = vpop.f32.mrf.mxu1 }
0x3063   :  { %v6097_v6 = vadd.f32 %v7090_v55, %v6096_v43  ;;  %v6113_v46 = vadd.f32 %v6105_v51, %v10116_v33 }
0x3064   :  { %v7806_v54 = vpop.f32.mrf.mxu1 }
0x3065   :  { %v6111_v20 = vadd.f32 %v6097_v6, %v10108_v21  ;;  %v6108_v4 = vadd.f32 %v7806_v54, %v7090_v55  ;;  %v6125_v53 = vsel %vm10866_vm3, %v6113_v46, 0.0  ;;  %vm10882_vm3 = vmmov %vm10864_vm0 }
0x3066   :  { %v6099_v0 = vpop.f32.mrf.mxu1 }
0x3067   :  { %v6100_v58 = vadd.f32 %v7090_v55, %v6099_v0  ;;  %v6119_v50 = vsel %vm10864_vm0, %v6111_v20, 0.0  ;;  %v6114_v27 = vadd.f32 %v6108_v4, %v10118_v41 }
0x3068   :  { %6120 = vadd.xlane.f32.xlu0 %v6119_v50 }
0x3069   :  { %v6112_v13 = vadd.f32 %v6100_v58, %v10110_v44  ;;  %v6128_v21 = vsel %vm10867_vm4, %v6114_v27, 0.0  ;;  %vm10883_vm4 = vmmov %vm10864_vm0 }
0x306b   :  { %v6122_v17 = vsel %vm10865_vm14, %v6112_v13, 0.0  ;;  %vm10881_vm14 = vmmov %vm10864_vm0 }
0x306c   :  { %6123 = vadd.xlane.f32.xlu1 %v6122_v17  ;;  %6126 = vadd.xlane.f32.xlu0 %v6125_v53 }
0x3070   :  { %6129 = vadd.xlane.f32.xlu0 %v6128_v21 }
0x30f1   :  { %v6121_v28 = vpop.xlane.xlu0 %6120 }
0x30f2   :  { %v6131_v33 = vmul.f32 0.015625, %v6121_v28 }
0x30f4   :  { %v10382_v61 = vsub.f32 %v6111_v20, %v6131_v33 }
0x30f5   :  { %v6124_v60 = vpop.xlane.xlu1 %6123  ;;  %v6127_v57 = vpop.xlane.xlu0 %6126 }
0x30f6   :  { %v6132_v56 = vmul.f32 0.015625, %v6124_v60  ;;  %v6133_v5 = vmul.f32 0.015625, %v6127_v57  ;;  %v6139_v44 = vmul.f32 %v10382_v61, %v10382_v61 }
0x30f8   :  { %v10386_v41 = vsub.f32 %v6112_v13, %v6132_v56  ;;  %v10388_v22 = vsub.f32 %v6113_v46, %v6133_v5  ;;  %v6143_v29 = vsel %vm10868_vm5, %v6139_v44, 0.0  ;;  %v7097_v46 = vld [vmem:[#allocation5 + $0x1] ss:$0 sm:$0xff] }
0x30f9   :  { %6144 = vadd.xlane.f32.xlu1 %v6143_v29  ;;  %v6130_v3 = vpop.xlane.xlu0 %6129  ;;  %v8213_v29 = vld [vmem:[%s10779_s17 + $0x90] sm:$0xff]  }
0x30fa   :  { %v6134_v35 = vmul.f32 0.015625, %v6130_v3  ;;  %v6140_v19 = vmul.f32 %v10386_v41, %v10386_v41  ;;  %v6141_v12 = vmul.f32 %v10388_v22, %v10388_v22  ;;  %v8214_v3 = vld [vmem:[%s10779_s17 + $0xc8] sm:$0xff]  }
0x30fc   :  { %v10395_v25 = vsub.f32 %v6114_v27, %v6134_v35  ;;  %v6146_v24 = vsel %vm10869_vm6, %v6140_v19, 0.0  ;;  %v6149_v26 = vsel %vm10870_vm7, %v6141_v12, 0.0  ;;  %v7098_v27 = vld [vmem:[#allocation7 + $0x1] ss:$0 sm:$0xff]  ;;  %v8215_v35 = vld [vmem:[%s10779_s17 + $0x88] sm:$0xff]  }
0x30fd   :  { %6147 = vadd.xlane.f32.xlu0 %v6146_v24  ;;  %6150 = vadd.xlane.f32.xlu1 %v6149_v26  ;;  %v8216_v19 = vld [vmem:[%s10779_s17 + $0xc0] sm:$0xff]  }
0x30fe   :  { %v6142_v18 = vmul.f32 %v10395_v25, %v10395_v25  ;;  %v7107_v12 = vld [vmem:[%s10781_s4 + $0x2] sm:$0x3] }
0x30ff   :  { %v6212_v24 = vrot.slane %v7107_v12, %v9053_v32  ;;  %v6208_v26 = vrot.slane %v7107_v12, %v9050_v30 }
0x3100   :  { %v6152_v40 = vsel %vm10871_vm8, %v6142_v18, 0.0 }
0x3101   :  { %6153 = vadd.xlane.f32.xlu0 %v6152_v40 }
0x3182   :  { %v6145_v23 = vpop.xlane.xlu1 %6144 }
0x3183   :  { %v6155_v59 = vmul.f32 0.015625, %v6145_v23 }
0x3185   :  { %v6159_v11 = vadd.f32 1e-05, %v6155_v59 }
0x3186   :  { %v6151_v48 = vpop.xlane.xlu1 %6150  ;;  %v6148_v10 = vpop.xlane.xlu0 %6147 }
0x3187   :  { %8528 = vrsqrt.f32 %v6159_v11  ;;  %v6157_v15 = vmul.f32 0.015625, %v6151_v48  ;;  %v6156_v38 = vmul.f32 0.015625, %v6148_v10 }
0x3189   :  { %v6160_v55 = vadd.f32 1e-05, %v6156_v38  ;;  %v6161_v43 = vadd.f32 1e-05, %v6157_v15  ;;  %v7150_v38 = vld [vmem:[#allocation8 + $0x1] ss:$0 sm:$0xff] }
0x318a   :  { %v6154_v51 = vpop.xlane.xlu0 %6153 }
0x318b   :  { %v6158_v6 = vmul.f32 0.015625, %v6154_v51  ;;  %8530 = vrsqrt.f32 %v6160_v55 }
0x318c   :  { %8532 = vrsqrt.f32 %v6161_v43 }
0x318d   :  { %v6162_v54 = vadd.f32 1e-05, %v6158_v6 }
0x318f   :  { %8534 = vrsqrt.f32 %v6162_v54 }
0x3194   :  { %v8529_v20 = vpop.eup %8528 }
0x3195   :  { %v6167_v0 = vmul.f32 %v8529_v20, %v10382_v61 }
0x3197   :  { %v6177_v58 = vmul.f32 %v7097_v46, %v6167_v0 }
0x3198   :  { %v8531_v4 = vpop.eup %8530 }
0x3199   :  { %v6168_v50 = vmul.f32 %v8531_v4, %v10386_v41  ;;  %v8533_v13 = vpop.eup %8532  ;;  %v10424_v33 = vadd.f32 %v7098_v27, %v6177_v58 }
0x319a   :  { %v6169_v28 = vmul.f32 %v8533_v13, %v10388_v22  ;;  %v8212_v22 = vld [vmem:[%s10779_s17 + $0xd0] sm:$0xff]  }
0x319b   :  { %v6178_v53 = vmul.f32 %v7097_v46, %v6168_v50  ;;  %7439 = vmatprep.subr.bf16.mxu1 %v8212_v22 }
0x319c   :  { %v8535_v17 = vpop.eup %8534  ;;  %v6179_v56 = vmul.f32 %v7097_v46, %v6169_v28  ;;  %7440 = vmatpush3.bf16.msra.mxu1 %v8213_v29 }
0x319d   :  { %v6170_v21 = vmul.f32 %v8535_v17, %v10395_v25  ;;  %v10426_v61 = vadd.f32 %v7098_v27, %v6178_v53  ;;  %7441 = vmatprep.subr.bf16.mxu1 %v8214_v3 }
0x319e   :  { %v10434_v44 = vadd.f32 %v7098_v27, %v6179_v56 }
0x319f   :  { %v6200_v60 = vpack.c.bf16 %v10426_v61, %v10424_v33  ;;  %v6180_v57 = vmul.f32 %v7097_v46, %v6170_v21 }
0x31a0   :  { %7442 = vmatpush3.bf16.msra.mxu1 %v8215_v35 }
0x31a1   :  { %7116 = vmatmul.mubr.msk.bf16.vlgmr.msra.gmra.mxu0 %vm10872_vm9, %v6200_v60  ;;  %v10432_v5 = vadd.f32 %v7098_v27, %v6180_v57  ;;  %7443 = vmatprep.subr.bf16.mxu1 %v8216_v19 }
0x31a2   :  { %6303 = vmatprep.mubr.bf16.mxu0 %v8783_v16  ;;  %v8217_v16 = vld [vmem:[%s10779_s17 + $0x80] sm:$0xff]  }
0x31a3   :  { %v6201_v41 = vpack.c.bf16 %v10432_v5, %v10434_v44 }
0x31a4   :  { %7444 = vmatpush3.bf16.msra.mxu1 %v8217_v16 }
0x31a9   :  { %7117 = vmatmul.mubr.msk.bf16.gmra.mxu0 %vm10873_vm1, %v6201_v41 }
0x3261   :  { %v6295_v25 = vpop.f32.mrf.mxu0 }
0x3262   :  { %v6296_v7 = vadd.f32 %v6295_v25, %v6208_v26 }
0x3263   :  { %v6297_v18 = vpop.f32.mrf.mxu0 }
0x3264   :  { %v6298_v14 = vadd.f32 %v6297_v18, %v6212_v24  ;;  %v6314_v39 = vmax.f32 %v6296_v7, 0.0 }
0x3265   :  { %v6299_v40 = vpop.f32.mrf.mxu0 }
0x3266   :  { %v6300_v63 = vadd.f32 %v6299_v40, %v6208_v26  ;;  %v6315_v52 = vmax.f32 %v6298_v14, 0.0 }
0x3267   :  { %v6301_v42 = vpop.f32.mrf.mxu0 }
0x3268   :  { %v6302_v2 = vadd.f32 %v6301_v42, %v6212_v24  ;;  %v6316_v36 = vmax.f32 %v6300_v63, 0.0 }
0x3269   :  { %v6305_v31 = vpop.f32.mrf.mxu0 }
0x326a   :  { %v6317_v37 = vmax.f32 %v6302_v2, 0.0  ;;  %v6355_v62 = vpack.c.bf16 %v6316_v36, %v6314_v39  ;;  %v6306_v30 = vadd.f32 %v6305_v31, %v6208_v26  ;;  %v8218_v31 = vld [vmem:[%s10879_s22 + $0x18] sm:$0xff]   ;;  %v8221_v39 = vld [vmem:[%s10879_s22] sm:$0xff]  }
0x326b   :  { %v6307_v49 = vpop.f32.mrf.mxu0  ;;  %7807 = vmatprep.subr.bf16.mxu0 %v8218_v31 }
0x326c   :  { %v6356_v45 = vpack.c.bf16 %v6317_v37, %v6315_v52  ;;  %v6308_v34 = vadd.f32 %v6307_v49, %v6212_v24  ;;  %v6318_v11 = vmax.f32 %v6306_v30, 0.0  ;;  %7808 = vmatpush3.bf16.msra.mxu0 %v8218_v31  ;;  %v8219_v52 = vld [vmem:[%s10879_s22 + $0x10] sm:$0xff]   ;;  %v8220_v37 = vld [vmem:[%s10879_s22 + $0x8] sm:$0xff]  }
0x326d   :  { %v6309_v47 = vpop.f32.mrf.mxu0  ;;  %7809 = vmatprep.subr.bf16.mxu0 %v8219_v52 }
0x326e   :  { %v6310_v32 = vadd.f32 %v6309_v47, %v6208_v26  ;;  %6495 = vmatprep.mubr.bf16.mxu1 %v6356_v45  ;;  %v6319_v23 = vmax.f32 %v6308_v34, 0.0 }
0x326f   :  { %v6311_v1 = vpop.f32.mrf.mxu0  ;;  %6496 = vmatmul.mubr.bf16.vlgmr.msra.gmra.mxu1 %v6355_v62 }
0x3270   :  { %v6312_v8 = vadd.f32 %v6311_v1, %v6212_v24  ;;  %v6320_v9 = vmax.f32 %v6310_v32, 0.0  ;;  %7810 = vmatpush3.bf16.msra.mxu0 %v8219_v52 }
0x3271   :  { %7811 = vmatprep.subr.bf16.mxu0 %v8220_v37 }
0x3272   :  { %v6321_v59 = vmax.f32 %v6312_v8, 0.0  ;;  %v6357_v10 = vpack.c.bf16 %v6320_v9, %v6318_v11 }
0x3274   :  { %v6358_v48 = vpack.c.bf16 %v6321_v59, %v6319_v23  ;;  %7812 = vmatpush3.bf16.msra.mxu0 %v8220_v37 }
0x3275   :  { %7813 = vmatprep.subr.bf16.mxu0 %v8221_v39 }
0x3276   :  { %6503 = vmatprep.mubr.bf16.mxu1 %v6358_v48 }
0x3277   :  { %6504 = vmatmul.mubr.bf16.gmra.mxu1 %v6357_v10  ;;  %v7167_v10 = vld [vmem:[#allocation10 + $0x1] ss:$0 sm:$0xff] }
0x3278   :  { %7814 = vmatpush3.bf16.msra.mxu0 %v8221_v39 }
0x332f   :  { %v7445_v15 = vpop.f32.mrf.mxu1 }
0x3331   :  { %v7446_v55 = vpop.f32.mrf.mxu1 }
0x3332   :  { %v7447_v43 = vadd.f32 %v7446_v55, %v7445_v15 }
0x3333   :  { %v7448_v51 = vpop.f32.mrf.mxu1 }
0x3334   :  { %v6498_v6 = vadd.f32 %v7447_v43, %v7150_v38  ;;  %v7168_v43 = vld [vmem:[#allocation11 + $0x1] ss:$0 sm:$0xff] }
0x3335   :  { %v7449_v54 = vpop.f32.mrf.mxu1 }
0x3336   :  { %v7450_v20 = vadd.f32 %v7449_v54, %v7448_v51  ;;  %v6512_v0 = vadd.f32 %v6498_v6, %v10424_v33 }
0x3337   :  { %v7451_v46 = vpop.f32.mrf.mxu1 }
0x3338   :  { %v6501_v4 = vadd.f32 %v7450_v20, %v7150_v38  ;;  %v6520_v58 = vsel %vm10874_vm2, %v6512_v0, 0.0 }
0x3339   :  { %6521 = vadd.xlane.f32.xlu1 %v6520_v58  ;;  %v7452_v50 = vpop.f32.mrf.mxu1 }
0x333a   :  { %v7453_v13 = vadd.f32 %v7452_v50, %v7451_v46  ;;  %v6513_v27 = vadd.f32 %v6501_v4, %v10426_v61 }
0x333b   :  { %v7454_v17 = vpop.f32.mrf.mxu1 }
0x333c   :  { %v6506_v53 = vadd.f32 %v7453_v13, %v7150_v38  ;;  %v6523_v21 = vsel %vm10875_vm10, %v6513_v27, 0.0 }
0x333d   :  { %6524 = vadd.xlane.f32.xlu0 %v6523_v21  ;;  %v7455_v28 = vpop.f32.mrf.mxu1 }
0x333e   :  { %v7456_v60 = vadd.f32 %v7455_v28, %v7454_v17  ;;  %v6514_v57 = vadd.f32 %v6506_v53, %v10434_v44 }
0x3340   :  { %v6509_v56 = vadd.f32 %v7456_v60, %v7150_v38  ;;  %v6526_v33 = vsel %vm10876_vm11, %v6514_v57, 0.0 }
0x3341   :  { %6527 = vadd.xlane.f32.xlu1 %v6526_v33 }
0x3342   :  { %v6515_v41 = vadd.f32 %v6509_v56, %v10432_v5 }
0x3344   :  { %v6529_v22 = vsel %vm10877_vm15, %v6515_v41, 0.0 }
0x3345   :  { %6530 = vadd.xlane.f32.xlu0 %v6529_v22 }
0x33c2   :  { %v6522_v29 = vpop.xlane.xlu1 %6521 }
0x33c3   :  { %v6532_v61 = vmul.f32 0.015625, %v6522_v29 }
0x33c5   :  { %v6536_v3 = vsub.f32 %v6512_v0, %v6532_v61 }
0x33c6   :  { %v6525_v35 = vpop.xlane.xlu0 %6524 }
0x33c7   :  { %v6533_v19 = vmul.f32 0.015625, %v6525_v35  ;;  %v6540_v16 = vmul.f32 %v6536_v3, %v6536_v3 }
0x33c9   :  { %v6537_v12 = vsub.f32 %v6513_v27, %v6533_v19  ;;  %v6544_v25 = vsel %vm10878_vm12, %v6540_v16, 0.0 }
0x33ca   :  { %6545 = vadd.xlane.f32.xlu1 %v6544_v25  ;;  %v6528_v44 = vpop.xlane.xlu1 %6527 }
0x33cb   :  { %v6534_v24 = vmul.f32 0.015625, %v6528_v44  ;;  %v6541_v26 = vmul.f32 %v6537_v12, %v6537_v12 }
0x33cd   :  { %v6538_v18 = vsub.f32 %v6514_v57, %v6534_v24  ;;  %v6547_v5 = vsel %vm10880_vm13, %v6541_v26, 0.0 }
0x33ce   :  { %6548 = vadd.xlane.f32.xlu0 %v6547_v5  ;;  %v6531_v40 = vpop.xlane.xlu0 %6530 }
0x33cf   :  { %v6535_v14 = vmul.f32 0.015625, %v6531_v40  ;;  %v6542_v63 = vmul.f32 %v6538_v18, %v6538_v18 }
0x33d1   :  { %v6539_v7 = vsub.f32 %v6515_v41, %v6535_v14  ;;  %v6550_v42 = vsel %vm10864_vm0, %v6542_v63, 0.0 }
0x33d2   :  { %6551 = vadd.xlane.f32.xlu1 %v6550_v42 }
0x33d3   :  { %v6543_v2 = vmul.f32 %v6539_v7, %v6539_v7 }
0x33d5   :  { %v6553_v36 = vsel %vm10881_vm14, %v6543_v2, 0.0 }
0x33d6   :  { %6554 = vadd.xlane.f32.xlu0 %v6553_v36 }
0x3453   :  { %v6546_v49 = vpop.xlane.xlu1 %6545 }
0x3454   :  { %v6556_v45 = vmul.f32 0.015625, %v6546_v49 }
0x3456   :  { %v6560_v62 = vadd.f32 1e-05, %v6556_v45 }
0x3457   :  { %v6549_v47 = vpop.xlane.xlu0 %6548 }
0x3458   :  { %8536 = vrsqrt.f32 %v6560_v62  ;;  %v6557_v34 = vmul.f32 0.015625, %v6549_v47 }
0x345a   :  { %v6561_v32 = vadd.f32 1e-05, %v6557_v34 }
0x345b   :  { %v6552_v30 = vpop.xlane.xlu1 %6551 }
0x345c   :  { %8538 = vrsqrt.f32 %v6561_v32  ;;  %v6558_v1 = vmul.f32 0.015625, %v6552_v30 }
0x345e   :  { %v6562_v8 = vadd.f32 1e-05, %v6558_v1 }
0x345f   :  { %v6555_v9 = vpop.xlane.xlu0 %6554 }
0x3460   :  { %8540 = vrsqrt.f32 %v6562_v8  ;;  %v6559_v23 = vmul.f32 0.015625, %v6555_v9 }
0x3462   :  { %v6563_v59 = vadd.f32 1e-05, %v6559_v23 }
0x3464   :  { %8542 = vrsqrt.f32 %v6563_v59 }
0x3465   :  { %v8537_v11 = vpop.eup %8536 }
0x3466   :  { %v6568_v48 = vmul.f32 %v8537_v11, %v6536_v3 }
0x3468   :  { %v6578_v55 = vmul.f32 %v7167_v10, %v6568_v48 }
0x3469   :  { %v8539_v15 = vpop.eup %8538 }
0x346a   :  { %v6569_v38 = vmul.f32 %v8539_v15, %v6537_v12  ;;  %v6588_v20 = vadd.f32 %v7168_v43, %v6578_v55 }
0x346c   :  { %v6579_v51 = vmul.f32 %v7167_v10, %v6569_v38 }
0x346d   :  { %v8541_v6 = vpop.eup %8540 }
0x346e   :  { %v6570_v54 = vmul.f32 %v8541_v6, %v6538_v18  ;;  %v6589_v0 = vadd.f32 %v7168_v43, %v6579_v51 }
0x3470   :  { %v6600_v46 = vpack.c.bf16 %v6589_v0, %v6588_v20  ;;  %v6580_v50 = vmul.f32 %v7167_v10, %v6570_v54 }
0x3471   :  { %v8543_v4 = vpop.eup %8542 }
0x3472   :  { %v6571_v58 = vmul.f32 %v8543_v4, %v6539_v7  ;;  %7815 = vmatprep.mubr.msk.bf16.mxu0 %vm10882_vm3, %v6600_v46  ;;  %v6590_v27 = vadd.f32 %v7168_v43, %v6580_v50 }
0x3474   :  { %v6581_v13 = vmul.f32 %v7167_v10, %v6571_v58 }
0x3476   :  { %v6591_v17 = vadd.f32 %v7168_v43, %v6581_v13 }
0x3478   :  { %v6601_v53 = vpack.c.bf16 %v6591_v17, %v6590_v27 }
0x347a   :  { %7816 = vmatmul.mubr.msk.bf16.vlgmr.msra.gmra.mxu0 %vm10883_vm4, %v6601_v53 }
0x347b   :  { %8695 = shalt.err (!%p8692_p11)
}
0x347c   :  { %6706 = dma.vmem_to_hbm [thread:$0]  %s6704_s9, 64, %s8988_s30, [#allocation4]  }
0x347d   :  { %s8704_s2 = scalar_lea.vmem %s6714_s24, 64  ;;  %p8709_p13 = scmp.lt.s32.totalorder %s6714_s24, %s6714_s24 }
0x347e   :  { %p8705_p12 = scmp.ne.s32.totalorder %s6714_s24, %s8704_s2  ;;  %p8710_p0 = scmp.lt.s32.totalorder %s8704_s2, %s8704_s2 }
0x3480   :  { %p8711_p1 = por %p8710_p0, %p8709_p13 }
0x3482   :  { %p8712_p2 = pnand %p8711_p1, %p8705_p12 }
0x3484   :  { %8715 = shalt.err (!%p8712_p2)
}
0x3485   :  { %6716 = dma.vmem_to_hbm [thread:$0]  %s6714_s24, 64, %s8993_s14, [#allocation16]   ;;  %v7169_v21 = vld [vmem:[%s8978_s8] ss:$0 sm:$0xff]  ;;  %vm10884_vm5 = vcmask 261120  }
0x3486   :  { %vm10885_vm6 = vmmov %vm10884_vm5 }
0x3487   :  { %vm10886_vm7 = vmmov %vm10884_vm5 }
0x3488   :  { %vm10887_vm8 = vmmov %vm10884_vm5 }
0x353a   :  { %v7817_v28 = vpop.f32.mrf.mxu0 }
0x353b   :  { %v6682_v60 = vadd.f32 %v7817_v28, %v7169_v21 }
0x353c   :  { %v6673_v57 = vpop.f32.mrf.mxu0 }
0x353d   :  { %6690 = vst.msk [vmem:[%s8983_s12 + $0x10] sm:$0xff] %vm10884_vm5, %v6682_v60  ;;  %v6674_v56 = vadd.f32 %v7169_v21, %v6673_v57 }
0x353e   :  { %v7818_v33 = vpop.f32.mrf.mxu0 }
0x353f   :  { %6688 = vst.msk [vmem:[%s8983_s12] sm:$0xff] %vm10885_vm6, %v6674_v56  ;;  %v6685_v41 = vadd.f32 %v7818_v33, %v7169_v21 }
0x3540   :  { %v6676_v22 = vpop.f32.mrf.mxu0 }
0x3541   :  { %6691 = vst.msk [vmem:[%s8983_s12 + $0x18] sm:$0xff] %vm10886_vm7, %v6685_v41  ;;  %v6677_v29 = vadd.f32 %v7169_v21, %v6676_v22 }
0x3543   :  { %6689 = vst.msk [vmem:[%s8983_s12 + $0x8] sm:$0xff] %vm10887_vm8, %v6677_v29 }
0x3544   :  { %8732 = dma.done.wait [#allocation4], 64  }
0x3545   :  { %8733 = vsyncadd [#allocation4], 4294967232 }
0x3546   :  { %8734 = dma.done.wait [#allocation16], 64  }
0x3547   :  { %8735 = vsyncadd [#allocation16], 4294967232 }
0x3548   :  { %6725 = vsyncpa [#allocation3], 1 }
0x3549   :  { %6726 = vsyncpa [#allocation6], 1 }
0x354a   :  { %6727 = vsyncpa [#allocation9], 1 }
0x354b   :  { %6728 = vsyncpa [#allocation12], 1 }
0x354c   :  { %6729 = vsyncpa [#allocation4], 1 }
0x354d   :  { %6730 = vsyncpa [#allocation16], 1 }

</bundles_post_ra>
